<compile_context>
chip_gen: v6e
topology: v6e:2x2x1
jax: 0.10.0
libtpu: 0.0.40
codegen_flags: <defaults>
</compile_context>

<pallas_src>
import functools

import numpy as np
import jax
import jax.numpy as jnp
from jax.experimental import pallas as pl
from jax.experimental.pallas import tpu as pltpu


def _round_up(x, m):
    return ((x + m - 1) // m) * m


# Explicit scoped-VMEM budget (v5e's default is 16 MiB; v6e/v7x default 32 MiB).
_VMEM_LIMIT = 64 * 1024 * 1024


# ----------------------------------------------------------------------------
# Kernel 1: fused 3x3 "project" conv (+ folded BN + ReLU) with the head 1x1
# conv folded into the epilogue.  Grid = (batch, Cin-chunk).
#   x_ref : (H+2, W+2, tc)      bf16   padded input slab (read once)
#   w_ref : (3, tc, 3*coutp)    bf16   [dh, cin, dw*coutp + cout]  (BN folded)
#   bp_ref: (1, coutp)          f32    project BN bias
#   wh_ref: (coutp, nhp)        bf16   head 1x1 weight
#   bh_ref: (1, nhp)            f32    head bias
#   o_ref : (H, W, nhp)         f32    final head output
#   acc_ref: (H, W, coutp)      f32    project accumulator across Cin chunks
# ----------------------------------------------------------------------------
def _conv3x3_head_kernel(x_ref, w_ref, bp_ref, wh_ref, bh_ref, o_ref, acc_ref,
                         *, out_h, out_w, coutp):
    k = pl.program_id(1)
    is_first = k == 0
    is_last = k == pl.num_programs(1) - 1

    def row_body(h, carry):
        # 3 matmuls per output row (one per dh); each produces all 3 dw taps at
        # once thanks to the dw-stacked weight -> better MXU N-fill, 3 dots not 9.
        acc_row = None
        for dh in range(3):
            row = x_ref[h + dh]                                   # (W+2, tc) bf16
            z = jnp.dot(row, w_ref[dh],
                        preferred_element_type=jnp.float32)       # (W+2, 3*coutp)
            for dw in range(3):
                term = z[dw:dw + out_w, dw * coutp:(dw + 1) * coutp]
                acc_row = term if acc_row is None else acc_row + term

        @pl.when(is_first)
        def _():
            acc_ref[h] = acc_row                      # assign, no zero-fill pass

        @pl.when(jnp.logical_not(is_first))
        def _():
            acc_ref[h] = acc_ref[h] + acc_row

        @pl.when(is_last)
        def _():
            # project epilogue (+BN bias, ReLU) fused with the head 1x1 conv.
            y = jnp.maximum(acc_ref[h] + bp_ref[...], 0.0)        # (W, coutp) f32
            o = jnp.dot(y.astype(jnp.bfloat16), wh_ref[...],
                        preferred_element_type=jnp.float32) + bh_ref[...]
            o_ref[h] = o.astype(o_ref.dtype)

        return carry

    jax.lax.fori_loop(0, out_h, row_body, 0, unroll=out_h <= 32)


_MAX_CIN_BLOCK = 1024  # above this, the project conv chunks Cin by 512


def pallas_project3x3_head(y1, w3x3, scale, bias, w_head, b_head):
    """Fused: 3x3 conv (pad=1, no bias) + folded BN + ReLU, then head 1x1 conv.

    y1:     (N, H, W, C) bf16 (concat of the six pyramid branches)
    w3x3:   (3, 3, C, inter) f32;  w_head: (inter, nclass) f32
    Returns (N, H, W, nclass) f32.
    """
    N, H, W, C = y1.shape
    inter = w3x3.shape[-1]
    nclass = w_head.shape[-1]

    coutp = _round_up(inter, 128)        # lane-dense project channels
    nhp = _round_up(nclass, 128)         # lane-dense head output
    if C <= _MAX_CIN_BLOCK:
        tc, cp = C, C                    # single Cin chunk, no channel padding
    else:
        tc = 512
        cp = _round_up(C, tc)
    kc = cp // tc

    # Fold BN scale into the 3x3 weights; reorganize to (dh, Cin, dw*coutp).
    wf = w3x3.astype(jnp.float32) * scale.reshape(1, 1, 1, inter)
    w_r = jnp.transpose(wf, (0, 2, 1, 3))                        # (3, C, 3, inter)
    w_r = jnp.pad(w_r, ((0, 0), (0, cp - C), (0, 0), (0, coutp - inter)))
    w_r = w_r.reshape(3, cp, 3 * coutp).astype(jnp.bfloat16)

    bp = jnp.pad(bias.astype(jnp.float32), (0, coutp - inter)).reshape(1, coutp)
    wh = jnp.pad(w_head.astype(jnp.float32),
                 ((0, coutp - inter), (0, nhp - nclass))).astype(jnp.bfloat16)
    bh = jnp.pad(b_head.astype(jnp.float32), (0, nhp - nclass)).reshape(1, nhp)

    # One-pixel zero border (cheap); the kernel then reads the input exactly once.
    xpad = jnp.pad(y1.astype(jnp.bfloat16),
                   ((0, 0), (1, 1), (1, 1), (0, cp - C)))

    out = pl.pallas_call(
        functools.partial(_conv3x3_head_kernel, out_h=H, out_w=W, coutp=coutp),
        grid=(N, kc),
        in_specs=[
            pl.BlockSpec((None, H + 2, W + 2, tc), lambda n, k: (n, 0, 0, k)),
            pl.BlockSpec((3, tc, 3 * coutp), lambda n, k: (0, k, 0)),
            pl.BlockSpec((1, coutp), lambda n, k: (0, 0)),
            pl.BlockSpec((coutp, nhp), lambda n, k: (0, 0)),
            pl.BlockSpec((1, nhp), lambda n, k: (0, 0)),
        ],
        out_specs=pl.BlockSpec((None, H, W, nhp), lambda n, k: (n, 0, 0, 0)),
        out_shape=jax.ShapeDtypeStruct((N, H, W, nhp), jnp.float32),
        scratch_shapes=[pltpu.VMEM((H, W, coutp), jnp.float32)],
        compiler_params=pltpu.CompilerParams(
            dimension_semantics=("parallel", "arbitrary"),
            vmem_limit_bytes=_VMEM_LIMIT),
    )(xpad, w_r, bp, wh, bh)
    return out[..., :nclass]


# ----------------------------------------------------------------------------
# Kernel 2: generic tiled (X @ W) + bias [+ReLU] on the MXU (bf16 in, f32 acc).
# Used for large 1x1 convs (feat6 at real PSPNet sizes); tiny shapes fall back
# to plain jnp in the wrapper.
# ----------------------------------------------------------------------------
def _mm_bias_act_kernel(x_ref, w_ref, b_ref, o_ref, acc_ref, *, relu):
    k = pl.program_id(2)
    part = jnp.dot(x_ref[...], w_ref[...], preferred_element_type=jnp.float32)

    @pl.when(k == 0)
    def _():
        acc_ref[...] = part                       # assign, no zero-fill pass

    @pl.when(k != 0)
    def _():
        acc_ref[...] += part

    @pl.when(k == pl.num_programs(2) - 1)
    def _():
        y = acc_ref[...] + b_ref[...]
        if relu:
            y = jnp.maximum(y, 0.0)
        o_ref[...] = y.astype(o_ref.dtype)


_TM, _TN, _TK = 512, 512, 1024


def fused_matmul_bias_act(x2d, w, bias, *, relu, out_dtype=jnp.float32):
    M, K = x2d.shape
    Cout = w.shape[1]

    # Row tiling: keep >=2 row blocks when M allows so both v7x TCs get work.
    if M <= _TM:
        tm = max(8, _round_up(M, 8))
    elif M <= 2 * _TM:
        tm = _round_up((M + 1) // 2, 8)
    else:
        tm = _TM
    Mp = _round_up(M, tm)

    Np = _round_up(Cout, 128)
    tn = _TN if Np % _TN == 0 else (256 if Np % 256 == 0 else 128)

    Kp = _round_up(K, 128)
    if Kp % _TK == 0:
        tk = _TK
    elif Kp % 512 == 0:
        tk = 512
    elif Kp % 256 == 0:
        tk = 256
    else:
        tk = 128

    xp = jnp.pad(x2d.astype(jnp.bfloat16), ((0, Mp - M), (0, Kp - K)))
    wp = jnp.pad(w.astype(jnp.bfloat16), ((0, Kp - K), (0, Np - Cout)))
    bp = jnp.pad(bias.reshape(1, Cout).astype(jnp.float32),
                 ((0, 0), (0, Np - Cout)))

    out = pl.pallas_call(
        functools.partial(_mm_bias_act_kernel, relu=relu),
        grid=(Mp // tm, Np // tn, Kp // tk),
        in_specs=[
            pl.BlockSpec((tm, tk), lambda i, j, k: (i, k)),
            pl.BlockSpec((tk, tn), lambda i, j, k: (k, j)),
            pl.BlockSpec((1, tn), lambda i, j, k: (0, j)),
        ],
        out_specs=pl.BlockSpec((tm, tn), lambda i, j, k: (i, j)),
        out_shape=jax.ShapeDtypeStruct((Mp, Np), out_dtype),
        scratch_shapes=[pltpu.VMEM((tm, tn), jnp.float32)],
        compiler_params=pltpu.CompilerParams(
            dimension_semantics=("parallel", "parallel", "arbitrary"),
            vmem_limit_bytes=_VMEM_LIMIT),
    )(xp, wp, bp)
    return out[:M, :Cout]


# Thresholds below which a Pallas launch (plus pad/cast/slice copies) is pure
# overhead and XLA handles the matmul faster.
_PALLAS_MIN_M, _PALLAS_MIN_K, _PALLAS_MIN_N = 1024, 256, 128


def pointwise_conv_bn_relu(x_nhwc, w, scale, bias, *, relu=True,
                           out_dtype=jnp.float32):
    """1x1 conv + folded BN + (optional) ReLU; Pallas matmul when big enough."""
    N, H, W, Cin = x_nhwc.shape
    Cout = w.shape[1]
    wf = w * scale.reshape(1, Cout)
    M = N * H * W
    if M >= _PALLAS_MIN_M and Cin >= _PALLAS_MIN_K and Cout >= _PALLAS_MIN_N:
        y = fused_matmul_bias_act(x_nhwc.reshape(M, Cin), wf, bias,
                                  relu=relu, out_dtype=out_dtype)
    else:
        y = jnp.einsum("mc,cd->md", x_nhwc.reshape(M, Cin).astype(jnp.float32),
                       wf) + bias.reshape(1, Cout)
        if relu:
            y = jnp.maximum(y, 0.0)
        y = y.astype(out_dtype)
    return y.reshape(N, H, W, Cout)


def jax_pointwise_conv_bn_relu(x_nhwc, w, scale, bias, *, relu=True):
    """Tiny pooled-branch 1x1 conv (sub-MXU-tile M): plain JAX in f32."""
    y = jnp.einsum("nhwc,cd->nhwd", x_nhwc.astype(jnp.float32),
                   w * scale.reshape(1, -1)) + bias.reshape(1, 1, 1, -1)
    return jnp.maximum(y, 0.0) if relu else y


def jax_conv3x3_bn_relu(x_nhwc, w3x3, scale, bias):
    """f32 reference for the 3x3 project conv (self-check only)."""
    N, H, W, C = x_nhwc.shape
    Cout = w3x3.shape[-1]
    xp = jnp.pad(x_nhwc.astype(jnp.float32), ((0, 0), (1, 1), (1, 1), (0, 0)))
    cols = [xp[:, dh:dh + H, dw:dw + W, :] for dh in range(3) for dw in range(3)]
    patches = jnp.concatenate(cols, axis=-1).reshape(N * H * W, 9 * C)
    w2 = w3x3.reshape(9 * C, Cout) * scale.reshape(1, Cout)
    y = jnp.maximum(patches @ w2 + bias.reshape(1, Cout), 0.0)
    return y.reshape(N, H, W, Cout)


# ----------------------------------------------------------------------------
# Glue: adaptive avg-pool / bilinear(align_corners=True) upsample as tiny
# separable matrices (PyTorch semantics).
# ----------------------------------------------------------------------------
def adaptive_pool_matrix(in_size, out_size):
    P = np.zeros((out_size, in_size), np.float32)
    for i in range(out_size):
        start = (i * in_size) // out_size
        end = -((-(i + 1) * in_size) // out_size)     # ceil((i+1)*in/out)
        P[i, start:end] = 1.0 / (end - start)
    return jnp.asarray(P)


def upsample_matrix(in_size, out_size):
    A = np.zeros((out_size, in_size), np.float32)
    if in_size == 1:
        A[:, 0] = 1.0
    else:
        for i in range(out_size):
            src = i * (in_size - 1) / (out_size - 1) if out_size > 1 else 0.0
            lo = int(np.floor(src))
            hi = min(lo + 1, in_size - 1)
            frac = src - lo
            A[i, lo] += 1.0 - frac
            A[i, hi] += frac
    return jnp.asarray(A)


# ----------------------------------------------------------------------------
# Parameters (deterministic synthetic init; eval-mode BatchNorm folded).
# ----------------------------------------------------------------------------
def make_params(key, in_channels, out_channels):
    inter = in_channels // 4
    ks = jax.random.split(key, 16)

    def conv_bn(k, cin, cout, ksize=1):
        k1, k2, k3, k4, k5 = jax.random.split(k, 5)
        if ksize == 1:
            w = jax.random.normal(k1, (cin, cout), jnp.float32) / np.sqrt(cin)
        else:
            w = jax.random.normal(k1, (ksize, ksize, cin, cout), jnp.float32) \
                / np.sqrt(cin * ksize * ksize)
        gamma = jax.random.uniform(k2, (cout,), jnp.float32, minval=0.5, maxval=1.5)
        beta = jax.random.normal(k3, (cout,), jnp.float32) * 0.1
        mean = jax.random.normal(k4, (cout,), jnp.float32) * 0.1
        var = jax.random.uniform(k5, (cout,), jnp.float32, minval=0.5, maxval=1.5)
        scale = gamma / jnp.sqrt(var + 1e-5)
        bias = beta - mean * scale
        return (w, scale, bias)

    p = {}
    for i in range(1, 7):
        # pp5 is allocated (matching __init__) but unused: the reference forward
        # computes feat5 with self.conv4 (reproduced below).
        p[f"pp{i}"] = conv_bn(ks[i], in_channels, inter, ksize=1)
    p["project"] = conv_bn(ks[7], 6 * inter, inter, ksize=3)
    kw, kb = jax.random.split(ks[8])
    p["head"] = (
        jax.random.normal(kw, (inter, out_channels), jnp.float32) / np.sqrt(inter),
        jax.random.normal(kb, (out_channels,), jnp.float32) * 0.1,
    )
    return p


# ----------------------------------------------------------------------------
# Forward pass of new_psp3Head.
# ----------------------------------------------------------------------------
_POOL_SIZES = (1, 2, 3, 6, 12)
# feat5 intentionally reuses the conv4 branch weights, as in the reference code.
_BRANCH_KEYS = ("pp1", "pp2", "pp3", "pp4", "pp4")


def _pyramid_branch_feats(params, x_nhwc):
    """Pooled pyramid branches (tiny matmuls -> plain JAX)."""
    N, H, W, _ = x_nhwc.shape
    feats = []
    for s, bk in zip(_POOL_SIZES, _BRANCH_KEYS):
        Ph = adaptive_pool_matrix(H, s)
        Pw = adaptive_pool_matrix(W, s)
        pooled = jnp.einsum("ph,nhwc,qw->npqc", Ph, x_nhwc, Pw)   # adaptive avg pool
        w, scale, bias = params[bk]
        f = jax_pointwise_conv_bn_relu(pooled, w, scale, bias, relu=True)
        Ah = upsample_matrix(s, H)
        Aw = upsample_matrix(s, W)
        f = jnp.einsum("hp,npqc,wq->nhwc", Ah, f, Aw)             # bilinear, align_corners
        feats.append(f)
    return feats


def new_psp3_head_forward(params, x_nchw):
    x = jnp.transpose(x_nchw, (0, 2, 3, 1))                       # NCHW -> NHWC
    # bf16 concat input halves the glue HBM traffic around the project kernel.
    feats = [f.astype(jnp.bfloat16) for f in _pyramid_branch_feats(params, x)]

    w6, s6, b6 = params["pp6"]
    feats.append(pointwise_conv_bn_relu(x, w6, s6, b6, relu=True,
                                        out_dtype=jnp.bfloat16))  # feat6

    y1 = jnp.concatenate(feats, axis=-1)                          # (N,H,W,6*inter) bf16

    # project (3x3 + BN + ReLU) fused with the head 1x1 conv (Dropout2d == id).
    wp, sp, bp = params["project"]
    wh, bh = params["head"]
    out = pallas_project3x3_head(y1, wp, sp, bp, wh, bh)

    return (jnp.transpose(out, (0, 3, 1, 2)),)                    # back to NCHW


def new_psp3_head_forward_ref(params, x_nchw):
    """Pure-JAX f32 reference (same math, no Pallas / no bf16) for self-check."""
    x = jnp.transpose(x_nchw, (0, 2, 3, 1))
    feats = _pyramid_branch_feats(params, x)
    w6, s6, b6 = params["pp6"]
    feats.append(jax_pointwise_conv_bn_relu(x, w6, s6, b6, relu=True))
    y1 = jnp.concatenate(feats, axis=-1)
    wp, sp, bp = params["project"]
    proj = jax_conv3x3_bn_relu(y1, wp, sp, bp)
    wh, bh = params["head"]
    out = jnp.einsum("nhwc,cd->nhwd", proj, wh) + bh.reshape(1, 1, 1, -1)
    return (jnp.transpose(out, (0, 3, 1, 2)),)


if __name__ == "__main__":
    key = jax.random.PRNGKey(0)
    kx, kp = jax.random.split(key)

    batch, in_channels, out_channels, H, W = 2, 16, 5, 16, 16
    x = jax.random.normal(kx, (batch, in_channels, H, W), jnp.float32)
    params = make_params(kp, in_channels, out_channels)

    fwd = jax.jit(new_psp3_head_forward)
    outs = jax.block_until_ready(fwd(params, x))

    assert isinstance(outs, tuple) and len(outs) == 1
    assert outs[0].shape == (batch, out_channels, H, W)
    assert bool(jnp.all(jnp.isfinite(outs[0])))

    # Self-check of the fused project+head Pallas path vs. the f32 JAX reference
    # (Pallas path uses bf16 MXU operands -> loose absolute tolerance).
    ref = new_psp3_head_forward_ref(params, x)[0]
    max_err = float(jnp.max(jnp.abs(outs[0] - ref)))
    assert max_err < 0.5, f"pallas vs reference mismatch: {max_err}"

    # Also exercise the generic tiled matmul kernel once (multi-step K reduction,
    # 2 row blocks, ReLU epilogue) and check it against jnp.
    ka, kb = jax.random.split(kx)
    A = jax.random.normal(ka, (1024, 768), jnp.float32)
    Bw = jax.random.normal(kb, (768, 256), jnp.float32) * 0.05
    bias0 = jnp.zeros((256,), jnp.float32)
    got = jax.block_until_ready(
        fused_matmul_bias_act(A, Bw, bias0, relu=True, out_dtype=jnp.float32))
    want = jnp.maximum(A @ Bw, 0.0)
    mm_err = float(jnp.max(jnp.abs(got - want)))
    assert mm_err < 0.25, f"pallas matmul vs jnp mismatch: {mm_err}"

    print("KERNEL_OK")
</pallas_src>

<mosaic_0001>
module attributes {stable_mosaic.version = 11 : i64} {
  func.func @_conv3x3_head_kernel(%arg0: i32, %arg1: i32, %arg2: memref<1x18x18x24xbf16, #tpu.memory_space<vmem>>, %arg3: memref<3x24x384xbf16, #tpu.memory_space<vmem>>, %arg4: memref<1x128xf32, #tpu.memory_space<vmem>>, %arg5: memref<128x128xbf16, #tpu.memory_space<vmem>>, %arg6: memref<1x128xf32, #tpu.memory_space<vmem>>, %arg7: memref<1x16x16x128xf32, #tpu.memory_space<vmem>>, %arg8: memref<16x16x128xf32, #tpu.memory_space<vmem>>) attributes {dimension_semantics = [#tpu.dimension_semantics<parallel>, #tpu.dimension_semantics<arbitrary>], iteration_bounds = array<i64: 2, 1>, scalar_prefetch = 0 : i64, scratch_operands = 1 : i64, tpu.core_type = #tpu.core_type<tc>, window_params = [{transform_indices = @transform_0, window_bounds = array<i64: 1, 18, 18, 24>}, {transform_indices = @transform_1, window_bounds = array<i64: 3, 24, 384>}, {pipeline_mode = #tpu.pipeline_mode<synchronous>, transform_indices = @transform_2, window_bounds = array<i64: 1, 128>}, {pipeline_mode = #tpu.pipeline_mode<synchronous>, transform_indices = @transform_3, window_bounds = array<i64: 128, 128>}, {pipeline_mode = #tpu.pipeline_mode<synchronous>, transform_indices = @transform_4, window_bounds = array<i64: 1, 128>}, {transform_indices = @transform_5, window_bounds = array<i64: 1, 16, 16, 128>}]} {
    %c0_i32 = arith.constant 0 : i32
    %0 = arith.cmpi eq, %arg1, %c0_i32 : i32
    %c0_i32_0 = arith.constant 0 : i32
    %1 = arith.cmpi eq, %arg1, %c0_i32_0 : i32
    %c0_i32_1 = arith.constant 0 : i32
    %c0_i32_2 = arith.constant 0 : i32
    %2 = arith.addi %c0_i32_1, %c0_i32_2 : i32
    %c0 = arith.constant 0 : index
    %3 = arith.index_cast %2 : i32 to index
    %c0_3 = arith.constant 0 : index
    %c0_4 = arith.constant 0 : index
    %4 = vector.load %arg2[%c0, %3, %c0_3, %c0_4] : memref<1x18x18x24xbf16, #tpu.memory_space<vmem>>, vector<1x1x18x24xbf16>
    %5 = vector.shape_cast %4 : vector<1x1x18x24xbf16> to vector<18x24xbf16>
    %c0_5 = arith.constant 0 : index
    %c0_6 = arith.constant 0 : index
    %c0_7 = arith.constant 0 : index
    %6 = vector.load %arg3[%c0_5, %c0_6, %c0_7] : memref<3x24x384xbf16, #tpu.memory_space<vmem>>, vector<1x24x384xbf16>
    %7 = vector.shape_cast %6 : vector<1x24x384xbf16> to vector<24x384xbf16>
    %cst = arith.constant dense<0.000000e+00> : vector<18x384xf32>
    %8 = tpu.matmul %5, %7, %cst {dimension_numbers = #tpu.dot_dimension_numbers<[1], [0], [0], [1], [0, 0, 1, 1], [], []>} : vector<18x24xbf16>, vector<24x384xbf16>, vector<18x384xf32> -> vector<18x384xf32>
    %9 = vector.extract_strided_slice %8 {offsets = [0, 0], sizes = [16, 128], strides = [1, 1]} : vector<18x384xf32> to vector<16x128xf32>
    %10 = vector.extract_strided_slice %8 {offsets = [1, 128], sizes = [16, 128], strides = [1, 1]} : vector<18x384xf32> to vector<16x128xf32>
    %11 = arith.addf %9, %10 : vector<16x128xf32>
    %12 = vector.extract_strided_slice %8 {offsets = [2, 256], sizes = [16, 128], strides = [1, 1]} : vector<18x384xf32> to vector<16x128xf32>
    %13 = arith.addf %11, %12 : vector<16x128xf32>
    %c1_i32 = arith.constant 1 : i32
    %14 = arith.addi %c0_i32_1, %c1_i32 : i32
    %c0_8 = arith.constant 0 : index
    %15 = arith.index_cast %14 : i32 to index
    %c0_9 = arith.constant 0 : index
    %c0_10 = arith.constant 0 : index
    %16 = vector.load %arg2[%c0_8, %15, %c0_9, %c0_10] : memref<1x18x18x24xbf16, #tpu.memory_space<vmem>>, vector<1x1x18x24xbf16>
    %17 = vector.shape_cast %16 : vector<1x1x18x24xbf16> to vector<18x24xbf16>
    %c1 = arith.constant 1 : index
    %c0_11 = arith.constant 0 : index
    %c0_12 = arith.constant 0 : index
    %18 = vector.load %arg3[%c1, %c0_11, %c0_12] : memref<3x24x384xbf16, #tpu.memory_space<vmem>>, vector<1x24x384xbf16>
    %19 = vector.shape_cast %18 : vector<1x24x384xbf16> to vector<24x384xbf16>
    %cst_13 = arith.constant dense<0.000000e+00> : vector<18x384xf32>
    %20 = tpu.matmul %17, %19, %cst_13 {dimension_numbers = #tpu.dot_dimension_numbers<[1], [0], [0], [1], [0, 0, 1, 1], [], []>} : vector<18x24xbf16>, vector<24x384xbf16>, vector<18x384xf32> -> vector<18x384xf32>
    %21 = vector.extract_strided_slice %20 {offsets = [0, 0], sizes = [16, 128], strides = [1, 1]} : vector<18x384xf32> to vector<16x128xf32>
    %22 = arith.addf %13, %21 : vector<16x128xf32>
    %23 = vector.extract_strided_slice %20 {offsets = [1, 128], sizes = [16, 128], strides = [1, 1]} : vector<18x384xf32> to vector<16x128xf32>
    %24 = arith.addf %22, %23 : vector<16x128xf32>
    %25 = vector.extract_strided_slice %20 {offsets = [2, 256], sizes = [16, 128], strides = [1, 1]} : vector<18x384xf32> to vector<16x128xf32>
    %26 = arith.addf %24, %25 : vector<16x128xf32>
    %c2_i32 = arith.constant 2 : i32
    %27 = arith.addi %c0_i32_1, %c2_i32 : i32
    %c0_14 = arith.constant 0 : index
    %28 = arith.index_cast %27 : i32 to index
    %c0_15 = arith.constant 0 : index
    %c0_16 = arith.constant 0 : index
    %29 = vector.load %arg2[%c0_14, %28, %c0_15, %c0_16] : memref<1x18x18x24xbf16, #tpu.memory_space<vmem>>, vector<1x1x18x24xbf16>
    %30 = vector.shape_cast %29 : vector<1x1x18x24xbf16> to vector<18x24xbf16>
    %c2 = arith.constant 2 : index
    %c0_17 = arith.constant 0 : index
    %c0_18 = arith.constant 0 : index
    %31 = vector.load %arg3[%c2, %c0_17, %c0_18] : memref<3x24x384xbf16, #tpu.memory_space<vmem>>, vector<1x24x384xbf16>
    %32 = vector.shape_cast %31 : vector<1x24x384xbf16> to vector<24x384xbf16>
    %cst_19 = arith.constant dense<0.000000e+00> : vector<18x384xf32>
    %33 = tpu.matmul %30, %32, %cst_19 {dimension_numbers = #tpu.dot_dimension_numbers<[1], [0], [0], [1], [0, 0, 1, 1], [], []>} : vector<18x24xbf16>, vector<24x384xbf16>, vector<18x384xf32> -> vector<18x384xf32>
    %34 = vector.extract_strided_slice %33 {offsets = [0, 0], sizes = [16, 128], strides = [1, 1]} : vector<18x384xf32> to vector<16x128xf32>
    %35 = arith.addf %26, %34 : vector<16x128xf32>
    %36 = vector.extract_strided_slice %33 {offsets = [1, 128], sizes = [16, 128], strides = [1, 1]} : vector<18x384xf32> to vector<16x128xf32>
    %37 = arith.addf %35, %36 : vector<16x128xf32>
    %38 = vector.extract_strided_slice %33 {offsets = [2, 256], sizes = [16, 128], strides = [1, 1]} : vector<18x384xf32> to vector<16x128xf32>
    %39 = arith.addf %37, %38 : vector<16x128xf32>
    %40 = arith.extui %0 : i1 to i32
    %c0_i32_20 = arith.constant 0 : i32
    %41 = arith.cmpi ne, %40, %c0_i32_20 : i32
    scf.if %41 {
      %722 = arith.index_cast %c0_i32_1 : i32 to index
      %c0_445 = arith.constant 0 : index
      %c0_446 = arith.constant 0 : index
      %723 = vector.load %arg8[%722, %c0_445, %c0_446] : memref<16x16x128xf32, #tpu.memory_space<vmem>>, vector<1x16x128xf32>
      %724 = vector.shape_cast %723 : vector<1x16x128xf32> to vector<16x128xf32>
      %725 = vector.shape_cast %39 : vector<16x128xf32> to vector<1x16x128xf32>
      tpu.vector_store %arg8[%722, %c0_445, %c0_446], %725 {strides = array<i32>} : memref<16x16x128xf32, #tpu.memory_space<vmem>>, vector<1x16x128xf32>,
    } else {
    }
    %true = arith.constant true
    %42 = arith.xori %0, %true : i1
    %43 = arith.extui %42 : i1 to i32
    %c0_i32_21 = arith.constant 0 : i32
    %44 = arith.cmpi ne, %43, %c0_i32_21 : i32
    scf.if %44 {
      %722 = arith.index_cast %c0_i32_1 : i32 to index
      %c0_445 = arith.constant 0 : index
      %c0_446 = arith.constant 0 : index
      %723 = vector.load %arg8[%722, %c0_445, %c0_446] : memref<16x16x128xf32, #tpu.memory_space<vmem>>, vector<1x16x128xf32>
      %724 = vector.shape_cast %723 : vector<1x16x128xf32> to vector<16x128xf32>
      %725 = arith.addf %724, %39 : vector<16x128xf32>
      %726 = arith.index_cast %c0_i32_1 : i32 to index
      %c0_447 = arith.constant 0 : index
      %c0_448 = arith.constant 0 : index
      %727 = vector.load %arg8[%726, %c0_447, %c0_448] : memref<16x16x128xf32, #tpu.memory_space<vmem>>, vector<1x16x128xf32>
      %728 = vector.shape_cast %727 : vector<1x16x128xf32> to vector<16x128xf32>
      %729 = vector.shape_cast %725 : vector<16x128xf32> to vector<1x16x128xf32>
      tpu.vector_store %arg8[%726, %c0_447, %c0_448], %729 {strides = array<i32>} : memref<16x16x128xf32, #tpu.memory_space<vmem>>, vector<1x16x128xf32>,
    } else {
    }
    %45 = arith.extui %1 : i1 to i32
    %c0_i32_22 = arith.constant 0 : i32
    %46 = arith.cmpi ne, %45, %c0_i32_22 : i32
    scf.if %46 {
      %722 = arith.index_cast %c0_i32_1 : i32 to index
      %c0_445 = arith.constant 0 : index
      %c0_446 = arith.constant 0 : index
      %723 = vector.load %arg8[%722, %c0_445, %c0_446] : memref<16x16x128xf32, #tpu.memory_space<vmem>>, vector<1x16x128xf32>
      %724 = vector.shape_cast %723 : vector<1x16x128xf32> to vector<16x128xf32>
      %c0_447 = arith.constant 0 : index
      %c0_448 = arith.constant 0 : index
      %725 = vector.load %arg4[%c0_447, %c0_448] : memref<1x128xf32, #tpu.memory_space<vmem>>, vector<1x128xf32>
      %726 = vector.broadcast %725 : vector<1x128xf32> to vector<16x128xf32>
      %727 = arith.addf %724, %726 : vector<16x128xf32>
      %cst_449 = arith.constant 0.000000e+00 : f32
      %728 = vector.broadcast %cst_449 : f32 to vector<16x128xf32>
      %729 = arith.maximumf %727, %728 : vector<16x128xf32>
      %730 = arith.truncf %729 : vector<16x128xf32> to vector<16x128xbf16>
      %c0_450 = arith.constant 0 : index
      %c0_451 = arith.constant 0 : index
      %731 = vector.load %arg5[%c0_450, %c0_451] : memref<128x128xbf16, #tpu.memory_space<vmem>>, vector<128x128xbf16>
      %cst_452 = arith.constant dense<0.000000e+00> : vector<16x128xf32>
      %732 = tpu.matmul %730, %731, %cst_452 {dimension_numbers = #tpu.dot_dimension_numbers<[1], [0], [0], [1], [0, 0, 1, 1], [], []>} : vector<16x128xbf16>, vector<128x128xbf16>, vector<16x128xf32> -> vector<16x128xf32>
      %c0_453 = arith.constant 0 : index
      %c0_454 = arith.constant 0 : index
      %733 = vector.load %arg6[%c0_453, %c0_454] : memref<1x128xf32, #tpu.memory_space<vmem>>, vector<1x128xf32>
      %734 = vector.broadcast %733 : vector<1x128xf32> to vector<16x128xf32>
      %735 = arith.addf %732, %734 : vector<16x128xf32>
      %c0_455 = arith.constant 0 : index
      %736 = arith.index_cast %c0_i32_1 : i32 to index
      %c0_456 = arith.constant 0 : index
      %c0_457 = arith.constant 0 : index
      %737 = vector.load %arg7[%c0_455, %736, %c0_456, %c0_457] : memref<1x16x16x128xf32, #tpu.memory_space<vmem>>, vector<1x1x16x128xf32>
      %738 = vector.shape_cast %737 : vector<1x1x16x128xf32> to vector<16x128xf32>
      %739 = vector.shape_cast %735 : vector<16x128xf32> to vector<1x1x16x128xf32>
      tpu.vector_store %arg7[%c0_455, %736, %c0_456, %c0_457], %739 {strides = array<i32>} : memref<1x16x16x128xf32, #tpu.memory_space<vmem>>, vector<1x1x16x128xf32>,
    } else {
    }
    %c1_i32_23 = arith.constant 1 : i32
    %c0_i32_24 = arith.constant 0 : i32
    %47 = arith.addi %c1_i32_23, %c0_i32_24 : i32
    %c0_25 = arith.constant 0 : index
    %48 = arith.index_cast %47 : i32 to index
    %c0_26 = arith.constant 0 : index
    %c0_27 = arith.constant 0 : index
    %49 = vector.load %arg2[%c0_25, %48, %c0_26, %c0_27] : memref<1x18x18x24xbf16, #tpu.memory_space<vmem>>, vector<1x1x18x24xbf16>
    %50 = vector.shape_cast %49 : vector<1x1x18x24xbf16> to vector<18x24xbf16>
    %c0_28 = arith.constant 0 : index
    %c0_29 = arith.constant 0 : index
    %c0_30 = arith.constant 0 : index
    %51 = vector.load %arg3[%c0_28, %c0_29, %c0_30] : memref<3x24x384xbf16, #tpu.memory_space<vmem>>, vector<1x24x384xbf16>
    %52 = vector.shape_cast %51 : vector<1x24x384xbf16> to vector<24x384xbf16>
    %cst_31 = arith.constant dense<0.000000e+00> : vector<18x384xf32>
    %53 = tpu.matmul %50, %52, %cst_31 {dimension_numbers = #tpu.dot_dimension_numbers<[1], [0], [0], [1], [0, 0, 1, 1], [], []>} : vector<18x24xbf16>, vector<24x384xbf16>, vector<18x384xf32> -> vector<18x384xf32>
    %54 = vector.extract_strided_slice %53 {offsets = [0, 0], sizes = [16, 128], strides = [1, 1]} : vector<18x384xf32> to vector<16x128xf32>
    %55 = vector.extract_strided_slice %53 {offsets = [1, 128], sizes = [16, 128], strides = [1, 1]} : vector<18x384xf32> to vector<16x128xf32>
    %56 = arith.addf %54, %55 : vector<16x128xf32>
    %57 = vector.extract_strided_slice %53 {offsets = [2, 256], sizes = [16, 128], strides = [1, 1]} : vector<18x384xf32> to vector<16x128xf32>
    %58 = arith.addf %56, %57 : vector<16x128xf32>
    %c1_i32_32 = arith.constant 1 : i32
    %59 = arith.addi %c1_i32_23, %c1_i32_32 : i32
    %c0_33 = arith.constant 0 : index
    %60 = arith.index_cast %59 : i32 to index
    %c0_34 = arith.constant 0 : index
    %c0_35 = arith.constant 0 : index
    %61 = vector.load %arg2[%c0_33, %60, %c0_34, %c0_35] : memref<1x18x18x24xbf16, #tpu.memory_space<vmem>>, vector<1x1x18x24xbf16>
    %62 = vector.shape_cast %61 : vector<1x1x18x24xbf16> to vector<18x24xbf16>
    %c1_36 = arith.constant 1 : index
    %c0_37 = arith.constant 0 : index
    %c0_38 = arith.constant 0 : index
    %63 = vector.load %arg3[%c1_36, %c0_37, %c0_38] : memref<3x24x384xbf16, #tpu.memory_space<vmem>>, vector<1x24x384xbf16>
    %64 = vector.shape_cast %63 : vector<1x24x384xbf16> to vector<24x384xbf16>
    %cst_39 = arith.constant dense<0.000000e+00> : vector<18x384xf32>
    %65 = tpu.matmul %62, %64, %cst_39 {dimension_numbers = #tpu.dot_dimension_numbers<[1], [0], [0], [1], [0, 0, 1, 1], [], []>} : vector<18x24xbf16>, vector<24x384xbf16>, vector<18x384xf32> -> vector<18x384xf32>
    %66 = vector.extract_strided_slice %65 {offsets = [0, 0], sizes = [16, 128], strides = [1, 1]} : vector<18x384xf32> to vector<16x128xf32>
    %67 = arith.addf %58, %66 : vector<16x128xf32>
    %68 = vector.extract_strided_slice %65 {offsets = [1, 128], sizes = [16, 128], strides = [1, 1]} : vector<18x384xf32> to vector<16x128xf32>
    %69 = arith.addf %67, %68 : vector<16x128xf32>
    %70 = vector.extract_strided_slice %65 {offsets = [2, 256], sizes = [16, 128], strides = [1, 1]} : vector<18x384xf32> to vector<16x128xf32>
    %71 = arith.addf %69, %70 : vector<16x128xf32>
    %c2_i32_40 = arith.constant 2 : i32
    %72 = arith.addi %c1_i32_23, %c2_i32_40 : i32
    %c0_41 = arith.constant 0 : index
    %73 = arith.index_cast %72 : i32 to index
    %c0_42 = arith.constant 0 : index
    %c0_43 = arith.constant 0 : index
    %74 = vector.load %arg2[%c0_41, %73, %c0_42, %c0_43] : memref<1x18x18x24xbf16, #tpu.memory_space<vmem>>, vector<1x1x18x24xbf16>
    %75 = vector.shape_cast %74 : vector<1x1x18x24xbf16> to vector<18x24xbf16>
    %c2_44 = arith.constant 2 : index
    %c0_45 = arith.constant 0 : index
    %c0_46 = arith.constant 0 : index
    %76 = vector.load %arg3[%c2_44, %c0_45, %c0_46] : memref<3x24x384xbf16, #tpu.memory_space<vmem>>, vector<1x24x384xbf16>
    %77 = vector.shape_cast %76 : vector<1x24x384xbf16> to vector<24x384xbf16>
    %cst_47 = arith.constant dense<0.000000e+00> : vector<18x384xf32>
    %78 = tpu.matmul %75, %77, %cst_47 {dimension_numbers = #tpu.dot_dimension_numbers<[1], [0], [0], [1], [0, 0, 1, 1], [], []>} : vector<18x24xbf16>, vector<24x384xbf16>, vector<18x384xf32> -> vector<18x384xf32>
    %79 = vector.extract_strided_slice %78 {offsets = [0, 0], sizes = [16, 128], strides = [1, 1]} : vector<18x384xf32> to vector<16x128xf32>
    %80 = arith.addf %71, %79 : vector<16x128xf32>
    %81 = vector.extract_strided_slice %78 {offsets = [1, 128], sizes = [16, 128], strides = [1, 1]} : vector<18x384xf32> to vector<16x128xf32>
    %82 = arith.addf %80, %81 : vector<16x128xf32>
    %83 = vector.extract_strided_slice %78 {offsets = [2, 256], sizes = [16, 128], strides = [1, 1]} : vector<18x384xf32> to vector<16x128xf32>
    %84 = arith.addf %82, %83 : vector<16x128xf32>
    %85 = arith.extui %0 : i1 to i32
    %c0_i32_48 = arith.constant 0 : i32
    %86 = arith.cmpi ne, %85, %c0_i32_48 : i32
    scf.if %86 {
      %722 = arith.index_cast %c1_i32_23 : i32 to index
      %c0_445 = arith.constant 0 : index
      %c0_446 = arith.constant 0 : index
      %723 = vector.load %arg8[%722, %c0_445, %c0_446] : memref<16x16x128xf32, #tpu.memory_space<vmem>>, vector<1x16x128xf32>
      %724 = vector.shape_cast %723 : vector<1x16x128xf32> to vector<16x128xf32>
      %725 = vector.shape_cast %84 : vector<16x128xf32> to vector<1x16x128xf32>
      tpu.vector_store %arg8[%722, %c0_445, %c0_446], %725 {strides = array<i32>} : memref<16x16x128xf32, #tpu.memory_space<vmem>>, vector<1x16x128xf32>,
    } else {
    }
    %true_49 = arith.constant true
    %87 = arith.xori %0, %true_49 : i1
    %88 = arith.extui %87 : i1 to i32
    %c0_i32_50 = arith.constant 0 : i32
    %89 = arith.cmpi ne, %88, %c0_i32_50 : i32
    scf.if %89 {
      %722 = arith.index_cast %c1_i32_23 : i32 to index
      %c0_445 = arith.constant 0 : index
      %c0_446 = arith.constant 0 : index
      %723 = vector.load %arg8[%722, %c0_445, %c0_446] : memref<16x16x128xf32, #tpu.memory_space<vmem>>, vector<1x16x128xf32>
      %724 = vector.shape_cast %723 : vector<1x16x128xf32> to vector<16x128xf32>
      %725 = arith.addf %724, %84 : vector<16x128xf32>
      %726 = arith.index_cast %c1_i32_23 : i32 to index
      %c0_447 = arith.constant 0 : index
      %c0_448 = arith.constant 0 : index
      %727 = vector.load %arg8[%726, %c0_447, %c0_448] : memref<16x16x128xf32, #tpu.memory_space<vmem>>, vector<1x16x128xf32>
      %728 = vector.shape_cast %727 : vector<1x16x128xf32> to vector<16x128xf32>
      %729 = vector.shape_cast %725 : vector<16x128xf32> to vector<1x16x128xf32>
      tpu.vector_store %arg8[%726, %c0_447, %c0_448], %729 {strides = array<i32>} : memref<16x16x128xf32, #tpu.memory_space<vmem>>, vector<1x16x128xf32>,
    } else {
    }
    %90 = arith.extui %1 : i1 to i32
    %c0_i32_51 = arith.constant 0 : i32
    %91 = arith.cmpi ne, %90, %c0_i32_51 : i32
    scf.if %91 {
      %722 = arith.index_cast %c1_i32_23 : i32 to index
      %c0_445 = arith.constant 0 : index
      %c0_446 = arith.constant 0 : index
      %723 = vector.load %arg8[%722, %c0_445, %c0_446] : memref<16x16x128xf32, #tpu.memory_space<vmem>>, vector<1x16x128xf32>
      %724 = vector.shape_cast %723 : vector<1x16x128xf32> to vector<16x128xf32>
      %c0_447 = arith.constant 0 : index
      %c0_448 = arith.constant 0 : index
      %725 = vector.load %arg4[%c0_447, %c0_448] : memref<1x128xf32, #tpu.memory_space<vmem>>, vector<1x128xf32>
      %726 = vector.broadcast %725 : vector<1x128xf32> to vector<16x128xf32>
      %727 = arith.addf %724, %726 : vector<16x128xf32>
      %cst_449 = arith.constant 0.000000e+00 : f32
      %728 = vector.broadcast %cst_449 : f32 to vector<16x128xf32>
      %729 = arith.maximumf %727, %728 : vector<16x128xf32>
      %730 = arith.truncf %729 : vector<16x128xf32> to vector<16x128xbf16>
      %c0_450 = arith.constant 0 : index
      %c0_451 = arith.constant 0 : index
      %731 = vector.load %arg5[%c0_450, %c0_451] : memref<128x128xbf16, #tpu.memory_space<vmem>>, vector<128x128xbf16>
      %cst_452 = arith.constant dense<0.000000e+00> : vector<16x128xf32>
      %732 = tpu.matmul %730, %731, %cst_452 {dimension_numbers = #tpu.dot_dimension_numbers<[1], [0], [0], [1], [0, 0, 1, 1], [], []>} : vector<16x128xbf16>, vector<128x128xbf16>, vector<16x128xf32> -> vector<16x128xf32>
      %c0_453 = arith.constant 0 : index
      %c0_454 = arith.constant 0 : index
      %733 = vector.load %arg6[%c0_453, %c0_454] : memref<1x128xf32, #tpu.memory_space<vmem>>, vector<1x128xf32>
      %734 = vector.broadcast %733 : vector<1x128xf32> to vector<16x128xf32>
      %735 = arith.addf %732, %734 : vector<16x128xf32>
      %c0_455 = arith.constant 0 : index
      %736 = arith.index_cast %c1_i32_23 : i32 to index
      %c0_456 = arith.constant 0 : index
      %c0_457 = arith.constant 0 : index
      %737 = vector.load %arg7[%c0_455, %736, %c0_456, %c0_457] : memref<1x16x16x128xf32, #tpu.memory_space<vmem>>, vector<1x1x16x128xf32>
      %738 = vector.shape_cast %737 : vector<1x1x16x128xf32> to vector<16x128xf32>
      %739 = vector.shape_cast %735 : vector<16x128xf32> to vector<1x1x16x128xf32>
      tpu.vector_store %arg7[%c0_455, %736, %c0_456, %c0_457], %739 {strides = array<i32>} : memref<1x16x16x128xf32, #tpu.memory_space<vmem>>, vector<1x1x16x128xf32>,
    } else {
    }
    %c2_i32_52 = arith.constant 2 : i32
    %c0_i32_53 = arith.constant 0 : i32
    %92 = arith.addi %c2_i32_52, %c0_i32_53 : i32
    %c0_54 = arith.constant 0 : index
    %93 = arith.index_cast %92 : i32 to index
    %c0_55 = arith.constant 0 : index
    %c0_56 = arith.constant 0 : index
    %94 = vector.load %arg2[%c0_54, %93, %c0_55, %c0_56] : memref<1x18x18x24xbf16, #tpu.memory_space<vmem>>, vector<1x1x18x24xbf16>
    %95 = vector.shape_cast %94 : vector<1x1x18x24xbf16> to vector<18x24xbf16>
    %c0_57 = arith.constant 0 : index
    %c0_58 = arith.constant 0 : index
    %c0_59 = arith.constant 0 : index
    %96 = vector.load %arg3[%c0_57, %c0_58, %c0_59] : memref<3x24x384xbf16, #tpu.memory_space<vmem>>, vector<1x24x384xbf16>
    %97 = vector.shape_cast %96 : vector<1x24x384xbf16> to vector<24x384xbf16>
    %cst_60 = arith.constant dense<0.000000e+00> : vector<18x384xf32>
    %98 = tpu.matmul %95, %97, %cst_60 {dimension_numbers = #tpu.dot_dimension_numbers<[1], [0], [0], [1], [0, 0, 1, 1], [], []>} : vector<18x24xbf16>, vector<24x384xbf16>, vector<18x384xf32> -> vector<18x384xf32>
    %99 = vector.extract_strided_slice %98 {offsets = [0, 0], sizes = [16, 128], strides = [1, 1]} : vector<18x384xf32> to vector<16x128xf32>
    %100 = vector.extract_strided_slice %98 {offsets = [1, 128], sizes = [16, 128], strides = [1, 1]} : vector<18x384xf32> to vector<16x128xf32>
    %101 = arith.addf %99, %100 : vector<16x128xf32>
    %102 = vector.extract_strided_slice %98 {offsets = [2, 256], sizes = [16, 128], strides = [1, 1]} : vector<18x384xf32> to vector<16x128xf32>
    %103 = arith.addf %101, %102 : vector<16x128xf32>
    %c1_i32_61 = arith.constant 1 : i32
    %104 = arith.addi %c2_i32_52, %c1_i32_61 : i32
    %c0_62 = arith.constant 0 : index
    %105 = arith.index_cast %104 : i32 to index
    %c0_63 = arith.constant 0 : index
    %c0_64 = arith.constant 0 : index
    %106 = vector.load %arg2[%c0_62, %105, %c0_63, %c0_64] : memref<1x18x18x24xbf16, #tpu.memory_space<vmem>>, vector<1x1x18x24xbf16>
    %107 = vector.shape_cast %106 : vector<1x1x18x24xbf16> to vector<18x24xbf16>
    %c1_65 = arith.constant 1 : index
    %c0_66 = arith.constant 0 : index
    %c0_67 = arith.constant 0 : index
    %108 = vector.load %arg3[%c1_65, %c0_66, %c0_67] : memref<3x24x384xbf16, #tpu.memory_space<vmem>>, vector<1x24x384xbf16>
    %109 = vector.shape_cast %108 : vector<1x24x384xbf16> to vector<24x384xbf16>
    %cst_68 = arith.constant dense<0.000000e+00> : vector<18x384xf32>
    %110 = tpu.matmul %107, %109, %cst_68 {dimension_numbers = #tpu.dot_dimension_numbers<[1], [0], [0], [1], [0, 0, 1, 1], [], []>} : vector<18x24xbf16>, vector<24x384xbf16>, vector<18x384xf32> -> vector<18x384xf32>
    %111 = vector.extract_strided_slice %110 {offsets = [0, 0], sizes = [16, 128], strides = [1, 1]} : vector<18x384xf32> to vector<16x128xf32>
    %112 = arith.addf %103, %111 : vector<16x128xf32>
    %113 = vector.extract_strided_slice %110 {offsets = [1, 128], sizes = [16, 128], strides = [1, 1]} : vector<18x384xf32> to vector<16x128xf32>
    %114 = arith.addf %112, %113 : vector<16x128xf32>
    %115 = vector.extract_strided_slice %110 {offsets = [2, 256], sizes = [16, 128], strides = [1, 1]} : vector<18x384xf32> to vector<16x128xf32>
    %116 = arith.addf %114, %115 : vector<16x128xf32>
    %c2_i32_69 = arith.constant 2 : i32
    %117 = arith.addi %c2_i32_52, %c2_i32_69 : i32
    %c0_70 = arith.constant 0 : index
    %118 = arith.index_cast %117 : i32 to index
    %c0_71 = arith.constant 0 : index
    %c0_72 = arith.constant 0 : index
    %119 = vector.load %arg2[%c0_70, %118, %c0_71, %c0_72] : memref<1x18x18x24xbf16, #tpu.memory_space<vmem>>, vector<1x1x18x24xbf16>
    %120 = vector.shape_cast %119 : vector<1x1x18x24xbf16> to vector<18x24xbf16>
    %c2_73 = arith.constant 2 : index
    %c0_74 = arith.constant 0 : index
    %c0_75 = arith.constant 0 : index
    %121 = vector.load %arg3[%c2_73, %c0_74, %c0_75] : memref<3x24x384xbf16, #tpu.memory_space<vmem>>, vector<1x24x384xbf16>
    %122 = vector.shape_cast %121 : vector<1x24x384xbf16> to vector<24x384xbf16>
    %cst_76 = arith.constant dense<0.000000e+00> : vector<18x384xf32>
    %123 = tpu.matmul %120, %122, %cst_76 {dimension_numbers = #tpu.dot_dimension_numbers<[1], [0], [0], [1], [0, 0, 1, 1], [], []>} : vector<18x24xbf16>, vector<24x384xbf16>, vector<18x384xf32> -> vector<18x384xf32>
    %124 = vector.extract_strided_slice %123 {offsets = [0, 0], sizes = [16, 128], strides = [1, 1]} : vector<18x384xf32> to vector<16x128xf32>
    %125 = arith.addf %116, %124 : vector<16x128xf32>
    %126 = vector.extract_strided_slice %123 {offsets = [1, 128], sizes = [16, 128], strides = [1, 1]} : vector<18x384xf32> to vector<16x128xf32>
    %127 = arith.addf %125, %126 : vector<16x128xf32>
    %128 = vector.extract_strided_slice %123 {offsets = [2, 256], sizes = [16, 128], strides = [1, 1]} : vector<18x384xf32> to vector<16x128xf32>
    %129 = arith.addf %127, %128 : vector<16x128xf32>
    %130 = arith.extui %0 : i1 to i32
    %c0_i32_77 = arith.constant 0 : i32
    %131 = arith.cmpi ne, %130, %c0_i32_77 : i32
    scf.if %131 {
      %722 = arith.index_cast %c2_i32_52 : i32 to index
      %c0_445 = arith.constant 0 : index
      %c0_446 = arith.constant 0 : index
      %723 = vector.load %arg8[%722, %c0_445, %c0_446] : memref<16x16x128xf32, #tpu.memory_space<vmem>>, vector<1x16x128xf32>
      %724 = vector.shape_cast %723 : vector<1x16x128xf32> to vector<16x128xf32>
      %725 = vector.shape_cast %129 : vector<16x128xf32> to vector<1x16x128xf32>
      tpu.vector_store %arg8[%722, %c0_445, %c0_446], %725 {strides = array<i32>} : memref<16x16x128xf32, #tpu.memory_space<vmem>>, vector<1x16x128xf32>,
    } else {
    }
    %true_78 = arith.constant true
    %132 = arith.xori %0, %true_78 : i1
    %133 = arith.extui %132 : i1 to i32
    %c0_i32_79 = arith.constant 0 : i32
    %134 = arith.cmpi ne, %133, %c0_i32_79 : i32
    scf.if %134 {
      %722 = arith.index_cast %c2_i32_52 : i32 to index
      %c0_445 = arith.constant 0 : index
      %c0_446 = arith.constant 0 : index
      %723 = vector.load %arg8[%722, %c0_445, %c0_446] : memref<16x16x128xf32, #tpu.memory_space<vmem>>, vector<1x16x128xf32>
      %724 = vector.shape_cast %723 : vector<1x16x128xf32> to vector<16x128xf32>
      %725 = arith.addf %724, %129 : vector<16x128xf32>
      %726 = arith.index_cast %c2_i32_52 : i32 to index
      %c0_447 = arith.constant 0 : index
      %c0_448 = arith.constant 0 : index
      %727 = vector.load %arg8[%726, %c0_447, %c0_448] : memref<16x16x128xf32, #tpu.memory_space<vmem>>, vector<1x16x128xf32>
      %728 = vector.shape_cast %727 : vector<1x16x128xf32> to vector<16x128xf32>
      %729 = vector.shape_cast %725 : vector<16x128xf32> to vector<1x16x128xf32>
      tpu.vector_store %arg8[%726, %c0_447, %c0_448], %729 {strides = array<i32>} : memref<16x16x128xf32, #tpu.memory_space<vmem>>, vector<1x16x128xf32>,
    } else {
    }
    %135 = arith.extui %1 : i1 to i32
    %c0_i32_80 = arith.constant 0 : i32
    %136 = arith.cmpi ne, %135, %c0_i32_80 : i32
    scf.if %136 {
      %722 = arith.index_cast %c2_i32_52 : i32 to index
      %c0_445 = arith.constant 0 : index
      %c0_446 = arith.constant 0 : index
      %723 = vector.load %arg8[%722, %c0_445, %c0_446] : memref<16x16x128xf32, #tpu.memory_space<vmem>>, vector<1x16x128xf32>
      %724 = vector.shape_cast %723 : vector<1x16x128xf32> to vector<16x128xf32>
      %c0_447 = arith.constant 0 : index
      %c0_448 = arith.constant 0 : index
      %725 = vector.load %arg4[%c0_447, %c0_448] : memref<1x128xf32, #tpu.memory_space<vmem>>, vector<1x128xf32>
      %726 = vector.broadcast %725 : vector<1x128xf32> to vector<16x128xf32>
      %727 = arith.addf %724, %726 : vector<16x128xf32>
      %cst_449 = arith.constant 0.000000e+00 : f32
      %728 = vector.broadcast %cst_449 : f32 to vector<16x128xf32>
      %729 = arith.maximumf %727, %728 : vector<16x128xf32>
      %730 = arith.truncf %729 : vector<16x128xf32> to vector<16x128xbf16>
      %c0_450 = arith.constant 0 : index
      %c0_451 = arith.constant 0 : index
      %731 = vector.load %arg5[%c0_450, %c0_451] : memref<128x128xbf16, #tpu.memory_space<vmem>>, vector<128x128xbf16>
      %cst_452 = arith.constant dense<0.000000e+00> : vector<16x128xf32>
      %732 = tpu.matmul %730, %731, %cst_452 {dimension_numbers = #tpu.dot_dimension_numbers<[1], [0], [0], [1], [0, 0, 1, 1], [], []>} : vector<16x128xbf16>, vector<128x128xbf16>, vector<16x128xf32> -> vector<16x128xf32>
      %c0_453 = arith.constant 0 : index
      %c0_454 = arith.constant 0 : index
      %733 = vector.load %arg6[%c0_453, %c0_454] : memref<1x128xf32, #tpu.memory_space<vmem>>, vector<1x128xf32>
      %734 = vector.broadcast %733 : vector<1x128xf32> to vector<16x128xf32>
      %735 = arith.addf %732, %734 : vector<16x128xf32>
      %c0_455 = arith.constant 0 : index
      %736 = arith.index_cast %c2_i32_52 : i32 to index
      %c0_456 = arith.constant 0 : index
      %c0_457 = arith.constant 0 : index
      %737 = vector.load %arg7[%c0_455, %736, %c0_456, %c0_457] : memref<1x16x16x128xf32, #tpu.memory_space<vmem>>, vector<1x1x16x128xf32>
      %738 = vector.shape_cast %737 : vector<1x1x16x128xf32> to vector<16x128xf32>
      %739 = vector.shape_cast %735 : vector<16x128xf32> to vector<1x1x16x128xf32>
      tpu.vector_store %arg7[%c0_455, %736, %c0_456, %c0_457], %739 {strides = array<i32>} : memref<1x16x16x128xf32, #tpu.memory_space<vmem>>, vector<1x1x16x128xf32>,
    } else {
    }
    %c3_i32 = arith.constant 3 : i32
    %c0_i32_81 = arith.constant 0 : i32
    %137 = arith.addi %c3_i32, %c0_i32_81 : i32
    %c0_82 = arith.constant 0 : index
    %138 = arith.index_cast %137 : i32 to index
    %c0_83 = arith.constant 0 : index
    %c0_84 = arith.constant 0 : index
    %139 = vector.load %arg2[%c0_82, %138, %c0_83, %c0_84] : memref<1x18x18x24xbf16, #tpu.memory_space<vmem>>, vector<1x1x18x24xbf16>
    %140 = vector.shape_cast %139 : vector<1x1x18x24xbf16> to vector<18x24xbf16>
    %c0_85 = arith.constant 0 : index
    %c0_86 = arith.constant 0 : index
    %c0_87 = arith.constant 0 : index
    %141 = vector.load %arg3[%c0_85, %c0_86, %c0_87] : memref<3x24x384xbf16, #tpu.memory_space<vmem>>, vector<1x24x384xbf16>
    %142 = vector.shape_cast %141 : vector<1x24x384xbf16> to vector<24x384xbf16>
    %cst_88 = arith.constant dense<0.000000e+00> : vector<18x384xf32>
    %143 = tpu.matmul %140, %142, %cst_88 {dimension_numbers = #tpu.dot_dimension_numbers<[1], [0], [0], [1], [0, 0, 1, 1], [], []>} : vector<18x24xbf16>, vector<24x384xbf16>, vector<18x384xf32> -> vector<18x384xf32>
    %144 = vector.extract_strided_slice %143 {offsets = [0, 0], sizes = [16, 128], strides = [1, 1]} : vector<18x384xf32> to vector<16x128xf32>
    %145 = vector.extract_strided_slice %143 {offsets = [1, 128], sizes = [16, 128], strides = [1, 1]} : vector<18x384xf32> to vector<16x128xf32>
    %146 = arith.addf %144, %145 : vector<16x128xf32>
    %147 = vector.extract_strided_slice %143 {offsets = [2, 256], sizes = [16, 128], strides = [1, 1]} : vector<18x384xf32> to vector<16x128xf32>
    %148 = arith.addf %146, %147 : vector<16x128xf32>
    %c1_i32_89 = arith.constant 1 : i32
    %149 = arith.addi %c3_i32, %c1_i32_89 : i32
    %c0_90 = arith.constant 0 : index
    %150 = arith.index_cast %149 : i32 to index
    %c0_91 = arith.constant 0 : index
    %c0_92 = arith.constant 0 : index
    %151 = vector.load %arg2[%c0_90, %150, %c0_91, %c0_92] : memref<1x18x18x24xbf16, #tpu.memory_space<vmem>>, vector<1x1x18x24xbf16>
    %152 = vector.shape_cast %151 : vector<1x1x18x24xbf16> to vector<18x24xbf16>
    %c1_93 = arith.constant 1 : index
    %c0_94 = arith.constant 0 : index
    %c0_95 = arith.constant 0 : index
    %153 = vector.load %arg3[%c1_93, %c0_94, %c0_95] : memref<3x24x384xbf16, #tpu.memory_space<vmem>>, vector<1x24x384xbf16>
    %154 = vector.shape_cast %153 : vector<1x24x384xbf16> to vector<24x384xbf16>
    %cst_96 = arith.constant dense<0.000000e+00> : vector<18x384xf32>
    %155 = tpu.matmul %152, %154, %cst_96 {dimension_numbers = #tpu.dot_dimension_numbers<[1], [0], [0], [1], [0, 0, 1, 1], [], []>} : vector<18x24xbf16>, vector<24x384xbf16>, vector<18x384xf32> -> vector<18x384xf32>
    %156 = vector.extract_strided_slice %155 {offsets = [0, 0], sizes = [16, 128], strides = [1, 1]} : vector<18x384xf32> to vector<16x128xf32>
    %157 = arith.addf %148, %156 : vector<16x128xf32>
    %158 = vector.extract_strided_slice %155 {offsets = [1, 128], sizes = [16, 128], strides = [1, 1]} : vector<18x384xf32> to vector<16x128xf32>
    %159 = arith.addf %157, %158 : vector<16x128xf32>
    %160 = vector.extract_strided_slice %155 {offsets = [2, 256], sizes = [16, 128], strides = [1, 1]} : vector<18x384xf32> to vector<16x128xf32>
    %161 = arith.addf %159, %160 : vector<16x128xf32>
    %c2_i32_97 = arith.constant 2 : i32
    %162 = arith.addi %c3_i32, %c2_i32_97 : i32
    %c0_98 = arith.constant 0 : index
    %163 = arith.index_cast %162 : i32 to index
    %c0_99 = arith.constant 0 : index
    %c0_100 = arith.constant 0 : index
    %164 = vector.load %arg2[%c0_98, %163, %c0_99, %c0_100] : memref<1x18x18x24xbf16, #tpu.memory_space<vmem>>, vector<1x1x18x24xbf16>
    %165 = vector.shape_cast %164 : vector<1x1x18x24xbf16> to vector<18x24xbf16>
    %c2_101 = arith.constant 2 : index
    %c0_102 = arith.constant 0 : index
    %c0_103 = arith.constant 0 : index
    %166 = vector.load %arg3[%c2_101, %c0_102, %c0_103] : memref<3x24x384xbf16, #tpu.memory_space<vmem>>, vector<1x24x384xbf16>
    %167 = vector.shape_cast %166 : vector<1x24x384xbf16> to vector<24x384xbf16>
    %cst_104 = arith.constant dense<0.000000e+00> : vector<18x384xf32>
    %168 = tpu.matmul %165, %167, %cst_104 {dimension_numbers = #tpu.dot_dimension_numbers<[1], [0], [0], [1], [0, 0, 1, 1], [], []>} : vector<18x24xbf16>, vector<24x384xbf16>, vector<18x384xf32> -> vector<18x384xf32>
    %169 = vector.extract_strided_slice %168 {offsets = [0, 0], sizes = [16, 128], strides = [1, 1]} : vector<18x384xf32> to vector<16x128xf32>
    %170 = arith.addf %161, %169 : vector<16x128xf32>
    %171 = vector.extract_strided_slice %168 {offsets = [1, 128], sizes = [16, 128], strides = [1, 1]} : vector<18x384xf32> to vector<16x128xf32>
    %172 = arith.addf %170, %171 : vector<16x128xf32>
    %173 = vector.extract_strided_slice %168 {offsets = [2, 256], sizes = [16, 128], strides = [1, 1]} : vector<18x384xf32> to vector<16x128xf32>
    %174 = arith.addf %172, %173 : vector<16x128xf32>
    %175 = arith.extui %0 : i1 to i32
    %c0_i32_105 = arith.constant 0 : i32
    %176 = arith.cmpi ne, %175, %c0_i32_105 : i32
    scf.if %176 {
      %722 = arith.index_cast %c3_i32 : i32 to index
      %c0_445 = arith.constant 0 : index
      %c0_446 = arith.constant 0 : index
      %723 = vector.load %arg8[%722, %c0_445, %c0_446] : memref<16x16x128xf32, #tpu.memory_space<vmem>>, vector<1x16x128xf32>
      %724 = vector.shape_cast %723 : vector<1x16x128xf32> to vector<16x128xf32>
      %725 = vector.shape_cast %174 : vector<16x128xf32> to vector<1x16x128xf32>
      tpu.vector_store %arg8[%722, %c0_445, %c0_446], %725 {strides = array<i32>} : memref<16x16x128xf32, #tpu.memory_space<vmem>>, vector<1x16x128xf32>,
    } else {
    }
    %true_106 = arith.constant true
    %177 = arith.xori %0, %true_106 : i1
    %178 = arith.extui %177 : i1 to i32
    %c0_i32_107 = arith.constant 0 : i32
    %179 = arith.cmpi ne, %178, %c0_i32_107 : i32
    scf.if %179 {
      %722 = arith.index_cast %c3_i32 : i32 to index
      %c0_445 = arith.constant 0 : index
      %c0_446 = arith.constant 0 : index
      %723 = vector.load %arg8[%722, %c0_445, %c0_446] : memref<16x16x128xf32, #tpu.memory_space<vmem>>, vector<1x16x128xf32>
      %724 = vector.shape_cast %723 : vector<1x16x128xf32> to vector<16x128xf32>
      %725 = arith.addf %724, %174 : vector<16x128xf32>
      %726 = arith.index_cast %c3_i32 : i32 to index
      %c0_447 = arith.constant 0 : index
      %c0_448 = arith.constant 0 : index
      %727 = vector.load %arg8[%726, %c0_447, %c0_448] : memref<16x16x128xf32, #tpu.memory_space<vmem>>, vector<1x16x128xf32>
      %728 = vector.shape_cast %727 : vector<1x16x128xf32> to vector<16x128xf32>
      %729 = vector.shape_cast %725 : vector<16x128xf32> to vector<1x16x128xf32>
      tpu.vector_store %arg8[%726, %c0_447, %c0_448], %729 {strides = array<i32>} : memref<16x16x128xf32, #tpu.memory_space<vmem>>, vector<1x16x128xf32>,
    } else {
    }
    %180 = arith.extui %1 : i1 to i32
    %c0_i32_108 = arith.constant 0 : i32
    %181 = arith.cmpi ne, %180, %c0_i32_108 : i32
    scf.if %181 {
      %722 = arith.index_cast %c3_i32 : i32 to index
      %c0_445 = arith.constant 0 : index
      %c0_446 = arith.constant 0 : index
      %723 = vector.load %arg8[%722, %c0_445, %c0_446] : memref<16x16x128xf32, #tpu.memory_space<vmem>>, vector<1x16x128xf32>
      %724 = vector.shape_cast %723 : vector<1x16x128xf32> to vector<16x128xf32>
      %c0_447 = arith.constant 0 : index
      %c0_448 = arith.constant 0 : index
      %725 = vector.load %arg4[%c0_447, %c0_448] : memref<1x128xf32, #tpu.memory_space<vmem>>, vector<1x128xf32>
      %726 = vector.broadcast %725 : vector<1x128xf32> to vector<16x128xf32>
      %727 = arith.addf %724, %726 : vector<16x128xf32>
      %cst_449 = arith.constant 0.000000e+00 : f32
      %728 = vector.broadcast %cst_449 : f32 to vector<16x128xf32>
      %729 = arith.maximumf %727, %728 : vector<16x128xf32>
      %730 = arith.truncf %729 : vector<16x128xf32> to vector<16x128xbf16>
      %c0_450 = arith.constant 0 : index
      %c0_451 = arith.constant 0 : index
      %731 = vector.load %arg5[%c0_450, %c0_451] : memref<128x128xbf16, #tpu.memory_space<vmem>>, vector<128x128xbf16>
      %cst_452 = arith.constant dense<0.000000e+00> : vector<16x128xf32>
      %732 = tpu.matmul %730, %731, %cst_452 {dimension_numbers = #tpu.dot_dimension_numbers<[1], [0], [0], [1], [0, 0, 1, 1], [], []>} : vector<16x128xbf16>, vector<128x128xbf16>, vector<16x128xf32> -> vector<16x128xf32>
      %c0_453 = arith.constant 0 : index
      %c0_454 = arith.constant 0 : index
      %733 = vector.load %arg6[%c0_453, %c0_454] : memref<1x128xf32, #tpu.memory_space<vmem>>, vector<1x128xf32>
      %734 = vector.broadcast %733 : vector<1x128xf32> to vector<16x128xf32>
      %735 = arith.addf %732, %734 : vector<16x128xf32>
      %c0_455 = arith.constant 0 : index
      %736 = arith.index_cast %c3_i32 : i32 to index
      %c0_456 = arith.constant 0 : index
      %c0_457 = arith.constant 0 : index
      %737 = vector.load %arg7[%c0_455, %736, %c0_456, %c0_457] : memref<1x16x16x128xf32, #tpu.memory_space<vmem>>, vector<1x1x16x128xf32>
      %738 = vector.shape_cast %737 : vector<1x1x16x128xf32> to vector<16x128xf32>
      %739 = vector.shape_cast %735 : vector<16x128xf32> to vector<1x1x16x128xf32>
      tpu.vector_store %arg7[%c0_455, %736, %c0_456, %c0_457], %739 {strides = array<i32>} : memref<1x16x16x128xf32, #tpu.memory_space<vmem>>, vector<1x1x16x128xf32>,
    } else {
    }
    %c4_i32 = arith.constant 4 : i32
    %c0_i32_109 = arith.constant 0 : i32
    %182 = arith.addi %c4_i32, %c0_i32_109 : i32
    %c0_110 = arith.constant 0 : index
    %183 = arith.index_cast %182 : i32 to index
    %c0_111 = arith.constant 0 : index
    %c0_112 = arith.constant 0 : index
    %184 = vector.load %arg2[%c0_110, %183, %c0_111, %c0_112] : memref<1x18x18x24xbf16, #tpu.memory_space<vmem>>, vector<1x1x18x24xbf16>
    %185 = vector.shape_cast %184 : vector<1x1x18x24xbf16> to vector<18x24xbf16>
    %c0_113 = arith.constant 0 : index
    %c0_114 = arith.constant 0 : index
    %c0_115 = arith.constant 0 : index
    %186 = vector.load %arg3[%c0_113, %c0_114, %c0_115] : memref<3x24x384xbf16, #tpu.memory_space<vmem>>, vector<1x24x384xbf16>
    %187 = vector.shape_cast %186 : vector<1x24x384xbf16> to vector<24x384xbf16>
    %cst_116 = arith.constant dense<0.000000e+00> : vector<18x384xf32>
    %188 = tpu.matmul %185, %187, %cst_116 {dimension_numbers = #tpu.dot_dimension_numbers<[1], [0], [0], [1], [0, 0, 1, 1], [], []>} : vector<18x24xbf16>, vector<24x384xbf16>, vector<18x384xf32> -> vector<18x384xf32>
    %189 = vector.extract_strided_slice %188 {offsets = [0, 0], sizes = [16, 128], strides = [1, 1]} : vector<18x384xf32> to vector<16x128xf32>
    %190 = vector.extract_strided_slice %188 {offsets = [1, 128], sizes = [16, 128], strides = [1, 1]} : vector<18x384xf32> to vector<16x128xf32>
    %191 = arith.addf %189, %190 : vector<16x128xf32>
    %192 = vector.extract_strided_slice %188 {offsets = [2, 256], sizes = [16, 128], strides = [1, 1]} : vector<18x384xf32> to vector<16x128xf32>
    %193 = arith.addf %191, %192 : vector<16x128xf32>
    %c1_i32_117 = arith.constant 1 : i32
    %194 = arith.addi %c4_i32, %c1_i32_117 : i32
    %c0_118 = arith.constant 0 : index
    %195 = arith.index_cast %194 : i32 to index
    %c0_119 = arith.constant 0 : index
    %c0_120 = arith.constant 0 : index
    %196 = vector.load %arg2[%c0_118, %195, %c0_119, %c0_120] : memref<1x18x18x24xbf16, #tpu.memory_space<vmem>>, vector<1x1x18x24xbf16>
    %197 = vector.shape_cast %196 : vector<1x1x18x24xbf16> to vector<18x24xbf16>
    %c1_121 = arith.constant 1 : index
    %c0_122 = arith.constant 0 : index
    %c0_123 = arith.constant 0 : index
    %198 = vector.load %arg3[%c1_121, %c0_122, %c0_123] : memref<3x24x384xbf16, #tpu.memory_space<vmem>>, vector<1x24x384xbf16>
    %199 = vector.shape_cast %198 : vector<1x24x384xbf16> to vector<24x384xbf16>
    %cst_124 = arith.constant dense<0.000000e+00> : vector<18x384xf32>
    %200 = tpu.matmul %197, %199, %cst_124 {dimension_numbers = #tpu.dot_dimension_numbers<[1], [0], [0], [1], [0, 0, 1, 1], [], []>} : vector<18x24xbf16>, vector<24x384xbf16>, vector<18x384xf32> -> vector<18x384xf32>
    %201 = vector.extract_strided_slice %200 {offsets = [0, 0], sizes = [16, 128], strides = [1, 1]} : vector<18x384xf32> to vector<16x128xf32>
    %202 = arith.addf %193, %201 : vector<16x128xf32>
    %203 = vector.extract_strided_slice %200 {offsets = [1, 128], sizes = [16, 128], strides = [1, 1]} : vector<18x384xf32> to vector<16x128xf32>
    %204 = arith.addf %202, %203 : vector<16x128xf32>
    %205 = vector.extract_strided_slice %200 {offsets = [2, 256], sizes = [16, 128], strides = [1, 1]} : vector<18x384xf32> to vector<16x128xf32>
    %206 = arith.addf %204, %205 : vector<16x128xf32>
    %c2_i32_125 = arith.constant 2 : i32
    %207 = arith.addi %c4_i32, %c2_i32_125 : i32
    %c0_126 = arith.constant 0 : index
    %208 = arith.index_cast %207 : i32 to index
    %c0_127 = arith.constant 0 : index
    %c0_128 = arith.constant 0 : index
    %209 = vector.load %arg2[%c0_126, %208, %c0_127, %c0_128] : memref<1x18x18x24xbf16, #tpu.memory_space<vmem>>, vector<1x1x18x24xbf16>
    %210 = vector.shape_cast %209 : vector<1x1x18x24xbf16> to vector<18x24xbf16>
    %c2_129 = arith.constant 2 : index
    %c0_130 = arith.constant 0 : index
    %c0_131 = arith.constant 0 : index
    %211 = vector.load %arg3[%c2_129, %c0_130, %c0_131] : memref<3x24x384xbf16, #tpu.memory_space<vmem>>, vector<1x24x384xbf16>
    %212 = vector.shape_cast %211 : vector<1x24x384xbf16> to vector<24x384xbf16>
    %cst_132 = arith.constant dense<0.000000e+00> : vector<18x384xf32>
    %213 = tpu.matmul %210, %212, %cst_132 {dimension_numbers = #tpu.dot_dimension_numbers<[1], [0], [0], [1], [0, 0, 1, 1], [], []>} : vector<18x24xbf16>, vector<24x384xbf16>, vector<18x384xf32> -> vector<18x384xf32>
    %214 = vector.extract_strided_slice %213 {offsets = [0, 0], sizes = [16, 128], strides = [1, 1]} : vector<18x384xf32> to vector<16x128xf32>
    %215 = arith.addf %206, %214 : vector<16x128xf32>
    %216 = vector.extract_strided_slice %213 {offsets = [1, 128], sizes = [16, 128], strides = [1, 1]} : vector<18x384xf32> to vector<16x128xf32>
    %217 = arith.addf %215, %216 : vector<16x128xf32>
    %218 = vector.extract_strided_slice %213 {offsets = [2, 256], sizes = [16, 128], strides = [1, 1]} : vector<18x384xf32> to vector<16x128xf32>
    %219 = arith.addf %217, %218 : vector<16x128xf32>
    %220 = arith.extui %0 : i1 to i32
    %c0_i32_133 = arith.constant 0 : i32
    %221 = arith.cmpi ne, %220, %c0_i32_133 : i32
    scf.if %221 {
      %722 = arith.index_cast %c4_i32 : i32 to index
      %c0_445 = arith.constant 0 : index
      %c0_446 = arith.constant 0 : index
      %723 = vector.load %arg8[%722, %c0_445, %c0_446] : memref<16x16x128xf32, #tpu.memory_space<vmem>>, vector<1x16x128xf32>
      %724 = vector.shape_cast %723 : vector<1x16x128xf32> to vector<16x128xf32>
      %725 = vector.shape_cast %219 : vector<16x128xf32> to vector<1x16x128xf32>
      tpu.vector_store %arg8[%722, %c0_445, %c0_446], %725 {strides = array<i32>} : memref<16x16x128xf32, #tpu.memory_space<vmem>>, vector<1x16x128xf32>,
    } else {
    }
    %true_134 = arith.constant true
    %222 = arith.xori %0, %true_134 : i1
    %223 = arith.extui %222 : i1 to i32
    %c0_i32_135 = arith.constant 0 : i32
    %224 = arith.cmpi ne, %223, %c0_i32_135 : i32
    scf.if %224 {
      %722 = arith.index_cast %c4_i32 : i32 to index
      %c0_445 = arith.constant 0 : index
      %c0_446 = arith.constant 0 : index
      %723 = vector.load %arg8[%722, %c0_445, %c0_446] : memref<16x16x128xf32, #tpu.memory_space<vmem>>, vector<1x16x128xf32>
      %724 = vector.shape_cast %723 : vector<1x16x128xf32> to vector<16x128xf32>
      %725 = arith.addf %724, %219 : vector<16x128xf32>
      %726 = arith.index_cast %c4_i32 : i32 to index
      %c0_447 = arith.constant 0 : index
      %c0_448 = arith.constant 0 : index
      %727 = vector.load %arg8[%726, %c0_447, %c0_448] : memref<16x16x128xf32, #tpu.memory_space<vmem>>, vector<1x16x128xf32>
      %728 = vector.shape_cast %727 : vector<1x16x128xf32> to vector<16x128xf32>
      %729 = vector.shape_cast %725 : vector<16x128xf32> to vector<1x16x128xf32>
      tpu.vector_store %arg8[%726, %c0_447, %c0_448], %729 {strides = array<i32>} : memref<16x16x128xf32, #tpu.memory_space<vmem>>, vector<1x16x128xf32>,
    } else {
    }
    %225 = arith.extui %1 : i1 to i32
    %c0_i32_136 = arith.constant 0 : i32
    %226 = arith.cmpi ne, %225, %c0_i32_136 : i32
    scf.if %226 {
      %722 = arith.index_cast %c4_i32 : i32 to index
      %c0_445 = arith.constant 0 : index
      %c0_446 = arith.constant 0 : index
      %723 = vector.load %arg8[%722, %c0_445, %c0_446] : memref<16x16x128xf32, #tpu.memory_space<vmem>>, vector<1x16x128xf32>
      %724 = vector.shape_cast %723 : vector<1x16x128xf32> to vector<16x128xf32>
      %c0_447 = arith.constant 0 : index
      %c0_448 = arith.constant 0 : index
      %725 = vector.load %arg4[%c0_447, %c0_448] : memref<1x128xf32, #tpu.memory_space<vmem>>, vector<1x128xf32>
      %726 = vector.broadcast %725 : vector<1x128xf32> to vector<16x128xf32>
      %727 = arith.addf %724, %726 : vector<16x128xf32>
      %cst_449 = arith.constant 0.000000e+00 : f32
      %728 = vector.broadcast %cst_449 : f32 to vector<16x128xf32>
      %729 = arith.maximumf %727, %728 : vector<16x128xf32>
      %730 = arith.truncf %729 : vector<16x128xf32> to vector<16x128xbf16>
      %c0_450 = arith.constant 0 : index
      %c0_451 = arith.constant 0 : index
      %731 = vector.load %arg5[%c0_450, %c0_451] : memref<128x128xbf16, #tpu.memory_space<vmem>>, vector<128x128xbf16>
      %cst_452 = arith.constant dense<0.000000e+00> : vector<16x128xf32>
      %732 = tpu.matmul %730, %731, %cst_452 {dimension_numbers = #tpu.dot_dimension_numbers<[1], [0], [0], [1], [0, 0, 1, 1], [], []>} : vector<16x128xbf16>, vector<128x128xbf16>, vector<16x128xf32> -> vector<16x128xf32>
      %c0_453 = arith.constant 0 : index
      %c0_454 = arith.constant 0 : index
      %733 = vector.load %arg6[%c0_453, %c0_454] : memref<1x128xf32, #tpu.memory_space<vmem>>, vector<1x128xf32>
      %734 = vector.broadcast %733 : vector<1x128xf32> to vector<16x128xf32>
      %735 = arith.addf %732, %734 : vector<16x128xf32>
      %c0_455 = arith.constant 0 : index
      %736 = arith.index_cast %c4_i32 : i32 to index
      %c0_456 = arith.constant 0 : index
      %c0_457 = arith.constant 0 : index
      %737 = vector.load %arg7[%c0_455, %736, %c0_456, %c0_457] : memref<1x16x16x128xf32, #tpu.memory_space<vmem>>, vector<1x1x16x128xf32>
      %738 = vector.shape_cast %737 : vector<1x1x16x128xf32> to vector<16x128xf32>
      %739 = vector.shape_cast %735 : vector<16x128xf32> to vector<1x1x16x128xf32>
      tpu.vector_store %arg7[%c0_455, %736, %c0_456, %c0_457], %739 {strides = array<i32>} : memref<1x16x16x128xf32, #tpu.memory_space<vmem>>, vector<1x1x16x128xf32>,
    } else {
    }
    %c5_i32 = arith.constant 5 : i32
    %c0_i32_137 = arith.constant 0 : i32
    %227 = arith.addi %c5_i32, %c0_i32_137 : i32
    %c0_138 = arith.constant 0 : index
    %228 = arith.index_cast %227 : i32 to index
    %c0_139 = arith.constant 0 : index
    %c0_140 = arith.constant 0 : index
    %229 = vector.load %arg2[%c0_138, %228, %c0_139, %c0_140] : memref<1x18x18x24xbf16, #tpu.memory_space<vmem>>, vector<1x1x18x24xbf16>
    %230 = vector.shape_cast %229 : vector<1x1x18x24xbf16> to vector<18x24xbf16>
    %c0_141 = arith.constant 0 : index
    %c0_142 = arith.constant 0 : index
    %c0_143 = arith.constant 0 : index
    %231 = vector.load %arg3[%c0_141, %c0_142, %c0_143] : memref<3x24x384xbf16, #tpu.memory_space<vmem>>, vector<1x24x384xbf16>
    %232 = vector.shape_cast %231 : vector<1x24x384xbf16> to vector<24x384xbf16>
    %cst_144 = arith.constant dense<0.000000e+00> : vector<18x384xf32>
    %233 = tpu.matmul %230, %232, %cst_144 {dimension_numbers = #tpu.dot_dimension_numbers<[1], [0], [0], [1], [0, 0, 1, 1], [], []>} : vector<18x24xbf16>, vector<24x384xbf16>, vector<18x384xf32> -> vector<18x384xf32>
    %234 = vector.extract_strided_slice %233 {offsets = [0, 0], sizes = [16, 128], strides = [1, 1]} : vector<18x384xf32> to vector<16x128xf32>
    %235 = vector.extract_strided_slice %233 {offsets = [1, 128], sizes = [16, 128], strides = [1, 1]} : vector<18x384xf32> to vector<16x128xf32>
    %236 = arith.addf %234, %235 : vector<16x128xf32>
    %237 = vector.extract_strided_slice %233 {offsets = [2, 256], sizes = [16, 128], strides = [1, 1]} : vector<18x384xf32> to vector<16x128xf32>
    %238 = arith.addf %236, %237 : vector<16x128xf32>
    %c1_i32_145 = arith.constant 1 : i32
    %239 = arith.addi %c5_i32, %c1_i32_145 : i32
    %c0_146 = arith.constant 0 : index
    %240 = arith.index_cast %239 : i32 to index
    %c0_147 = arith.constant 0 : index
    %c0_148 = arith.constant 0 : index
    %241 = vector.load %arg2[%c0_146, %240, %c0_147, %c0_148] : memref<1x18x18x24xbf16, #tpu.memory_space<vmem>>, vector<1x1x18x24xbf16>
    %242 = vector.shape_cast %241 : vector<1x1x18x24xbf16> to vector<18x24xbf16>
    %c1_149 = arith.constant 1 : index
    %c0_150 = arith.constant 0 : index
    %c0_151 = arith.constant 0 : index
    %243 = vector.load %arg3[%c1_149, %c0_150, %c0_151] : memref<3x24x384xbf16, #tpu.memory_space<vmem>>, vector<1x24x384xbf16>
    %244 = vector.shape_cast %243 : vector<1x24x384xbf16> to vector<24x384xbf16>
    %cst_152 = arith.constant dense<0.000000e+00> : vector<18x384xf32>
    %245 = tpu.matmul %242, %244, %cst_152 {dimension_numbers = #tpu.dot_dimension_numbers<[1], [0], [0], [1], [0, 0, 1, 1], [], []>} : vector<18x24xbf16>, vector<24x384xbf16>, vector<18x384xf32> -> vector<18x384xf32>
    %246 = vector.extract_strided_slice %245 {offsets = [0, 0], sizes = [16, 128], strides = [1, 1]} : vector<18x384xf32> to vector<16x128xf32>
    %247 = arith.addf %238, %246 : vector<16x128xf32>
    %248 = vector.extract_strided_slice %245 {offsets = [1, 128], sizes = [16, 128], strides = [1, 1]} : vector<18x384xf32> to vector<16x128xf32>
    %249 = arith.addf %247, %248 : vector<16x128xf32>
    %250 = vector.extract_strided_slice %245 {offsets = [2, 256], sizes = [16, 128], strides = [1, 1]} : vector<18x384xf32> to vector<16x128xf32>
    %251 = arith.addf %249, %250 : vector<16x128xf32>
    %c2_i32_153 = arith.constant 2 : i32
    %252 = arith.addi %c5_i32, %c2_i32_153 : i32
    %c0_154 = arith.constant 0 : index
    %253 = arith.index_cast %252 : i32 to index
    %c0_155 = arith.constant 0 : index
    %c0_156 = arith.constant 0 : index
    %254 = vector.load %arg2[%c0_154, %253, %c0_155, %c0_156] : memref<1x18x18x24xbf16, #tpu.memory_space<vmem>>, vector<1x1x18x24xbf16>
    %255 = vector.shape_cast %254 : vector<1x1x18x24xbf16> to vector<18x24xbf16>
    %c2_157 = arith.constant 2 : index
    %c0_158 = arith.constant 0 : index
    %c0_159 = arith.constant 0 : index
    %256 = vector.load %arg3[%c2_157, %c0_158, %c0_159] : memref<3x24x384xbf16, #tpu.memory_space<vmem>>, vector<1x24x384xbf16>
    %257 = vector.shape_cast %256 : vector<1x24x384xbf16> to vector<24x384xbf16>
    %cst_160 = arith.constant dense<0.000000e+00> : vector<18x384xf32>
    %258 = tpu.matmul %255, %257, %cst_160 {dimension_numbers = #tpu.dot_dimension_numbers<[1], [0], [0], [1], [0, 0, 1, 1], [], []>} : vector<18x24xbf16>, vector<24x384xbf16>, vector<18x384xf32> -> vector<18x384xf32>
    %259 = vector.extract_strided_slice %258 {offsets = [0, 0], sizes = [16, 128], strides = [1, 1]} : vector<18x384xf32> to vector<16x128xf32>
    %260 = arith.addf %251, %259 : vector<16x128xf32>
    %261 = vector.extract_strided_slice %258 {offsets = [1, 128], sizes = [16, 128], strides = [1, 1]} : vector<18x384xf32> to vector<16x128xf32>
    %262 = arith.addf %260, %261 : vector<16x128xf32>
    %263 = vector.extract_strided_slice %258 {offsets = [2, 256], sizes = [16, 128], strides = [1, 1]} : vector<18x384xf32> to vector<16x128xf32>
    %264 = arith.addf %262, %263 : vector<16x128xf32>
    %265 = arith.extui %0 : i1 to i32
    %c0_i32_161 = arith.constant 0 : i32
    %266 = arith.cmpi ne, %265, %c0_i32_161 : i32
    scf.if %266 {
      %722 = arith.index_cast %c5_i32 : i32 to index
      %c0_445 = arith.constant 0 : index
      %c0_446 = arith.constant 0 : index
      %723 = vector.load %arg8[%722, %c0_445, %c0_446] : memref<16x16x128xf32, #tpu.memory_space<vmem>>, vector<1x16x128xf32>
      %724 = vector.shape_cast %723 : vector<1x16x128xf32> to vector<16x128xf32>
      %725 = vector.shape_cast %264 : vector<16x128xf32> to vector<1x16x128xf32>
      tpu.vector_store %arg8[%722, %c0_445, %c0_446], %725 {strides = array<i32>} : memref<16x16x128xf32, #tpu.memory_space<vmem>>, vector<1x16x128xf32>,
    } else {
    }
    %true_162 = arith.constant true
    %267 = arith.xori %0, %true_162 : i1
    %268 = arith.extui %267 : i1 to i32
    %c0_i32_163 = arith.constant 0 : i32
    %269 = arith.cmpi ne, %268, %c0_i32_163 : i32
    scf.if %269 {
      %722 = arith.index_cast %c5_i32 : i32 to index
      %c0_445 = arith.constant 0 : index
      %c0_446 = arith.constant 0 : index
      %723 = vector.load %arg8[%722, %c0_445, %c0_446] : memref<16x16x128xf32, #tpu.memory_space<vmem>>, vector<1x16x128xf32>
      %724 = vector.shape_cast %723 : vector<1x16x128xf32> to vector<16x128xf32>
      %725 = arith.addf %724, %264 : vector<16x128xf32>
      %726 = arith.index_cast %c5_i32 : i32 to index
      %c0_447 = arith.constant 0 : index
      %c0_448 = arith.constant 0 : index
      %727 = vector.load %arg8[%726, %c0_447, %c0_448] : memref<16x16x128xf32, #tpu.memory_space<vmem>>, vector<1x16x128xf32>
      %728 = vector.shape_cast %727 : vector<1x16x128xf32> to vector<16x128xf32>
      %729 = vector.shape_cast %725 : vector<16x128xf32> to vector<1x16x128xf32>
      tpu.vector_store %arg8[%726, %c0_447, %c0_448], %729 {strides = array<i32>} : memref<16x16x128xf32, #tpu.memory_space<vmem>>, vector<1x16x128xf32>,
    } else {
    }
    %270 = arith.extui %1 : i1 to i32
    %c0_i32_164 = arith.constant 0 : i32
    %271 = arith.cmpi ne, %270, %c0_i32_164 : i32
    scf.if %271 {
      %722 = arith.index_cast %c5_i32 : i32 to index
      %c0_445 = arith.constant 0 : index
      %c0_446 = arith.constant 0 : index
      %723 = vector.load %arg8[%722, %c0_445, %c0_446] : memref<16x16x128xf32, #tpu.memory_space<vmem>>, vector<1x16x128xf32>
      %724 = vector.shape_cast %723 : vector<1x16x128xf32> to vector<16x128xf32>
      %c0_447 = arith.constant 0 : index
      %c0_448 = arith.constant 0 : index
      %725 = vector.load %arg4[%c0_447, %c0_448] : memref<1x128xf32, #tpu.memory_space<vmem>>, vector<1x128xf32>
      %726 = vector.broadcast %725 : vector<1x128xf32> to vector<16x128xf32>
      %727 = arith.addf %724, %726 : vector<16x128xf32>
      %cst_449 = arith.constant 0.000000e+00 : f32
      %728 = vector.broadcast %cst_449 : f32 to vector<16x128xf32>
      %729 = arith.maximumf %727, %728 : vector<16x128xf32>
      %730 = arith.truncf %729 : vector<16x128xf32> to vector<16x128xbf16>
      %c0_450 = arith.constant 0 : index
      %c0_451 = arith.constant 0 : index
      %731 = vector.load %arg5[%c0_450, %c0_451] : memref<128x128xbf16, #tpu.memory_space<vmem>>, vector<128x128xbf16>
      %cst_452 = arith.constant dense<0.000000e+00> : vector<16x128xf32>
      %732 = tpu.matmul %730, %731, %cst_452 {dimension_numbers = #tpu.dot_dimension_numbers<[1], [0], [0], [1], [0, 0, 1, 1], [], []>} : vector<16x128xbf16>, vector<128x128xbf16>, vector<16x128xf32> -> vector<16x128xf32>
      %c0_453 = arith.constant 0 : index
      %c0_454 = arith.constant 0 : index
      %733 = vector.load %arg6[%c0_453, %c0_454] : memref<1x128xf32, #tpu.memory_space<vmem>>, vector<1x128xf32>
      %734 = vector.broadcast %733 : vector<1x128xf32> to vector<16x128xf32>
      %735 = arith.addf %732, %734 : vector<16x128xf32>
      %c0_455 = arith.constant 0 : index
      %736 = arith.index_cast %c5_i32 : i32 to index
      %c0_456 = arith.constant 0 : index
      %c0_457 = arith.constant 0 : index
      %737 = vector.load %arg7[%c0_455, %736, %c0_456, %c0_457] : memref<1x16x16x128xf32, #tpu.memory_space<vmem>>, vector<1x1x16x128xf32>
      %738 = vector.shape_cast %737 : vector<1x1x16x128xf32> to vector<16x128xf32>
      %739 = vector.shape_cast %735 : vector<16x128xf32> to vector<1x1x16x128xf32>
      tpu.vector_store %arg7[%c0_455, %736, %c0_456, %c0_457], %739 {strides = array<i32>} : memref<1x16x16x128xf32, #tpu.memory_space<vmem>>, vector<1x1x16x128xf32>,
    } else {
    }
    %c6_i32 = arith.constant 6 : i32
    %c0_i32_165 = arith.constant 0 : i32
    %272 = arith.addi %c6_i32, %c0_i32_165 : i32
    %c0_166 = arith.constant 0 : index
    %273 = arith.index_cast %272 : i32 to index
    %c0_167 = arith.constant 0 : index
    %c0_168 = arith.constant 0 : index
    %274 = vector.load %arg2[%c0_166, %273, %c0_167, %c0_168] : memref<1x18x18x24xbf16, #tpu.memory_space<vmem>>, vector<1x1x18x24xbf16>
    %275 = vector.shape_cast %274 : vector<1x1x18x24xbf16> to vector<18x24xbf16>
    %c0_169 = arith.constant 0 : index
    %c0_170 = arith.constant 0 : index
    %c0_171 = arith.constant 0 : index
    %276 = vector.load %arg3[%c0_169, %c0_170, %c0_171] : memref<3x24x384xbf16, #tpu.memory_space<vmem>>, vector<1x24x384xbf16>
    %277 = vector.shape_cast %276 : vector<1x24x384xbf16> to vector<24x384xbf16>
    %cst_172 = arith.constant dense<0.000000e+00> : vector<18x384xf32>
    %278 = tpu.matmul %275, %277, %cst_172 {dimension_numbers = #tpu.dot_dimension_numbers<[1], [0], [0], [1], [0, 0, 1, 1], [], []>} : vector<18x24xbf16>, vector<24x384xbf16>, vector<18x384xf32> -> vector<18x384xf32>
    %279 = vector.extract_strided_slice %278 {offsets = [0, 0], sizes = [16, 128], strides = [1, 1]} : vector<18x384xf32> to vector<16x128xf32>
    %280 = vector.extract_strided_slice %278 {offsets = [1, 128], sizes = [16, 128], strides = [1, 1]} : vector<18x384xf32> to vector<16x128xf32>
    %281 = arith.addf %279, %280 : vector<16x128xf32>
    %282 = vector.extract_strided_slice %278 {offsets = [2, 256], sizes = [16, 128], strides = [1, 1]} : vector<18x384xf32> to vector<16x128xf32>
    %283 = arith.addf %281, %282 : vector<16x128xf32>
    %c1_i32_173 = arith.constant 1 : i32
    %284 = arith.addi %c6_i32, %c1_i32_173 : i32
    %c0_174 = arith.constant 0 : index
    %285 = arith.index_cast %284 : i32 to index
    %c0_175 = arith.constant 0 : index
    %c0_176 = arith.constant 0 : index
    %286 = vector.load %arg2[%c0_174, %285, %c0_175, %c0_176] : memref<1x18x18x24xbf16, #tpu.memory_space<vmem>>, vector<1x1x18x24xbf16>
    %287 = vector.shape_cast %286 : vector<1x1x18x24xbf16> to vector<18x24xbf16>
    %c1_177 = arith.constant 1 : index
    %c0_178 = arith.constant 0 : index
    %c0_179 = arith.constant 0 : index
    %288 = vector.load %arg3[%c1_177, %c0_178, %c0_179] : memref<3x24x384xbf16, #tpu.memory_space<vmem>>, vector<1x24x384xbf16>
    %289 = vector.shape_cast %288 : vector<1x24x384xbf16> to vector<24x384xbf16>
    %cst_180 = arith.constant dense<0.000000e+00> : vector<18x384xf32>
    %290 = tpu.matmul %287, %289, %cst_180 {dimension_numbers = #tpu.dot_dimension_numbers<[1], [0], [0], [1], [0, 0, 1, 1], [], []>} : vector<18x24xbf16>, vector<24x384xbf16>, vector<18x384xf32> -> vector<18x384xf32>
    %291 = vector.extract_strided_slice %290 {offsets = [0, 0], sizes = [16, 128], strides = [1, 1]} : vector<18x384xf32> to vector<16x128xf32>
    %292 = arith.addf %283, %291 : vector<16x128xf32>
    %293 = vector.extract_strided_slice %290 {offsets = [1, 128], sizes = [16, 128], strides = [1, 1]} : vector<18x384xf32> to vector<16x128xf32>
    %294 = arith.addf %292, %293 : vector<16x128xf32>
    %295 = vector.extract_strided_slice %290 {offsets = [2, 256], sizes = [16, 128], strides = [1, 1]} : vector<18x384xf32> to vector<16x128xf32>
    %296 = arith.addf %294, %295 : vector<16x128xf32>
    %c2_i32_181 = arith.constant 2 : i32
    %297 = arith.addi %c6_i32, %c2_i32_181 : i32
    %c0_182 = arith.constant 0 : index
    %298 = arith.index_cast %297 : i32 to index
    %c0_183 = arith.constant 0 : index
    %c0_184 = arith.constant 0 : index
    %299 = vector.load %arg2[%c0_182, %298, %c0_183, %c0_184] : memref<1x18x18x24xbf16, #tpu.memory_space<vmem>>, vector<1x1x18x24xbf16>
    %300 = vector.shape_cast %299 : vector<1x1x18x24xbf16> to vector<18x24xbf16>
    %c2_185 = arith.constant 2 : index
    %c0_186 = arith.constant 0 : index
    %c0_187 = arith.constant 0 : index
    %301 = vector.load %arg3[%c2_185, %c0_186, %c0_187] : memref<3x24x384xbf16, #tpu.memory_space<vmem>>, vector<1x24x384xbf16>
    %302 = vector.shape_cast %301 : vector<1x24x384xbf16> to vector<24x384xbf16>
    %cst_188 = arith.constant dense<0.000000e+00> : vector<18x384xf32>
    %303 = tpu.matmul %300, %302, %cst_188 {dimension_numbers = #tpu.dot_dimension_numbers<[1], [0], [0], [1], [0, 0, 1, 1], [], []>} : vector<18x24xbf16>, vector<24x384xbf16>, vector<18x384xf32> -> vector<18x384xf32>
    %304 = vector.extract_strided_slice %303 {offsets = [0, 0], sizes = [16, 128], strides = [1, 1]} : vector<18x384xf32> to vector<16x128xf32>
    %305 = arith.addf %296, %304 : vector<16x128xf32>
    %306 = vector.extract_strided_slice %303 {offsets = [1, 128], sizes = [16, 128], strides = [1, 1]} : vector<18x384xf32> to vector<16x128xf32>
    %307 = arith.addf %305, %306 : vector<16x128xf32>
    %308 = vector.extract_strided_slice %303 {offsets = [2, 256], sizes = [16, 128], strides = [1, 1]} : vector<18x384xf32> to vector<16x128xf32>
    %309 = arith.addf %307, %308 : vector<16x128xf32>
    %310 = arith.extui %0 : i1 to i32
    %c0_i32_189 = arith.constant 0 : i32
    %311 = arith.cmpi ne, %310, %c0_i32_189 : i32
    scf.if %311 {
      %722 = arith.index_cast %c6_i32 : i32 to index
      %c0_445 = arith.constant 0 : index
      %c0_446 = arith.constant 0 : index
      %723 = vector.load %arg8[%722, %c0_445, %c0_446] : memref<16x16x128xf32, #tpu.memory_space<vmem>>, vector<1x16x128xf32>
      %724 = vector.shape_cast %723 : vector<1x16x128xf32> to vector<16x128xf32>
      %725 = vector.shape_cast %309 : vector<16x128xf32> to vector<1x16x128xf32>
      tpu.vector_store %arg8[%722, %c0_445, %c0_446], %725 {strides = array<i32>} : memref<16x16x128xf32, #tpu.memory_space<vmem>>, vector<1x16x128xf32>,
    } else {
    }
    %true_190 = arith.constant true
    %312 = arith.xori %0, %true_190 : i1
    %313 = arith.extui %312 : i1 to i32
    %c0_i32_191 = arith.constant 0 : i32
    %314 = arith.cmpi ne, %313, %c0_i32_191 : i32
    scf.if %314 {
      %722 = arith.index_cast %c6_i32 : i32 to index
      %c0_445 = arith.constant 0 : index
      %c0_446 = arith.constant 0 : index
      %723 = vector.load %arg8[%722, %c0_445, %c0_446] : memref<16x16x128xf32, #tpu.memory_space<vmem>>, vector<1x16x128xf32>
      %724 = vector.shape_cast %723 : vector<1x16x128xf32> to vector<16x128xf32>
      %725 = arith.addf %724, %309 : vector<16x128xf32>
      %726 = arith.index_cast %c6_i32 : i32 to index
      %c0_447 = arith.constant 0 : index
      %c0_448 = arith.constant 0 : index
      %727 = vector.load %arg8[%726, %c0_447, %c0_448] : memref<16x16x128xf32, #tpu.memory_space<vmem>>, vector<1x16x128xf32>
      %728 = vector.shape_cast %727 : vector<1x16x128xf32> to vector<16x128xf32>
      %729 = vector.shape_cast %725 : vector<16x128xf32> to vector<1x16x128xf32>
      tpu.vector_store %arg8[%726, %c0_447, %c0_448], %729 {strides = array<i32>} : memref<16x16x128xf32, #tpu.memory_space<vmem>>, vector<1x16x128xf32>,
    } else {
    }
    %315 = arith.extui %1 : i1 to i32
    %c0_i32_192 = arith.constant 0 : i32
    %316 = arith.cmpi ne, %315, %c0_i32_192 : i32
    scf.if %316 {
      %722 = arith.index_cast %c6_i32 : i32 to index
      %c0_445 = arith.constant 0 : index
      %c0_446 = arith.constant 0 : index
      %723 = vector.load %arg8[%722, %c0_445, %c0_446] : memref<16x16x128xf32, #tpu.memory_space<vmem>>, vector<1x16x128xf32>
      %724 = vector.shape_cast %723 : vector<1x16x128xf32> to vector<16x128xf32>
      %c0_447 = arith.constant 0 : index
      %c0_448 = arith.constant 0 : index
      %725 = vector.load %arg4[%c0_447, %c0_448] : memref<1x128xf32, #tpu.memory_space<vmem>>, vector<1x128xf32>
      %726 = vector.broadcast %725 : vector<1x128xf32> to vector<16x128xf32>
      %727 = arith.addf %724, %726 : vector<16x128xf32>
      %cst_449 = arith.constant 0.000000e+00 : f32
      %728 = vector.broadcast %cst_449 : f32 to vector<16x128xf32>
      %729 = arith.maximumf %727, %728 : vector<16x128xf32>
      %730 = arith.truncf %729 : vector<16x128xf32> to vector<16x128xbf16>
      %c0_450 = arith.constant 0 : index
      %c0_451 = arith.constant 0 : index
      %731 = vector.load %arg5[%c0_450, %c0_451] : memref<128x128xbf16, #tpu.memory_space<vmem>>, vector<128x128xbf16>
      %cst_452 = arith.constant dense<0.000000e+00> : vector<16x128xf32>
      %732 = tpu.matmul %730, %731, %cst_452 {dimension_numbers = #tpu.dot_dimension_numbers<[1], [0], [0], [1], [0, 0, 1, 1], [], []>} : vector<16x128xbf16>, vector<128x128xbf16>, vector<16x128xf32> -> vector<16x128xf32>
      %c0_453 = arith.constant 0 : index
      %c0_454 = arith.constant 0 : index
      %733 = vector.load %arg6[%c0_453, %c0_454] : memref<1x128xf32, #tpu.memory_space<vmem>>, vector<1x128xf32>
      %734 = vector.broadcast %733 : vector<1x128xf32> to vector<16x128xf32>
      %735 = arith.addf %732, %734 : vector<16x128xf32>
      %c0_455 = arith.constant 0 : index
      %736 = arith.index_cast %c6_i32 : i32 to index
      %c0_456 = arith.constant 0 : index
      %c0_457 = arith.constant 0 : index
      %737 = vector.load %arg7[%c0_455, %736, %c0_456, %c0_457] : memref<1x16x16x128xf32, #tpu.memory_space<vmem>>, vector<1x1x16x128xf32>
      %738 = vector.shape_cast %737 : vector<1x1x16x128xf32> to vector<16x128xf32>
      %739 = vector.shape_cast %735 : vector<16x128xf32> to vector<1x1x16x128xf32>
      tpu.vector_store %arg7[%c0_455, %736, %c0_456, %c0_457], %739 {strides = array<i32>} : memref<1x16x16x128xf32, #tpu.memory_space<vmem>>, vector<1x1x16x128xf32>,
    } else {
    }
    %c7_i32 = arith.constant 7 : i32
    %c0_i32_193 = arith.constant 0 : i32
    %317 = arith.addi %c7_i32, %c0_i32_193 : i32
    %c0_194 = arith.constant 0 : index
    %318 = arith.index_cast %317 : i32 to index
    %c0_195 = arith.constant 0 : index
    %c0_196 = arith.constant 0 : index
    %319 = vector.load %arg2[%c0_194, %318, %c0_195, %c0_196] : memref<1x18x18x24xbf16, #tpu.memory_space<vmem>>, vector<1x1x18x24xbf16>
    %320 = vector.shape_cast %319 : vector<1x1x18x24xbf16> to vector<18x24xbf16>
    %c0_197 = arith.constant 0 : index
    %c0_198 = arith.constant 0 : index
    %c0_199 = arith.constant 0 : index
    %321 = vector.load %arg3[%c0_197, %c0_198, %c0_199] : memref<3x24x384xbf16, #tpu.memory_space<vmem>>, vector<1x24x384xbf16>
    %322 = vector.shape_cast %321 : vector<1x24x384xbf16> to vector<24x384xbf16>
    %cst_200 = arith.constant dense<0.000000e+00> : vector<18x384xf32>
    %323 = tpu.matmul %320, %322, %cst_200 {dimension_numbers = #tpu.dot_dimension_numbers<[1], [0], [0], [1], [0, 0, 1, 1], [], []>} : vector<18x24xbf16>, vector<24x384xbf16>, vector<18x384xf32> -> vector<18x384xf32>
    %324 = vector.extract_strided_slice %323 {offsets = [0, 0], sizes = [16, 128], strides = [1, 1]} : vector<18x384xf32> to vector<16x128xf32>
    %325 = vector.extract_strided_slice %323 {offsets = [1, 128], sizes = [16, 128], strides = [1, 1]} : vector<18x384xf32> to vector<16x128xf32>
    %326 = arith.addf %324, %325 : vector<16x128xf32>
    %327 = vector.extract_strided_slice %323 {offsets = [2, 256], sizes = [16, 128], strides = [1, 1]} : vector<18x384xf32> to vector<16x128xf32>
    %328 = arith.addf %326, %327 : vector<16x128xf32>
    %c1_i32_201 = arith.constant 1 : i32
    %329 = arith.addi %c7_i32, %c1_i32_201 : i32
    %c0_202 = arith.constant 0 : index
    %330 = arith.index_cast %329 : i32 to index
    %c0_203 = arith.constant 0 : index
    %c0_204 = arith.constant 0 : index
    %331 = vector.load %arg2[%c0_202, %330, %c0_203, %c0_204] : memref<1x18x18x24xbf16, #tpu.memory_space<vmem>>, vector<1x1x18x24xbf16>
    %332 = vector.shape_cast %331 : vector<1x1x18x24xbf16> to vector<18x24xbf16>
    %c1_205 = arith.constant 1 : index
    %c0_206 = arith.constant 0 : index
    %c0_207 = arith.constant 0 : index
    %333 = vector.load %arg3[%c1_205, %c0_206, %c0_207] : memref<3x24x384xbf16, #tpu.memory_space<vmem>>, vector<1x24x384xbf16>
    %334 = vector.shape_cast %333 : vector<1x24x384xbf16> to vector<24x384xbf16>
    %cst_208 = arith.constant dense<0.000000e+00> : vector<18x384xf32>
    %335 = tpu.matmul %332, %334, %cst_208 {dimension_numbers = #tpu.dot_dimension_numbers<[1], [0], [0], [1], [0, 0, 1, 1], [], []>} : vector<18x24xbf16>, vector<24x384xbf16>, vector<18x384xf32> -> vector<18x384xf32>
    %336 = vector.extract_strided_slice %335 {offsets = [0, 0], sizes = [16, 128], strides = [1, 1]} : vector<18x384xf32> to vector<16x128xf32>
    %337 = arith.addf %328, %336 : vector<16x128xf32>
    %338 = vector.extract_strided_slice %335 {offsets = [1, 128], sizes = [16, 128], strides = [1, 1]} : vector<18x384xf32> to vector<16x128xf32>
    %339 = arith.addf %337, %338 : vector<16x128xf32>
    %340 = vector.extract_strided_slice %335 {offsets = [2, 256], sizes = [16, 128], strides = [1, 1]} : vector<18x384xf32> to vector<16x128xf32>
    %341 = arith.addf %339, %340 : vector<16x128xf32>
    %c2_i32_209 = arith.constant 2 : i32
    %342 = arith.addi %c7_i32, %c2_i32_209 : i32
    %c0_210 = arith.constant 0 : index
    %343 = arith.index_cast %342 : i32 to index
    %c0_211 = arith.constant 0 : index
    %c0_212 = arith.constant 0 : index
    %344 = vector.load %arg2[%c0_210, %343, %c0_211, %c0_212] : memref<1x18x18x24xbf16, #tpu.memory_space<vmem>>, vector<1x1x18x24xbf16>
    %345 = vector.shape_cast %344 : vector<1x1x18x24xbf16> to vector<18x24xbf16>
    %c2_213 = arith.constant 2 : index
    %c0_214 = arith.constant 0 : index
    %c0_215 = arith.constant 0 : index
    %346 = vector.load %arg3[%c2_213, %c0_214, %c0_215] : memref<3x24x384xbf16, #tpu.memory_space<vmem>>, vector<1x24x384xbf16>
    %347 = vector.shape_cast %346 : vector<1x24x384xbf16> to vector<24x384xbf16>
    %cst_216 = arith.constant dense<0.000000e+00> : vector<18x384xf32>
    %348 = tpu.matmul %345, %347, %cst_216 {dimension_numbers = #tpu.dot_dimension_numbers<[1], [0], [0], [1], [0, 0, 1, 1], [], []>} : vector<18x24xbf16>, vector<24x384xbf16>, vector<18x384xf32> -> vector<18x384xf32>
    %349 = vector.extract_strided_slice %348 {offsets = [0, 0], sizes = [16, 128], strides = [1, 1]} : vector<18x384xf32> to vector<16x128xf32>
    %350 = arith.addf %341, %349 : vector<16x128xf32>
    %351 = vector.extract_strided_slice %348 {offsets = [1, 128], sizes = [16, 128], strides = [1, 1]} : vector<18x384xf32> to vector<16x128xf32>
    %352 = arith.addf %350, %351 : vector<16x128xf32>
    %353 = vector.extract_strided_slice %348 {offsets = [2, 256], sizes = [16, 128], strides = [1, 1]} : vector<18x384xf32> to vector<16x128xf32>
    %354 = arith.addf %352, %353 : vector<16x128xf32>
    %355 = arith.extui %0 : i1 to i32
    %c0_i32_217 = arith.constant 0 : i32
    %356 = arith.cmpi ne, %355, %c0_i32_217 : i32
    scf.if %356 {
      %722 = arith.index_cast %c7_i32 : i32 to index
      %c0_445 = arith.constant 0 : index
      %c0_446 = arith.constant 0 : index
      %723 = vector.load %arg8[%722, %c0_445, %c0_446] : memref<16x16x128xf32, #tpu.memory_space<vmem>>, vector<1x16x128xf32>
      %724 = vector.shape_cast %723 : vector<1x16x128xf32> to vector<16x128xf32>
      %725 = vector.shape_cast %354 : vector<16x128xf32> to vector<1x16x128xf32>
      tpu.vector_store %arg8[%722, %c0_445, %c0_446], %725 {strides = array<i32>} : memref<16x16x128xf32, #tpu.memory_space<vmem>>, vector<1x16x128xf32>,
    } else {
    }
    %true_218 = arith.constant true
    %357 = arith.xori %0, %true_218 : i1
    %358 = arith.extui %357 : i1 to i32
    %c0_i32_219 = arith.constant 0 : i32
    %359 = arith.cmpi ne, %358, %c0_i32_219 : i32
    scf.if %359 {
      %722 = arith.index_cast %c7_i32 : i32 to index
      %c0_445 = arith.constant 0 : index
      %c0_446 = arith.constant 0 : index
      %723 = vector.load %arg8[%722, %c0_445, %c0_446] : memref<16x16x128xf32, #tpu.memory_space<vmem>>, vector<1x16x128xf32>
      %724 = vector.shape_cast %723 : vector<1x16x128xf32> to vector<16x128xf32>
      %725 = arith.addf %724, %354 : vector<16x128xf32>
      %726 = arith.index_cast %c7_i32 : i32 to index
      %c0_447 = arith.constant 0 : index
      %c0_448 = arith.constant 0 : index
      %727 = vector.load %arg8[%726, %c0_447, %c0_448] : memref<16x16x128xf32, #tpu.memory_space<vmem>>, vector<1x16x128xf32>
      %728 = vector.shape_cast %727 : vector<1x16x128xf32> to vector<16x128xf32>
      %729 = vector.shape_cast %725 : vector<16x128xf32> to vector<1x16x128xf32>
      tpu.vector_store %arg8[%726, %c0_447, %c0_448], %729 {strides = array<i32>} : memref<16x16x128xf32, #tpu.memory_space<vmem>>, vector<1x16x128xf32>,
    } else {
    }
    %360 = arith.extui %1 : i1 to i32
    %c0_i32_220 = arith.constant 0 : i32
    %361 = arith.cmpi ne, %360, %c0_i32_220 : i32
    scf.if %361 {
      %722 = arith.index_cast %c7_i32 : i32 to index
      %c0_445 = arith.constant 0 : index
      %c0_446 = arith.constant 0 : index
      %723 = vector.load %arg8[%722, %c0_445, %c0_446] : memref<16x16x128xf32, #tpu.memory_space<vmem>>, vector<1x16x128xf32>
      %724 = vector.shape_cast %723 : vector<1x16x128xf32> to vector<16x128xf32>
      %c0_447 = arith.constant 0 : index
      %c0_448 = arith.constant 0 : index
      %725 = vector.load %arg4[%c0_447, %c0_448] : memref<1x128xf32, #tpu.memory_space<vmem>>, vector<1x128xf32>
      %726 = vector.broadcast %725 : vector<1x128xf32> to vector<16x128xf32>
      %727 = arith.addf %724, %726 : vector<16x128xf32>
      %cst_449 = arith.constant 0.000000e+00 : f32
      %728 = vector.broadcast %cst_449 : f32 to vector<16x128xf32>
      %729 = arith.maximumf %727, %728 : vector<16x128xf32>
      %730 = arith.truncf %729 : vector<16x128xf32> to vector<16x128xbf16>
      %c0_450 = arith.constant 0 : index
      %c0_451 = arith.constant 0 : index
      %731 = vector.load %arg5[%c0_450, %c0_451] : memref<128x128xbf16, #tpu.memory_space<vmem>>, vector<128x128xbf16>
      %cst_452 = arith.constant dense<0.000000e+00> : vector<16x128xf32>
      %732 = tpu.matmul %730, %731, %cst_452 {dimension_numbers = #tpu.dot_dimension_numbers<[1], [0], [0], [1], [0, 0, 1, 1], [], []>} : vector<16x128xbf16>, vector<128x128xbf16>, vector<16x128xf32> -> vector<16x128xf32>
      %c0_453 = arith.constant 0 : index
      %c0_454 = arith.constant 0 : index
      %733 = vector.load %arg6[%c0_453, %c0_454] : memref<1x128xf32, #tpu.memory_space<vmem>>, vector<1x128xf32>
      %734 = vector.broadcast %733 : vector<1x128xf32> to vector<16x128xf32>
      %735 = arith.addf %732, %734 : vector<16x128xf32>
      %c0_455 = arith.constant 0 : index
      %736 = arith.index_cast %c7_i32 : i32 to index
      %c0_456 = arith.constant 0 : index
      %c0_457 = arith.constant 0 : index
      %737 = vector.load %arg7[%c0_455, %736, %c0_456, %c0_457] : memref<1x16x16x128xf32, #tpu.memory_space<vmem>>, vector<1x1x16x128xf32>
      %738 = vector.shape_cast %737 : vector<1x1x16x128xf32> to vector<16x128xf32>
      %739 = vector.shape_cast %735 : vector<16x128xf32> to vector<1x1x16x128xf32>
      tpu.vector_store %arg7[%c0_455, %736, %c0_456, %c0_457], %739 {strides = array<i32>} : memref<1x16x16x128xf32, #tpu.memory_space<vmem>>, vector<1x1x16x128xf32>,
    } else {
    }
    %c8_i32 = arith.constant 8 : i32
    %c0_i32_221 = arith.constant 0 : i32
    %362 = arith.addi %c8_i32, %c0_i32_221 : i32
    %c0_222 = arith.constant 0 : index
    %363 = arith.index_cast %362 : i32 to index
    %c0_223 = arith.constant 0 : index
    %c0_224 = arith.constant 0 : index
    %364 = vector.load %arg2[%c0_222, %363, %c0_223, %c0_224] : memref<1x18x18x24xbf16, #tpu.memory_space<vmem>>, vector<1x1x18x24xbf16>
    %365 = vector.shape_cast %364 : vector<1x1x18x24xbf16> to vector<18x24xbf16>
    %c0_225 = arith.constant 0 : index
    %c0_226 = arith.constant 0 : index
    %c0_227 = arith.constant 0 : index
    %366 = vector.load %arg3[%c0_225, %c0_226, %c0_227] : memref<3x24x384xbf16, #tpu.memory_space<vmem>>, vector<1x24x384xbf16>
    %367 = vector.shape_cast %366 : vector<1x24x384xbf16> to vector<24x384xbf16>
    %cst_228 = arith.constant dense<0.000000e+00> : vector<18x384xf32>
    %368 = tpu.matmul %365, %367, %cst_228 {dimension_numbers = #tpu.dot_dimension_numbers<[1], [0], [0], [1], [0, 0, 1, 1], [], []>} : vector<18x24xbf16>, vector<24x384xbf16>, vector<18x384xf32> -> vector<18x384xf32>
    %369 = vector.extract_strided_slice %368 {offsets = [0, 0], sizes = [16, 128], strides = [1, 1]} : vector<18x384xf32> to vector<16x128xf32>
    %370 = vector.extract_strided_slice %368 {offsets = [1, 128], sizes = [16, 128], strides = [1, 1]} : vector<18x384xf32> to vector<16x128xf32>
    %371 = arith.addf %369, %370 : vector<16x128xf32>
    %372 = vector.extract_strided_slice %368 {offsets = [2, 256], sizes = [16, 128], strides = [1, 1]} : vector<18x384xf32> to vector<16x128xf32>
    %373 = arith.addf %371, %372 : vector<16x128xf32>
    %c1_i32_229 = arith.constant 1 : i32
    %374 = arith.addi %c8_i32, %c1_i32_229 : i32
    %c0_230 = arith.constant 0 : index
    %375 = arith.index_cast %374 : i32 to index
    %c0_231 = arith.constant 0 : index
    %c0_232 = arith.constant 0 : index
    %376 = vector.load %arg2[%c0_230, %375, %c0_231, %c0_232] : memref<1x18x18x24xbf16, #tpu.memory_space<vmem>>, vector<1x1x18x24xbf16>
    %377 = vector.shape_cast %376 : vector<1x1x18x24xbf16> to vector<18x24xbf16>
    %c1_233 = arith.constant 1 : index
    %c0_234 = arith.constant 0 : index
    %c0_235 = arith.constant 0 : index
    %378 = vector.load %arg3[%c1_233, %c0_234, %c0_235] : memref<3x24x384xbf16, #tpu.memory_space<vmem>>, vector<1x24x384xbf16>
    %379 = vector.shape_cast %378 : vector<1x24x384xbf16> to vector<24x384xbf16>
    %cst_236 = arith.constant dense<0.000000e+00> : vector<18x384xf32>
    %380 = tpu.matmul %377, %379, %cst_236 {dimension_numbers = #tpu.dot_dimension_numbers<[1], [0], [0], [1], [0, 0, 1, 1], [], []>} : vector<18x24xbf16>, vector<24x384xbf16>, vector<18x384xf32> -> vector<18x384xf32>
    %381 = vector.extract_strided_slice %380 {offsets = [0, 0], sizes = [16, 128], strides = [1, 1]} : vector<18x384xf32> to vector<16x128xf32>
    %382 = arith.addf %373, %381 : vector<16x128xf32>
    %383 = vector.extract_strided_slice %380 {offsets = [1, 128], sizes = [16, 128], strides = [1, 1]} : vector<18x384xf32> to vector<16x128xf32>
    %384 = arith.addf %382, %383 : vector<16x128xf32>
    %385 = vector.extract_strided_slice %380 {offsets = [2, 256], sizes = [16, 128], strides = [1, 1]} : vector<18x384xf32> to vector<16x128xf32>
    %386 = arith.addf %384, %385 : vector<16x128xf32>
    %c2_i32_237 = arith.constant 2 : i32
    %387 = arith.addi %c8_i32, %c2_i32_237 : i32
    %c0_238 = arith.constant 0 : index
    %388 = arith.index_cast %387 : i32 to index
    %c0_239 = arith.constant 0 : index
    %c0_240 = arith.constant 0 : index
    %389 = vector.load %arg2[%c0_238, %388, %c0_239, %c0_240] : memref<1x18x18x24xbf16, #tpu.memory_space<vmem>>, vector<1x1x18x24xbf16>
    %390 = vector.shape_cast %389 : vector<1x1x18x24xbf16> to vector<18x24xbf16>
    %c2_241 = arith.constant 2 : index
    %c0_242 = arith.constant 0 : index
    %c0_243 = arith.constant 0 : index
    %391 = vector.load %arg3[%c2_241, %c0_242, %c0_243] : memref<3x24x384xbf16, #tpu.memory_space<vmem>>, vector<1x24x384xbf16>
    %392 = vector.shape_cast %391 : vector<1x24x384xbf16> to vector<24x384xbf16>
    %cst_244 = arith.constant dense<0.000000e+00> : vector<18x384xf32>
    %393 = tpu.matmul %390, %392, %cst_244 {dimension_numbers = #tpu.dot_dimension_numbers<[1], [0], [0], [1], [0, 0, 1, 1], [], []>} : vector<18x24xbf16>, vector<24x384xbf16>, vector<18x384xf32> -> vector<18x384xf32>
    %394 = vector.extract_strided_slice %393 {offsets = [0, 0], sizes = [16, 128], strides = [1, 1]} : vector<18x384xf32> to vector<16x128xf32>
    %395 = arith.addf %386, %394 : vector<16x128xf32>
    %396 = vector.extract_strided_slice %393 {offsets = [1, 128], sizes = [16, 128], strides = [1, 1]} : vector<18x384xf32> to vector<16x128xf32>
    %397 = arith.addf %395, %396 : vector<16x128xf32>
    %398 = vector.extract_strided_slice %393 {offsets = [2, 256], sizes = [16, 128], strides = [1, 1]} : vector<18x384xf32> to vector<16x128xf32>
    %399 = arith.addf %397, %398 : vector<16x128xf32>
    %400 = arith.extui %0 : i1 to i32
    %c0_i32_245 = arith.constant 0 : i32
    %401 = arith.cmpi ne, %400, %c0_i32_245 : i32
    scf.if %401 {
      %722 = arith.index_cast %c8_i32 : i32 to index
      %c0_445 = arith.constant 0 : index
      %c0_446 = arith.constant 0 : index
      %723 = vector.load %arg8[%722, %c0_445, %c0_446] : memref<16x16x128xf32, #tpu.memory_space<vmem>>, vector<1x16x128xf32>
      %724 = vector.shape_cast %723 : vector<1x16x128xf32> to vector<16x128xf32>
      %725 = vector.shape_cast %399 : vector<16x128xf32> to vector<1x16x128xf32>
      tpu.vector_store %arg8[%722, %c0_445, %c0_446], %725 {strides = array<i32>} : memref<16x16x128xf32, #tpu.memory_space<vmem>>, vector<1x16x128xf32>,
    } else {
    }
    %true_246 = arith.constant true
    %402 = arith.xori %0, %true_246 : i1
    %403 = arith.extui %402 : i1 to i32
    %c0_i32_247 = arith.constant 0 : i32
    %404 = arith.cmpi ne, %403, %c0_i32_247 : i32
    scf.if %404 {
      %722 = arith.index_cast %c8_i32 : i32 to index
      %c0_445 = arith.constant 0 : index
      %c0_446 = arith.constant 0 : index
      %723 = vector.load %arg8[%722, %c0_445, %c0_446] : memref<16x16x128xf32, #tpu.memory_space<vmem>>, vector<1x16x128xf32>
      %724 = vector.shape_cast %723 : vector<1x16x128xf32> to vector<16x128xf32>
      %725 = arith.addf %724, %399 : vector<16x128xf32>
      %726 = arith.index_cast %c8_i32 : i32 to index
      %c0_447 = arith.constant 0 : index
      %c0_448 = arith.constant 0 : index
      %727 = vector.load %arg8[%726, %c0_447, %c0_448] : memref<16x16x128xf32, #tpu.memory_space<vmem>>, vector<1x16x128xf32>
      %728 = vector.shape_cast %727 : vector<1x16x128xf32> to vector<16x128xf32>
      %729 = vector.shape_cast %725 : vector<16x128xf32> to vector<1x16x128xf32>
      tpu.vector_store %arg8[%726, %c0_447, %c0_448], %729 {strides = array<i32>} : memref<16x16x128xf32, #tpu.memory_space<vmem>>, vector<1x16x128xf32>,
    } else {
    }
    %405 = arith.extui %1 : i1 to i32
    %c0_i32_248 = arith.constant 0 : i32
    %406 = arith.cmpi ne, %405, %c0_i32_248 : i32
    scf.if %406 {
      %722 = arith.index_cast %c8_i32 : i32 to index
      %c0_445 = arith.constant 0 : index
      %c0_446 = arith.constant 0 : index
      %723 = vector.load %arg8[%722, %c0_445, %c0_446] : memref<16x16x128xf32, #tpu.memory_space<vmem>>, vector<1x16x128xf32>
      %724 = vector.shape_cast %723 : vector<1x16x128xf32> to vector<16x128xf32>
      %c0_447 = arith.constant 0 : index
      %c0_448 = arith.constant 0 : index
      %725 = vector.load %arg4[%c0_447, %c0_448] : memref<1x128xf32, #tpu.memory_space<vmem>>, vector<1x128xf32>
      %726 = vector.broadcast %725 : vector<1x128xf32> to vector<16x128xf32>
      %727 = arith.addf %724, %726 : vector<16x128xf32>
      %cst_449 = arith.constant 0.000000e+00 : f32
      %728 = vector.broadcast %cst_449 : f32 to vector<16x128xf32>
      %729 = arith.maximumf %727, %728 : vector<16x128xf32>
      %730 = arith.truncf %729 : vector<16x128xf32> to vector<16x128xbf16>
      %c0_450 = arith.constant 0 : index
      %c0_451 = arith.constant 0 : index
      %731 = vector.load %arg5[%c0_450, %c0_451] : memref<128x128xbf16, #tpu.memory_space<vmem>>, vector<128x128xbf16>
      %cst_452 = arith.constant dense<0.000000e+00> : vector<16x128xf32>
      %732 = tpu.matmul %730, %731, %cst_452 {dimension_numbers = #tpu.dot_dimension_numbers<[1], [0], [0], [1], [0, 0, 1, 1], [], []>} : vector<16x128xbf16>, vector<128x128xbf16>, vector<16x128xf32> -> vector<16x128xf32>
      %c0_453 = arith.constant 0 : index
      %c0_454 = arith.constant 0 : index
      %733 = vector.load %arg6[%c0_453, %c0_454] : memref<1x128xf32, #tpu.memory_space<vmem>>, vector<1x128xf32>
      %734 = vector.broadcast %733 : vector<1x128xf32> to vector<16x128xf32>
      %735 = arith.addf %732, %734 : vector<16x128xf32>
      %c0_455 = arith.constant 0 : index
      %736 = arith.index_cast %c8_i32 : i32 to index
      %c0_456 = arith.constant 0 : index
      %c0_457 = arith.constant 0 : index
      %737 = vector.load %arg7[%c0_455, %736, %c0_456, %c0_457] : memref<1x16x16x128xf32, #tpu.memory_space<vmem>>, vector<1x1x16x128xf32>
      %738 = vector.shape_cast %737 : vector<1x1x16x128xf32> to vector<16x128xf32>
      %739 = vector.shape_cast %735 : vector<16x128xf32> to vector<1x1x16x128xf32>
      tpu.vector_store %arg7[%c0_455, %736, %c0_456, %c0_457], %739 {strides = array<i32>} : memref<1x16x16x128xf32, #tpu.memory_space<vmem>>, vector<1x1x16x128xf32>,
    } else {
    }
    %c9_i32 = arith.constant 9 : i32
    %c0_i32_249 = arith.constant 0 : i32
    %407 = arith.addi %c9_i32, %c0_i32_249 : i32
    %c0_250 = arith.constant 0 : index
    %408 = arith.index_cast %407 : i32 to index
    %c0_251 = arith.constant 0 : index
    %c0_252 = arith.constant 0 : index
    %409 = vector.load %arg2[%c0_250, %408, %c0_251, %c0_252] : memref<1x18x18x24xbf16, #tpu.memory_space<vmem>>, vector<1x1x18x24xbf16>
    %410 = vector.shape_cast %409 : vector<1x1x18x24xbf16> to vector<18x24xbf16>
    %c0_253 = arith.constant 0 : index
    %c0_254 = arith.constant 0 : index
    %c0_255 = arith.constant 0 : index
    %411 = vector.load %arg3[%c0_253, %c0_254, %c0_255] : memref<3x24x384xbf16, #tpu.memory_space<vmem>>, vector<1x24x384xbf16>
    %412 = vector.shape_cast %411 : vector<1x24x384xbf16> to vector<24x384xbf16>
    %cst_256 = arith.constant dense<0.000000e+00> : vector<18x384xf32>
    %413 = tpu.matmul %410, %412, %cst_256 {dimension_numbers = #tpu.dot_dimension_numbers<[1], [0], [0], [1], [0, 0, 1, 1], [], []>} : vector<18x24xbf16>, vector<24x384xbf16>, vector<18x384xf32> -> vector<18x384xf32>
    %414 = vector.extract_strided_slice %413 {offsets = [0, 0], sizes = [16, 128], strides = [1, 1]} : vector<18x384xf32> to vector<16x128xf32>
    %415 = vector.extract_strided_slice %413 {offsets = [1, 128], sizes = [16, 128], strides = [1, 1]} : vector<18x384xf32> to vector<16x128xf32>
    %416 = arith.addf %414, %415 : vector<16x128xf32>
    %417 = vector.extract_strided_slice %413 {offsets = [2, 256], sizes = [16, 128], strides = [1, 1]} : vector<18x384xf32> to vector<16x128xf32>
    %418 = arith.addf %416, %417 : vector<16x128xf32>
    %c1_i32_257 = arith.constant 1 : i32
    %419 = arith.addi %c9_i32, %c1_i32_257 : i32
    %c0_258 = arith.constant 0 : index
    %420 = arith.index_cast %419 : i32 to index
    %c0_259 = arith.constant 0 : index
    %c0_260 = arith.constant 0 : index
    %421 = vector.load %arg2[%c0_258, %420, %c0_259, %c0_260] : memref<1x18x18x24xbf16, #tpu.memory_space<vmem>>, vector<1x1x18x24xbf16>
    %422 = vector.shape_cast %421 : vector<1x1x18x24xbf16> to vector<18x24xbf16>
    %c1_261 = arith.constant 1 : index
    %c0_262 = arith.constant 0 : index
    %c0_263 = arith.constant 0 : index
    %423 = vector.load %arg3[%c1_261, %c0_262, %c0_263] : memref<3x24x384xbf16, #tpu.memory_space<vmem>>, vector<1x24x384xbf16>
    %424 = vector.shape_cast %423 : vector<1x24x384xbf16> to vector<24x384xbf16>
    %cst_264 = arith.constant dense<0.000000e+00> : vector<18x384xf32>
    %425 = tpu.matmul %422, %424, %cst_264 {dimension_numbers = #tpu.dot_dimension_numbers<[1], [0], [0], [1], [0, 0, 1, 1], [], []>} : vector<18x24xbf16>, vector<24x384xbf16>, vector<18x384xf32> -> vector<18x384xf32>
    %426 = vector.extract_strided_slice %425 {offsets = [0, 0], sizes = [16, 128], strides = [1, 1]} : vector<18x384xf32> to vector<16x128xf32>
    %427 = arith.addf %418, %426 : vector<16x128xf32>
    %428 = vector.extract_strided_slice %425 {offsets = [1, 128], sizes = [16, 128], strides = [1, 1]} : vector<18x384xf32> to vector<16x128xf32>
    %429 = arith.addf %427, %428 : vector<16x128xf32>
    %430 = vector.extract_strided_slice %425 {offsets = [2, 256], sizes = [16, 128], strides = [1, 1]} : vector<18x384xf32> to vector<16x128xf32>
    %431 = arith.addf %429, %430 : vector<16x128xf32>
    %c2_i32_265 = arith.constant 2 : i32
    %432 = arith.addi %c9_i32, %c2_i32_265 : i32
    %c0_266 = arith.constant 0 : index
    %433 = arith.index_cast %432 : i32 to index
    %c0_267 = arith.constant 0 : index
    %c0_268 = arith.constant 0 : index
    %434 = vector.load %arg2[%c0_266, %433, %c0_267, %c0_268] : memref<1x18x18x24xbf16, #tpu.memory_space<vmem>>, vector<1x1x18x24xbf16>
    %435 = vector.shape_cast %434 : vector<1x1x18x24xbf16> to vector<18x24xbf16>
    %c2_269 = arith.constant 2 : index
    %c0_270 = arith.constant 0 : index
    %c0_271 = arith.constant 0 : index
    %436 = vector.load %arg3[%c2_269, %c0_270, %c0_271] : memref<3x24x384xbf16, #tpu.memory_space<vmem>>, vector<1x24x384xbf16>
    %437 = vector.shape_cast %436 : vector<1x24x384xbf16> to vector<24x384xbf16>
    %cst_272 = arith.constant dense<0.000000e+00> : vector<18x384xf32>
    %438 = tpu.matmul %435, %437, %cst_272 {dimension_numbers = #tpu.dot_dimension_numbers<[1], [0], [0], [1], [0, 0, 1, 1], [], []>} : vector<18x24xbf16>, vector<24x384xbf16>, vector<18x384xf32> -> vector<18x384xf32>
    %439 = vector.extract_strided_slice %438 {offsets = [0, 0], sizes = [16, 128], strides = [1, 1]} : vector<18x384xf32> to vector<16x128xf32>
    %440 = arith.addf %431, %439 : vector<16x128xf32>
    %441 = vector.extract_strided_slice %438 {offsets = [1, 128], sizes = [16, 128], strides = [1, 1]} : vector<18x384xf32> to vector<16x128xf32>
    %442 = arith.addf %440, %441 : vector<16x128xf32>
    %443 = vector.extract_strided_slice %438 {offsets = [2, 256], sizes = [16, 128], strides = [1, 1]} : vector<18x384xf32> to vector<16x128xf32>
    %444 = arith.addf %442, %443 : vector<16x128xf32>
    %445 = arith.extui %0 : i1 to i32
    %c0_i32_273 = arith.constant 0 : i32
    %446 = arith.cmpi ne, %445, %c0_i32_273 : i32
    scf.if %446 {
      %722 = arith.index_cast %c9_i32 : i32 to index
      %c0_445 = arith.constant 0 : index
      %c0_446 = arith.constant 0 : index
      %723 = vector.load %arg8[%722, %c0_445, %c0_446] : memref<16x16x128xf32, #tpu.memory_space<vmem>>, vector<1x16x128xf32>
      %724 = vector.shape_cast %723 : vector<1x16x128xf32> to vector<16x128xf32>
      %725 = vector.shape_cast %444 : vector<16x128xf32> to vector<1x16x128xf32>
      tpu.vector_store %arg8[%722, %c0_445, %c0_446], %725 {strides = array<i32>} : memref<16x16x128xf32, #tpu.memory_space<vmem>>, vector<1x16x128xf32>,
    } else {
    }
    %true_274 = arith.constant true
    %447 = arith.xori %0, %true_274 : i1
    %448 = arith.extui %447 : i1 to i32
    %c0_i32_275 = arith.constant 0 : i32
    %449 = arith.cmpi ne, %448, %c0_i32_275 : i32
    scf.if %449 {
      %722 = arith.index_cast %c9_i32 : i32 to index
      %c0_445 = arith.constant 0 : index
      %c0_446 = arith.constant 0 : index
      %723 = vector.load %arg8[%722, %c0_445, %c0_446] : memref<16x16x128xf32, #tpu.memory_space<vmem>>, vector<1x16x128xf32>
      %724 = vector.shape_cast %723 : vector<1x16x128xf32> to vector<16x128xf32>
      %725 = arith.addf %724, %444 : vector<16x128xf32>
      %726 = arith.index_cast %c9_i32 : i32 to index
      %c0_447 = arith.constant 0 : index
      %c0_448 = arith.constant 0 : index
      %727 = vector.load %arg8[%726, %c0_447, %c0_448] : memref<16x16x128xf32, #tpu.memory_space<vmem>>, vector<1x16x128xf32>
      %728 = vector.shape_cast %727 : vector<1x16x128xf32> to vector<16x128xf32>
      %729 = vector.shape_cast %725 : vector<16x128xf32> to vector<1x16x128xf32>
      tpu.vector_store %arg8[%726, %c0_447, %c0_448], %729 {strides = array<i32>} : memref<16x16x128xf32, #tpu.memory_space<vmem>>, vector<1x16x128xf32>,
    } else {
    }
    %450 = arith.extui %1 : i1 to i32
    %c0_i32_276 = arith.constant 0 : i32
    %451 = arith.cmpi ne, %450, %c0_i32_276 : i32
    scf.if %451 {
      %722 = arith.index_cast %c9_i32 : i32 to index
      %c0_445 = arith.constant 0 : index
      %c0_446 = arith.constant 0 : index
      %723 = vector.load %arg8[%722, %c0_445, %c0_446] : memref<16x16x128xf32, #tpu.memory_space<vmem>>, vector<1x16x128xf32>
      %724 = vector.shape_cast %723 : vector<1x16x128xf32> to vector<16x128xf32>
      %c0_447 = arith.constant 0 : index
      %c0_448 = arith.constant 0 : index
      %725 = vector.load %arg4[%c0_447, %c0_448] : memref<1x128xf32, #tpu.memory_space<vmem>>, vector<1x128xf32>
      %726 = vector.broadcast %725 : vector<1x128xf32> to vector<16x128xf32>
      %727 = arith.addf %724, %726 : vector<16x128xf32>
      %cst_449 = arith.constant 0.000000e+00 : f32
      %728 = vector.broadcast %cst_449 : f32 to vector<16x128xf32>
      %729 = arith.maximumf %727, %728 : vector<16x128xf32>
      %730 = arith.truncf %729 : vector<16x128xf32> to vector<16x128xbf16>
      %c0_450 = arith.constant 0 : index
      %c0_451 = arith.constant 0 : index
      %731 = vector.load %arg5[%c0_450, %c0_451] : memref<128x128xbf16, #tpu.memory_space<vmem>>, vector<128x128xbf16>
      %cst_452 = arith.constant dense<0.000000e+00> : vector<16x128xf32>
      %732 = tpu.matmul %730, %731, %cst_452 {dimension_numbers = #tpu.dot_dimension_numbers<[1], [0], [0], [1], [0, 0, 1, 1], [], []>} : vector<16x128xbf16>, vector<128x128xbf16>, vector<16x128xf32> -> vector<16x128xf32>
      %c0_453 = arith.constant 0 : index
      %c0_454 = arith.constant 0 : index
      %733 = vector.load %arg6[%c0_453, %c0_454] : memref<1x128xf32, #tpu.memory_space<vmem>>, vector<1x128xf32>
      %734 = vector.broadcast %733 : vector<1x128xf32> to vector<16x128xf32>
      %735 = arith.addf %732, %734 : vector<16x128xf32>
      %c0_455 = arith.constant 0 : index
      %736 = arith.index_cast %c9_i32 : i32 to index
      %c0_456 = arith.constant 0 : index
      %c0_457 = arith.constant 0 : index
      %737 = vector.load %arg7[%c0_455, %736, %c0_456, %c0_457] : memref<1x16x16x128xf32, #tpu.memory_space<vmem>>, vector<1x1x16x128xf32>
      %738 = vector.shape_cast %737 : vector<1x1x16x128xf32> to vector<16x128xf32>
      %739 = vector.shape_cast %735 : vector<16x128xf32> to vector<1x1x16x128xf32>
      tpu.vector_store %arg7[%c0_455, %736, %c0_456, %c0_457], %739 {strides = array<i32>} : memref<1x16x16x128xf32, #tpu.memory_space<vmem>>, vector<1x1x16x128xf32>,
    } else {
    }
    %c10_i32 = arith.constant 10 : i32
    %c0_i32_277 = arith.constant 0 : i32
    %452 = arith.addi %c10_i32, %c0_i32_277 : i32
    %c0_278 = arith.constant 0 : index
    %453 = arith.index_cast %452 : i32 to index
    %c0_279 = arith.constant 0 : index
    %c0_280 = arith.constant 0 : index
    %454 = vector.load %arg2[%c0_278, %453, %c0_279, %c0_280] : memref<1x18x18x24xbf16, #tpu.memory_space<vmem>>, vector<1x1x18x24xbf16>
    %455 = vector.shape_cast %454 : vector<1x1x18x24xbf16> to vector<18x24xbf16>
    %c0_281 = arith.constant 0 : index
    %c0_282 = arith.constant 0 : index
    %c0_283 = arith.constant 0 : index
    %456 = vector.load %arg3[%c0_281, %c0_282, %c0_283] : memref<3x24x384xbf16, #tpu.memory_space<vmem>>, vector<1x24x384xbf16>
    %457 = vector.shape_cast %456 : vector<1x24x384xbf16> to vector<24x384xbf16>
    %cst_284 = arith.constant dense<0.000000e+00> : vector<18x384xf32>
    %458 = tpu.matmul %455, %457, %cst_284 {dimension_numbers = #tpu.dot_dimension_numbers<[1], [0], [0], [1], [0, 0, 1, 1], [], []>} : vector<18x24xbf16>, vector<24x384xbf16>, vector<18x384xf32> -> vector<18x384xf32>
    %459 = vector.extract_strided_slice %458 {offsets = [0, 0], sizes = [16, 128], strides = [1, 1]} : vector<18x384xf32> to vector<16x128xf32>
    %460 = vector.extract_strided_slice %458 {offsets = [1, 128], sizes = [16, 128], strides = [1, 1]} : vector<18x384xf32> to vector<16x128xf32>
    %461 = arith.addf %459, %460 : vector<16x128xf32>
    %462 = vector.extract_strided_slice %458 {offsets = [2, 256], sizes = [16, 128], strides = [1, 1]} : vector<18x384xf32> to vector<16x128xf32>
    %463 = arith.addf %461, %462 : vector<16x128xf32>
    %c1_i32_285 = arith.constant 1 : i32
    %464 = arith.addi %c10_i32, %c1_i32_285 : i32
    %c0_286 = arith.constant 0 : index
    %465 = arith.index_cast %464 : i32 to index
    %c0_287 = arith.constant 0 : index
    %c0_288 = arith.constant 0 : index
    %466 = vector.load %arg2[%c0_286, %465, %c0_287, %c0_288] : memref<1x18x18x24xbf16, #tpu.memory_space<vmem>>, vector<1x1x18x24xbf16>
    %467 = vector.shape_cast %466 : vector<1x1x18x24xbf16> to vector<18x24xbf16>
    %c1_289 = arith.constant 1 : index
    %c0_290 = arith.constant 0 : index
    %c0_291 = arith.constant 0 : index
    %468 = vector.load %arg3[%c1_289, %c0_290, %c0_291] : memref<3x24x384xbf16, #tpu.memory_space<vmem>>, vector<1x24x384xbf16>
    %469 = vector.shape_cast %468 : vector<1x24x384xbf16> to vector<24x384xbf16>
    %cst_292 = arith.constant dense<0.000000e+00> : vector<18x384xf32>
    %470 = tpu.matmul %467, %469, %cst_292 {dimension_numbers = #tpu.dot_dimension_numbers<[1], [0], [0], [1], [0, 0, 1, 1], [], []>} : vector<18x24xbf16>, vector<24x384xbf16>, vector<18x384xf32> -> vector<18x384xf32>
    %471 = vector.extract_strided_slice %470 {offsets = [0, 0], sizes = [16, 128], strides = [1, 1]} : vector<18x384xf32> to vector<16x128xf32>
    %472 = arith.addf %463, %471 : vector<16x128xf32>
    %473 = vector.extract_strided_slice %470 {offsets = [1, 128], sizes = [16, 128], strides = [1, 1]} : vector<18x384xf32> to vector<16x128xf32>
    %474 = arith.addf %472, %473 : vector<16x128xf32>
    %475 = vector.extract_strided_slice %470 {offsets = [2, 256], sizes = [16, 128], strides = [1, 1]} : vector<18x384xf32> to vector<16x128xf32>
    %476 = arith.addf %474, %475 : vector<16x128xf32>
    %c2_i32_293 = arith.constant 2 : i32
    %477 = arith.addi %c10_i32, %c2_i32_293 : i32
    %c0_294 = arith.constant 0 : index
    %478 = arith.index_cast %477 : i32 to index
    %c0_295 = arith.constant 0 : index
    %c0_296 = arith.constant 0 : index
    %479 = vector.load %arg2[%c0_294, %478, %c0_295, %c0_296] : memref<1x18x18x24xbf16, #tpu.memory_space<vmem>>, vector<1x1x18x24xbf16>
    %480 = vector.shape_cast %479 : vector<1x1x18x24xbf16> to vector<18x24xbf16>
    %c2_297 = arith.constant 2 : index
    %c0_298 = arith.constant 0 : index
    %c0_299 = arith.constant 0 : index
    %481 = vector.load %arg3[%c2_297, %c0_298, %c0_299] : memref<3x24x384xbf16, #tpu.memory_space<vmem>>, vector<1x24x384xbf16>
    %482 = vector.shape_cast %481 : vector<1x24x384xbf16> to vector<24x384xbf16>
    %cst_300 = arith.constant dense<0.000000e+00> : vector<18x384xf32>
    %483 = tpu.matmul %480, %482, %cst_300 {dimension_numbers = #tpu.dot_dimension_numbers<[1], [0], [0], [1], [0, 0, 1, 1], [], []>} : vector<18x24xbf16>, vector<24x384xbf16>, vector<18x384xf32> -> vector<18x384xf32>
    %484 = vector.extract_strided_slice %483 {offsets = [0, 0], sizes = [16, 128], strides = [1, 1]} : vector<18x384xf32> to vector<16x128xf32>
    %485 = arith.addf %476, %484 : vector<16x128xf32>
    %486 = vector.extract_strided_slice %483 {offsets = [1, 128], sizes = [16, 128], strides = [1, 1]} : vector<18x384xf32> to vector<16x128xf32>
    %487 = arith.addf %485, %486 : vector<16x128xf32>
    %488 = vector.extract_strided_slice %483 {offsets = [2, 256], sizes = [16, 128], strides = [1, 1]} : vector<18x384xf32> to vector<16x128xf32>
    %489 = arith.addf %487, %488 : vector<16x128xf32>
    %490 = arith.extui %0 : i1 to i32
    %c0_i32_301 = arith.constant 0 : i32
    %491 = arith.cmpi ne, %490, %c0_i32_301 : i32
    scf.if %491 {
      %722 = arith.index_cast %c10_i32 : i32 to index
      %c0_445 = arith.constant 0 : index
      %c0_446 = arith.constant 0 : index
      %723 = vector.load %arg8[%722, %c0_445, %c0_446] : memref<16x16x128xf32, #tpu.memory_space<vmem>>, vector<1x16x128xf32>
      %724 = vector.shape_cast %723 : vector<1x16x128xf32> to vector<16x128xf32>
      %725 = vector.shape_cast %489 : vector<16x128xf32> to vector<1x16x128xf32>
      tpu.vector_store %arg8[%722, %c0_445, %c0_446], %725 {strides = array<i32>} : memref<16x16x128xf32, #tpu.memory_space<vmem>>, vector<1x16x128xf32>,
    } else {
    }
    %true_302 = arith.constant true
    %492 = arith.xori %0, %true_302 : i1
    %493 = arith.extui %492 : i1 to i32
    %c0_i32_303 = arith.constant 0 : i32
    %494 = arith.cmpi ne, %493, %c0_i32_303 : i32
    scf.if %494 {
      %722 = arith.index_cast %c10_i32 : i32 to index
      %c0_445 = arith.constant 0 : index
      %c0_446 = arith.constant 0 : index
      %723 = vector.load %arg8[%722, %c0_445, %c0_446] : memref<16x16x128xf32, #tpu.memory_space<vmem>>, vector<1x16x128xf32>
      %724 = vector.shape_cast %723 : vector<1x16x128xf32> to vector<16x128xf32>
      %725 = arith.addf %724, %489 : vector<16x128xf32>
      %726 = arith.index_cast %c10_i32 : i32 to index
      %c0_447 = arith.constant 0 : index
      %c0_448 = arith.constant 0 : index
      %727 = vector.load %arg8[%726, %c0_447, %c0_448] : memref<16x16x128xf32, #tpu.memory_space<vmem>>, vector<1x16x128xf32>
      %728 = vector.shape_cast %727 : vector<1x16x128xf32> to vector<16x128xf32>
      %729 = vector.shape_cast %725 : vector<16x128xf32> to vector<1x16x128xf32>
      tpu.vector_store %arg8[%726, %c0_447, %c0_448], %729 {strides = array<i32>} : memref<16x16x128xf32, #tpu.memory_space<vmem>>, vector<1x16x128xf32>,
    } else {
    }
    %495 = arith.extui %1 : i1 to i32
    %c0_i32_304 = arith.constant 0 : i32
    %496 = arith.cmpi ne, %495, %c0_i32_304 : i32
    scf.if %496 {
      %722 = arith.index_cast %c10_i32 : i32 to index
      %c0_445 = arith.constant 0 : index
      %c0_446 = arith.constant 0 : index
      %723 = vector.load %arg8[%722, %c0_445, %c0_446] : memref<16x16x128xf32, #tpu.memory_space<vmem>>, vector<1x16x128xf32>
      %724 = vector.shape_cast %723 : vector<1x16x128xf32> to vector<16x128xf32>
      %c0_447 = arith.constant 0 : index
      %c0_448 = arith.constant 0 : index
      %725 = vector.load %arg4[%c0_447, %c0_448] : memref<1x128xf32, #tpu.memory_space<vmem>>, vector<1x128xf32>
      %726 = vector.broadcast %725 : vector<1x128xf32> to vector<16x128xf32>
      %727 = arith.addf %724, %726 : vector<16x128xf32>
      %cst_449 = arith.constant 0.000000e+00 : f32
      %728 = vector.broadcast %cst_449 : f32 to vector<16x128xf32>
      %729 = arith.maximumf %727, %728 : vector<16x128xf32>
      %730 = arith.truncf %729 : vector<16x128xf32> to vector<16x128xbf16>
      %c0_450 = arith.constant 0 : index
      %c0_451 = arith.constant 0 : index
      %731 = vector.load %arg5[%c0_450, %c0_451] : memref<128x128xbf16, #tpu.memory_space<vmem>>, vector<128x128xbf16>
      %cst_452 = arith.constant dense<0.000000e+00> : vector<16x128xf32>
      %732 = tpu.matmul %730, %731, %cst_452 {dimension_numbers = #tpu.dot_dimension_numbers<[1], [0], [0], [1], [0, 0, 1, 1], [], []>} : vector<16x128xbf16>, vector<128x128xbf16>, vector<16x128xf32> -> vector<16x128xf32>
      %c0_453 = arith.constant 0 : index
      %c0_454 = arith.constant 0 : index
      %733 = vector.load %arg6[%c0_453, %c0_454] : memref<1x128xf32, #tpu.memory_space<vmem>>, vector<1x128xf32>
      %734 = vector.broadcast %733 : vector<1x128xf32> to vector<16x128xf32>
      %735 = arith.addf %732, %734 : vector<16x128xf32>
      %c0_455 = arith.constant 0 : index
      %736 = arith.index_cast %c10_i32 : i32 to index
      %c0_456 = arith.constant 0 : index
      %c0_457 = arith.constant 0 : index
      %737 = vector.load %arg7[%c0_455, %736, %c0_456, %c0_457] : memref<1x16x16x128xf32, #tpu.memory_space<vmem>>, vector<1x1x16x128xf32>
      %738 = vector.shape_cast %737 : vector<1x1x16x128xf32> to vector<16x128xf32>
      %739 = vector.shape_cast %735 : vector<16x128xf32> to vector<1x1x16x128xf32>
      tpu.vector_store %arg7[%c0_455, %736, %c0_456, %c0_457], %739 {strides = array<i32>} : memref<1x16x16x128xf32, #tpu.memory_space<vmem>>, vector<1x1x16x128xf32>,
    } else {
    }
    %c11_i32 = arith.constant 11 : i32
    %c0_i32_305 = arith.constant 0 : i32
    %497 = arith.addi %c11_i32, %c0_i32_305 : i32
    %c0_306 = arith.constant 0 : index
    %498 = arith.index_cast %497 : i32 to index
    %c0_307 = arith.constant 0 : index
    %c0_308 = arith.constant 0 : index
    %499 = vector.load %arg2[%c0_306, %498, %c0_307, %c0_308] : memref<1x18x18x24xbf16, #tpu.memory_space<vmem>>, vector<1x1x18x24xbf16>
    %500 = vector.shape_cast %499 : vector<1x1x18x24xbf16> to vector<18x24xbf16>
    %c0_309 = arith.constant 0 : index
    %c0_310 = arith.constant 0 : index
    %c0_311 = arith.constant 0 : index
    %501 = vector.load %arg3[%c0_309, %c0_310, %c0_311] : memref<3x24x384xbf16, #tpu.memory_space<vmem>>, vector<1x24x384xbf16>
    %502 = vector.shape_cast %501 : vector<1x24x384xbf16> to vector<24x384xbf16>
    %cst_312 = arith.constant dense<0.000000e+00> : vector<18x384xf32>
    %503 = tpu.matmul %500, %502, %cst_312 {dimension_numbers = #tpu.dot_dimension_numbers<[1], [0], [0], [1], [0, 0, 1, 1], [], []>} : vector<18x24xbf16>, vector<24x384xbf16>, vector<18x384xf32> -> vector<18x384xf32>
    %504 = vector.extract_strided_slice %503 {offsets = [0, 0], sizes = [16, 128], strides = [1, 1]} : vector<18x384xf32> to vector<16x128xf32>
    %505 = vector.extract_strided_slice %503 {offsets = [1, 128], sizes = [16, 128], strides = [1, 1]} : vector<18x384xf32> to vector<16x128xf32>
    %506 = arith.addf %504, %505 : vector<16x128xf32>
    %507 = vector.extract_strided_slice %503 {offsets = [2, 256], sizes = [16, 128], strides = [1, 1]} : vector<18x384xf32> to vector<16x128xf32>
    %508 = arith.addf %506, %507 : vector<16x128xf32>
    %c1_i32_313 = arith.constant 1 : i32
    %509 = arith.addi %c11_i32, %c1_i32_313 : i32
    %c0_314 = arith.constant 0 : index
    %510 = arith.index_cast %509 : i32 to index
    %c0_315 = arith.constant 0 : index
    %c0_316 = arith.constant 0 : index
    %511 = vector.load %arg2[%c0_314, %510, %c0_315, %c0_316] : memref<1x18x18x24xbf16, #tpu.memory_space<vmem>>, vector<1x1x18x24xbf16>
    %512 = vector.shape_cast %511 : vector<1x1x18x24xbf16> to vector<18x24xbf16>
    %c1_317 = arith.constant 1 : index
    %c0_318 = arith.constant 0 : index
    %c0_319 = arith.constant 0 : index
    %513 = vector.load %arg3[%c1_317, %c0_318, %c0_319] : memref<3x24x384xbf16, #tpu.memory_space<vmem>>, vector<1x24x384xbf16>
    %514 = vector.shape_cast %513 : vector<1x24x384xbf16> to vector<24x384xbf16>
    %cst_320 = arith.constant dense<0.000000e+00> : vector<18x384xf32>
    %515 = tpu.matmul %512, %514, %cst_320 {dimension_numbers = #tpu.dot_dimension_numbers<[1], [0], [0], [1], [0, 0, 1, 1], [], []>} : vector<18x24xbf16>, vector<24x384xbf16>, vector<18x384xf32> -> vector<18x384xf32>
    %516 = vector.extract_strided_slice %515 {offsets = [0, 0], sizes = [16, 128], strides = [1, 1]} : vector<18x384xf32> to vector<16x128xf32>
    %517 = arith.addf %508, %516 : vector<16x128xf32>
    %518 = vector.extract_strided_slice %515 {offsets = [1, 128], sizes = [16, 128], strides = [1, 1]} : vector<18x384xf32> to vector<16x128xf32>
    %519 = arith.addf %517, %518 : vector<16x128xf32>
    %520 = vector.extract_strided_slice %515 {offsets = [2, 256], sizes = [16, 128], strides = [1, 1]} : vector<18x384xf32> to vector<16x128xf32>
    %521 = arith.addf %519, %520 : vector<16x128xf32>
    %c2_i32_321 = arith.constant 2 : i32
    %522 = arith.addi %c11_i32, %c2_i32_321 : i32
    %c0_322 = arith.constant 0 : index
    %523 = arith.index_cast %522 : i32 to index
    %c0_323 = arith.constant 0 : index
    %c0_324 = arith.constant 0 : index
    %524 = vector.load %arg2[%c0_322, %523, %c0_323, %c0_324] : memref<1x18x18x24xbf16, #tpu.memory_space<vmem>>, vector<1x1x18x24xbf16>
    %525 = vector.shape_cast %524 : vector<1x1x18x24xbf16> to vector<18x24xbf16>
    %c2_325 = arith.constant 2 : index
    %c0_326 = arith.constant 0 : index
    %c0_327 = arith.constant 0 : index
    %526 = vector.load %arg3[%c2_325, %c0_326, %c0_327] : memref<3x24x384xbf16, #tpu.memory_space<vmem>>, vector<1x24x384xbf16>
    %527 = vector.shape_cast %526 : vector<1x24x384xbf16> to vector<24x384xbf16>
    %cst_328 = arith.constant dense<0.000000e+00> : vector<18x384xf32>
    %528 = tpu.matmul %525, %527, %cst_328 {dimension_numbers = #tpu.dot_dimension_numbers<[1], [0], [0], [1], [0, 0, 1, 1], [], []>} : vector<18x24xbf16>, vector<24x384xbf16>, vector<18x384xf32> -> vector<18x384xf32>
    %529 = vector.extract_strided_slice %528 {offsets = [0, 0], sizes = [16, 128], strides = [1, 1]} : vector<18x384xf32> to vector<16x128xf32>
    %530 = arith.addf %521, %529 : vector<16x128xf32>
    %531 = vector.extract_strided_slice %528 {offsets = [1, 128], sizes = [16, 128], strides = [1, 1]} : vector<18x384xf32> to vector<16x128xf32>
    %532 = arith.addf %530, %531 : vector<16x128xf32>
    %533 = vector.extract_strided_slice %528 {offsets = [2, 256], sizes = [16, 128], strides = [1, 1]} : vector<18x384xf32> to vector<16x128xf32>
    %534 = arith.addf %532, %533 : vector<16x128xf32>
    %535 = arith.extui %0 : i1 to i32
    %c0_i32_329 = arith.constant 0 : i32
    %536 = arith.cmpi ne, %535, %c0_i32_329 : i32
    scf.if %536 {
      %722 = arith.index_cast %c11_i32 : i32 to index
      %c0_445 = arith.constant 0 : index
      %c0_446 = arith.constant 0 : index
      %723 = vector.load %arg8[%722, %c0_445, %c0_446] : memref<16x16x128xf32, #tpu.memory_space<vmem>>, vector<1x16x128xf32>
      %724 = vector.shape_cast %723 : vector<1x16x128xf32> to vector<16x128xf32>
      %725 = vector.shape_cast %534 : vector<16x128xf32> to vector<1x16x128xf32>
      tpu.vector_store %arg8[%722, %c0_445, %c0_446], %725 {strides = array<i32>} : memref<16x16x128xf32, #tpu.memory_space<vmem>>, vector<1x16x128xf32>,
    } else {
    }
    %true_330 = arith.constant true
    %537 = arith.xori %0, %true_330 : i1
    %538 = arith.extui %537 : i1 to i32
    %c0_i32_331 = arith.constant 0 : i32
    %539 = arith.cmpi ne, %538, %c0_i32_331 : i32
    scf.if %539 {
      %722 = arith.index_cast %c11_i32 : i32 to index
      %c0_445 = arith.constant 0 : index
      %c0_446 = arith.constant 0 : index
      %723 = vector.load %arg8[%722, %c0_445, %c0_446] : memref<16x16x128xf32, #tpu.memory_space<vmem>>, vector<1x16x128xf32>
      %724 = vector.shape_cast %723 : vector<1x16x128xf32> to vector<16x128xf32>
      %725 = arith.addf %724, %534 : vector<16x128xf32>
      %726 = arith.index_cast %c11_i32 : i32 to index
      %c0_447 = arith.constant 0 : index
      %c0_448 = arith.constant 0 : index
      %727 = vector.load %arg8[%726, %c0_447, %c0_448] : memref<16x16x128xf32, #tpu.memory_space<vmem>>, vector<1x16x128xf32>
      %728 = vector.shape_cast %727 : vector<1x16x128xf32> to vector<16x128xf32>
      %729 = vector.shape_cast %725 : vector<16x128xf32> to vector<1x16x128xf32>
      tpu.vector_store %arg8[%726, %c0_447, %c0_448], %729 {strides = array<i32>} : memref<16x16x128xf32, #tpu.memory_space<vmem>>, vector<1x16x128xf32>,
    } else {
    }
    %540 = arith.extui %1 : i1 to i32
    %c0_i32_332 = arith.constant 0 : i32
    %541 = arith.cmpi ne, %540, %c0_i32_332 : i32
    scf.if %541 {
      %722 = arith.index_cast %c11_i32 : i32 to index
      %c0_445 = arith.constant 0 : index
      %c0_446 = arith.constant 0 : index
      %723 = vector.load %arg8[%722, %c0_445, %c0_446] : memref<16x16x128xf32, #tpu.memory_space<vmem>>, vector<1x16x128xf32>
      %724 = vector.shape_cast %723 : vector<1x16x128xf32> to vector<16x128xf32>
      %c0_447 = arith.constant 0 : index
      %c0_448 = arith.constant 0 : index
      %725 = vector.load %arg4[%c0_447, %c0_448] : memref<1x128xf32, #tpu.memory_space<vmem>>, vector<1x128xf32>
      %726 = vector.broadcast %725 : vector<1x128xf32> to vector<16x128xf32>
      %727 = arith.addf %724, %726 : vector<16x128xf32>
      %cst_449 = arith.constant 0.000000e+00 : f32
      %728 = vector.broadcast %cst_449 : f32 to vector<16x128xf32>
      %729 = arith.maximumf %727, %728 : vector<16x128xf32>
      %730 = arith.truncf %729 : vector<16x128xf32> to vector<16x128xbf16>
      %c0_450 = arith.constant 0 : index
      %c0_451 = arith.constant 0 : index
      %731 = vector.load %arg5[%c0_450, %c0_451] : memref<128x128xbf16, #tpu.memory_space<vmem>>, vector<128x128xbf16>
      %cst_452 = arith.constant dense<0.000000e+00> : vector<16x128xf32>
      %732 = tpu.matmul %730, %731, %cst_452 {dimension_numbers = #tpu.dot_dimension_numbers<[1], [0], [0], [1], [0, 0, 1, 1], [], []>} : vector<16x128xbf16>, vector<128x128xbf16>, vector<16x128xf32> -> vector<16x128xf32>
      %c0_453 = arith.constant 0 : index
      %c0_454 = arith.constant 0 : index
      %733 = vector.load %arg6[%c0_453, %c0_454] : memref<1x128xf32, #tpu.memory_space<vmem>>, vector<1x128xf32>
      %734 = vector.broadcast %733 : vector<1x128xf32> to vector<16x128xf32>
      %735 = arith.addf %732, %734 : vector<16x128xf32>
      %c0_455 = arith.constant 0 : index
      %736 = arith.index_cast %c11_i32 : i32 to index
      %c0_456 = arith.constant 0 : index
      %c0_457 = arith.constant 0 : index
      %737 = vector.load %arg7[%c0_455, %736, %c0_456, %c0_457] : memref<1x16x16x128xf32, #tpu.memory_space<vmem>>, vector<1x1x16x128xf32>
      %738 = vector.shape_cast %737 : vector<1x1x16x128xf32> to vector<16x128xf32>
      %739 = vector.shape_cast %735 : vector<16x128xf32> to vector<1x1x16x128xf32>
      tpu.vector_store %arg7[%c0_455, %736, %c0_456, %c0_457], %739 {strides = array<i32>} : memref<1x16x16x128xf32, #tpu.memory_space<vmem>>, vector<1x1x16x128xf32>,
    } else {
    }
    %c12_i32 = arith.constant 12 : i32
    %c0_i32_333 = arith.constant 0 : i32
    %542 = arith.addi %c12_i32, %c0_i32_333 : i32
    %c0_334 = arith.constant 0 : index
    %543 = arith.index_cast %542 : i32 to index
    %c0_335 = arith.constant 0 : index
    %c0_336 = arith.constant 0 : index
    %544 = vector.load %arg2[%c0_334, %543, %c0_335, %c0_336] : memref<1x18x18x24xbf16, #tpu.memory_space<vmem>>, vector<1x1x18x24xbf16>
    %545 = vector.shape_cast %544 : vector<1x1x18x24xbf16> to vector<18x24xbf16>
    %c0_337 = arith.constant 0 : index
    %c0_338 = arith.constant 0 : index
    %c0_339 = arith.constant 0 : index
    %546 = vector.load %arg3[%c0_337, %c0_338, %c0_339] : memref<3x24x384xbf16, #tpu.memory_space<vmem>>, vector<1x24x384xbf16>
    %547 = vector.shape_cast %546 : vector<1x24x384xbf16> to vector<24x384xbf16>
    %cst_340 = arith.constant dense<0.000000e+00> : vector<18x384xf32>
    %548 = tpu.matmul %545, %547, %cst_340 {dimension_numbers = #tpu.dot_dimension_numbers<[1], [0], [0], [1], [0, 0, 1, 1], [], []>} : vector<18x24xbf16>, vector<24x384xbf16>, vector<18x384xf32> -> vector<18x384xf32>
    %549 = vector.extract_strided_slice %548 {offsets = [0, 0], sizes = [16, 128], strides = [1, 1]} : vector<18x384xf32> to vector<16x128xf32>
    %550 = vector.extract_strided_slice %548 {offsets = [1, 128], sizes = [16, 128], strides = [1, 1]} : vector<18x384xf32> to vector<16x128xf32>
    %551 = arith.addf %549, %550 : vector<16x128xf32>
    %552 = vector.extract_strided_slice %548 {offsets = [2, 256], sizes = [16, 128], strides = [1, 1]} : vector<18x384xf32> to vector<16x128xf32>
    %553 = arith.addf %551, %552 : vector<16x128xf32>
    %c1_i32_341 = arith.constant 1 : i32
    %554 = arith.addi %c12_i32, %c1_i32_341 : i32
    %c0_342 = arith.constant 0 : index
    %555 = arith.index_cast %554 : i32 to index
    %c0_343 = arith.constant 0 : index
    %c0_344 = arith.constant 0 : index
    %556 = vector.load %arg2[%c0_342, %555, %c0_343, %c0_344] : memref<1x18x18x24xbf16, #tpu.memory_space<vmem>>, vector<1x1x18x24xbf16>
    %557 = vector.shape_cast %556 : vector<1x1x18x24xbf16> to vector<18x24xbf16>
    %c1_345 = arith.constant 1 : index
    %c0_346 = arith.constant 0 : index
    %c0_347 = arith.constant 0 : index
    %558 = vector.load %arg3[%c1_345, %c0_346, %c0_347] : memref<3x24x384xbf16, #tpu.memory_space<vmem>>, vector<1x24x384xbf16>
    %559 = vector.shape_cast %558 : vector<1x24x384xbf16> to vector<24x384xbf16>
    %cst_348 = arith.constant dense<0.000000e+00> : vector<18x384xf32>
    %560 = tpu.matmul %557, %559, %cst_348 {dimension_numbers = #tpu.dot_dimension_numbers<[1], [0], [0], [1], [0, 0, 1, 1], [], []>} : vector<18x24xbf16>, vector<24x384xbf16>, vector<18x384xf32> -> vector<18x384xf32>
    %561 = vector.extract_strided_slice %560 {offsets = [0, 0], sizes = [16, 128], strides = [1, 1]} : vector<18x384xf32> to vector<16x128xf32>
    %562 = arith.addf %553, %561 : vector<16x128xf32>
    %563 = vector.extract_strided_slice %560 {offsets = [1, 128], sizes = [16, 128], strides = [1, 1]} : vector<18x384xf32> to vector<16x128xf32>
    %564 = arith.addf %562, %563 : vector<16x128xf32>
    %565 = vector.extract_strided_slice %560 {offsets = [2, 256], sizes = [16, 128], strides = [1, 1]} : vector<18x384xf32> to vector<16x128xf32>
    %566 = arith.addf %564, %565 : vector<16x128xf32>
    %c2_i32_349 = arith.constant 2 : i32
    %567 = arith.addi %c12_i32, %c2_i32_349 : i32
    %c0_350 = arith.constant 0 : index
    %568 = arith.index_cast %567 : i32 to index
    %c0_351 = arith.constant 0 : index
    %c0_352 = arith.constant 0 : index
    %569 = vector.load %arg2[%c0_350, %568, %c0_351, %c0_352] : memref<1x18x18x24xbf16, #tpu.memory_space<vmem>>, vector<1x1x18x24xbf16>
    %570 = vector.shape_cast %569 : vector<1x1x18x24xbf16> to vector<18x24xbf16>
    %c2_353 = arith.constant 2 : index
    %c0_354 = arith.constant 0 : index
    %c0_355 = arith.constant 0 : index
    %571 = vector.load %arg3[%c2_353, %c0_354, %c0_355] : memref<3x24x384xbf16, #tpu.memory_space<vmem>>, vector<1x24x384xbf16>
    %572 = vector.shape_cast %571 : vector<1x24x384xbf16> to vector<24x384xbf16>
    %cst_356 = arith.constant dense<0.000000e+00> : vector<18x384xf32>
    %573 = tpu.matmul %570, %572, %cst_356 {dimension_numbers = #tpu.dot_dimension_numbers<[1], [0], [0], [1], [0, 0, 1, 1], [], []>} : vector<18x24xbf16>, vector<24x384xbf16>, vector<18x384xf32> -> vector<18x384xf32>
    %574 = vector.extract_strided_slice %573 {offsets = [0, 0], sizes = [16, 128], strides = [1, 1]} : vector<18x384xf32> to vector<16x128xf32>
    %575 = arith.addf %566, %574 : vector<16x128xf32>
    %576 = vector.extract_strided_slice %573 {offsets = [1, 128], sizes = [16, 128], strides = [1, 1]} : vector<18x384xf32> to vector<16x128xf32>
    %577 = arith.addf %575, %576 : vector<16x128xf32>
    %578 = vector.extract_strided_slice %573 {offsets = [2, 256], sizes = [16, 128], strides = [1, 1]} : vector<18x384xf32> to vector<16x128xf32>
    %579 = arith.addf %577, %578 : vector<16x128xf32>
    %580 = arith.extui %0 : i1 to i32
    %c0_i32_357 = arith.constant 0 : i32
    %581 = arith.cmpi ne, %580, %c0_i32_357 : i32
    scf.if %581 {
      %722 = arith.index_cast %c12_i32 : i32 to index
      %c0_445 = arith.constant 0 : index
      %c0_446 = arith.constant 0 : index
      %723 = vector.load %arg8[%722, %c0_445, %c0_446] : memref<16x16x128xf32, #tpu.memory_space<vmem>>, vector<1x16x128xf32>
      %724 = vector.shape_cast %723 : vector<1x16x128xf32> to vector<16x128xf32>
      %725 = vector.shape_cast %579 : vector<16x128xf32> to vector<1x16x128xf32>
      tpu.vector_store %arg8[%722, %c0_445, %c0_446], %725 {strides = array<i32>} : memref<16x16x128xf32, #tpu.memory_space<vmem>>, vector<1x16x128xf32>,
    } else {
    }
    %true_358 = arith.constant true
    %582 = arith.xori %0, %true_358 : i1
    %583 = arith.extui %582 : i1 to i32
    %c0_i32_359 = arith.constant 0 : i32
    %584 = arith.cmpi ne, %583, %c0_i32_359 : i32
    scf.if %584 {
      %722 = arith.index_cast %c12_i32 : i32 to index
      %c0_445 = arith.constant 0 : index
      %c0_446 = arith.constant 0 : index
      %723 = vector.load %arg8[%722, %c0_445, %c0_446] : memref<16x16x128xf32, #tpu.memory_space<vmem>>, vector<1x16x128xf32>
      %724 = vector.shape_cast %723 : vector<1x16x128xf32> to vector<16x128xf32>
      %725 = arith.addf %724, %579 : vector<16x128xf32>
      %726 = arith.index_cast %c12_i32 : i32 to index
      %c0_447 = arith.constant 0 : index
      %c0_448 = arith.constant 0 : index
      %727 = vector.load %arg8[%726, %c0_447, %c0_448] : memref<16x16x128xf32, #tpu.memory_space<vmem>>, vector<1x16x128xf32>
      %728 = vector.shape_cast %727 : vector<1x16x128xf32> to vector<16x128xf32>
      %729 = vector.shape_cast %725 : vector<16x128xf32> to vector<1x16x128xf32>
      tpu.vector_store %arg8[%726, %c0_447, %c0_448], %729 {strides = array<i32>} : memref<16x16x128xf32, #tpu.memory_space<vmem>>, vector<1x16x128xf32>,
    } else {
    }
    %585 = arith.extui %1 : i1 to i32
    %c0_i32_360 = arith.constant 0 : i32
    %586 = arith.cmpi ne, %585, %c0_i32_360 : i32
    scf.if %586 {
      %722 = arith.index_cast %c12_i32 : i32 to index
      %c0_445 = arith.constant 0 : index
      %c0_446 = arith.constant 0 : index
      %723 = vector.load %arg8[%722, %c0_445, %c0_446] : memref<16x16x128xf32, #tpu.memory_space<vmem>>, vector<1x16x128xf32>
      %724 = vector.shape_cast %723 : vector<1x16x128xf32> to vector<16x128xf32>
      %c0_447 = arith.constant 0 : index
      %c0_448 = arith.constant 0 : index
      %725 = vector.load %arg4[%c0_447, %c0_448] : memref<1x128xf32, #tpu.memory_space<vmem>>, vector<1x128xf32>
      %726 = vector.broadcast %725 : vector<1x128xf32> to vector<16x128xf32>
      %727 = arith.addf %724, %726 : vector<16x128xf32>
      %cst_449 = arith.constant 0.000000e+00 : f32
      %728 = vector.broadcast %cst_449 : f32 to vector<16x128xf32>
      %729 = arith.maximumf %727, %728 : vector<16x128xf32>
      %730 = arith.truncf %729 : vector<16x128xf32> to vector<16x128xbf16>
      %c0_450 = arith.constant 0 : index
      %c0_451 = arith.constant 0 : index
      %731 = vector.load %arg5[%c0_450, %c0_451] : memref<128x128xbf16, #tpu.memory_space<vmem>>, vector<128x128xbf16>
      %cst_452 = arith.constant dense<0.000000e+00> : vector<16x128xf32>
      %732 = tpu.matmul %730, %731, %cst_452 {dimension_numbers = #tpu.dot_dimension_numbers<[1], [0], [0], [1], [0, 0, 1, 1], [], []>} : vector<16x128xbf16>, vector<128x128xbf16>, vector<16x128xf32> -> vector<16x128xf32>
      %c0_453 = arith.constant 0 : index
      %c0_454 = arith.constant 0 : index
      %733 = vector.load %arg6[%c0_453, %c0_454] : memref<1x128xf32, #tpu.memory_space<vmem>>, vector<1x128xf32>
      %734 = vector.broadcast %733 : vector<1x128xf32> to vector<16x128xf32>
      %735 = arith.addf %732, %734 : vector<16x128xf32>
      %c0_455 = arith.constant 0 : index
      %736 = arith.index_cast %c12_i32 : i32 to index
      %c0_456 = arith.constant 0 : index
      %c0_457 = arith.constant 0 : index
      %737 = vector.load %arg7[%c0_455, %736, %c0_456, %c0_457] : memref<1x16x16x128xf32, #tpu.memory_space<vmem>>, vector<1x1x16x128xf32>
      %738 = vector.shape_cast %737 : vector<1x1x16x128xf32> to vector<16x128xf32>
      %739 = vector.shape_cast %735 : vector<16x128xf32> to vector<1x1x16x128xf32>
      tpu.vector_store %arg7[%c0_455, %736, %c0_456, %c0_457], %739 {strides = array<i32>} : memref<1x16x16x128xf32, #tpu.memory_space<vmem>>, vector<1x1x16x128xf32>,
    } else {
    }
    %c13_i32 = arith.constant 13 : i32
    %c0_i32_361 = arith.constant 0 : i32
    %587 = arith.addi %c13_i32, %c0_i32_361 : i32
    %c0_362 = arith.constant 0 : index
    %588 = arith.index_cast %587 : i32 to index
    %c0_363 = arith.constant 0 : index
    %c0_364 = arith.constant 0 : index
    %589 = vector.load %arg2[%c0_362, %588, %c0_363, %c0_364] : memref<1x18x18x24xbf16, #tpu.memory_space<vmem>>, vector<1x1x18x24xbf16>
    %590 = vector.shape_cast %589 : vector<1x1x18x24xbf16> to vector<18x24xbf16>
    %c0_365 = arith.constant 0 : index
    %c0_366 = arith.constant 0 : index
    %c0_367 = arith.constant 0 : index
    %591 = vector.load %arg3[%c0_365, %c0_366, %c0_367] : memref<3x24x384xbf16, #tpu.memory_space<vmem>>, vector<1x24x384xbf16>
    %592 = vector.shape_cast %591 : vector<1x24x384xbf16> to vector<24x384xbf16>
    %cst_368 = arith.constant dense<0.000000e+00> : vector<18x384xf32>
    %593 = tpu.matmul %590, %592, %cst_368 {dimension_numbers = #tpu.dot_dimension_numbers<[1], [0], [0], [1], [0, 0, 1, 1], [], []>} : vector<18x24xbf16>, vector<24x384xbf16>, vector<18x384xf32> -> vector<18x384xf32>
    %594 = vector.extract_strided_slice %593 {offsets = [0, 0], sizes = [16, 128], strides = [1, 1]} : vector<18x384xf32> to vector<16x128xf32>
    %595 = vector.extract_strided_slice %593 {offsets = [1, 128], sizes = [16, 128], strides = [1, 1]} : vector<18x384xf32> to vector<16x128xf32>
    %596 = arith.addf %594, %595 : vector<16x128xf32>
    %597 = vector.extract_strided_slice %593 {offsets = [2, 256], sizes = [16, 128], strides = [1, 1]} : vector<18x384xf32> to vector<16x128xf32>
    %598 = arith.addf %596, %597 : vector<16x128xf32>
    %c1_i32_369 = arith.constant 1 : i32
    %599 = arith.addi %c13_i32, %c1_i32_369 : i32
    %c0_370 = arith.constant 0 : index
    %600 = arith.index_cast %599 : i32 to index
    %c0_371 = arith.constant 0 : index
    %c0_372 = arith.constant 0 : index
    %601 = vector.load %arg2[%c0_370, %600, %c0_371, %c0_372] : memref<1x18x18x24xbf16, #tpu.memory_space<vmem>>, vector<1x1x18x24xbf16>
    %602 = vector.shape_cast %601 : vector<1x1x18x24xbf16> to vector<18x24xbf16>
    %c1_373 = arith.constant 1 : index
    %c0_374 = arith.constant 0 : index
    %c0_375 = arith.constant 0 : index
    %603 = vector.load %arg3[%c1_373, %c0_374, %c0_375] : memref<3x24x384xbf16, #tpu.memory_space<vmem>>, vector<1x24x384xbf16>
    %604 = vector.shape_cast %603 : vector<1x24x384xbf16> to vector<24x384xbf16>
    %cst_376 = arith.constant dense<0.000000e+00> : vector<18x384xf32>
    %605 = tpu.matmul %602, %604, %cst_376 {dimension_numbers = #tpu.dot_dimension_numbers<[1], [0], [0], [1], [0, 0, 1, 1], [], []>} : vector<18x24xbf16>, vector<24x384xbf16>, vector<18x384xf32> -> vector<18x384xf32>
    %606 = vector.extract_strided_slice %605 {offsets = [0, 0], sizes = [16, 128], strides = [1, 1]} : vector<18x384xf32> to vector<16x128xf32>
    %607 = arith.addf %598, %606 : vector<16x128xf32>
    %608 = vector.extract_strided_slice %605 {offsets = [1, 128], sizes = [16, 128], strides = [1, 1]} : vector<18x384xf32> to vector<16x128xf32>
    %609 = arith.addf %607, %608 : vector<16x128xf32>
    %610 = vector.extract_strided_slice %605 {offsets = [2, 256], sizes = [16, 128], strides = [1, 1]} : vector<18x384xf32> to vector<16x128xf32>
    %611 = arith.addf %609, %610 : vector<16x128xf32>
    %c2_i32_377 = arith.constant 2 : i32
    %612 = arith.addi %c13_i32, %c2_i32_377 : i32
    %c0_378 = arith.constant 0 : index
    %613 = arith.index_cast %612 : i32 to index
    %c0_379 = arith.constant 0 : index
    %c0_380 = arith.constant 0 : index
    %614 = vector.load %arg2[%c0_378, %613, %c0_379, %c0_380] : memref<1x18x18x24xbf16, #tpu.memory_space<vmem>>, vector<1x1x18x24xbf16>
    %615 = vector.shape_cast %614 : vector<1x1x18x24xbf16> to vector<18x24xbf16>
    %c2_381 = arith.constant 2 : index
    %c0_382 = arith.constant 0 : index
    %c0_383 = arith.constant 0 : index
    %616 = vector.load %arg3[%c2_381, %c0_382, %c0_383] : memref<3x24x384xbf16, #tpu.memory_space<vmem>>, vector<1x24x384xbf16>
    %617 = vector.shape_cast %616 : vector<1x24x384xbf16> to vector<24x384xbf16>
    %cst_384 = arith.constant dense<0.000000e+00> : vector<18x384xf32>
    %618 = tpu.matmul %615, %617, %cst_384 {dimension_numbers = #tpu.dot_dimension_numbers<[1], [0], [0], [1], [0, 0, 1, 1], [], []>} : vector<18x24xbf16>, vector<24x384xbf16>, vector<18x384xf32> -> vector<18x384xf32>
    %619 = vector.extract_strided_slice %618 {offsets = [0, 0], sizes = [16, 128], strides = [1, 1]} : vector<18x384xf32> to vector<16x128xf32>
    %620 = arith.addf %611, %619 : vector<16x128xf32>
    %621 = vector.extract_strided_slice %618 {offsets = [1, 128], sizes = [16, 128], strides = [1, 1]} : vector<18x384xf32> to vector<16x128xf32>
    %622 = arith.addf %620, %621 : vector<16x128xf32>
    %623 = vector.extract_strided_slice %618 {offsets = [2, 256], sizes = [16, 128], strides = [1, 1]} : vector<18x384xf32> to vector<16x128xf32>
    %624 = arith.addf %622, %623 : vector<16x128xf32>
    %625 = arith.extui %0 : i1 to i32
    %c0_i32_385 = arith.constant 0 : i32
    %626 = arith.cmpi ne, %625, %c0_i32_385 : i32
    scf.if %626 {
      %722 = arith.index_cast %c13_i32 : i32 to index
      %c0_445 = arith.constant 0 : index
      %c0_446 = arith.constant 0 : index
      %723 = vector.load %arg8[%722, %c0_445, %c0_446] : memref<16x16x128xf32, #tpu.memory_space<vmem>>, vector<1x16x128xf32>
      %724 = vector.shape_cast %723 : vector<1x16x128xf32> to vector<16x128xf32>
      %725 = vector.shape_cast %624 : vector<16x128xf32> to vector<1x16x128xf32>
      tpu.vector_store %arg8[%722, %c0_445, %c0_446], %725 {strides = array<i32>} : memref<16x16x128xf32, #tpu.memory_space<vmem>>, vector<1x16x128xf32>,
    } else {
    }
    %true_386 = arith.constant true
    %627 = arith.xori %0, %true_386 : i1
    %628 = arith.extui %627 : i1 to i32
    %c0_i32_387 = arith.constant 0 : i32
    %629 = arith.cmpi ne, %628, %c0_i32_387 : i32
    scf.if %629 {
      %722 = arith.index_cast %c13_i32 : i32 to index
      %c0_445 = arith.constant 0 : index
      %c0_446 = arith.constant 0 : index
      %723 = vector.load %arg8[%722, %c0_445, %c0_446] : memref<16x16x128xf32, #tpu.memory_space<vmem>>, vector<1x16x128xf32>
      %724 = vector.shape_cast %723 : vector<1x16x128xf32> to vector<16x128xf32>
      %725 = arith.addf %724, %624 : vector<16x128xf32>
      %726 = arith.index_cast %c13_i32 : i32 to index
      %c0_447 = arith.constant 0 : index
      %c0_448 = arith.constant 0 : index
      %727 = vector.load %arg8[%726, %c0_447, %c0_448] : memref<16x16x128xf32, #tpu.memory_space<vmem>>, vector<1x16x128xf32>
      %728 = vector.shape_cast %727 : vector<1x16x128xf32> to vector<16x128xf32>
      %729 = vector.shape_cast %725 : vector<16x128xf32> to vector<1x16x128xf32>
      tpu.vector_store %arg8[%726, %c0_447, %c0_448], %729 {strides = array<i32>} : memref<16x16x128xf32, #tpu.memory_space<vmem>>, vector<1x16x128xf32>,
    } else {
    }
    %630 = arith.extui %1 : i1 to i32
    %c0_i32_388 = arith.constant 0 : i32
    %631 = arith.cmpi ne, %630, %c0_i32_388 : i32
    scf.if %631 {
      %722 = arith.index_cast %c13_i32 : i32 to index
      %c0_445 = arith.constant 0 : index
      %c0_446 = arith.constant 0 : index
      %723 = vector.load %arg8[%722, %c0_445, %c0_446] : memref<16x16x128xf32, #tpu.memory_space<vmem>>, vector<1x16x128xf32>
      %724 = vector.shape_cast %723 : vector<1x16x128xf32> to vector<16x128xf32>
      %c0_447 = arith.constant 0 : index
      %c0_448 = arith.constant 0 : index
      %725 = vector.load %arg4[%c0_447, %c0_448] : memref<1x128xf32, #tpu.memory_space<vmem>>, vector<1x128xf32>
      %726 = vector.broadcast %725 : vector<1x128xf32> to vector<16x128xf32>
      %727 = arith.addf %724, %726 : vector<16x128xf32>
      %cst_449 = arith.constant 0.000000e+00 : f32
      %728 = vector.broadcast %cst_449 : f32 to vector<16x128xf32>
      %729 = arith.maximumf %727, %728 : vector<16x128xf32>
      %730 = arith.truncf %729 : vector<16x128xf32> to vector<16x128xbf16>
      %c0_450 = arith.constant 0 : index
      %c0_451 = arith.constant 0 : index
      %731 = vector.load %arg5[%c0_450, %c0_451] : memref<128x128xbf16, #tpu.memory_space<vmem>>, vector<128x128xbf16>
      %cst_452 = arith.constant dense<0.000000e+00> : vector<16x128xf32>
      %732 = tpu.matmul %730, %731, %cst_452 {dimension_numbers = #tpu.dot_dimension_numbers<[1], [0], [0], [1], [0, 0, 1, 1], [], []>} : vector<16x128xbf16>, vector<128x128xbf16>, vector<16x128xf32> -> vector<16x128xf32>
      %c0_453 = arith.constant 0 : index
      %c0_454 = arith.constant 0 : index
      %733 = vector.load %arg6[%c0_453, %c0_454] : memref<1x128xf32, #tpu.memory_space<vmem>>, vector<1x128xf32>
      %734 = vector.broadcast %733 : vector<1x128xf32> to vector<16x128xf32>
      %735 = arith.addf %732, %734 : vector<16x128xf32>
      %c0_455 = arith.constant 0 : index
      %736 = arith.index_cast %c13_i32 : i32 to index
      %c0_456 = arith.constant 0 : index
      %c0_457 = arith.constant 0 : index
      %737 = vector.load %arg7[%c0_455, %736, %c0_456, %c0_457] : memref<1x16x16x128xf32, #tpu.memory_space<vmem>>, vector<1x1x16x128xf32>
      %738 = vector.shape_cast %737 : vector<1x1x16x128xf32> to vector<16x128xf32>
      %739 = vector.shape_cast %735 : vector<16x128xf32> to vector<1x1x16x128xf32>
      tpu.vector_store %arg7[%c0_455, %736, %c0_456, %c0_457], %739 {strides = array<i32>} : memref<1x16x16x128xf32, #tpu.memory_space<vmem>>, vector<1x1x16x128xf32>,
    } else {
    }
    %c14_i32 = arith.constant 14 : i32
    %c0_i32_389 = arith.constant 0 : i32
    %632 = arith.addi %c14_i32, %c0_i32_389 : i32
    %c0_390 = arith.constant 0 : index
    %633 = arith.index_cast %632 : i32 to index
    %c0_391 = arith.constant 0 : index
    %c0_392 = arith.constant 0 : index
    %634 = vector.load %arg2[%c0_390, %633, %c0_391, %c0_392] : memref<1x18x18x24xbf16, #tpu.memory_space<vmem>>, vector<1x1x18x24xbf16>
    %635 = vector.shape_cast %634 : vector<1x1x18x24xbf16> to vector<18x24xbf16>
    %c0_393 = arith.constant 0 : index
    %c0_394 = arith.constant 0 : index
    %c0_395 = arith.constant 0 : index
    %636 = vector.load %arg3[%c0_393, %c0_394, %c0_395] : memref<3x24x384xbf16, #tpu.memory_space<vmem>>, vector<1x24x384xbf16>
    %637 = vector.shape_cast %636 : vector<1x24x384xbf16> to vector<24x384xbf16>
    %cst_396 = arith.constant dense<0.000000e+00> : vector<18x384xf32>
    %638 = tpu.matmul %635, %637, %cst_396 {dimension_numbers = #tpu.dot_dimension_numbers<[1], [0], [0], [1], [0, 0, 1, 1], [], []>} : vector<18x24xbf16>, vector<24x384xbf16>, vector<18x384xf32> -> vector<18x384xf32>
    %639 = vector.extract_strided_slice %638 {offsets = [0, 0], sizes = [16, 128], strides = [1, 1]} : vector<18x384xf32> to vector<16x128xf32>
    %640 = vector.extract_strided_slice %638 {offsets = [1, 128], sizes = [16, 128], strides = [1, 1]} : vector<18x384xf32> to vector<16x128xf32>
    %641 = arith.addf %639, %640 : vector<16x128xf32>
    %642 = vector.extract_strided_slice %638 {offsets = [2, 256], sizes = [16, 128], strides = [1, 1]} : vector<18x384xf32> to vector<16x128xf32>
    %643 = arith.addf %641, %642 : vector<16x128xf32>
    %c1_i32_397 = arith.constant 1 : i32
    %644 = arith.addi %c14_i32, %c1_i32_397 : i32
    %c0_398 = arith.constant 0 : index
    %645 = arith.index_cast %644 : i32 to index
    %c0_399 = arith.constant 0 : index
    %c0_400 = arith.constant 0 : index
    %646 = vector.load %arg2[%c0_398, %645, %c0_399, %c0_400] : memref<1x18x18x24xbf16, #tpu.memory_space<vmem>>, vector<1x1x18x24xbf16>
    %647 = vector.shape_cast %646 : vector<1x1x18x24xbf16> to vector<18x24xbf16>
    %c1_401 = arith.constant 1 : index
    %c0_402 = arith.constant 0 : index
    %c0_403 = arith.constant 0 : index
    %648 = vector.load %arg3[%c1_401, %c0_402, %c0_403] : memref<3x24x384xbf16, #tpu.memory_space<vmem>>, vector<1x24x384xbf16>
    %649 = vector.shape_cast %648 : vector<1x24x384xbf16> to vector<24x384xbf16>
    %cst_404 = arith.constant dense<0.000000e+00> : vector<18x384xf32>
    %650 = tpu.matmul %647, %649, %cst_404 {dimension_numbers = #tpu.dot_dimension_numbers<[1], [0], [0], [1], [0, 0, 1, 1], [], []>} : vector<18x24xbf16>, vector<24x384xbf16>, vector<18x384xf32> -> vector<18x384xf32>
    %651 = vector.extract_strided_slice %650 {offsets = [0, 0], sizes = [16, 128], strides = [1, 1]} : vector<18x384xf32> to vector<16x128xf32>
    %652 = arith.addf %643, %651 : vector<16x128xf32>
    %653 = vector.extract_strided_slice %650 {offsets = [1, 128], sizes = [16, 128], strides = [1, 1]} : vector<18x384xf32> to vector<16x128xf32>
    %654 = arith.addf %652, %653 : vector<16x128xf32>
    %655 = vector.extract_strided_slice %650 {offsets = [2, 256], sizes = [16, 128], strides = [1, 1]} : vector<18x384xf32> to vector<16x128xf32>
    %656 = arith.addf %654, %655 : vector<16x128xf32>
    %c2_i32_405 = arith.constant 2 : i32
    %657 = arith.addi %c14_i32, %c2_i32_405 : i32
    %c0_406 = arith.constant 0 : index
    %658 = arith.index_cast %657 : i32 to index
    %c0_407 = arith.constant 0 : index
    %c0_408 = arith.constant 0 : index
    %659 = vector.load %arg2[%c0_406, %658, %c0_407, %c0_408] : memref<1x18x18x24xbf16, #tpu.memory_space<vmem>>, vector<1x1x18x24xbf16>
    %660 = vector.shape_cast %659 : vector<1x1x18x24xbf16> to vector<18x24xbf16>
    %c2_409 = arith.constant 2 : index
    %c0_410 = arith.constant 0 : index
    %c0_411 = arith.constant 0 : index
    %661 = vector.load %arg3[%c2_409, %c0_410, %c0_411] : memref<3x24x384xbf16, #tpu.memory_space<vmem>>, vector<1x24x384xbf16>
    %662 = vector.shape_cast %661 : vector<1x24x384xbf16> to vector<24x384xbf16>
    %cst_412 = arith.constant dense<0.000000e+00> : vector<18x384xf32>
    %663 = tpu.matmul %660, %662, %cst_412 {dimension_numbers = #tpu.dot_dimension_numbers<[1], [0], [0], [1], [0, 0, 1, 1], [], []>} : vector<18x24xbf16>, vector<24x384xbf16>, vector<18x384xf32> -> vector<18x384xf32>
    %664 = vector.extract_strided_slice %663 {offsets = [0, 0], sizes = [16, 128], strides = [1, 1]} : vector<18x384xf32> to vector<16x128xf32>
    %665 = arith.addf %656, %664 : vector<16x128xf32>
    %666 = vector.extract_strided_slice %663 {offsets = [1, 128], sizes = [16, 128], strides = [1, 1]} : vector<18x384xf32> to vector<16x128xf32>
    %667 = arith.addf %665, %666 : vector<16x128xf32>
    %668 = vector.extract_strided_slice %663 {offsets = [2, 256], sizes = [16, 128], strides = [1, 1]} : vector<18x384xf32> to vector<16x128xf32>
    %669 = arith.addf %667, %668 : vector<16x128xf32>
    %670 = arith.extui %0 : i1 to i32
    %c0_i32_413 = arith.constant 0 : i32
    %671 = arith.cmpi ne, %670, %c0_i32_413 : i32
    scf.if %671 {
      %722 = arith.index_cast %c14_i32 : i32 to index
      %c0_445 = arith.constant 0 : index
      %c0_446 = arith.constant 0 : index
      %723 = vector.load %arg8[%722, %c0_445, %c0_446] : memref<16x16x128xf32, #tpu.memory_space<vmem>>, vector<1x16x128xf32>
      %724 = vector.shape_cast %723 : vector<1x16x128xf32> to vector<16x128xf32>
      %725 = vector.shape_cast %669 : vector<16x128xf32> to vector<1x16x128xf32>
      tpu.vector_store %arg8[%722, %c0_445, %c0_446], %725 {strides = array<i32>} : memref<16x16x128xf32, #tpu.memory_space<vmem>>, vector<1x16x128xf32>,
    } else {
    }
    %true_414 = arith.constant true
    %672 = arith.xori %0, %true_414 : i1
    %673 = arith.extui %672 : i1 to i32
    %c0_i32_415 = arith.constant 0 : i32
    %674 = arith.cmpi ne, %673, %c0_i32_415 : i32
    scf.if %674 {
      %722 = arith.index_cast %c14_i32 : i32 to index
      %c0_445 = arith.constant 0 : index
      %c0_446 = arith.constant 0 : index
      %723 = vector.load %arg8[%722, %c0_445, %c0_446] : memref<16x16x128xf32, #tpu.memory_space<vmem>>, vector<1x16x128xf32>
      %724 = vector.shape_cast %723 : vector<1x16x128xf32> to vector<16x128xf32>
      %725 = arith.addf %724, %669 : vector<16x128xf32>
      %726 = arith.index_cast %c14_i32 : i32 to index
      %c0_447 = arith.constant 0 : index
      %c0_448 = arith.constant 0 : index
      %727 = vector.load %arg8[%726, %c0_447, %c0_448] : memref<16x16x128xf32, #tpu.memory_space<vmem>>, vector<1x16x128xf32>
      %728 = vector.shape_cast %727 : vector<1x16x128xf32> to vector<16x128xf32>
      %729 = vector.shape_cast %725 : vector<16x128xf32> to vector<1x16x128xf32>
      tpu.vector_store %arg8[%726, %c0_447, %c0_448], %729 {strides = array<i32>} : memref<16x16x128xf32, #tpu.memory_space<vmem>>, vector<1x16x128xf32>,
    } else {
    }
    %675 = arith.extui %1 : i1 to i32
    %c0_i32_416 = arith.constant 0 : i32
    %676 = arith.cmpi ne, %675, %c0_i32_416 : i32
    scf.if %676 {
      %722 = arith.index_cast %c14_i32 : i32 to index
      %c0_445 = arith.constant 0 : index
      %c0_446 = arith.constant 0 : index
      %723 = vector.load %arg8[%722, %c0_445, %c0_446] : memref<16x16x128xf32, #tpu.memory_space<vmem>>, vector<1x16x128xf32>
      %724 = vector.shape_cast %723 : vector<1x16x128xf32> to vector<16x128xf32>
      %c0_447 = arith.constant 0 : index
      %c0_448 = arith.constant 0 : index
      %725 = vector.load %arg4[%c0_447, %c0_448] : memref<1x128xf32, #tpu.memory_space<vmem>>, vector<1x128xf32>
      %726 = vector.broadcast %725 : vector<1x128xf32> to vector<16x128xf32>
      %727 = arith.addf %724, %726 : vector<16x128xf32>
      %cst_449 = arith.constant 0.000000e+00 : f32
      %728 = vector.broadcast %cst_449 : f32 to vector<16x128xf32>
      %729 = arith.maximumf %727, %728 : vector<16x128xf32>
      %730 = arith.truncf %729 : vector<16x128xf32> to vector<16x128xbf16>
      %c0_450 = arith.constant 0 : index
      %c0_451 = arith.constant 0 : index
      %731 = vector.load %arg5[%c0_450, %c0_451] : memref<128x128xbf16, #tpu.memory_space<vmem>>, vector<128x128xbf16>
      %cst_452 = arith.constant dense<0.000000e+00> : vector<16x128xf32>
      %732 = tpu.matmul %730, %731, %cst_452 {dimension_numbers = #tpu.dot_dimension_numbers<[1], [0], [0], [1], [0, 0, 1, 1], [], []>} : vector<16x128xbf16>, vector<128x128xbf16>, vector<16x128xf32> -> vector<16x128xf32>
      %c0_453 = arith.constant 0 : index
      %c0_454 = arith.constant 0 : index
      %733 = vector.load %arg6[%c0_453, %c0_454] : memref<1x128xf32, #tpu.memory_space<vmem>>, vector<1x128xf32>
      %734 = vector.broadcast %733 : vector<1x128xf32> to vector<16x128xf32>
      %735 = arith.addf %732, %734 : vector<16x128xf32>
      %c0_455 = arith.constant 0 : index
      %736 = arith.index_cast %c14_i32 : i32 to index
      %c0_456 = arith.constant 0 : index
      %c0_457 = arith.constant 0 : index
      %737 = vector.load %arg7[%c0_455, %736, %c0_456, %c0_457] : memref<1x16x16x128xf32, #tpu.memory_space<vmem>>, vector<1x1x16x128xf32>
      %738 = vector.shape_cast %737 : vector<1x1x16x128xf32> to vector<16x128xf32>
      %739 = vector.shape_cast %735 : vector<16x128xf32> to vector<1x1x16x128xf32>
      tpu.vector_store %arg7[%c0_455, %736, %c0_456, %c0_457], %739 {strides = array<i32>} : memref<1x16x16x128xf32, #tpu.memory_space<vmem>>, vector<1x1x16x128xf32>,
    } else {
    }
    %c15_i32 = arith.constant 15 : i32
    %c0_i32_417 = arith.constant 0 : i32
    %677 = arith.addi %c15_i32, %c0_i32_417 : i32
    %c0_418 = arith.constant 0 : index
    %678 = arith.index_cast %677 : i32 to index
    %c0_419 = arith.constant 0 : index
    %c0_420 = arith.constant 0 : index
    %679 = vector.load %arg2[%c0_418, %678, %c0_419, %c0_420] : memref<1x18x18x24xbf16, #tpu.memory_space<vmem>>, vector<1x1x18x24xbf16>
    %680 = vector.shape_cast %679 : vector<1x1x18x24xbf16> to vector<18x24xbf16>
    %c0_421 = arith.constant 0 : index
    %c0_422 = arith.constant 0 : index
    %c0_423 = arith.constant 0 : index
    %681 = vector.load %arg3[%c0_421, %c0_422, %c0_423] : memref<3x24x384xbf16, #tpu.memory_space<vmem>>, vector<1x24x384xbf16>
    %682 = vector.shape_cast %681 : vector<1x24x384xbf16> to vector<24x384xbf16>
    %cst_424 = arith.constant dense<0.000000e+00> : vector<18x384xf32>
    %683 = tpu.matmul %680, %682, %cst_424 {dimension_numbers = #tpu.dot_dimension_numbers<[1], [0], [0], [1], [0, 0, 1, 1], [], []>} : vector<18x24xbf16>, vector<24x384xbf16>, vector<18x384xf32> -> vector<18x384xf32>
    %684 = vector.extract_strided_slice %683 {offsets = [0, 0], sizes = [16, 128], strides = [1, 1]} : vector<18x384xf32> to vector<16x128xf32>
    %685 = vector.extract_strided_slice %683 {offsets = [1, 128], sizes = [16, 128], strides = [1, 1]} : vector<18x384xf32> to vector<16x128xf32>
    %686 = arith.addf %684, %685 : vector<16x128xf32>
    %687 = vector.extract_strided_slice %683 {offsets = [2, 256], sizes = [16, 128], strides = [1, 1]} : vector<18x384xf32> to vector<16x128xf32>
    %688 = arith.addf %686, %687 : vector<16x128xf32>
    %c1_i32_425 = arith.constant 1 : i32
    %689 = arith.addi %c15_i32, %c1_i32_425 : i32
    %c0_426 = arith.constant 0 : index
    %690 = arith.index_cast %689 : i32 to index
    %c0_427 = arith.constant 0 : index
    %c0_428 = arith.constant 0 : index
    %691 = vector.load %arg2[%c0_426, %690, %c0_427, %c0_428] : memref<1x18x18x24xbf16, #tpu.memory_space<vmem>>, vector<1x1x18x24xbf16>
    %692 = vector.shape_cast %691 : vector<1x1x18x24xbf16> to vector<18x24xbf16>
    %c1_429 = arith.constant 1 : index
    %c0_430 = arith.constant 0 : index
    %c0_431 = arith.constant 0 : index
    %693 = vector.load %arg3[%c1_429, %c0_430, %c0_431] : memref<3x24x384xbf16, #tpu.memory_space<vmem>>, vector<1x24x384xbf16>
    %694 = vector.shape_cast %693 : vector<1x24x384xbf16> to vector<24x384xbf16>
    %cst_432 = arith.constant dense<0.000000e+00> : vector<18x384xf32>
    %695 = tpu.matmul %692, %694, %cst_432 {dimension_numbers = #tpu.dot_dimension_numbers<[1], [0], [0], [1], [0, 0, 1, 1], [], []>} : vector<18x24xbf16>, vector<24x384xbf16>, vector<18x384xf32> -> vector<18x384xf32>
    %696 = vector.extract_strided_slice %695 {offsets = [0, 0], sizes = [16, 128], strides = [1, 1]} : vector<18x384xf32> to vector<16x128xf32>
    %697 = arith.addf %688, %696 : vector<16x128xf32>
    %698 = vector.extract_strided_slice %695 {offsets = [1, 128], sizes = [16, 128], strides = [1, 1]} : vector<18x384xf32> to vector<16x128xf32>
    %699 = arith.addf %697, %698 : vector<16x128xf32>
    %700 = vector.extract_strided_slice %695 {offsets = [2, 256], sizes = [16, 128], strides = [1, 1]} : vector<18x384xf32> to vector<16x128xf32>
    %701 = arith.addf %699, %700 : vector<16x128xf32>
    %c2_i32_433 = arith.constant 2 : i32
    %702 = arith.addi %c15_i32, %c2_i32_433 : i32
    %c0_434 = arith.constant 0 : index
    %703 = arith.index_cast %702 : i32 to index
    %c0_435 = arith.constant 0 : index
    %c0_436 = arith.constant 0 : index
    %704 = vector.load %arg2[%c0_434, %703, %c0_435, %c0_436] : memref<1x18x18x24xbf16, #tpu.memory_space<vmem>>, vector<1x1x18x24xbf16>
    %705 = vector.shape_cast %704 : vector<1x1x18x24xbf16> to vector<18x24xbf16>
    %c2_437 = arith.constant 2 : index
    %c0_438 = arith.constant 0 : index
    %c0_439 = arith.constant 0 : index
    %706 = vector.load %arg3[%c2_437, %c0_438, %c0_439] : memref<3x24x384xbf16, #tpu.memory_space<vmem>>, vector<1x24x384xbf16>
    %707 = vector.shape_cast %706 : vector<1x24x384xbf16> to vector<24x384xbf16>
    %cst_440 = arith.constant dense<0.000000e+00> : vector<18x384xf32>
    %708 = tpu.matmul %705, %707, %cst_440 {dimension_numbers = #tpu.dot_dimension_numbers<[1], [0], [0], [1], [0, 0, 1, 1], [], []>} : vector<18x24xbf16>, vector<24x384xbf16>, vector<18x384xf32> -> vector<18x384xf32>
    %709 = vector.extract_strided_slice %708 {offsets = [0, 0], sizes = [16, 128], strides = [1, 1]} : vector<18x384xf32> to vector<16x128xf32>
    %710 = arith.addf %701, %709 : vector<16x128xf32>
    %711 = vector.extract_strided_slice %708 {offsets = [1, 128], sizes = [16, 128], strides = [1, 1]} : vector<18x384xf32> to vector<16x128xf32>
    %712 = arith.addf %710, %711 : vector<16x128xf32>
    %713 = vector.extract_strided_slice %708 {offsets = [2, 256], sizes = [16, 128], strides = [1, 1]} : vector<18x384xf32> to vector<16x128xf32>
    %714 = arith.addf %712, %713 : vector<16x128xf32>
    %715 = arith.extui %0 : i1 to i32
    %c0_i32_441 = arith.constant 0 : i32
    %716 = arith.cmpi ne, %715, %c0_i32_441 : i32
    scf.if %716 {
      %722 = arith.index_cast %c15_i32 : i32 to index
      %c0_445 = arith.constant 0 : index
      %c0_446 = arith.constant 0 : index
      %723 = vector.load %arg8[%722, %c0_445, %c0_446] : memref<16x16x128xf32, #tpu.memory_space<vmem>>, vector<1x16x128xf32>
      %724 = vector.shape_cast %723 : vector<1x16x128xf32> to vector<16x128xf32>
      %725 = vector.shape_cast %714 : vector<16x128xf32> to vector<1x16x128xf32>
      tpu.vector_store %arg8[%722, %c0_445, %c0_446], %725 {strides = array<i32>} : memref<16x16x128xf32, #tpu.memory_space<vmem>>, vector<1x16x128xf32>,
    } else {
    }
    %true_442 = arith.constant true
    %717 = arith.xori %0, %true_442 : i1
    %718 = arith.extui %717 : i1 to i32
    %c0_i32_443 = arith.constant 0 : i32
    %719 = arith.cmpi ne, %718, %c0_i32_443 : i32
    scf.if %719 {
      %722 = arith.index_cast %c15_i32 : i32 to index
      %c0_445 = arith.constant 0 : index
      %c0_446 = arith.constant 0 : index
      %723 = vector.load %arg8[%722, %c0_445, %c0_446] : memref<16x16x128xf32, #tpu.memory_space<vmem>>, vector<1x16x128xf32>
      %724 = vector.shape_cast %723 : vector<1x16x128xf32> to vector<16x128xf32>
      %725 = arith.addf %724, %714 : vector<16x128xf32>
      %726 = arith.index_cast %c15_i32 : i32 to index
      %c0_447 = arith.constant 0 : index
      %c0_448 = arith.constant 0 : index
      %727 = vector.load %arg8[%726, %c0_447, %c0_448] : memref<16x16x128xf32, #tpu.memory_space<vmem>>, vector<1x16x128xf32>
      %728 = vector.shape_cast %727 : vector<1x16x128xf32> to vector<16x128xf32>
      %729 = vector.shape_cast %725 : vector<16x128xf32> to vector<1x16x128xf32>
      tpu.vector_store %arg8[%726, %c0_447, %c0_448], %729 {strides = array<i32>} : memref<16x16x128xf32, #tpu.memory_space<vmem>>, vector<1x16x128xf32>,
    } else {
    }
    %720 = arith.extui %1 : i1 to i32
    %c0_i32_444 = arith.constant 0 : i32
    %721 = arith.cmpi ne, %720, %c0_i32_444 : i32
    scf.if %721 {
      %722 = arith.index_cast %c15_i32 : i32 to index
      %c0_445 = arith.constant 0 : index
      %c0_446 = arith.constant 0 : index
      %723 = vector.load %arg8[%722, %c0_445, %c0_446] : memref<16x16x128xf32, #tpu.memory_space<vmem>>, vector<1x16x128xf32>
      %724 = vector.shape_cast %723 : vector<1x16x128xf32> to vector<16x128xf32>
      %c0_447 = arith.constant 0 : index
      %c0_448 = arith.constant 0 : index
      %725 = vector.load %arg4[%c0_447, %c0_448] : memref<1x128xf32, #tpu.memory_space<vmem>>, vector<1x128xf32>
      %726 = vector.broadcast %725 : vector<1x128xf32> to vector<16x128xf32>
      %727 = arith.addf %724, %726 : vector<16x128xf32>
      %cst_449 = arith.constant 0.000000e+00 : f32
      %728 = vector.broadcast %cst_449 : f32 to vector<16x128xf32>
      %729 = arith.maximumf %727, %728 : vector<16x128xf32>
      %730 = arith.truncf %729 : vector<16x128xf32> to vector<16x128xbf16>
      %c0_450 = arith.constant 0 : index
      %c0_451 = arith.constant 0 : index
      %731 = vector.load %arg5[%c0_450, %c0_451] : memref<128x128xbf16, #tpu.memory_space<vmem>>, vector<128x128xbf16>
      %cst_452 = arith.constant dense<0.000000e+00> : vector<16x128xf32>
      %732 = tpu.matmul %730, %731, %cst_452 {dimension_numbers = #tpu.dot_dimension_numbers<[1], [0], [0], [1], [0, 0, 1, 1], [], []>} : vector<16x128xbf16>, vector<128x128xbf16>, vector<16x128xf32> -> vector<16x128xf32>
      %c0_453 = arith.constant 0 : index
      %c0_454 = arith.constant 0 : index
      %733 = vector.load %arg6[%c0_453, %c0_454] : memref<1x128xf32, #tpu.memory_space<vmem>>, vector<1x128xf32>
      %734 = vector.broadcast %733 : vector<1x128xf32> to vector<16x128xf32>
      %735 = arith.addf %732, %734 : vector<16x128xf32>
      %c0_455 = arith.constant 0 : index
      %736 = arith.index_cast %c15_i32 : i32 to index
      %c0_456 = arith.constant 0 : index
      %c0_457 = arith.constant 0 : index
      %737 = vector.load %arg7[%c0_455, %736, %c0_456, %c0_457] : memref<1x16x16x128xf32, #tpu.memory_space<vmem>>, vector<1x1x16x128xf32>
      %738 = vector.shape_cast %737 : vector<1x1x16x128xf32> to vector<16x128xf32>
      %739 = vector.shape_cast %735 : vector<16x128xf32> to vector<1x1x16x128xf32>
      tpu.vector_store %arg7[%c0_455, %736, %c0_456, %c0_457], %739 {strides = array<i32>} : memref<1x16x16x128xf32, #tpu.memory_space<vmem>>, vector<1x1x16x128xf32>,
    } else {
    }
    %c16_i32 = arith.constant 16 : i32
    return
  }
  func.func @transform_0(%arg0: i32, %arg1: i32) -> (i32, i32, i32, i32) {
    %c0_i32 = arith.constant 0 : i32
    %c0_i32_0 = arith.constant 0 : i32
    %c0_i32_1 = arith.constant 0 : i32
    return %arg0, %c0_i32, %c0_i32_0, %arg1 : i32, i32, i32, i32
  }
  func.func @transform_1(%arg0: i32, %arg1: i32) -> (i32, i32, i32) {
    %c0_i32 = arith.constant 0 : i32
    %c0_i32_0 = arith.constant 0 : i32
    %c0_i32_1 = arith.constant 0 : i32
    return %c0_i32, %arg1, %c0_i32_0 : i32, i32, i32
  }
  func.func @transform_2(%arg0: i32, %arg1: i32) -> (i32, i32) {
    %c0_i32 = arith.constant 0 : i32
    %c0_i32_0 = arith.constant 0 : i32
    %c0_i32_1 = arith.constant 0 : i32
    return %c0_i32, %c0_i32_0 : i32, i32
  }
  func.func @transform_3(%arg0: i32, %arg1: i32) -> (i32, i32) {
    %c0_i32 = arith.constant 0 : i32
    %c0_i32_0 = arith.constant 0 : i32
    %c0_i32_1 = arith.constant 0 : i32
    return %c0_i32, %c0_i32_0 : i32, i32
  }
  func.func @transform_4(%arg0: i32, %arg1: i32) -> (i32, i32) {
    %c0_i32 = arith.constant 0 : i32
    %c0_i32_0 = arith.constant 0 : i32
    %c0_i32_1 = arith.constant 0 : i32
    return %c0_i32, %c0_i32_0 : i32, i32
  }
  func.func @transform_5(%arg0: i32, %arg1: i32) -> (i32, i32, i32, i32) {
    %c0_i32 = arith.constant 0 : i32
    %c0_i32_0 = arith.constant 0 : i32
    %c0_i32_1 = arith.constant 0 : i32
    %c0_i32_2 = arith.constant 0 : i32
    return %arg0, %c0_i32, %c0_i32_0, %c0_i32_1 : i32, i32, i32, i32
  }
}

</mosaic_0001>

<bundles_post_ra>
// kernel: new_psp3_head_forward.1
= control target key start
LH: loop header
LB: loop body
LE: loop exit
PB: predicated region body
PF: predicated region fallthrough
CT: control target
= control target key end

     0   :  { %s14120_s18 = smov 0   ;;  %s14122_s19 = smov 0   ;;  %s17069_s0 = inlined_call_operand.vmem [shape: bf16[2,18,18,24], index: 0, kind: input, shape index: {}]   ;;  %s17070_s1 = inlined_call_operand.vmem [shape: bf16[3,24,384], index: 1, kind: input, shape index: {}]   ;;  %s17071_s2 = inlined_call_operand.vmem [shape: f32[1,128], index: 2, kind: input, shape index: {}]   ;;  %s17072_s3 = inlined_call_operand.vmem [shape: bf16[128,128], index: 3, kind: input, shape index: {}]   ;;  %s17073_s4 = inlined_call_operand.vmem [shape: f32[1,128], index: 4, kind: input, shape index: {}]   ;;  %s17074_s5 = inlined_call_operand.vmem [shape: f32[2,16,16,128], index: 5, kind: output, shape index: {}]  }
   0x1   :  { %s14124_s20 = smov 0  }
   0x2 LB: > { %s27_s21 = sadd.s32 1, %s14081_s19  ;;  %p11377_p0 = scmp.ge.s32.totalorder %s14085_s20, 1  ;;  %s14085_s20 = sphi %s14124_s20, %s15_s20   ;;  %s14081_s19 = sphi %s14122_s19, %s17076_s19   ;;  %s14077_s18 = sphi %s14120_s18, %s17075_s18  }
   0x3   : > { %p29_p1 = scmp.ge.s32.totalorder %s27_s21, 2  ;;  %p216_p2 = scmp.lt.s32.totalorder %s14085_s20, 3 }
   0x5   : > { %s17078_s21 = smov (%p29_p1, %s27_s21), 0  ;;  %p217_p3 = pnand %p11377_p0, %p216_p2 }
   0x6   : > { %p253_p4 = scmp.lt.s32.totalorder (!%p217_p3), %s14077_s18, 1 }
   0x7   : > { %220 = sbr.rel (%p217_p3) target bundleno = 3953 (0xf71), region = 40 }
   0xc   : > { %v282_v0 = vld [vmem:[%s17070_s1 + $0x18] sm:$0xff]  ;;  %vm323_vm0 = vcmask 1043456   ;;  %v14146_v3 = vld [vmem:[%s17070_s1 + $0x4] ss:$12 sps:$4 sm:$0xff]   ;;  %v14087_v4 = vmov 0   ;;  %s17080_s18 = smov (!%p253_p4, %s14077_s18), 1 }
   0xd   : > { %v14141_v1 = vcombine.high %v282_v0, %v282_v0  ;;  %v11386_v2 = vcombine.low %v282_v0, %v282_v0  ;;  %365 = vmatprep.mubr.bf16.mxu1 %v14087_v4  ;;  %v14152_v5 = vld [vmem:[%s17070_s1] ss:$12 sps:$4 sm:$0xff]   ;;  %s13619_s28 = smul.u32 216, %s17080_s18  ;;  %v13656_v9 = vld [vmem:[%s17070_s1 + $0x44] ss:$0 sps:$4 sm:$0xff]   ;;  %vm316_vm1 = vcmask 195584  }
   0xe   : > { %v13653_v7 = vld [vmem:[%s17070_s1 + $0x20] ss:$0 sps:$4 sm:$0xff]   ;;  %v13657_v11 = vld [vmem:[%s17070_s1 + $0x2c] ss:$12 sps:$4 sm:$0xff]   ;;  %13572 = vmatprep.subr.msk.bf16.mxu0 %vm323_vm0, %v13656_v9  ;;  %v513_v13 = vsel %vm323_vm0, %v13656_v9, 0  ;;  %v14088_v40 = vmov 0.0  }
   0xf   : > { %11389 = vmatprep.subr.msk.bf16.mxu1 %vm323_vm0, %v14141_v1  ;;  %v14159_v6 = vsel %vm323_vm0, %v11386_v2, 0  ;;  %v11401_v8 = vld [vmem:[%s17070_s1 + $0x3c] sm:$0xff]  ;;  %s14179_s14 = scalar_lea.vmem %s17069_s0, %s13619_s28  ;;  %v331_v14 = vsel %vm323_vm0, %v13653_v7, 0  ;;  %v13655_v15 = vld [vmem:[%s17070_s1 + $0x8] ss:$12 sps:$4 sm:$0xff]   ;;  %12876 = vmatpush3.bf16.msra.mxu0 %v513_v13  ;;  %vm14089_vm2 = vmmov 0  }
  0x10   : > { %346 = vmatpush1.bf16.msra.mxu1 %v14159_v6  ;;  %v11423_v10 = vld [vmem:[%s17070_s1 + $0x60] sm:$0xff]  ;;  %v13659_v16 = vld [vmem:[%s14179_s14 + $0xc] sm:$0xff]   ;;  %12877 = vmatprep.subr.bf16.mxu0 %v13657_v11  ;;  %v11408_v17 = vcombine.low %v11401_v8, %v11401_v8  ;;  %v13661_v20 = vld [vmem:[%s14179_s14 + $0x14] ss:$0 sps:$4 sm:$0x11]   ;;  %v14204_v23 = vcombine.high %v11401_v8, %v11401_v8  ;;  %vm434_vm3 = vcmask 1046528  }
  0x11   : > { %347 = vmatprep.subr.bf16.mxu1 %v14146_v3  ;;  %v13652_v12 = vld [vmem:[%s14179_s14] sm:$0xff]   ;;  %12879 = vmatprep.mubr.msk.bf16.mxu0 %vm316_vm1, %v13659_v16  ;;  %v14195_v18 = vcombine.high %v11423_v10, %v11423_v10  ;;  %v11430_v19 = vcombine.low %v11423_v10, %v11423_v10  ;;  %v13670_v21 = vld [vmem:[%s17070_s1 + $0x68] ss:$0 sps:$4 sm:$0xff]   ;;  %v13669_v26 = vld [vmem:[%s17070_s1 + $0x4c] ss:$12 sps:$4 sm:$0xff]   ;;  %vm447_vm4 = vcmask 1045504  }
  0x12   : > { %v13654_v22 = vld [vmem:[%s14179_s14 + $0x8] ss:$0 sps:$4 sm:$0x11]   ;;  %v14207_v24 = vsel %vm323_vm0, %v11408_v17, 0  ;;  %v695_v28 = vsel %vm323_vm0, %v13670_v21, 0  ;;  %v13671_v29 = vld [vmem:[%s14179_s14 + $0x18] sm:$0xff]  }
  0x13   : > { %12878 = vmatpush3.bf16.msra.mxu0 %v13657_v11  ;;  %v14212_v25 = vsel %vm323_vm0, %v11430_v19, 0  ;;  %v13667_v27 = vld [vmem:[%s17070_s1 + $0x48] ss:$12 sps:$4 sm:$0xff]   ;;  %v13664_v31 = vld [vmem:[%s17070_s1 + $0x24] ss:$12 sps:$4 sm:$0xff]   ;;  %v13678_v39 = vld [vmem:[%s17072_s3 + $0x38] sm:$0xff]  }
  0x14   : > { %348 = vmatpush1.bf16.msra.mxu1 %v14152_v5  ;;  %11433 = vmatprep.subr.msk.bf16.mxu0 %vm323_vm0, %v14195_v18  ;;  %v13666_v30 = vld [vmem:[%s17070_s1 + $0x28] ss:$12 sps:$4 sm:$0xff]   ;;  %v13673_v32 = vld [vmem:[%s14179_s14 + $0x20] ss:$0 sps:$4 sm:$0x11]   ;;  %v13674_v34 = vld [vmem:[%s14179_s14 + $0xc] sm:$0xff]  }
  0x15   : > { %13571 = vmatprep.subr.msk.bf16.mxu1 %vm323_vm0, %v13653_v7  ;;  %v13672_v33 = vld [vmem:[%s17070_s1 + $0x50] ss:$12 sps:$4 sm:$0xff]   ;;  %v13675_v35 = vld [vmem:[%s14179_s14 + $0x14] ss:$0 sps:$4 sm:$0x11]   ;;  %v13681_v43 = vld [vmem:[%s17072_s3 + $0x28] sm:$0xff]  }
  0x16   : > { %12880 = vmatmul.mubr.msk.bf16.vlgmr.msra.gmra.mxu0 %vm316_vm1, %v13661_v20  ;;  %v13676_v36 = vld [vmem:[%s17070_s1 + $0x20] ss:$0 sps:$4 sm:$0xff]   ;;  %v13677_v38 = vld [vmem:[%s17070_s1 + $0x8] ss:$12 sps:$4 sm:$0xff]   ;;  %v14285_v42 = vld [vmem:[%s14179_s14 + $0x18] sm:$0xff]   ;;  %s12530_s29 = sshll.u32 %s17080_s18, 8 }
  0x17   : > { %11390 = vmatmul.mubr.msk.bf16.vlgmr.msra.gmra.mxu1 %vm316_vm1, %v13652_v12  ;;  %710 = vmatpush1.bf16.msra.mxu0 %v14212_v25  ;;  %v1021_v37 = vsel %vm323_vm0, %v13676_v36, 0  ;;  %v13679_v41 = vld [vmem:[%s17072_s3 + $0x30] sm:$0xff]   ;;  %v13682_v44 = vld [vmem:[%s17072_s3 + $0x20] sm:$0xff]   ;;  %v13684_v46 = vld [vmem:[%s17072_s3 + $0x18] sm:$0xff]   ;;  %s14569_s9 = scalar_lea.vmem %s17074_s5, %s12530_s29 }
  0x18   : > { %12868 = vmatpush3.bf16.msra.mxu1 %v331_v14  ;;  %375 = vmatprep.mubr.bf16.mxu1 %v14087_v4  ;;  %v14299_v45 = vld [vmem:[%s14179_s14 + $0x20] ss:$0 sps:$4 sm:$0x11]   ;;  %v13685_v47 = vld [vmem:[%s17072_s3 + $0x10] sm:$0xff]   ;;  %v13686_v48 = vld [vmem:[%s17072_s3 + $0x8] sm:$0xff]  }
  0x19   : > { %12869 = vmatprep.subr.bf16.mxu1 %v13655_v15  ;;  %711 = vmatprep.subr.bf16.mxu0 %v13669_v26  ;;  %v13687_v49 = vld [vmem:[%s17072_s3] sm:$0xff]   ;;  %v13690_v51 = vld [vmem:[%s17070_s1 + $0x68] ss:$0 sps:$4 sm:$0xff]   ;;  %v13691_v53 = vld [vmem:[%s17070_s1 + $0x50] ss:$12 sps:$4 sm:$0xff]  }
  0x1a   : > { %729 = vmatprep.mubr.bf16.mxu0 %v14087_v4  ;;  %v14322_v50 = vld [vmem:[%s17070_s1 + $0x44] ss:$0 sps:$4 sm:$0xff]   ;;  %v1380_v52 = vsel %vm323_vm0, %v13690_v51, 0  ;;  %v14340_v55 = vld [vmem:[%s14179_s14 + $0x2c] ss:$0 sps:$4 sm:$0x11]  }
  0x1b   : > { %712 = vmatpush1.bf16.msra.mxu0 %v13667_v27  ;;  %v14337_v54 = vld [vmem:[%s14179_s14 + $0x24] sm:$0xff]   ;;  %v14058_v57 = vld [vmem:[%s17070_s1] ss:$12 sps:$4 sm:$0xff]   ;;  %v14357_v58 = vld [vmem:[%s14179_s14 + $0x18] sm:$0xff]  }
  0x1c   : > { %12870 = vmatpush3.bf16.msra.mxu1 %v13655_v15  ;;  %12891 = vmatprep.subr.bf16.mxu0 %v14088_v40  ;;  %v14057_v56 = vld [vmem:[%s17070_s1 + $0x4] ss:$12 sps:$4 sm:$0xff]  }
  0x1d   : > { %11411 = vmatprep.subr.msk.bf16.mxu1 %vm323_vm0, %v14204_v23 }
  0x1e   : > { %11434 = vmatmul.mubr.msk.bf16.vlgmr.msra.gmra.mxu0 %vm316_vm1, %v13671_v29 }
  0x1f   : > { %11391 = vmatmul.mubr.msk.bf16.gmra.mxu1 %vm316_vm1, %v13654_v22  ;;  %739 = vmatprep.mubr.bf16.mxu0 %v14087_v4 }
  0x20   : > { %12871 = vmatprep.mubr.msk.bf16.mxu1 %vm316_vm1, %v13652_v12  ;;  %12892 = vmatpush3.bf16.msra.mxu0 %v13678_v39 }
  0x21   : > { %12893 = vmatprep.subr.bf16.mxu0 %v14088_v40 }
  0x24   : > { %12894 = vmatpush3.bf16.msra.mxu0 %v13679_v41 }
  0x25   : > { %12895 = vmatprep.subr.bf16.mxu0 %v14088_v40 }
  0x26   : > { %11435 = vmatmul.mubr.msk.bf16.gmra.mxu0 %vm316_vm1, %v13673_v32 }
  0x27   : > { %12872 = vmatmul.mubr.msk.bf16.vlgmr.msra.gmra.mxu1 %vm316_vm1, %v13654_v22  ;;  %12907 = vmatprep.mubr.msk.bf16.mxu0 %vm14089_vm2, %v14088_v40 }
  0x28   : > { %528 = vmatpush1.bf16.msra.mxu1 %v14207_v24  ;;  %547 = vmatprep.mubr.bf16.mxu1 %v14087_v4 }
  0x29   : > { %529 = vmatprep.subr.bf16.mxu1 %v13666_v30  ;;  %12896 = vmatpush3.bf16.msra.mxu0 %v13681_v43 }
  0x2a   : > { %12897 = vmatprep.subr.bf16.mxu0 %v14088_v40 }
  0x2c   : > { %530 = vmatpush1.bf16.msra.mxu1 %v13664_v31 }
  0x2d   : > { %13573 = vmatprep.subr.msk.bf16.mxu1 %vm323_vm0, %v13670_v21  ;;  %12898 = vmatpush3.bf16.msra.mxu0 %v13682_v44 }
  0x2e   : > { %12899 = vmatprep.subr.bf16.mxu0 %v14088_v40 }
  0x2f   : > { %11412 = vmatmul.mubr.msk.bf16.vlgmr.msra.gmra.mxu1 %vm316_vm1, %v13659_v16 }
  0x30   : > { %12884 = vmatpush3.bf16.msra.mxu1 %v695_v28  ;;  %557 = vmatprep.mubr.bf16.mxu1 %v14087_v4 }
  0x31   : > { %12885 = vmatprep.subr.bf16.mxu1 %v13672_v33  ;;  %12900 = vmatpush3.bf16.msra.mxu0 %v13684_v46 }
  0x32   : > { %12901 = vmatprep.subr.bf16.mxu0 %v14088_v40 }
  0x34   : > { %12886 = vmatpush3.bf16.msra.mxu1 %v13672_v33 }
  0x35   : > { %11459 = vmatprep.subr.msk.bf16.mxu1 %vm323_vm0, %v14141_v1  ;;  %12902 = vmatpush3.bf16.msra.mxu0 %v13685_v47 }
  0x36   : > { %12903 = vmatprep.subr.bf16.mxu0 %v14088_v40 }
  0x37   : > { %11413 = vmatmul.mubr.msk.bf16.gmra.mxu1 %vm316_vm1, %v13661_v20 }
  0x38   : > { %12887 = vmatprep.mubr.msk.bf16.mxu1 %vm316_vm1, %v13671_v29 }
  0x39   : > { %12904 = vmatpush3.bf16.msra.mxu0 %v13686_v48 }
  0x3a   : > { %12905 = vmatprep.subr.bf16.mxu0 %v14088_v40 }
  0x3d   : > { %12906 = vmatpush3.bf16.msra.mxu0 %v13687_v49 }
  0x3e   : > { %13575 = vmatprep.subr.msk.bf16.mxu0 %vm323_vm0, %v14322_v50 }
  0x3f   : > { %12888 = vmatmul.mubr.msk.bf16.vlgmr.msra.gmra.mxu1 %vm316_vm1, %v13673_v32 }
  0x40   : > { %1036 = vmatpush1.bf16.msra.mxu1 %v14159_v6  ;;  %1055 = vmatprep.mubr.bf16.mxu1 %v14087_v4 }
  0x41   : > { %1037 = vmatprep.subr.bf16.mxu1 %v14146_v3 }
  0x44   : > { %1038 = vmatpush1.bf16.msra.mxu1 %v14152_v5 }
  0x45   : > { %13574 = vmatprep.subr.msk.bf16.mxu1 %vm323_vm0, %v13676_v36 }
  0x47   : > { %11460 = vmatmul.mubr.msk.bf16.vlgmr.msra.gmra.mxu1 %vm316_vm1, %v13674_v34 }
  0x48   : > { %1065 = vmatprep.mubr.bf16.mxu1 %v14087_v4  ;;  %12912 = vmatpush3.bf16.msra.mxu1 %v1021_v37 }
  0x49   : > { %12913 = vmatprep.subr.bf16.mxu1 %v13677_v38 }
  0x4c   : > { %12914 = vmatpush3.bf16.msra.mxu1 %v13677_v38 }
  0x4d   : > { %11481 = vmatprep.subr.msk.bf16.mxu1 %vm323_vm0, %v14204_v23 }
  0x4f   : > { %11461 = vmatmul.mubr.msk.bf16.gmra.mxu1 %vm316_vm1, %v13675_v35 }
  0x50   : > { %12915 = vmatprep.mubr.msk.bf16.mxu1 %vm316_vm1, %v13674_v34 }
  0x57   : > { %12916 = vmatmul.mubr.msk.bf16.vlgmr.msra.gmra.mxu1 %vm316_vm1, %v13675_v35 }
  0x58   : > { %1214 = vmatpush1.bf16.msra.mxu1 %v14207_v24  ;;  %1233 = vmatprep.mubr.bf16.mxu1 %v14087_v4 }
  0x59   : > { %1215 = vmatprep.subr.bf16.mxu1 %v13666_v30 }
  0x5c   : > { %1216 = vmatpush1.bf16.msra.mxu1 %v13664_v31 }
  0x5d   : > { %13576 = vmatprep.subr.msk.bf16.mxu1 %vm323_vm0, %v13690_v51 }
  0x5f   : > { %11482 = vmatmul.mubr.msk.bf16.vlgmr.msra.gmra.mxu1 %vm316_vm1, %v14285_v42 }
  0x60   : > { %1243 = vmatprep.mubr.bf16.mxu1 %v14087_v4  ;;  %12928 = vmatpush3.bf16.msra.mxu1 %v1380_v52 }
  0x61   : > { %12929 = vmatprep.subr.bf16.mxu1 %v13691_v53 }
  0x64   : > { %12930 = vmatpush3.bf16.msra.mxu1 %v13691_v53 }
  0x65   : > { %11531 = vmatprep.subr.msk.bf16.mxu1 %vm323_vm0, %v14141_v1 }
  0x67   : > { %11483 = vmatmul.mubr.msk.bf16.gmra.mxu1 %vm316_vm1, %v14299_v45 }
  0x68   : > { %12931 = vmatprep.mubr.msk.bf16.mxu1 %vm316_vm1, %v14337_v54 }
  0x6f   : > { %12932 = vmatmul.mubr.msk.bf16.vlgmr.msra.gmra.mxu1 %vm316_vm1, %v14340_v55 }
  0x70   : > { %1724 = vmatpush1.bf16.msra.mxu1 %v14159_v6  ;;  %1743 = vmatprep.mubr.bf16.mxu1 %v14087_v4 }
  0x71   : > { %1725 = vmatprep.subr.bf16.mxu1 %v14057_v56 }
  0x74   : > { %1726 = vmatpush1.bf16.msra.mxu1 %v14058_v57 }
  0x77   : > { %11532 = vmatmul.mubr.msk.bf16.vlgmr.msra.gmra.mxu1 %vm316_vm1, %v14357_v58 }
  0x78   : > { %1753 = vmatprep.mubr.bf16.mxu1 %v14087_v4 }
  0xd6   : > { %v12881_v62 = vpop.f32.mrf.mxu0 }
  0xd7   : > { %v367_v59 = vpop.f32.mrf.mxu1  ;;  %v633_v52 = vrot.slane %v12881_v62, 2 }
  0xd8   : > { %v599_v0 = vpop.f32.mrf.mxu0 }
  0xd9   : > { %v369_v60 = vpop.f32.mrf.mxu1  ;;  %v630_v53 = vrot.slane %v599_v0, 2 }
  0xda   : > { %v12882_v2 = vpop.f32.mrf.mxu0  ;;  %v435_v19 = vrot.slane %v369_v60, 1 }
  0xdb   : > { %v371_v61 = vpop.f32.mrf.mxu1 }
  0xdc   : > { %v602_v5 = vpop.f32.mrf.mxu0 }
  0xdd   : > { %v373_v63 = vpop.f32.mrf.mxu1  ;;  %v631_v56 = vrot.slane %v602_v5, 2 }
  0xde   : > { %v731_v7 = vpop.f32.mrf.mxu0  ;;  %v436_v15 = vrot.slane %v373_v63, 1 }
  0xdf   : > { %v377_v1 = vpop.f32.mrf.mxu1 }
  0xe0   : > { %v733_v9 = vpop.f32.mrf.mxu0  ;;  %v437_v28 = vsel %vm434_vm3, %v435_v19, %v436_v15 }
  0xe1   : > { %v378_v3 = vpop.f32.mrf.mxu1  ;;  %v442_v35 = vadd.f32 %v437_v28, %v367_v59 }
  0xe2   : > { %v735_v11 = vpop.f32.mrf.mxu0  ;;  %v438_v20 = vrot.slane %v378_v3, 1  ;;  %v632_v3 = vsel %vm447_vm4, %v630_v53, %v631_v56 }
  0xe3   : > { %v380_v6 = vpop.f32.mrf.mxu1 }
  0xe4   : > { %v737_v13 = vpop.f32.mrf.mxu0  ;;  %v439_v31 = vsel %vm434_vm3, %v436_v15, %v438_v20  ;;  %v634_v6 = vsel %vm447_vm4, %v631_v56, %v633_v52 }
  0xe5   : > { %v381_v8 = vpop.f32.mrf.mxu1  ;;  %v443_v39 = vadd.f32 %v439_v31, %v371_v61  ;;  %v801_v15 = vrot.slane %v737_v13, 1 }
  0xe6   : > { %v741_v16 = vpop.f32.mrf.mxu0 }
  0xe7   : > { %v12873_v10 = vpop.f32.mrf.mxu1 }
  0xe8   : > { %v742_v22 = vpop.f32.mrf.mxu0  ;;  %v451_v32 = vrot.slane %v12873_v10, 2 }
  0xe9   : > { %v417_v12 = vpop.f32.mrf.mxu1  ;;  %v803_v0 = vrot.slane %v742_v22, 1 }
  0xea   : > { %v448_v27 = vrot.slane %v417_v12, 2  ;;  %v744_v29 = vpop.f32.mrf.mxu0 }
  0xeb   : > { %v12874_v14 = vpop.f32.mrf.mxu1 }
  0xec   : > { %v745_v34 = vpop.f32.mrf.mxu0  ;;  %v800_v14 = vrot.slane %v733_v9, 1 }
  0xed   : > { %v420_v17 = vpop.f32.mrf.mxu1 }
  0xee   : > { %v449_v21 = vrot.slane %v420_v17, 2  ;;  %v802_v19 = vsel %vm434_vm3, %v800_v14, %v801_v15 }
  0xef   : > { %v549_v26 = vpop.f32.mrf.mxu1 }
  0xf0   : > { %v450_v33 = vsel %vm447_vm4, %v448_v27, %v449_v21  ;;  %v452_v37 = vsel %vm447_vm4, %v449_v21, %v451_v32  ;;  %v804_v21 = vsel %vm434_vm3, %v801_v15, %v803_v0 }
  0xf1   : > { %v551_v30 = vpop.f32.mrf.mxu1  ;;  %v455_v38 = vadd.f32 %v450_v33, %v442_v35  ;;  %v456_v46 = vadd.f32 %v452_v37, %v443_v39  ;;  %v13689_v37 = vld [vmem:[%s17070_s1 + $0x2c] ss:$12 sps:$4 sm:$0xff]  }
  0xf2   : > { %v618_v43 = vrot.slane %v551_v30, 1 }
  0xf3   : > { %v553_v36 = vpop.f32.mrf.mxu1  ;;  %v613_v49 = vadd.f32 %v549_v26, %v455_v38 }
  0xf4   : > { %v614_v60 = vadd.f32 %v553_v36, %v456_v46  ;;  %v1199_v36 = vsel %vm323_vm0, %v14322_v50, 0  ;;  %v14397_v50 = vld [vmem:[%s17070_s1 + $0x4c] ss:$12 sps:$4 sm:$0xff]  }
  0xf5   : > { %v555_v41 = vpop.f32.mrf.mxu1 }
  0xf6   : > { %v619_v44 = vrot.slane %v555_v41, 1 }
  0xf7   : > { %v559_v47 = vpop.f32.mrf.mxu1 }
  0xf8   : > { %v620_v48 = vsel %vm434_vm3, %v618_v43, %v619_v44 }
  0xf9   : > { %v560_v51 = vpop.f32.mrf.mxu1  ;;  %v625_v59 = vadd.f32 %v620_v48, %v613_v49 }
  0xfa   : > { %v621_v57 = vrot.slane %v560_v51, 1 }
  0xfb   : > { %v562_v63 = vpop.f32.mrf.mxu1  ;;  %v637_v8 = vadd.f32 %v632_v3, %v625_v59 }
  0xfc   : > { %v622_v1 = vsel %vm434_vm3, %v619_v44, %v621_v57 }
  0xfd   : > { %v626_v2 = vadd.f32 %v622_v1, %v614_v60  ;;  %v563_v61 = vpop.f32.mrf.mxu1  ;;  %v795_v5 = vadd.f32 %v731_v7, %v637_v8  ;;  %v14377_v7 = vld [vmem:[%s17071_s2] ss:$0 sm:$0xff] }
  0xff   : > { %v638_v10 = vadd.f32 %v634_v6, %v626_v2  ;;  %v12889_v12 = vpop.f32.mrf.mxu1  ;;  %v807_v29 = vadd.f32 %v802_v19, %v795_v5 }
 0x100   : > { %v815_v26 = vrot.slane %v12889_v12, 2 }
 0x101   : > { %v781_v62 = vpop.f32.mrf.mxu1  ;;  %v796_v16 = vadd.f32 %v735_v11, %v638_v10 }
 0x102   : > { %v812_v27 = vrot.slane %v781_v62, 2 }
 0x103   : > { %v12890_v17 = vpop.f32.mrf.mxu1  ;;  %v808_v30 = vadd.f32 %v804_v21, %v796_v16 }
 0x105   : > { %v784_v20 = vpop.f32.mrf.mxu1 }
 0x106   : > { %v813_v28 = vrot.slane %v784_v20, 2 }
 0x108   : > { %v814_v31 = vsel %vm447_vm4, %v812_v27, %v813_v28  ;;  %v816_v9 = vsel %vm447_vm4, %v813_v28, %v815_v26 }
 0x109   : > { %v819_v11 = vadd.f32 %v814_v31, %v807_v29  ;;  %v820_v13 = vadd.f32 %v816_v9, %v808_v30  ;;  %v13695_v31 = vld [vmem:[%s14179_s14 + $0x20] ss:$0 sps:$4 sm:$0x11]  }
 0x10a   : > { %v13696_v9 = vld [vmem:[%s17070_s1 + $0x20] ss:$0 sps:$4 sm:$0xff]   ;;  %11533 = vmatmul.mubr.msk.bf16.gmra.mxu1 %vm316_vm1, %v13695_v31 }
 0x10b   : > { %v848_v22 = vadd.f32 %v14377_v7, %v819_v11  ;;  %v849_v32 = vadd.f32 %v14377_v7, %v820_v13  ;;  %13577 = vmatprep.subr.msk.bf16.mxu1 %vm323_vm0, %v13696_v9  ;;  %v1709_v11 = vsel %vm323_vm0, %v13696_v9, 0  ;;  %12959 = vmatprep.mubr.msk.bf16.mxu1 %vm316_vm1, %v14357_v58  ;;  %v13697_v13 = vld [vmem:[%s17070_s1 + $0x8] ss:$12 sps:$4 sm:$0xff]  }
 0x10c   : > { %12956 = vmatpush3.bf16.msra.mxu1 %v1709_v11  ;;  %v14061_v58 = vld [vmem:[%s17070_s1 + $0x28] ss:$12 sps:$4 sm:$0xff]  }
 0x10d   : > { %v850_v33 = vmax.f32 %v848_v22, 0.0  ;;  %v851_v34 = vmax.f32 %v849_v32, 0.0  ;;  %12957 = vmatprep.subr.bf16.mxu1 %v13697_v13  ;;  %v13698_v22 = vld [vmem:[%s17072_s3 + $0x38] sm:$0xff]   ;;  %v14062_v32 = vld [vmem:[%s17070_s1 + $0x24] ss:$12 sps:$4 sm:$0xff]  }
 0x10f   : > { %v852_v35 = vpack.c.bf16 %v851_v34, %v850_v33  ;;  %v13701_v33 = vld [vmem:[%s17072_s3 + $0x28] sm:$0xff]  }
 0x110   : > { %12958 = vmatpush3.bf16.msra.mxu1 %v13697_v13 }
 0x111   : > { %12908 = vmatmul.mubr.bf16.vlgmr.msra.gmra.mxu0 %v852_v35  ;;  %11553 = vmatprep.subr.msk.bf16.mxu1 %vm323_vm0, %v14204_v23  ;;  %v13699_v23 = vld [vmem:[%s17072_s3 + $0x30] sm:$0xff]  }
 0x112   : > { %12920 = vmatpush3.bf16.msra.mxu0 %v1199_v36  ;;  %12923 = vmatprep.mubr.msk.bf16.mxu0 %vm316_vm1, %v14285_v42  ;;  %v14403_v42 = vld [vmem:[%s17070_s1 + $0x48] ss:$12 sps:$4 sm:$0xff]   ;;  %v13702_v36 = vld [vmem:[%s17072_s3 + $0x20] sm:$0xff]  }
 0x113   : > { %12921 = vmatprep.subr.bf16.mxu0 %v13689_v37  ;;  %12960 = vmatmul.mubr.msk.bf16.vlgmr.msra.gmra.mxu1 %vm316_vm1, %v13695_v31 }
 0x114   : > { %1902 = vmatpush1.bf16.msra.mxu1 %v14207_v24  ;;  %1921 = vmatprep.mubr.bf16.mxu1 %v14087_v4  ;;  %v14455_v24 = vld [vmem:[%s14179_s14 + $0x24] sm:$0xff]  }
 0x115   : > { %1903 = vmatprep.subr.bf16.mxu1 %v14061_v58 }
 0x116   : > { %12922 = vmatpush3.bf16.msra.mxu0 %v13689_v37 }
 0x117   : > { %11503 = vmatprep.subr.msk.bf16.mxu0 %vm323_vm0, %v14195_v18 }
 0x118   : > { %1904 = vmatpush1.bf16.msra.mxu1 %v14062_v32 }
 0x119   : > { %12924 = vmatmul.mubr.msk.bf16.vlgmr.msra.gmra.mxu0 %vm316_vm1, %v14299_v45  ;;  %v1057_v45 = vpop.f32.mrf.mxu1 }
 0x11a   : > { %1395 = vmatpush1.bf16.msra.mxu0 %v14212_v25  ;;  %1414 = vmatprep.mubr.bf16.mxu0 %v14087_v4 }
 0x11b   : > { %1396 = vmatprep.subr.bf16.mxu0 %v14397_v50  ;;  %v1059_v38 = vpop.f32.mrf.mxu1  ;;  %11554 = vmatmul.mubr.msk.bf16.vlgmr.msra.gmra.mxu1 %vm316_vm1, %v14455_v24 }
 0x11c   : > { %v1124_v41 = vrot.slane %v1059_v38, 1  ;;  %1931 = vmatprep.mubr.bf16.mxu1 %v14087_v4  ;;  %v13704_v38 = vld [vmem:[%s17072_s3 + $0x18] sm:$0xff]  }
 0x11d   : > { %v1061_v39 = vpop.f32.mrf.mxu1 }
 0x11e   : > { %1397 = vmatpush1.bf16.msra.mxu0 %v14403_v42 }
 0x11f   : > { %12935 = vmatprep.subr.bf16.mxu0 %v14088_v40  ;;  %v1063_v43 = vpop.f32.mrf.mxu1 }
 0x120   : > { %v1125_v44 = vrot.slane %v1063_v43, 1  ;;  %v13707_v43 = vld [vmem:[%s17072_s3] sm:$0xff]  }
 0x121   : > { %11504 = vmatmul.mubr.msk.bf16.vlgmr.msra.gmra.mxu0 %vm316_vm1, %v14337_v54  ;;  %v1067_v46 = vpop.f32.mrf.mxu1 }
 0x122   : > { %1424 = vmatprep.mubr.bf16.mxu0 %v14087_v4  ;;  %v1126_v47 = vsel %vm434_vm3, %v1124_v41, %v1125_v44  ;;  %12936 = vmatpush3.bf16.msra.mxu0 %v13698_v22  ;;  %v13706_v41 = vld [vmem:[%s17072_s3 + $0x8] sm:$0xff]  }
 0x123   : > { %v1068_v48 = vpop.f32.mrf.mxu1  ;;  %v1131_v49 = vadd.f32 %v1126_v47, %v1057_v45  ;;  %12937 = vmatprep.subr.bf16.mxu0 %v14088_v40  ;;  %v14473_v45 = vld [vmem:[%s14179_s14 + $0x2c] ss:$0 sps:$4 sm:$0x11]   ;;  %v13710_v46 = vld [vmem:[%s17070_s1 + $0x68] ss:$0 sps:$4 sm:$0xff]  }
 0x124   : > { %v1127_v51 = vrot.slane %v1068_v48, 1  ;;  %11555 = vmatmul.mubr.msk.bf16.gmra.mxu1 %vm316_vm1, %v14473_v45  ;;  %13579 = vmatprep.subr.msk.bf16.mxu1 %vm323_vm0, %v13710_v46  ;;  %v2068_v47 = vsel %vm323_vm0, %v13710_v46, 0  ;;  %v13711_v48 = vld [vmem:[%s17070_s1 + $0x50] ss:$12 sps:$4 sm:$0xff]  }
 0x125   : > { %v1070_v54 = vpop.f32.mrf.mxu1  ;;  %12972 = vmatpush3.bf16.msra.mxu1 %v2068_v47 }
 0x126   : > { %v1128_v52 = vsel %vm434_vm3, %v1125_v44, %v1127_v51  ;;  %12938 = vmatpush3.bf16.msra.mxu0 %v13699_v23  ;;  %v14496_v44 = vld [vmem:[%s17070_s1 + $0x44] ss:$0 sps:$4 sm:$0xff]   ;;  %12973 = vmatprep.subr.bf16.mxu1 %v13711_v48  ;;  %v14512_v51 = vld [vmem:[%s14179_s14 + $0x38] ss:$0 sps:$4 sm:$0x11]  }
 0x127   : > { %v1071_v53 = vpop.f32.mrf.mxu1  ;;  %v1132_v56 = vadd.f32 %v1128_v52, %v1061_v39  ;;  %12939 = vmatprep.subr.bf16.mxu0 %v14088_v40  ;;  %v13705_v39 = vld [vmem:[%s17072_s3 + $0x10] sm:$0xff]  }
 0x129   : > { %11505 = vmatmul.mubr.msk.bf16.gmra.mxu0 %vm316_vm1, %v14340_v55  ;;  %v12917_v57 = vpop.f32.mrf.mxu1  ;;  %12974 = vmatpush3.bf16.msra.mxu1 %v13711_v48 }
 0x12a   : > { %12951 = vmatprep.mubr.msk.bf16.mxu0 %vm14089_vm2, %v14088_v40  ;;  %v1139_v63 = vrot.slane %v12917_v57, 2  ;;  %12940 = vmatpush3.bf16.msra.mxu0 %v13701_v33 }
 0x12b   : > { %v1107_v60 = vpop.f32.mrf.mxu1  ;;  %12941 = vmatprep.subr.bf16.mxu0 %v14088_v40 }
 0x12c   : > { %v1136_v1 = vrot.slane %v1107_v60, 2 }
 0x12d   : > { %v12918_v59 = vpop.f32.mrf.mxu1 }
 0x12e   : > { %12942 = vmatpush3.bf16.msra.mxu0 %v13702_v36 }
 0x12f   : > { %v1110_v2 = vpop.f32.mrf.mxu1  ;;  %12943 = vmatprep.subr.bf16.mxu0 %v14088_v40 }
 0x130   : > { %v1137_v55 = vrot.slane %v1110_v2, 2  ;;  %v2350_v2 = vld [vmem:[%s17070_s1 + $0x18] sm:$0xff] }
 0x131   : > { %v1235_v61 = vpop.f32.mrf.mxu1 }
 0x132   : > { %v1138_v3 = vsel %vm447_vm4, %v1136_v1, %v1137_v55  ;;  %v1140_v6 = vsel %vm447_vm4, %v1137_v55, %v1139_v63  ;;  %12944 = vmatpush3.bf16.msra.mxu0 %v13704_v38  ;;  %v14534_v55 = vcombine.high %v2350_v2, %v2350_v2 }
 0x133   : > { %v1143_v8 = vadd.f32 %v1138_v3, %v1131_v49  ;;  %v1237_v10 = vpop.f32.mrf.mxu1  ;;  %v1144_v12 = vadd.f32 %v1140_v6, %v1132_v56  ;;  %12945 = vmatprep.subr.bf16.mxu0 %v14088_v40  ;;  %v14509_v49 = vld [vmem:[%s14179_s14 + $0x30] sm:$0xff]   ;;  %v14545_v6 = vld [vmem:[%s17070_s1] ss:$12 sps:$4 sm:$0xff]  }
 0x134   : > { %v1304_v16 = vrot.slane %v1237_v10, 1  ;;  %12975 = vmatprep.mubr.msk.bf16.mxu1 %vm316_vm1, %v14509_v49  ;;  %11603 = vmatprep.subr.msk.bf16.mxu1 %vm323_vm0, %v14534_v55  ;;  %v14554_v10 = vld [vmem:[%s14179_s14 + $0x24] sm:$0xff]  }
 0x135   : > { %v1299_v14 = vadd.f32 %v1235_v61, %v1143_v8  ;;  %v1239_v15 = vpop.f32.mrf.mxu1  ;;  %12976 = vmatmul.mubr.msk.bf16.vlgmr.msra.gmra.mxu1 %vm316_vm1, %v14512_v51  ;;  %v11600_v61 = vcombine.low %v2350_v2, %v2350_v2  ;;  %v14550_v8 = vld [vmem:[%s17070_s1 + $0x4] ss:$12 sps:$4 sm:$0xff]  }
 0x136   : > { %v1300_v62 = vadd.f32 %v1239_v15, %v1144_v12  ;;  %12946 = vmatpush3.bf16.msra.mxu0 %v13705_v39  ;;  %2431 = vmatprep.mubr.bf16.mxu1 %v14087_v4  ;;  %v14564_v12 = vld [vmem:[%s17073_s4] ss:$0 sm:$0xff] }
 0x137   : > { %v1241_v0 = vpop.f32.mrf.mxu1  ;;  %12947 = vmatprep.subr.bf16.mxu0 %v14088_v40  ;;  %v14539_v3 = vsel %vm323_vm0, %v11600_v61, 0 }
 0x138   : > { %v1305_v17 = vrot.slane %v1241_v0, 1  ;;  %2412 = vmatpush1.bf16.msra.mxu1 %v14539_v3 }
 0x139   : > { %v1245_v5 = vpop.f32.mrf.mxu1  ;;  %2413 = vmatprep.subr.bf16.mxu1 %v14550_v8 }
 0x13a   : > { %v1306_v27 = vsel %vm434_vm3, %v1304_v16, %v1305_v17  ;;  %12948 = vmatpush3.bf16.msra.mxu0 %v13706_v41 }
 0x13b   : > { %v1246_v19 = vpop.f32.mrf.mxu1  ;;  %v14420_v29 = vadd.f32 %v1306_v27, %v1299_v14  ;;  %12949 = vmatprep.subr.bf16.mxu0 %v14088_v40 }
 0x13c   : > { %v1307_v20 = vrot.slane %v1246_v19, 1  ;;  %2414 = vmatpush1.bf16.msra.mxu1 %v14545_v6 }
 0x13d   : > { %v1248_v21 = vpop.f32.mrf.mxu1 }
 0x13e   : > { %v1308_v26 = vsel %vm434_vm3, %v1305_v17, %v1307_v20  ;;  %12950 = vmatpush3.bf16.msra.mxu0 %v13707_v43 }
 0x13f   : > { %v1249_v28 = vpop.f32.mrf.mxu1  ;;  %v14422_v30 = vadd.f32 %v1308_v26, %v1300_v62  ;;  %13578 = vmatprep.subr.msk.bf16.mxu0 %vm323_vm0, %v14496_v44  ;;  %11604 = vmatmul.mubr.msk.bf16.vlgmr.msra.gmra.mxu1 %vm316_vm1, %v14554_v10 }
 0x140   : > { %2441 = vmatprep.mubr.bf16.mxu1 %v14087_v4 }
 0x141   : > { %v14463_v34 = vpop.f32.mrf.mxu1 }
 0x143   : > { %v14466_v35 = vpop.f32.mrf.mxu1 }
 0x144   : > { %v1497_v33 = vrot.slane %v14466_v35, 2 }
 0x145   : > { %v12934_v37 = vpop.f32.mrf.mxu1 }
 0x147   : > { %v14519_v54 = vpop.f32.mrf.mxu1 }
 0x148   : > { %v1498_v37 = vrot.slane %v14519_v54, 2 }
 0x149   : > { %v1745_v52 = vpop.f32.mrf.mxu1 }
 0x14a   : > { %v1499_v48 = vsel %vm447_vm4, %v1497_v33, %v1498_v37 }
 0x14b   : > { %v1747_v53 = vpop.f32.mrf.mxu1 }
 0x14c   : > { %v1812_v60 = vrot.slane %v1747_v53, 1 }
 0x14d   : > { %v14521_v56 = vpop.f32.mrf.mxu1 }
 0x14f   : > { %v14523_v57 = vpop.f32.mrf.mxu1 }
 0x150   : > { %v1813_v59 = vrot.slane %v14523_v57, 1 }
 0x152   : > { %v1814_v63 = vsel %vm434_vm3, %v1812_v60, %v1813_v59 }
 0x153   : > { %v14529_v1 = vadd.f32 %v1814_v63, %v1745_v52 }
 0x1d1   : > { %v958_v14 = vpop.f32.mrf.mxu0 }
 0x1d2   : > { %v959_v15 = vadd.f32 %v14564_v12, %v958_v14 }
 0x1d3   : > { %v12909_v62 = vpop.f32.mrf.mxu0 }
 0x1d4   : > { %965 = vst [vmem:[%s14569_s9] sm:$0xff] %v959_v15 }
 0x1d5   : > { %v961_v0 = vpop.f32.mrf.mxu0 }
 0x1d6   : > { %v962_v5 = vadd.f32 %v14564_v12, %v961_v0 }
 0x1d7   : > { %v12910_v16 = vpop.f32.mrf.mxu0 }
 0x1d8   : > { %966 = vst [vmem:[%s14569_s9 + $0x8] sm:$0xff] %v962_v5  ;;  %v1887_v5 = vsel %vm323_vm0, %v14496_v44, 0  ;;  %v13709_v16 = vld [vmem:[%s17070_s1 + $0x2c] ss:$12 sps:$4 sm:$0xff]  }
 0x1d9   : > { %v12925_v17 = vpop.f32.mrf.mxu0 }
 0x1da   : > { %v1319_v11 = vrot.slane %v12925_v17, 2 }
 0x1db   : > { %v1285_v19 = vpop.f32.mrf.mxu0 }
 0x1dc   : > { %v1316_v26 = vrot.slane %v1285_v19, 2 }
 0x1dd   : > { %v12926_v20 = vpop.f32.mrf.mxu0 }
 0x1df   : > { %v1288_v21 = vpop.f32.mrf.mxu0 }
 0x1e0   : > { %v1317_v27 = vrot.slane %v1288_v21, 2 }
 0x1e1   : > { %v1416_v28 = vpop.f32.mrf.mxu0 }
 0x1e2   : > { %v1318_v31 = vsel %vm447_vm4, %v1316_v26, %v1317_v27  ;;  %v1320_v58 = vsel %vm447_vm4, %v1317_v27, %v1319_v11 }
 0x1e3   : > { %v1418_v9 = vpop.f32.mrf.mxu0  ;;  %v1323_v13 = vadd.f32 %v1318_v31, %v14420_v29  ;;  %v1324_v39 = vadd.f32 %v1320_v58, %v14422_v30  ;;  %v1500_v29 = vrot.slane %v14463_v34, 2 }
 0x1e4   : > { %v1485_v32 = vrot.slane %v1418_v9, 1 }
 0x1e5   : > { %v1420_v22 = vpop.f32.mrf.mxu0  ;;  %v1480_v38 = vadd.f32 %v1416_v28, %v1323_v13  ;;  %v1501_v61 = vsel %vm447_vm4, %v1498_v37, %v1500_v29 }
 0x1e6   : > { %v1481_v53 = vadd.f32 %v1420_v22, %v1324_v39 }
 0x1e7   : > { %v1422_v23 = vpop.f32.mrf.mxu0 }
 0x1e8   : > { %v1486_v36 = vrot.slane %v1422_v23, 1 }
 0x1e9   : > { %v1426_v41 = vpop.f32.mrf.mxu0 }
 0x1ea   : > { %v1487_v43 = vsel %vm434_vm3, %v1485_v32, %v1486_v36 }
 0x1eb   : > { %v1492_v46 = vadd.f32 %v1487_v43, %v1480_v38  ;;  %v1427_v47 = vpop.f32.mrf.mxu0 }
 0x1ec   : > { %v1488_v52 = vrot.slane %v1427_v47, 1  ;;  %v13721_v47 = vld [vmem:[%s17070_s1 + $0x20] ss:$0 sps:$4 sm:$0xff]  }
 0x1ed   : > { %v1504_v60 = vadd.f32 %v1499_v48, %v1492_v46  ;;  %v1429_v63 = vpop.f32.mrf.mxu0  ;;  %v13720_v46 = vld [vmem:[%s14179_s14 + $0x2c] ss:$0 sps:$4 sm:$0x11]   ;;  %13580 = vmatprep.subr.msk.bf16.mxu1 %vm323_vm0, %v13721_v47  ;;  %v2397_v29 = vsel %vm323_vm0, %v13721_v47, 0  ;;  %v13722_v48 = vld [vmem:[%s17070_s1 + $0x8] ss:$12 sps:$4 sm:$0xff]  }
 0x1ee   : > { %v1489_v35 = vsel %vm434_vm3, %v1486_v36, %v1488_v52  ;;  %11605 = vmatmul.mubr.msk.bf16.gmra.mxu1 %vm316_vm1, %v13720_v46  ;;  %v11615_v52 = vld [vmem:[%s17070_s1 + $0x3c] sm:$0xff] }
 0x1ef   : > { %v1493_v2 = vadd.f32 %v1489_v35, %v1481_v53  ;;  %v1430_v54 = vpop.f32.mrf.mxu0  ;;  %v1535_v30 = vadd.f32 %v14377_v7, %v1504_v60  ;;  %13000 = vmatpush3.bf16.msra.mxu1 %v2397_v29  ;;  %13003 = vmatprep.mubr.msk.bf16.mxu1 %vm316_vm1, %v14554_v10  ;;  %v14639_v53 = vcombine.high %v11615_v52, %v11615_v52  ;;  %v13724_v10 = vld [vmem:[%s17072_s3 + $0x38] sm:$0xff]   ;;  %v14655_v35 = vld [vmem:[%s17070_s1 + $0x28] ss:$12 sps:$4 sm:$0xff]  }
 0x1f0   : > { %13001 = vmatprep.subr.bf16.mxu1 %v13722_v48  ;;  %v11622_v60 = vcombine.low %v11615_v52, %v11615_v52  ;;  %v13729_v54 = vld [vmem:[%s17072_s3 + $0x30] sm:$0xff]  }
 0x1f1   : > { %v1505_v14 = vadd.f32 %v1501_v61, %v1493_v2  ;;  %v1537_v62 = vmax.f32 %v1535_v30, 0.0  ;;  %v14661_v2 = vld [vmem:[%s17070_s1 + $0x24] ss:$12 sps:$4 sm:$0xff]   ;;  %v13731_v30 = vld [vmem:[%s17072_s3 + $0x28] sm:$0xff]  }
 0x1f2   : > { %v14648_v63 = vsel %vm323_vm0, %v11622_v60, 0  ;;  %v14669_v61 = vld [vmem:[%s14179_s14 + $0x30] sm:$0xff]  }
 0x1f3   : > { %v1536_v15 = vadd.f32 %v14377_v7, %v1505_v14  ;;  %13002 = vmatpush3.bf16.msra.mxu1 %v13722_v48 }
 0x1f4   : > { %11625 = vmatprep.subr.msk.bf16.mxu1 %vm323_vm0, %v14639_v53 }
 0x1f5   : > { %v1538_v0 = vmax.f32 %v1536_v15, 0.0 }
 0x1f6   : > { %13004 = vmatmul.mubr.msk.bf16.vlgmr.msra.gmra.mxu1 %vm316_vm1, %v13720_v46 }
 0x1f7   : > { %v1539_v34 = vpack.c.bf16 %v1538_v0, %v1537_v62  ;;  %2590 = vmatpush1.bf16.msra.mxu1 %v14648_v63  ;;  %2609 = vmatprep.mubr.bf16.mxu1 %v14087_v4  ;;  %v13732_v62 = vld [vmem:[%s17072_s3 + $0x20] sm:$0xff]  }
 0x1f8   : > { %2591 = vmatprep.subr.bf16.mxu1 %v14655_v35 }
 0x1f9   : > { %12952 = vmatmul.mubr.bf16.vlgmr.msra.gmra.mxu0 %v1539_v34  ;;  %v14687_v34 = vld [vmem:[%s14179_s14 + $0x38] ss:$0 sps:$4 sm:$0x11]  }
 0x1fa   : > { %12964 = vmatpush3.bf16.msra.mxu0 %v1887_v5  ;;  %12967 = vmatprep.mubr.msk.bf16.mxu0 %vm316_vm1, %v14455_v24  ;;  %v1755_v24 = vpop.f32.mrf.mxu1  ;;  %v13734_v5 = vld [vmem:[%s17072_s3 + $0x18] sm:$0xff]  }
 0x1fb   : > { %12965 = vmatprep.subr.bf16.mxu0 %v13709_v16  ;;  %2592 = vmatpush1.bf16.msra.mxu1 %v14661_v2  ;;  %v13736_v24 = vld [vmem:[%s17072_s3 + $0x8] sm:$0xff]  }
 0x1fe   : > { %12966 = vmatpush3.bf16.msra.mxu0 %v13709_v16  ;;  %11626 = vmatmul.mubr.msk.bf16.vlgmr.msra.gmra.mxu1 %vm316_vm1, %v14669_v61  ;;  %v13735_v16 = vld [vmem:[%s17072_s3 + $0x10] sm:$0xff]  }
 0x1ff   : > { %11575 = vmatprep.subr.msk.bf16.mxu0 %vm323_vm0, %v14195_v18  ;;  %v1756_v18 = vpop.f32.mrf.mxu1  ;;  %2619 = vmatprep.mubr.bf16.mxu1 %v14087_v4 }
 0x201   : > { %12968 = vmatmul.mubr.msk.bf16.vlgmr.msra.gmra.mxu0 %vm316_vm1, %v14473_v45 }
 0x202   : > { %2083 = vmatpush1.bf16.msra.mxu0 %v14212_v25  ;;  %2102 = vmatprep.mubr.bf16.mxu0 %v14087_v4  ;;  %v1758_v25 = vpop.f32.mrf.mxu1 }
 0x203   : > { %2084 = vmatprep.subr.bf16.mxu0 %v14397_v50  ;;  %v1815_v50 = vrot.slane %v1756_v18, 1  ;;  %v13737_v18 = vld [vmem:[%s17072_s3] sm:$0xff]  }
 0x204   : > { %v1759_v45 = vpop.f32.mrf.mxu1  ;;  %v14710_v25 = vld [vmem:[%s17070_s1 + $0x44] ss:$0 sps:$4 sm:$0xff]  }
 0x205   : > { %v1816_v17 = vsel %vm434_vm3, %v1813_v59, %v1815_v50  ;;  %v13740_v45 = vld [vmem:[%s17070_s1 + $0x68] ss:$0 sps:$4 sm:$0xff]  }
 0x206   : > { %2085 = vmatpush1.bf16.msra.mxu0 %v14403_v42  ;;  %v12961_v44 = vpop.f32.mrf.mxu1  ;;  %v1820_v26 = vadd.f32 %v1816_v17, %v14521_v56  ;;  %11627 = vmatmul.mubr.msk.bf16.gmra.mxu1 %vm316_vm1, %v14687_v34  ;;  %v2756_v50 = vsel %vm323_vm0, %v13740_v45, 0  ;;  %v14726_v17 = vld [vmem:[%s14179_s14 + $0x44] ss:$0 sps:$4 sm:$0x11]  }
 0x207   : > { %12979 = vmatprep.subr.bf16.mxu0 %v14088_v40  ;;  %v1827_v19 = vrot.slane %v12961_v44, 2  ;;  %13582 = vmatprep.subr.msk.bf16.mxu1 %vm323_vm0, %v13740_v45  ;;  %v13746_v44 = vld [vmem:[%s17070_s1 + $0x50] ss:$12 sps:$4 sm:$0xff]  }
 0x208   : > { %v1795_v42 = vpop.f32.mrf.mxu1  ;;  %13016 = vmatpush3.bf16.msra.mxu1 %v2756_v50 }
 0x209   : > { %11576 = vmatmul.mubr.msk.bf16.vlgmr.msra.gmra.mxu0 %vm316_vm1, %v14509_v49  ;;  %v1824_v20 = vrot.slane %v1795_v42, 2  ;;  %13017 = vmatprep.subr.bf16.mxu1 %v13746_v44  ;;  %v14723_v42 = vld [vmem:[%s14179_s14 + $0x3c] sm:$0xff]  }
 0x20a   : > { %2112 = vmatprep.mubr.bf16.mxu0 %v14087_v4  ;;  %v12962_v49 = vpop.f32.mrf.mxu1  ;;  %12980 = vmatpush3.bf16.msra.mxu0 %v13724_v10 }
 0x20b   : > { %12981 = vmatprep.subr.bf16.mxu0 %v14088_v40  ;;  %13019 = vmatprep.mubr.msk.bf16.mxu1 %vm316_vm1, %v14723_v42 }
 0x20c   : > { %v1798_v21 = vpop.f32.mrf.mxu1  ;;  %13018 = vmatpush3.bf16.msra.mxu1 %v13746_v44 }
 0x20d   : > { %11675 = vmatprep.subr.msk.bf16.mxu1 %vm323_vm0, %v14534_v55 }
 0x20e   : > { %v1923_v27 = vpop.f32.mrf.mxu1  ;;  %12982 = vmatpush3.bf16.msra.mxu0 %v13729_v54 }
 0x20f   : > { %12983 = vmatprep.subr.bf16.mxu0 %v14088_v40  ;;  %13020 = vmatmul.mubr.msk.bf16.vlgmr.msra.gmra.mxu1 %vm316_vm1, %v14726_v17 }
 0x210   : > { %v1925_v11 = vpop.f32.mrf.mxu1  ;;  %3100 = vmatpush1.bf16.msra.mxu1 %v14539_v3  ;;  %3119 = vmatprep.mubr.bf16.mxu1 %v14087_v4 }
 0x211   : > { %11577 = vmatmul.mubr.msk.bf16.gmra.mxu0 %vm316_vm1, %v14512_v51  ;;  %v1825_v51 = vrot.slane %v1798_v21, 2  ;;  %v1992_v32 = vrot.slane %v1925_v11, 1  ;;  %3101 = vmatprep.subr.bf16.mxu1 %v14550_v8 }
 0x212   : > { %12995 = vmatprep.mubr.msk.bf16.mxu0 %vm14089_vm2, %v14088_v40  ;;  %v1927_v22 = vpop.f32.mrf.mxu1  ;;  %12984 = vmatpush3.bf16.msra.mxu0 %v13731_v30 }
 0x213   : > { %v1826_v28 = vsel %vm447_vm4, %v1824_v20, %v1825_v51  ;;  %v1828_v31 = vsel %vm447_vm4, %v1825_v51, %v1827_v19  ;;  %12985 = vmatprep.subr.bf16.mxu0 %v14088_v40 }
 0x214   : > { %v1831_v9 = vadd.f32 %v1826_v28, %v14529_v1  ;;  %v1832_v13 = vadd.f32 %v1828_v31, %v1820_v26  ;;  %v1929_v58 = vpop.f32.mrf.mxu1  ;;  %3102 = vmatpush1.bf16.msra.mxu1 %v14545_v6 }
 0x215   : > { %v1993_v33 = vrot.slane %v1929_v58, 1 }
 0x216   : > { %v1987_v57 = vadd.f32 %v1923_v27, %v1831_v9  ;;  %v1988_v59 = vadd.f32 %v1927_v22, %v1832_v13  ;;  %v1933_v23 = vpop.f32.mrf.mxu1  ;;  %12986 = vmatpush3.bf16.msra.mxu0 %v13732_v62  ;;  %v14749_v9 = vld [vmem:[%s14179_s14 + $0x30] sm:$0xff]  }
 0x217   : > { %v1994_v39 = vsel %vm434_vm3, %v1992_v32, %v1993_v33  ;;  %12987 = vmatprep.subr.bf16.mxu0 %v14088_v40  ;;  %11676 = vmatmul.mubr.msk.bf16.vlgmr.msra.gmra.mxu1 %vm316_vm1, %v14749_v9 }
 0x218   : > { %v1934_v36 = vpop.f32.mrf.mxu1  ;;  %v14620_v43 = vadd.f32 %v1994_v39, %v1987_v57  ;;  %3129 = vmatprep.mubr.bf16.mxu1 %v14087_v4 }
 0x219   : > { %v1995_v56 = vrot.slane %v1934_v36, 1 }
 0x21a   : > { %v1936_v37 = vpop.f32.mrf.mxu1  ;;  %12988 = vmatpush3.bf16.msra.mxu0 %v13734_v5 }
 0x21b   : > { %v1996_v38 = vsel %vm434_vm3, %v1993_v33, %v1995_v56  ;;  %12989 = vmatprep.subr.bf16.mxu0 %v14088_v40 }
 0x21c   : > { %v1937_v41 = vpop.f32.mrf.mxu1  ;;  %v14622_v1 = vadd.f32 %v1996_v38, %v1988_v59 }
 0x21e   : > { %v14677_v14 = vpop.f32.mrf.mxu1  ;;  %12990 = vmatpush3.bf16.msra.mxu0 %v13735_v16 }
 0x21f   : > { %12991 = vmatprep.subr.bf16.mxu0 %v14088_v40  ;;  %v2188_v45 = vrot.slane %v14677_v14, 2 }
 0x220   : > { %v14680_v15 = vpop.f32.mrf.mxu1 }
 0x221   : > { %v2185_v10 = vrot.slane %v14680_v15, 2 }
 0x222   : > { %v12978_v0 = vpop.f32.mrf.mxu1  ;;  %12992 = vmatpush3.bf16.msra.mxu0 %v13736_v24 }
 0x223   : > { %12993 = vmatprep.subr.bf16.mxu0 %v14088_v40 }
 0x224   : > { %v2157_v49 = vpop.f32.mrf.mxu1 }
 0x225   : > { %v2186_v30 = vrot.slane %v2157_v49, 2 }
 0x226   : > { %12994 = vmatpush3.bf16.msra.mxu0 %v13737_v18  ;;  %v2433_v19 = vpop.f32.mrf.mxu1 }
 0x227   : > { %13581 = vmatprep.subr.msk.bf16.mxu0 %vm323_vm0, %v14710_v25 }
 0x228   : > { %v2435_v20 = vpop.f32.mrf.mxu1 }
 0x229   : > { %v2500_v51 = vrot.slane %v2435_v20, 1 }
 0x22a   : > { %v14738_v21 = vpop.f32.mrf.mxu1 }
 0x22c   : > { %v14740_v26 = vpop.f32.mrf.mxu1 }
 0x22d   : > { %v2501_v27 = vrot.slane %v14740_v26, 1 }
 0x22f   : > { %v2502_v28 = vsel %vm434_vm3, %v2500_v51, %v2501_v27 }
 0x230   : > { %v14746_v31 = vadd.f32 %v2502_v28, %v2433_v19  ;;  %v2189_v28 = vsel %vm447_vm4, %v2186_v30, %v2188_v45 }
 0x2b9   : > { %v1645_v11 = vpop.f32.mrf.mxu0 }
 0x2ba   : > { %v1646_v13 = vadd.f32 %v14564_v12, %v1645_v11 }
 0x2bb   : > { %v12953_v57 = vpop.f32.mrf.mxu0 }
 0x2bc   : > { %11518 = vst [vmem:[%s14569_s9 + $0x10] sm:$0xff] %v1646_v13 }
 0x2bd   : > { %v1648_v22 = vpop.f32.mrf.mxu0 }
 0x2be   : > { %v1649_v59 = vadd.f32 %v14564_v12, %v1648_v22 }
 0x2bf   : > { %v12954_v58 = vpop.f32.mrf.mxu0 }
 0x2c0   : > { %11519 = vst [vmem:[%s14569_s9 + $0x18] sm:$0xff] %v1649_v59  ;;  %v2575_v59 = vsel %vm323_vm0, %v14710_v25, 0  ;;  %v13739_v58 = vld [vmem:[%s17070_s1 + $0x2c] ss:$12 sps:$4 sm:$0xff]  }
 0x2c1   : > { %v12969_v23 = vpop.f32.mrf.mxu0 }
 0x2c2   : > { %v2007_v46 = vrot.slane %v12969_v23, 2  ;;  %v11637_v23 = vld [vmem:[%s17070_s1 + $0x60] sm:$0xff] }
 0x2c3   : > { %v1973_v32 = vpop.f32.mrf.mxu0 }
 0x2c4   : > { %v2004_v56 = vrot.slane %v1973_v32, 2  ;;  %v11644_v32 = vcombine.low %v11637_v23, %v11637_v23 }
 0x2c5   : > { %v12970_v33 = vpop.f32.mrf.mxu0 }
 0x2c6   : > { %v14785_v25 = vsel %vm323_vm0, %v11644_v32, 0  ;;  %v14790_v33 = vld [vmem:[%s17070_s1 + $0x4c] ss:$12 sps:$4 sm:$0xff]  }
 0x2c7   : > { %v1976_v36 = vpop.f32.mrf.mxu0  ;;  %v13759_v32 = vld [vmem:[%s17072_s3 + $0x18] sm:$0xff]  }
 0x2c8   : > { %v2005_v37 = vrot.slane %v1976_v36, 2 }
 0x2c9   : > { %v2104_v38 = vpop.f32.mrf.mxu0 }
 0x2ca   : > { %v2006_v39 = vsel %vm447_vm4, %v2004_v56, %v2005_v37  ;;  %v2008_v48 = vsel %vm447_vm4, %v2005_v37, %v2007_v46 }
 0x2cb   : > { %v2106_v41 = vpop.f32.mrf.mxu0  ;;  %v2011_v47 = vadd.f32 %v2006_v39, %v14620_v43  ;;  %v2012_v0 = vadd.f32 %v2008_v48, %v14622_v1  ;;  %v2187_v43 = vsel %vm447_vm4, %v2185_v10, %v2186_v30 }
 0x2cc   : > { %v2173_v60 = vrot.slane %v2106_v41, 1 }
 0x2cd   : > { %v2108_v29 = vpop.f32.mrf.mxu0  ;;  %v2168_v62 = vadd.f32 %v2104_v38, %v2011_v47 }
 0x2ce   : > { %v2169_v44 = vadd.f32 %v2108_v29, %v2012_v0 }
 0x2cf   : > { %v2110_v52 = vpop.f32.mrf.mxu0 }
 0x2d0   : > { %v2174_v54 = vrot.slane %v2110_v52, 1 }
 0x2d1   : > { %v2114_v5 = vpop.f32.mrf.mxu0 }
 0x2d2   : > { %v2175_v16 = vsel %vm434_vm3, %v2173_v60, %v2174_v54 }
 0x2d3   : > { %v2180_v24 = vadd.f32 %v2175_v16, %v2168_v62  ;;  %v2115_v18 = vpop.f32.mrf.mxu0 }
 0x2d4   : > { %v2176_v50 = vrot.slane %v2115_v18, 1 }
 0x2d5   : > { %v2192_v19 = vadd.f32 %v2187_v43, %v2180_v24  ;;  %v2117_v20 = vpop.f32.mrf.mxu0 }
 0x2d6   : > { %v2177_v15 = vsel %vm434_vm3, %v2174_v54, %v2176_v50 }
 0x2d7   : > { %v2181_v51 = vadd.f32 %v2177_v15, %v2169_v44  ;;  %v2118_v49 = vpop.f32.mrf.mxu0  ;;  %v2223_v1 = vadd.f32 %v14377_v7, %v2192_v19 }
 0x2d8   : > { %v13751_v49 = vld [vmem:[%s17070_s1 + $0x20] ss:$0 sps:$4 sm:$0xff]  }
 0x2d9   : > { %v2193_v11 = vadd.f32 %v2189_v28, %v2181_v51  ;;  %v2225_v57 = vmax.f32 %v2223_v1, 0.0  ;;  %v13750_v51 = vld [vmem:[%s14179_s14 + $0x38] ss:$0 sps:$4 sm:$0x11]   ;;  %13583 = vmatprep.subr.msk.bf16.mxu1 %vm323_vm0, %v13751_v49  ;;  %v3085_v28 = vsel %vm323_vm0, %v13751_v49, 0 }
 0x2da   : > { %11677 = vmatmul.mubr.msk.bf16.gmra.mxu1 %vm316_vm1, %v13750_v51  ;;  %v13752_v1 = vld [vmem:[%s17070_s1 + $0x8] ss:$12 sps:$4 sm:$0xff]  }
 0x2db   : > { %v2224_v13 = vadd.f32 %v14377_v7, %v2193_v11  ;;  %v14780_v7 = vcombine.high %v11637_v23, %v11637_v23  ;;  %13044 = vmatpush3.bf16.msra.mxu1 %v3085_v28  ;;  %13047 = vmatprep.mubr.msk.bf16.mxu1 %vm316_vm1, %v14749_v9  ;;  %v13753_v11 = vld [vmem:[%s17072_s3 + $0x38] sm:$0xff]   ;;  %v13754_v9 = vld [vmem:[%s17072_s3 + $0x30] sm:$0xff]   ;;  %v14869_v23 = vld [vmem:[%s14179_s14 + $0x44] ss:$0 sps:$4 sm:$0x11]  }
 0x2dc   : > { %13045 = vmatprep.subr.bf16.mxu1 %v13752_v1 }
 0x2dd   : > { %v2226_v22 = vmax.f32 %v2224_v13, 0.0  ;;  %v14851_v13 = vld [vmem:[%s14179_s14 + $0x3c] sm:$0xff]  }
 0x2df   : > { %v2227_v14 = vpack.c.bf16 %v2226_v22, %v2225_v57  ;;  %13046 = vmatpush3.bf16.msra.mxu1 %v13752_v1  ;;  %v13756_v57 = vld [vmem:[%s17072_s3 + $0x28] sm:$0xff]  }
 0x2e0   : > { %11697 = vmatprep.subr.msk.bf16.mxu1 %vm323_vm0, %v14639_v53 }
 0x2e1   : > { %12996 = vmatmul.mubr.bf16.vlgmr.msra.gmra.mxu0 %v2227_v14 }
 0x2e2   : > { %13008 = vmatpush3.bf16.msra.mxu0 %v2575_v59  ;;  %13011 = vmatprep.mubr.msk.bf16.mxu0 %vm316_vm1, %v14669_v61  ;;  %v14798_v61 = vld [vmem:[%s17070_s1 + $0x48] ss:$12 sps:$4 sm:$0xff]   ;;  %v13757_v59 = vld [vmem:[%s17072_s3 + $0x20] sm:$0xff]  }
 0x2e3   : > { %13009 = vmatprep.subr.bf16.mxu0 %v13739_v58  ;;  %13048 = vmatmul.mubr.msk.bf16.vlgmr.msra.gmra.mxu1 %vm316_vm1, %v13750_v51 }
 0x2e4   : > { %3278 = vmatpush1.bf16.msra.mxu1 %v14648_v63  ;;  %3297 = vmatprep.mubr.bf16.mxu1 %v14087_v4 }
 0x2e5   : > { %3279 = vmatprep.subr.bf16.mxu1 %v14655_v35 }
 0x2e6   : > { %13010 = vmatpush3.bf16.msra.mxu0 %v13739_v58 }
 0x2e7   : > { %11647 = vmatprep.subr.msk.bf16.mxu0 %vm323_vm0, %v14780_v7 }
 0x2e8   : > { %3280 = vmatpush1.bf16.msra.mxu1 %v14661_v2 }
 0x2e9   : > { %13012 = vmatmul.mubr.msk.bf16.vlgmr.msra.gmra.mxu0 %vm316_vm1, %v14687_v34  ;;  %v2443_v34 = vpop.f32.mrf.mxu1 }
 0x2ea   : > { %2771 = vmatpush1.bf16.msra.mxu0 %v14785_v25  ;;  %2790 = vmatprep.mubr.bf16.mxu0 %v14087_v4  ;;  %v13760_v34 = vld [vmem:[%s17072_s3 + $0x10] sm:$0xff]  }
 0x2eb   : > { %2772 = vmatprep.subr.bf16.mxu0 %v14790_v33  ;;  %v2444_v36 = vpop.f32.mrf.mxu1  ;;  %11698 = vmatmul.mubr.msk.bf16.vlgmr.msra.gmra.mxu1 %vm316_vm1, %v14851_v13 }
 0x2ec   : > { %v2503_v38 = vrot.slane %v2444_v36, 1  ;;  %3307 = vmatprep.mubr.bf16.mxu1 %v14087_v4  ;;  %v13761_v36 = vld [vmem:[%s17072_s3 + $0x8] sm:$0xff]  }
 0x2ed   : > { %v2446_v56 = vpop.f32.mrf.mxu1 }
 0x2ee   : > { %2773 = vmatpush1.bf16.msra.mxu0 %v14798_v61  ;;  %v2504_v46 = vsel %vm434_vm3, %v2501_v27, %v2503_v38  ;;  %v13762_v56 = vld [vmem:[%s17072_s3] sm:$0xff]   ;;  %v13765_v38 = vld [vmem:[%s17070_s1 + $0x68] ss:$0 sps:$4 sm:$0xff]  }
 0x2ef   : > { %13023 = vmatprep.subr.bf16.mxu0 %v14088_v40  ;;  %v2447_v37 = vpop.f32.mrf.mxu1  ;;  %v2508_v52 = vadd.f32 %v2504_v46, %v14738_v21  ;;  %13585 = vmatprep.subr.msk.bf16.mxu1 %vm323_vm0, %v13765_v38  ;;  %v14905_v46 = vld [vmem:[%s14179_s14 + $0x48] sm:$0xff]  }
 0x2f0   : > { %v14892_v37 = vld [vmem:[%s17070_s1 + $0x44] ss:$0 sps:$4 sm:$0xff]  }
 0x2f1   : > { %11648 = vmatmul.mubr.msk.bf16.vlgmr.msra.gmra.mxu0 %vm316_vm1, %v14723_v42  ;;  %v13005_v39 = vpop.f32.mrf.mxu1 }
 0x2f2   : > { %2800 = vmatprep.mubr.bf16.mxu0 %v14087_v4  ;;  %v2515_v47 = vrot.slane %v13005_v39, 2  ;;  %13024 = vmatpush3.bf16.msra.mxu0 %v13753_v11  ;;  %v3444_v39 = vsel %vm323_vm0, %v13765_v38, 0 }
 0x2f3   : > { %v2483_v41 = vpop.f32.mrf.mxu1  ;;  %13025 = vmatprep.subr.bf16.mxu0 %v14088_v40  ;;  %11699 = vmatmul.mubr.msk.bf16.gmra.mxu1 %vm316_vm1, %v14869_v23 }
 0x2f4   : > { %v2512_v29 = vrot.slane %v2483_v41, 2  ;;  %13060 = vmatpush3.bf16.msra.mxu1 %v3444_v39  ;;  %v13766_v41 = vld [vmem:[%s17070_s1 + $0x50] ss:$12 sps:$4 sm:$0xff]   ;;  %13063 = vmatprep.mubr.msk.bf16.mxu1 %vm316_vm1, %v14905_v46 }
 0x2f5   : > { %v13006_v42 = vpop.f32.mrf.mxu1  ;;  %13061 = vmatprep.subr.bf16.mxu1 %v13766_v41 }
 0x2f6   : > { %13026 = vmatpush3.bf16.msra.mxu0 %v13754_v9  ;;  %v14908_v42 = vld [vmem:[%s14179_s14 + $0x50] ss:$0 sps:$4 sm:$0x11]  }
 0x2f7   : > { %v2486_v48 = vpop.f32.mrf.mxu1  ;;  %13027 = vmatprep.subr.bf16.mxu0 %v14088_v40 }
 0x2f8   : > { %13062 = vmatpush3.bf16.msra.mxu1 %v13766_v41 }
 0x2f9   : > { %11649 = vmatmul.mubr.msk.bf16.gmra.mxu0 %vm316_vm1, %v14726_v17  ;;  %v2513_v17 = vrot.slane %v2486_v48, 2  ;;  %v2611_v60 = vpop.f32.mrf.mxu1  ;;  %11747 = vmatprep.subr.msk.bf16.mxu1 %vm323_vm0, %v14534_v55 }
 0x2fa   : > { %13039 = vmatprep.mubr.msk.bf16.mxu0 %vm14089_vm2, %v14088_v40  ;;  %13028 = vmatpush3.bf16.msra.mxu0 %v13756_v57 }
 0x2fb   : > { %v2514_v10 = vsel %vm447_vm4, %v2512_v29, %v2513_v17  ;;  %v2516_v54 = vsel %vm447_vm4, %v2513_v17, %v2515_v47  ;;  %v2613_v62 = vpop.f32.mrf.mxu1  ;;  %13029 = vmatprep.subr.bf16.mxu0 %v14088_v40  ;;  %13064 = vmatmul.mubr.msk.bf16.vlgmr.msra.gmra.mxu1 %vm316_vm1, %v14908_v42 }
 0x2fc   : > { %v2519_v30 = vadd.f32 %v2514_v10, %v14746_v31  ;;  %v2520_v0 = vadd.f32 %v2516_v54, %v2508_v52  ;;  %v2680_v18 = vrot.slane %v2613_v62, 1  ;;  %3788 = vmatpush1.bf16.msra.mxu1 %v14539_v3  ;;  %3807 = vmatprep.mubr.bf16.mxu1 %v14087_v4 }
 0x2fd   : > { %v2615_v5 = vpop.f32.mrf.mxu1  ;;  %3789 = vmatprep.subr.bf16.mxu1 %v14550_v8  ;;  %v14931_v8 = vld [vmem:[%s14179_s14 + $0x3c] sm:$0xff]  }
 0x2fe   : > { %v2675_v26 = vadd.f32 %v2611_v60, %v2519_v30  ;;  %v2676_v27 = vadd.f32 %v2615_v5, %v2520_v0  ;;  %13030 = vmatpush3.bf16.msra.mxu0 %v13757_v59 }
 0x2ff   : > { %v2617_v16 = vpop.f32.mrf.mxu1  ;;  %13031 = vmatprep.subr.bf16.mxu0 %v14088_v40 }
 0x300   : > { %v2681_v45 = vrot.slane %v2617_v16, 1  ;;  %3790 = vmatpush1.bf16.msra.mxu1 %v14545_v6 }
 0x301   : > { %v2621_v24 = vpop.f32.mrf.mxu1 }
 0x302   : > { %v2682_v19 = vsel %vm434_vm3, %v2680_v18, %v2681_v45  ;;  %13032 = vmatpush3.bf16.msra.mxu0 %v13759_v32 }
 0x303   : > { %v2622_v43 = vpop.f32.mrf.mxu1  ;;  %v14820_v15 = vadd.f32 %v2682_v19, %v2675_v26  ;;  %13033 = vmatprep.subr.bf16.mxu0 %v14088_v40  ;;  %11748 = vmatmul.mubr.msk.bf16.vlgmr.msra.gmra.mxu1 %vm316_vm1, %v14931_v8 }
 0x304   : > { %v2683_v21 = vrot.slane %v2622_v43, 1  ;;  %3817 = vmatprep.mubr.bf16.mxu1 %v14087_v4 }
 0x305   : > { %v2624_v50 = vpop.f32.mrf.mxu1 }
 0x306   : > { %v2684_v44 = vsel %vm434_vm3, %v2681_v45, %v2683_v21  ;;  %13034 = vmatpush3.bf16.msra.mxu0 %v13760_v34 }
 0x307   : > { %v2625_v20 = vpop.f32.mrf.mxu1  ;;  %v14822_v31 = vadd.f32 %v2684_v44, %v2676_v27  ;;  %13035 = vmatprep.subr.bf16.mxu0 %v14088_v40 }
 0x309   : > { %v14859_v22 = vpop.f32.mrf.mxu1 }
 0x30a   : > { %13036 = vmatpush3.bf16.msra.mxu0 %v13761_v36  ;;  %v2876_v36 = vrot.slane %v14859_v22, 2 }
 0x30b   : > { %v14862_v14 = vpop.f32.mrf.mxu1  ;;  %13037 = vmatprep.subr.bf16.mxu0 %v14088_v40 }
 0x30c   : > { %v2873_v28 = vrot.slane %v14862_v14, 2  ;;  %v14951_v14 = vld [vmem:[%s17071_s2] ss:$0 sm:$0xff] }
 0x30d   : > { %v13022_v58 = vpop.f32.mrf.mxu1 }
 0x30e   : > { %13038 = vmatpush3.bf16.msra.mxu0 %v13762_v56 }
 0x30f   : > { %13584 = vmatprep.subr.msk.bf16.mxu0 %vm323_vm0, %v14892_v37  ;;  %v2845_v47 = vpop.f32.mrf.mxu1 }
 0x310   : > { %v2874_v11 = vrot.slane %v2845_v47, 2 }
 0x311   : > { %v3121_v29 = vpop.f32.mrf.mxu1 }
 0x313   : > { %v3123_v48 = vpop.f32.mrf.mxu1 }
 0x314   : > { %v3188_v17 = vrot.slane %v3123_v48, 1  ;;  %v2877_v48 = vsel %vm447_vm4, %v2874_v11, %v2876_v36 }
 0x315   : > { %v14920_v55 = vpop.f32.mrf.mxu1 }
 0x317   : > { %v14922_v52 = vpop.f32.mrf.mxu1 }
 0x318   : > { %v3189_v60 = vrot.slane %v14922_v52, 1 }
 0x31a   : > { %v3190_v3 = vsel %vm434_vm3, %v3188_v17, %v3189_v60 }
 0x31b   : > { %v14928_v10 = vadd.f32 %v3190_v3, %v3121_v29 }
 0x3a1   : > { %v2333_v6 = vpop.f32.mrf.mxu0 }
 0x3a2   : > { %v2334_v54 = vadd.f32 %v14564_v12, %v2333_v6 }
 0x3a3   : > { %v12997_v30 = vpop.f32.mrf.mxu0 }
 0x3a4   : > { %11590 = vst [vmem:[%s14569_s9 + $0x20] sm:$0xff] %v2334_v54 }
 0x3a5   : > { %v2336_v62 = vpop.f32.mrf.mxu0 }
 0x3a6   : > { %v2337_v0 = vadd.f32 %v14564_v12, %v2336_v62  ;;  %v3263_v62 = vsel %vm323_vm0, %v14892_v37, 0 }
 0x3a7   : > { %v12998_v26 = vpop.f32.mrf.mxu0 }
 0x3a8   : > { %11591 = vst [vmem:[%s14569_s9 + $0x28] sm:$0xff] %v2337_v0  ;;  %v13764_v0 = vld [vmem:[%s17070_s1 + $0x2c] ss:$12 sps:$4 sm:$0xff]  }
 0x3a9   : > { %v13013_v5 = vpop.f32.mrf.mxu0 }
 0x3aa   : > { %v2695_v44 = vrot.slane %v13013_v5, 2 }
 0x3ab   : > { %v2661_v27 = vpop.f32.mrf.mxu0 }
 0x3ac   : > { %v2692_v18 = vrot.slane %v2661_v27, 2 }
 0x3ad   : > { %v13014_v16 = vpop.f32.mrf.mxu0 }
 0x3af   : > { %v2664_v24 = vpop.f32.mrf.mxu0 }
 0x3b0   : > { %v2693_v45 = vrot.slane %v2664_v24, 2 }
 0x3b1   : > { %v2792_v43 = vpop.f32.mrf.mxu0 }
 0x3b2   : > { %v2694_v21 = vsel %vm447_vm4, %v2692_v18, %v2693_v45  ;;  %v2696_v51 = vsel %vm447_vm4, %v2693_v45, %v2695_v44 }
 0x3b3   : > { %v2794_v50 = vpop.f32.mrf.mxu0  ;;  %v2699_v19 = vadd.f32 %v2694_v21, %v14820_v15  ;;  %v2700_v57 = vadd.f32 %v2696_v51, %v14822_v31  ;;  %v2875_v15 = vsel %vm447_vm4, %v2873_v28, %v2874_v11 }
 0x3b4   : > { %v2861_v12 = vrot.slane %v2794_v50, 1 }
 0x3b5   : > { %v2796_v20 = vpop.f32.mrf.mxu0  ;;  %v2856_v9 = vadd.f32 %v2792_v43, %v2699_v19 }
 0x3b6   : > { %v2857_v38 = vadd.f32 %v2796_v20, %v2700_v57 }
 0x3b7   : > { %v2798_v49 = vpop.f32.mrf.mxu0 }
 0x3b8   : > { %v2862_v1 = vrot.slane %v2798_v49, 1 }
 0x3b9   : > { %v2802_v59 = vpop.f32.mrf.mxu0 }
 0x3ba   : > { %v2863_v58 = vsel %vm434_vm3, %v2861_v12, %v2862_v1 }
 0x3bb   : > { %v2868_v32 = vadd.f32 %v2863_v58, %v2856_v9  ;;  %v2803_v34 = vpop.f32.mrf.mxu0 }
 0x3bc   : > { %v2864_v56 = vrot.slane %v2803_v34, 1 }
 0x3bd   : > { %v2880_v39 = vadd.f32 %v2875_v15, %v2868_v32  ;;  %v2805_v41 = vpop.f32.mrf.mxu0  ;;  %v13770_v15 = vld [vmem:[%s14179_s14 + $0x44] ss:$0 sps:$4 sm:$0x11]  }
 0x3be   : > { %v2865_v31 = vsel %vm434_vm3, %v2862_v1, %v2864_v56  ;;  %v13771_v56 = vld [vmem:[%s17070_s1 + $0x20] ss:$0 sps:$4 sm:$0xff]   ;;  %11749 = vmatmul.mubr.msk.bf16.gmra.mxu1 %vm316_vm1, %v13770_v15  ;;  %v13773_v41 = vld [vmem:[%s17072_s3 + $0x38] sm:$0xff]  }
 0x3bf   : > { %v2869_v47 = vadd.f32 %v2865_v31, %v2857_v38  ;;  %v2806_v29 = vpop.f32.mrf.mxu0  ;;  %v2911_v17 = vadd.f32 %v14951_v14, %v2880_v39  ;;  %13586 = vmatprep.subr.msk.bf16.mxu1 %vm323_vm0, %v13771_v56  ;;  %v3773_v38 = vsel %vm323_vm0, %v13771_v56, 0  ;;  %13091 = vmatprep.mubr.msk.bf16.mxu1 %vm316_vm1, %v14931_v8  ;;  %v13772_v39 = vld [vmem:[%s17070_s1 + $0x8] ss:$12 sps:$4 sm:$0xff]  }
 0x3c0   : > { %13088 = vmatpush3.bf16.msra.mxu1 %v3773_v38  ;;  %v15020_v8 = vld [vmem:[%s14179_s14 + $0x48] sm:$0xff]   ;;  %v15038_v29 = vld [vmem:[%s14179_s14 + $0x50] ss:$0 sps:$4 sm:$0x11]  }
 0x3c1   : > { %v2881_v22 = vadd.f32 %v2877_v48, %v2869_v47  ;;  %v2913_v6 = vmax.f32 %v2911_v17, 0.0  ;;  %13089 = vmatprep.subr.bf16.mxu1 %v13772_v39  ;;  %v13779_v48 = vld [vmem:[%s17072_s3 + $0x18] sm:$0xff]   ;;  %v13780_v17 = vld [vmem:[%s17072_s3 + $0x10] sm:$0xff]  }
 0x3c3   : > { %v2912_v3 = vadd.f32 %v14951_v14, %v2881_v22  ;;  %v13781_v22 = vld [vmem:[%s17072_s3 + $0x8] sm:$0xff]  }
 0x3c4   : > { %13090 = vmatpush3.bf16.msra.mxu1 %v13772_v39 }
 0x3c5   : > { %v2914_v54 = vmax.f32 %v2912_v3, 0.0  ;;  %11769 = vmatprep.subr.msk.bf16.mxu1 %vm323_vm0, %v14639_v53  ;;  %v13774_v53 = vld [vmem:[%s17072_s3 + $0x30] sm:$0xff]   ;;  %v13782_v3 = vld [vmem:[%s17072_s3] sm:$0xff]  }
 0x3c7   : > { %v2915_v30 = vpack.c.bf16 %v2914_v54, %v2913_v6  ;;  %13092 = vmatmul.mubr.msk.bf16.vlgmr.msra.gmra.mxu1 %vm316_vm1, %v13770_v15  ;;  %v15061_v6 = vld [vmem:[%s17070_s1 + $0x44] ss:$0 sps:$4 sm:$0xff]   ;;  %v13785_v54 = vld [vmem:[%s17070_s1 + $0x68] ss:$0 sps:$4 sm:$0xff]  }
 0x3c8   : > { %3966 = vmatpush1.bf16.msra.mxu1 %v14648_v63  ;;  %3985 = vmatprep.mubr.bf16.mxu1 %v14087_v4  ;;  %v13776_v63 = vld [vmem:[%s17072_s3 + $0x28] sm:$0xff]  }
 0x3c9   : > { %13040 = vmatmul.mubr.bf16.vlgmr.msra.gmra.mxu0 %v2915_v30  ;;  %3967 = vmatprep.subr.bf16.mxu1 %v14655_v35  ;;  %v4132_v30 = vsel %vm323_vm0, %v13785_v54, 0 }
 0x3ca   : > { %13052 = vmatpush3.bf16.msra.mxu0 %v3263_v62  ;;  %13055 = vmatprep.mubr.msk.bf16.mxu0 %vm316_vm1, %v14851_v13  ;;  %v3131_v13 = vpop.f32.mrf.mxu1  ;;  %v13786_v62 = vld [vmem:[%s17070_s1 + $0x50] ss:$12 sps:$4 sm:$0xff]  }
 0x3cb   : > { %13053 = vmatprep.subr.bf16.mxu0 %v13764_v0  ;;  %v15077_v13 = vld [vmem:[%s14179_s14 + $0x5c] ss:$0 sps:$4 sm:$0x11]  }
 0x3cc   : > { %3968 = vmatpush1.bf16.msra.mxu1 %v14661_v2  ;;  %v13777_v2 = vld [vmem:[%s17072_s3 + $0x20] sm:$0xff]  }
 0x3cd   : > { %13588 = vmatprep.subr.msk.bf16.mxu1 %vm323_vm0, %v13785_v54 }
 0x3ce   : > { %13054 = vmatpush3.bf16.msra.mxu0 %v13764_v0  ;;  %v15074_v0 = vld [vmem:[%s14179_s14 + $0x54] sm:$0xff]  }
 0x3cf   : > { %11719 = vmatprep.subr.msk.bf16.mxu0 %vm323_vm0, %v14780_v7  ;;  %11770 = vmatmul.mubr.msk.bf16.vlgmr.msra.gmra.mxu1 %vm316_vm1, %v15020_v8 }
 0x3d0   : > { %3995 = vmatprep.mubr.bf16.mxu1 %v14087_v4  ;;  %13104 = vmatpush3.bf16.msra.mxu1 %v4132_v30 }
 0x3d1   : > { %13056 = vmatmul.mubr.msk.bf16.vlgmr.msra.gmra.mxu0 %vm316_vm1, %v14869_v23  ;;  %v3132_v23 = vpop.f32.mrf.mxu1  ;;  %13105 = vmatprep.subr.bf16.mxu1 %v13786_v62 }
 0x3d2   : > { %3459 = vmatpush1.bf16.msra.mxu0 %v14785_v25  ;;  %3478 = vmatprep.mubr.bf16.mxu0 %v14087_v4  ;;  %v3191_v5 = vrot.slane %v3132_v23, 1 }
 0x3d3   : > { %3460 = vmatprep.subr.bf16.mxu0 %v14790_v33  ;;  %v3134_v37 = vpop.f32.mrf.mxu1 }
 0x3d4   : > { %v3192_v24 = vsel %vm434_vm3, %v3189_v60, %v3191_v5  ;;  %13106 = vmatpush3.bf16.msra.mxu1 %v13786_v62 }
 0x3d5   : > { %v3135_v26 = vpop.f32.mrf.mxu1  ;;  %v3196_v21 = vadd.f32 %v3192_v24, %v14920_v55 }
 0x3d6   : > { %3461 = vmatpush1.bf16.msra.mxu0 %v14798_v61 }
 0x3d7   : > { %13067 = vmatprep.subr.bf16.mxu0 %v14088_v40  ;;  %v13049_v27 = vpop.f32.mrf.mxu1  ;;  %11771 = vmatmul.mubr.msk.bf16.gmra.mxu1 %vm316_vm1, %v15038_v29 }
 0x3d8   : > { %v3203_v18 = vrot.slane %v13049_v27, 2  ;;  %13107 = vmatprep.mubr.msk.bf16.mxu1 %vm316_vm1, %v15074_v0 }
 0x3d9   : > { %11720 = vmatmul.mubr.msk.bf16.vlgmr.msra.gmra.mxu0 %vm316_vm1, %v14905_v46  ;;  %v3171_v16 = vpop.f32.mrf.mxu1 }
 0x3da   : > { %3488 = vmatprep.mubr.bf16.mxu0 %v14087_v4  ;;  %v3200_v45 = vrot.slane %v3171_v16, 2  ;;  %13068 = vmatpush3.bf16.msra.mxu0 %v13773_v41 }
 0x3db   : > { %v13050_v46 = vpop.f32.mrf.mxu1  ;;  %13069 = vmatprep.subr.bf16.mxu0 %v14088_v40 }
 0x3dd   : > { %v3174_v43 = vpop.f32.mrf.mxu1 }
 0x3de   : > { %13070 = vmatpush3.bf16.msra.mxu0 %v13774_v53 }
 0x3df   : > { %v3299_v50 = vpop.f32.mrf.mxu1  ;;  %13071 = vmatprep.subr.bf16.mxu0 %v14088_v40  ;;  %13108 = vmatmul.mubr.msk.bf16.vlgmr.msra.gmra.mxu1 %vm316_vm1, %v15077_v13 }
 0x3e0   : > { %4495 = vmatprep.mubr.bf16.mxu1 %v14087_v4 }
 0x3e1   : > { %11721 = vmatmul.mubr.msk.bf16.gmra.mxu0 %vm316_vm1, %v14908_v42  ;;  %v3201_v42 = vrot.slane %v3174_v43, 2  ;;  %v3301_v51 = vpop.f32.mrf.mxu1 }
 0x3e2   : > { %13083 = vmatprep.mubr.msk.bf16.mxu0 %vm14089_vm2, %v14088_v40  ;;  %v3368_v11 = vrot.slane %v3301_v51, 1  ;;  %13072 = vmatpush3.bf16.msra.mxu0 %v13776_v63 }
 0x3e3   : > { %v3202_v44 = vsel %vm447_vm4, %v3200_v45, %v3201_v42  ;;  %v3204_v19 = vsel %vm447_vm4, %v3201_v42, %v3203_v18  ;;  %v3303_v12 = vpop.f32.mrf.mxu1  ;;  %13073 = vmatprep.subr.bf16.mxu0 %v14088_v40  ;;  %v4414_v45 = vld [vmem:[%s17070_s1 + $0x18] sm:$0xff] }
 0x3e4   : > { %v3207_v20 = vadd.f32 %v3202_v44, %v14928_v10  ;;  %v3208_v49 = vadd.f32 %v3204_v19, %v3196_v21  ;;  %v15099_v43 = vcombine.high %v4414_v45, %v4414_v45  ;;  %v11816_v21 = vcombine.low %v4414_v45, %v4414_v45  ;;  %v15115_v44 = vld [vmem:[%s17070_s1 + $0x4] ss:$12 sps:$4 sm:$0xff]   ;;  %v15119_v19 = vld [vmem:[%s14179_s14 + $0x48] sm:$0xff]  }
 0x3e5   : > { %v3305_v28 = vpop.f32.mrf.mxu1 }
 0x3e6   : > { %v3363_v52 = vadd.f32 %v3299_v50, %v3207_v20  ;;  %v3364_v60 = vadd.f32 %v3303_v12, %v3208_v49  ;;  %v3369_v9 = vrot.slane %v3305_v28, 1  ;;  %13074 = vmatpush3.bf16.msra.mxu0 %v13777_v2  ;;  %11819 = vmatprep.subr.msk.bf16.mxu1 %vm323_vm0, %v15099_v43  ;;  %v15104_v42 = vsel %vm323_vm0, %v11816_v21, 0  ;;  %v15110_v50 = vld [vmem:[%s17070_s1] ss:$12 sps:$4 sm:$0xff]  }
 0x3e7   : > { %v3309_v1 = vpop.f32.mrf.mxu1  ;;  %13075 = vmatprep.subr.bf16.mxu0 %v14088_v40  ;;  %4476 = vmatpush1.bf16.msra.mxu1 %v15104_v42  ;;  %v15128_v20 = vld [vmem:[%s17073_s4] ss:$0 sm:$0xff] }
 0x3e8   : > { %v3370_v32 = vsel %vm434_vm3, %v3368_v11, %v3369_v9  ;;  %4477 = vmatprep.subr.bf16.mxu1 %v15115_v44 }
 0x3e9   : > { %v3310_v57 = vpop.f32.mrf.mxu1  ;;  %v14989_v36 = vadd.f32 %v3370_v32, %v3363_v52 }
 0x3ea   : > { %v3371_v55 = vrot.slane %v3310_v57, 1  ;;  %13076 = vmatpush3.bf16.msra.mxu0 %v13779_v48 }
 0x3eb   : > { %v3312_v59 = vpop.f32.mrf.mxu1  ;;  %13077 = vmatprep.subr.bf16.mxu0 %v14088_v40  ;;  %4478 = vmatpush1.bf16.msra.mxu1 %v15110_v50 }
 0x3ec   : > { %v3372_v58 = vsel %vm434_vm3, %v3369_v9, %v3371_v55 }
 0x3ed   : > { %v3313_v34 = vpop.f32.mrf.mxu1  ;;  %v14991_v10 = vadd.f32 %v3372_v58, %v3364_v60 }
 0x3ee   : > { %13078 = vmatpush3.bf16.msra.mxu0 %v13780_v17  ;;  %11820 = vmatmul.mubr.msk.bf16.vlgmr.msra.gmra.mxu1 %vm316_vm1, %v15119_v19 }
 0x3ef   : > { %v15028_v35 = vpop.f32.mrf.mxu1  ;;  %13079 = vmatprep.subr.bf16.mxu0 %v14088_v40  ;;  %4505 = vmatprep.mubr.bf16.mxu1 %v14087_v4 }
 0x3f1   : > { %v15031_v31 = vpop.f32.mrf.mxu1 }
 0x3f2   : > { %13080 = vmatpush3.bf16.msra.mxu0 %v13781_v22  ;;  %v3561_v63 = vrot.slane %v15031_v31, 2 }
 0x3f3   : > { %v13066_v47 = vpop.f32.mrf.mxu1  ;;  %13081 = vmatprep.subr.bf16.mxu0 %v14088_v40 }
 0x3f5   : > { %v15084_v23 = vpop.f32.mrf.mxu1 }
 0x3f6   : > { %13082 = vmatpush3.bf16.msra.mxu0 %v13782_v3  ;;  %v3562_v47 = vrot.slane %v15084_v23, 2 }
 0x3f7   : > { %13587 = vmatprep.subr.msk.bf16.mxu0 %vm323_vm0, %v15061_v6  ;;  %v3809_v37 = vpop.f32.mrf.mxu1 }
 0x3f8   : > { %v3563_v62 = vsel %vm447_vm4, %v3561_v63, %v3562_v47 }
 0x3f9   : > { %v3811_v26 = vpop.f32.mrf.mxu1 }
 0x3fa   : > { %v3876_v16 = vrot.slane %v3811_v26, 1 }
 0x3fb   : > { %v15086_v5 = vpop.f32.mrf.mxu1 }
 0x3fd   : > { %v15088_v27 = vpop.f32.mrf.mxu1 }
 0x3fe   : > { %v3877_v24 = vrot.slane %v15088_v27, 1 }
 0x400   : > { %v3878_v46 = vsel %vm434_vm3, %v3876_v16, %v3877_v24 }
 0x401   : > { %v15094_v18 = vadd.f32 %v3878_v46, %v3809_v37 }
 0x489   : > { %v3021_v51 = vpop.f32.mrf.mxu0 }
 0x48a   : > { %v3022_v49 = vadd.f32 %v15128_v20, %v3021_v51 }
 0x48b   : > { %v13041_v52 = vpop.f32.mrf.mxu0 }
 0x48c   : > { %11662 = vst [vmem:[%s14569_s9 + $0x30] sm:$0xff] %v3022_v49 }
 0x48d   : > { %v3024_v12 = vpop.f32.mrf.mxu0 }
 0x48e   : > { %v3025_v60 = vadd.f32 %v15128_v20, %v3024_v12 }
 0x48f   : > { %v13042_v28 = vpop.f32.mrf.mxu0 }
 0x490   : > { %11663 = vst [vmem:[%s14569_s9 + $0x38] sm:$0xff] %v3025_v60  ;;  %v3951_v60 = vsel %vm323_vm0, %v15061_v6, 0  ;;  %v13784_v28 = vld [vmem:[%s17070_s1 + $0x2c] ss:$12 sps:$4 sm:$0xff]  }
 0x491   : > { %v13057_v1 = vpop.f32.mrf.mxu0 }
 0x492   : > { %v3383_v15 = vrot.slane %v13057_v1, 2 }
 0x493   : > { %v3349_v11 = vpop.f32.mrf.mxu0 }
 0x494   : > { %v3380_v55 = vrot.slane %v3349_v11, 2 }
 0x495   : > { %v13058_v9 = vpop.f32.mrf.mxu0 }
 0x497   : > { %v3352_v57 = vpop.f32.mrf.mxu0 }
 0x498   : > { %v3381_v59 = vrot.slane %v3352_v57, 2 }
 0x499   : > { %v3480_v58 = vpop.f32.mrf.mxu0 }
 0x49a   : > { %v3382_v32 = vsel %vm447_vm4, %v3380_v55, %v3381_v59  ;;  %v3384_v39 = vsel %vm447_vm4, %v3381_v59, %v3383_v15 }
 0x49b   : > { %v3482_v34 = vpop.f32.mrf.mxu0  ;;  %v3387_v56 = vadd.f32 %v3382_v32, %v14989_v36  ;;  %v3388_v17 = vadd.f32 %v3384_v39, %v14991_v10  ;;  %v3564_v36 = vrot.slane %v15028_v35, 2 }
 0x49c   : > { %v3549_v53 = vrot.slane %v3482_v34, 1 }
 0x49d   : > { %v3484_v38 = vpop.f32.mrf.mxu0  ;;  %v3544_v48 = vadd.f32 %v3480_v58, %v3387_v56  ;;  %v3565_v21 = vsel %vm447_vm4, %v3562_v47, %v3564_v36 }
 0x49e   : > { %v3545_v26 = vadd.f32 %v3484_v38, %v3388_v17 }
 0x49f   : > { %v3486_v41 = vpop.f32.mrf.mxu0 }
 0x4a0   : > { %v3550_v2 = vrot.slane %v3486_v41, 1 }
 0x4a1   : > { %v3490_v22 = vpop.f32.mrf.mxu0 }
 0x4a2   : > { %v3551_v3 = vsel %vm434_vm3, %v3549_v53, %v3550_v2 }
 0x4a3   : > { %v3556_v54 = vadd.f32 %v3551_v3, %v3544_v48  ;;  %v3491_v30 = vpop.f32.mrf.mxu0 }
 0x4a4   : > { %v3552_v37 = vrot.slane %v3491_v30, 1  ;;  %v13796_v30 = vld [vmem:[%s17070_s1 + $0x20] ss:$0 sps:$4 sm:$0xff]  }
 0x4a5   : > { %v3568_v16 = vadd.f32 %v3563_v62, %v3556_v54  ;;  %v3493_v46 = vpop.f32.mrf.mxu0  ;;  %v13795_v54 = vld [vmem:[%s14179_s14 + $0x50] ss:$0 sps:$4 sm:$0x11]   ;;  %13589 = vmatprep.subr.msk.bf16.mxu1 %vm323_vm0, %v13796_v30  ;;  %v4461_v36 = vsel %vm323_vm0, %v13796_v30, 0  ;;  %v13797_v62 = vld [vmem:[%s17070_s1 + $0x8] ss:$12 sps:$4 sm:$0xff]  }
 0x4a6   : > { %v3553_v31 = vsel %vm434_vm3, %v3550_v2, %v3552_v37  ;;  %11821 = vmatmul.mubr.msk.bf16.gmra.mxu1 %vm316_vm1, %v13795_v54  ;;  %v11831_v37 = vld [vmem:[%s17070_s1 + $0x3c] sm:$0xff] }
 0x4a7   : > { %v3557_v45 = vadd.f32 %v3553_v31, %v3545_v26  ;;  %v3494_v23 = vpop.f32.mrf.mxu0  ;;  %v3599_v10 = vadd.f32 %v14951_v14, %v3568_v16  ;;  %13132 = vmatpush3.bf16.msra.mxu1 %v4461_v36  ;;  %13135 = vmatprep.mubr.msk.bf16.mxu1 %vm316_vm1, %v15119_v19  ;;  %v15198_v26 = vcombine.high %v11831_v37, %v11831_v37  ;;  %v13799_v19 = vld [vmem:[%s17072_s3 + $0x38] sm:$0xff]   ;;  %v15214_v31 = vld [vmem:[%s17070_s1 + $0x28] ss:$12 sps:$4 sm:$0xff]  }
 0x4a8   : > { %13133 = vmatprep.subr.bf16.mxu1 %v13797_v62  ;;  %v11838_v16 = vcombine.low %v11831_v37, %v11831_v37  ;;  %v13804_v23 = vld [vmem:[%s17072_s3 + $0x30] sm:$0xff]  }
 0x4a9   : > { %v3569_v51 = vadd.f32 %v3565_v21, %v3557_v45  ;;  %v3601_v52 = vmax.f32 %v3599_v10, 0.0  ;;  %v15220_v45 = vld [vmem:[%s17070_s1 + $0x24] ss:$12 sps:$4 sm:$0xff]   ;;  %v15228_v21 = vld [vmem:[%s14179_s14 + $0x54] sm:$0xff]   ;;  %v13806_v10 = vld [vmem:[%s17072_s3 + $0x28] sm:$0xff]  }
 0x4aa   : > { %v15207_v46 = vsel %vm323_vm0, %v11838_v16, 0 }
 0x4ab   : > { %v3600_v49 = vadd.f32 %v14951_v14, %v3569_v51  ;;  %13134 = vmatpush3.bf16.msra.mxu1 %v13797_v62 }
 0x4ac   : > { %11841 = vmatprep.subr.msk.bf16.mxu1 %vm323_vm0, %v15198_v26 }
 0x4ad   : > { %v3602_v12 = vmax.f32 %v3600_v49, 0.0 }
 0x4ae   : > { %13136 = vmatmul.mubr.msk.bf16.vlgmr.msra.gmra.mxu1 %vm316_vm1, %v13795_v54 }
 0x4af   : > { %v3603_v35 = vpack.c.bf16 %v3602_v12, %v3601_v52  ;;  %4654 = vmatpush1.bf16.msra.mxu1 %v15207_v46  ;;  %4673 = vmatprep.mubr.bf16.mxu1 %v14087_v4  ;;  %v13807_v52 = vld [vmem:[%s17072_s3 + $0x20] sm:$0xff]  }
 0x4b0   : > { %4655 = vmatprep.subr.bf16.mxu1 %v15214_v31 }
 0x4b1   : > { %13084 = vmatmul.mubr.bf16.vlgmr.msra.gmra.mxu0 %v3603_v35  ;;  %v15246_v35 = vld [vmem:[%s14179_s14 + $0x5c] ss:$0 sps:$4 sm:$0x11]  }
 0x4b2   : > { %13096 = vmatpush3.bf16.msra.mxu0 %v3951_v60  ;;  %13099 = vmatprep.mubr.msk.bf16.mxu0 %vm316_vm1, %v15020_v8  ;;  %v3819_v8 = vpop.f32.mrf.mxu1  ;;  %v13809_v60 = vld [vmem:[%s17072_s3 + $0x18] sm:$0xff]  }
 0x4b3   : > { %13097 = vmatprep.subr.bf16.mxu0 %v13784_v28  ;;  %4656 = vmatpush1.bf16.msra.mxu1 %v15220_v45  ;;  %v13811_v8 = vld [vmem:[%s17072_s3 + $0x8] sm:$0xff]  }
 0x4b6   : > { %13098 = vmatpush3.bf16.msra.mxu0 %v13784_v28  ;;  %11842 = vmatmul.mubr.msk.bf16.vlgmr.msra.gmra.mxu1 %vm316_vm1, %v15228_v21  ;;  %v13810_v28 = vld [vmem:[%s17072_s3 + $0x10] sm:$0xff]  }
 0x4b7   : > { %11791 = vmatprep.subr.msk.bf16.mxu0 %vm323_vm0, %v14780_v7  ;;  %v3820_v7 = vpop.f32.mrf.mxu1  ;;  %4683 = vmatprep.mubr.bf16.mxu1 %v14087_v4 }
 0x4b9   : > { %13100 = vmatmul.mubr.msk.bf16.vlgmr.msra.gmra.mxu0 %vm316_vm1, %v15038_v29 }
 0x4ba   : > { %4147 = vmatpush1.bf16.msra.mxu0 %v14785_v25  ;;  %4166 = vmatprep.mubr.bf16.mxu0 %v14087_v4  ;;  %v3822_v25 = vpop.f32.mrf.mxu1 }
 0x4bb   : > { %4148 = vmatprep.subr.bf16.mxu0 %v14790_v33  ;;  %v3879_v33 = vrot.slane %v3820_v7, 1  ;;  %v13812_v7 = vld [vmem:[%s17072_s3] sm:$0xff]  }
 0x4bc   : > { %v3823_v29 = vpop.f32.mrf.mxu1  ;;  %v15269_v25 = vld [vmem:[%s17070_s1 + $0x44] ss:$0 sps:$4 sm:$0xff]  }
 0x4bd   : > { %v3880_v1 = vsel %vm434_vm3, %v3877_v24, %v3879_v33  ;;  %v13815_v29 = vld [vmem:[%s17070_s1 + $0x68] ss:$0 sps:$4 sm:$0xff]  }
 0x4be   : > { %4149 = vmatpush1.bf16.msra.mxu0 %v14798_v61  ;;  %v13093_v6 = vpop.f32.mrf.mxu1  ;;  %v3884_v55 = vadd.f32 %v3880_v1, %v15086_v5  ;;  %11843 = vmatmul.mubr.msk.bf16.gmra.mxu1 %vm316_vm1, %v15246_v35  ;;  %v4820_v33 = vsel %vm323_vm0, %v13815_v29, 0  ;;  %v15285_v1 = vld [vmem:[%s14179_s14 + $0x68] ss:$0 sps:$4 sm:$0x11]  }
 0x4bf   : > { %13111 = vmatprep.subr.bf16.mxu0 %v14088_v40  ;;  %v3891_v11 = vrot.slane %v13093_v6, 2  ;;  %13591 = vmatprep.subr.msk.bf16.mxu1 %vm323_vm0, %v13815_v29  ;;  %v13821_v6 = vld [vmem:[%s17070_s1 + $0x50] ss:$12 sps:$4 sm:$0xff]  }
 0x4c0   : > { %v3859_v61 = vpop.f32.mrf.mxu1  ;;  %13148 = vmatpush3.bf16.msra.mxu1 %v4820_v33 }
 0x4c1   : > { %11792 = vmatmul.mubr.msk.bf16.vlgmr.msra.gmra.mxu0 %vm316_vm1, %v15074_v0  ;;  %v3888_v9 = vrot.slane %v3859_v61, 2  ;;  %13149 = vmatprep.subr.bf16.mxu1 %v13821_v6  ;;  %v15282_v61 = vld [vmem:[%s14179_s14 + $0x60] sm:$0xff]  }
 0x4c2   : > { %4176 = vmatprep.mubr.bf16.mxu0 %v14087_v4  ;;  %v13094_v0 = vpop.f32.mrf.mxu1  ;;  %13112 = vmatpush3.bf16.msra.mxu0 %v13799_v19 }
 0x4c3   : > { %13113 = vmatprep.subr.bf16.mxu0 %v14088_v40  ;;  %13151 = vmatprep.mubr.msk.bf16.mxu1 %vm316_vm1, %v15282_v61 }
 0x4c4   : > { %v3862_v57 = vpop.f32.mrf.mxu1  ;;  %13150 = vmatpush3.bf16.msra.mxu1 %v13821_v6 }
 0x4c5   : > { %11891 = vmatprep.subr.msk.bf16.mxu1 %vm323_vm0, %v15099_v43 }
 0x4c6   : > { %v3987_v59 = vpop.f32.mrf.mxu1  ;;  %13114 = vmatpush3.bf16.msra.mxu0 %v13804_v23 }
 0x4c7   : > { %13115 = vmatprep.subr.bf16.mxu0 %v14088_v40  ;;  %13152 = vmatmul.mubr.msk.bf16.vlgmr.msra.gmra.mxu1 %vm316_vm1, %v15285_v1 }
 0x4c8   : > { %v3989_v15 = vpop.f32.mrf.mxu1  ;;  %5164 = vmatpush1.bf16.msra.mxu1 %v15104_v42  ;;  %5183 = vmatprep.mubr.bf16.mxu1 %v14087_v4 }
 0x4c9   : > { %11793 = vmatmul.mubr.msk.bf16.gmra.mxu0 %vm316_vm1, %v15077_v13  ;;  %v3889_v13 = vrot.slane %v3862_v57, 2  ;;  %v4056_v53 = vrot.slane %v3989_v15, 1  ;;  %5165 = vmatprep.subr.bf16.mxu1 %v15115_v44 }
 0x4ca   : > { %13127 = vmatprep.mubr.msk.bf16.mxu0 %vm14089_vm2, %v14088_v40  ;;  %v3991_v38 = vpop.f32.mrf.mxu1  ;;  %13116 = vmatpush3.bf16.msra.mxu0 %v13806_v10 }
 0x4cb   : > { %v3890_v58 = vsel %vm447_vm4, %v3888_v9, %v3889_v13  ;;  %v3892_v32 = vsel %vm447_vm4, %v3889_v13, %v3891_v11  ;;  %13117 = vmatprep.subr.bf16.mxu0 %v14088_v40 }
 0x4cc   : > { %v3895_v34 = vadd.f32 %v3890_v58, %v15094_v18  ;;  %v3896_v56 = vadd.f32 %v3892_v32, %v3884_v55  ;;  %v3993_v39 = vpop.f32.mrf.mxu1  ;;  %5166 = vmatpush1.bf16.msra.mxu1 %v15110_v50 }
 0x4cd   : > { %v4057_v63 = vrot.slane %v3993_v39, 1 }
 0x4ce   : > { %v4051_v27 = vadd.f32 %v3987_v59, %v3895_v34  ;;  %v4052_v24 = vadd.f32 %v3991_v38, %v3896_v56  ;;  %v3997_v41 = vpop.f32.mrf.mxu1  ;;  %13118 = vmatpush3.bf16.msra.mxu0 %v13807_v52  ;;  %v15308_v34 = vld [vmem:[%s14179_s14 + $0x54] sm:$0xff]  }
 0x4cf   : > { %v4058_v17 = vsel %vm434_vm3, %v4056_v53, %v4057_v63  ;;  %13119 = vmatprep.subr.bf16.mxu0 %v14088_v40  ;;  %11892 = vmatmul.mubr.msk.bf16.vlgmr.msra.gmra.mxu1 %vm316_vm1, %v15308_v34 }
 0x4d0   : > { %v3998_v2 = vpop.f32.mrf.mxu1  ;;  %v15179_v3 = vadd.f32 %v4058_v17, %v4051_v27  ;;  %5193 = vmatprep.mubr.bf16.mxu1 %v14087_v4 }
 0x4d1   : > { %v4059_v5 = vrot.slane %v3998_v2, 1 }
 0x4d2   : > { %v4000_v47 = vpop.f32.mrf.mxu1  ;;  %13120 = vmatpush3.bf16.msra.mxu0 %v13809_v60 }
 0x4d3   : > { %v4060_v48 = vsel %vm434_vm3, %v4057_v63, %v4059_v5  ;;  %13121 = vmatprep.subr.bf16.mxu0 %v14088_v40 }
 0x4d4   : > { %v4001_v22 = vpop.f32.mrf.mxu1  ;;  %v15181_v18 = vadd.f32 %v4060_v48, %v4052_v24 }
 0x4d6   : > { %v15236_v51 = vpop.f32.mrf.mxu1  ;;  %13122 = vmatpush3.bf16.msra.mxu0 %v13810_v28 }
 0x4d7   : > { %13123 = vmatprep.subr.bf16.mxu0 %v14088_v40  ;;  %v4252_v29 = vrot.slane %v15236_v51, 2 }
 0x4d8   : > { %v15239_v49 = vpop.f32.mrf.mxu1 }
 0x4d9   : > { %v4249_v19 = vrot.slane %v15239_v49, 2 }
 0x4da   : > { %v13110_v12 = vpop.f32.mrf.mxu1  ;;  %13124 = vmatpush3.bf16.msra.mxu0 %v13811_v8 }
 0x4db   : > { %13125 = vmatprep.subr.bf16.mxu0 %v14088_v40 }
 0x4dc   : > { %v4221_v0 = vpop.f32.mrf.mxu1 }
 0x4dd   : > { %v4250_v10 = vrot.slane %v4221_v0, 2 }
 0x4de   : > { %13126 = vmatpush3.bf16.msra.mxu0 %v13812_v7  ;;  %v4497_v11 = vpop.f32.mrf.mxu1 }
 0x4df   : > { %13590 = vmatprep.subr.msk.bf16.mxu0 %vm323_vm0, %v15269_v25 }
 0x4e0   : > { %v4499_v9 = vpop.f32.mrf.mxu1 }
 0x4e1   : > { %v4564_v13 = vrot.slane %v4499_v9, 1 }
 0x4e2   : > { %v15297_v57 = vpop.f32.mrf.mxu1 }
 0x4e4   : > { %v15299_v55 = vpop.f32.mrf.mxu1 }
 0x4e5   : > { %v4565_v59 = vrot.slane %v15299_v55, 1 }
 0x4e7   : > { %v4566_v58 = vsel %vm434_vm3, %v4564_v13, %v4565_v59 }
 0x4e8   : > { %v15305_v32 = vadd.f32 %v4566_v58, %v4497_v11  ;;  %v4253_v58 = vsel %vm447_vm4, %v4250_v10, %v4252_v29 }
 0x571   : > { %v3709_v15 = vpop.f32.mrf.mxu0 }
 0x572   : > { %v3710_v56 = vadd.f32 %v15128_v20, %v3709_v15 }
 0x573   : > { %v13085_v27 = vpop.f32.mrf.mxu0 }
 0x574   : > { %11734 = vst [vmem:[%s14569_s9 + $0x40] sm:$0xff] %v3710_v56 }
 0x575   : > { %v3712_v38 = vpop.f32.mrf.mxu0 }
 0x576   : > { %v3713_v24 = vadd.f32 %v15128_v20, %v3712_v38 }
 0x577   : > { %v13086_v39 = vpop.f32.mrf.mxu0 }
 0x578   : > { %11735 = vst [vmem:[%s14569_s9 + $0x48] sm:$0xff] %v3713_v24  ;;  %v4639_v24 = vsel %vm323_vm0, %v15269_v25, 0  ;;  %v13814_v39 = vld [vmem:[%s17070_s1 + $0x2c] ss:$12 sps:$4 sm:$0xff]  }
 0x579   : > { %v13101_v41 = vpop.f32.mrf.mxu0 }
 0x57a   : > { %v4071_v54 = vrot.slane %v13101_v41, 2  ;;  %v11853_v41 = vld [vmem:[%s17070_s1 + $0x60] sm:$0xff] }
 0x57b   : > { %v4037_v53 = vpop.f32.mrf.mxu0 }
 0x57c   : > { %v4068_v5 = vrot.slane %v4037_v53, 2  ;;  %v11860_v53 = vcombine.low %v11853_v41, %v11853_v41 }
 0x57d   : > { %v13102_v63 = vpop.f32.mrf.mxu0 }
 0x57e   : > { %v15344_v25 = vsel %vm323_vm0, %v11860_v53, 0  ;;  %v15349_v63 = vld [vmem:[%s17070_s1 + $0x4c] ss:$12 sps:$4 sm:$0xff]  }
 0x57f   : > { %v4040_v2 = vpop.f32.mrf.mxu0  ;;  %v13834_v53 = vld [vmem:[%s17072_s3 + $0x18] sm:$0xff]  }
 0x580   : > { %v4069_v47 = vrot.slane %v4040_v2, 2 }
 0x581   : > { %v4168_v48 = vpop.f32.mrf.mxu0 }
 0x582   : > { %v4070_v17 = vsel %vm447_vm4, %v4068_v5, %v4069_v47  ;;  %v4072_v62 = vsel %vm447_vm4, %v4069_v47, %v4071_v54 }
 0x583   : > { %v4170_v22 = vpop.f32.mrf.mxu0  ;;  %v4075_v30 = vadd.f32 %v4070_v17, %v15179_v3  ;;  %v4076_v12 = vadd.f32 %v4072_v62, %v15181_v18  ;;  %v4251_v3 = vsel %vm447_vm4, %v4249_v19, %v4250_v10 }
 0x584   : > { %v4237_v16 = vrot.slane %v4170_v22, 1 }
 0x585   : > { %v4172_v36 = vpop.f32.mrf.mxu0  ;;  %v4232_v52 = vadd.f32 %v4168_v48, %v4075_v30 }
 0x586   : > { %v4233_v6 = vadd.f32 %v4172_v36, %v4076_v12 }
 0x587   : > { %v4174_v37 = vpop.f32.mrf.mxu0 }
 0x588   : > { %v4238_v23 = vrot.slane %v4174_v37, 1 }
 0x589   : > { %v4178_v60 = vpop.f32.mrf.mxu0 }
 0x58a   : > { %v4239_v28 = vsel %vm434_vm3, %v4237_v16, %v4238_v23 }
 0x58b   : > { %v4244_v8 = vadd.f32 %v4239_v28, %v4232_v52  ;;  %v4179_v7 = vpop.f32.mrf.mxu0 }
 0x58c   : > { %v4240_v33 = vrot.slane %v4179_v7, 1 }
 0x58d   : > { %v4256_v11 = vadd.f32 %v4251_v3, %v4244_v8  ;;  %v4181_v9 = vpop.f32.mrf.mxu0 }
 0x58e   : > { %v4241_v49 = vsel %vm434_vm3, %v4238_v23, %v4240_v33 }
 0x58f   : > { %v4245_v13 = vadd.f32 %v4241_v49, %v4233_v6  ;;  %v4182_v0 = vpop.f32.mrf.mxu0  ;;  %v4287_v18 = vadd.f32 %v14951_v14, %v4256_v11 }
 0x590   : > { %v13826_v0 = vld [vmem:[%s17070_s1 + $0x20] ss:$0 sps:$4 sm:$0xff]  }
 0x591   : > { %v4257_v15 = vadd.f32 %v4253_v58, %v4245_v13  ;;  %v4289_v27 = vmax.f32 %v4287_v18, 0.0  ;;  %v13825_v13 = vld [vmem:[%s14179_s14 + $0x5c] ss:$0 sps:$4 sm:$0x11]   ;;  %13592 = vmatprep.subr.msk.bf16.mxu1 %vm323_vm0, %v13826_v0  ;;  %v5149_v58 = vsel %vm323_vm0, %v13826_v0, 0 }
 0x592   : > { %11893 = vmatmul.mubr.msk.bf16.gmra.mxu1 %vm316_vm1, %v13825_v13  ;;  %v13827_v18 = vld [vmem:[%s17070_s1 + $0x8] ss:$12 sps:$4 sm:$0xff]  }
 0x593   : > { %v4288_v56 = vadd.f32 %v14951_v14, %v4257_v15  ;;  %v15339_v14 = vcombine.high %v11853_v41, %v11853_v41  ;;  %13176 = vmatpush3.bf16.msra.mxu1 %v5149_v58  ;;  %13179 = vmatprep.mubr.msk.bf16.mxu1 %vm316_vm1, %v15308_v34  ;;  %v13828_v15 = vld [vmem:[%s17072_s3 + $0x38] sm:$0xff]   ;;  %v13829_v34 = vld [vmem:[%s17072_s3 + $0x30] sm:$0xff]   ;;  %v15428_v41 = vld [vmem:[%s14179_s14 + $0x68] ss:$0 sps:$4 sm:$0x11]  }
 0x594   : > { %13177 = vmatprep.subr.bf16.mxu1 %v13827_v18 }
 0x595   : > { %v4290_v38 = vmax.f32 %v4288_v56, 0.0  ;;  %v15410_v56 = vld [vmem:[%s14179_s14 + $0x60] sm:$0xff]  }
 0x597   : > { %v4291_v51 = vpack.c.bf16 %v4290_v38, %v4289_v27  ;;  %13178 = vmatpush3.bf16.msra.mxu1 %v13827_v18  ;;  %v13831_v27 = vld [vmem:[%s17072_s3 + $0x28] sm:$0xff]  }
 0x598   : > { %11913 = vmatprep.subr.msk.bf16.mxu1 %vm323_vm0, %v15198_v26 }
 0x599   : > { %13128 = vmatmul.mubr.bf16.vlgmr.msra.gmra.mxu0 %v4291_v51 }
 0x59a   : > { %13140 = vmatpush3.bf16.msra.mxu0 %v4639_v24  ;;  %13143 = vmatprep.mubr.msk.bf16.mxu0 %vm316_vm1, %v15228_v21  ;;  %v15357_v21 = vld [vmem:[%s17070_s1 + $0x48] ss:$12 sps:$4 sm:$0xff]   ;;  %v13832_v24 = vld [vmem:[%s17072_s3 + $0x20] sm:$0xff]  }
 0x59b   : > { %13141 = vmatprep.subr.bf16.mxu0 %v13814_v39  ;;  %13180 = vmatmul.mubr.msk.bf16.vlgmr.msra.gmra.mxu1 %vm316_vm1, %v13825_v13 }
 0x59c   : > { %5342 = vmatpush1.bf16.msra.mxu1 %v15207_v46  ;;  %5361 = vmatprep.mubr.bf16.mxu1 %v14087_v4 }
 0x59d   : > { %5343 = vmatprep.subr.bf16.mxu1 %v15214_v31 }
 0x59e   : > { %13142 = vmatpush3.bf16.msra.mxu0 %v13814_v39 }
 0x59f   : > { %11863 = vmatprep.subr.msk.bf16.mxu0 %vm323_vm0, %v15339_v14 }
 0x5a0   : > { %5344 = vmatpush1.bf16.msra.mxu1 %v15220_v45 }
 0x5a1   : > { %13144 = vmatmul.mubr.msk.bf16.vlgmr.msra.gmra.mxu0 %vm316_vm1, %v15246_v35  ;;  %v4507_v35 = vpop.f32.mrf.mxu1 }
 0x5a2   : > { %4835 = vmatpush1.bf16.msra.mxu0 %v15344_v25  ;;  %4854 = vmatprep.mubr.bf16.mxu0 %v14087_v4  ;;  %v13835_v35 = vld [vmem:[%s17072_s3 + $0x10] sm:$0xff]  }
 0x5a3   : > { %4836 = vmatprep.subr.bf16.mxu0 %v15349_v63  ;;  %v4508_v2 = vpop.f32.mrf.mxu1  ;;  %11914 = vmatmul.mubr.msk.bf16.vlgmr.msra.gmra.mxu1 %vm316_vm1, %v15410_v56 }
 0x5a4   : > { %v4567_v48 = vrot.slane %v4508_v2, 1  ;;  %5371 = vmatprep.mubr.bf16.mxu1 %v14087_v4  ;;  %v13836_v2 = vld [vmem:[%s17072_s3 + $0x8] sm:$0xff]  }
 0x5a5   : > { %v4510_v5 = vpop.f32.mrf.mxu1 }
 0x5a6   : > { %4837 = vmatpush1.bf16.msra.mxu0 %v15357_v21  ;;  %v4568_v54 = vsel %vm434_vm3, %v4565_v59, %v4567_v48  ;;  %v13837_v5 = vld [vmem:[%s17072_s3] sm:$0xff]   ;;  %v13840_v48 = vld [vmem:[%s17070_s1 + $0x68] ss:$0 sps:$4 sm:$0xff]  }
 0x5a7   : > { %13155 = vmatprep.subr.bf16.mxu0 %v14088_v40  ;;  %v4511_v47 = vpop.f32.mrf.mxu1  ;;  %v4572_v37 = vadd.f32 %v4568_v54, %v15297_v57  ;;  %13594 = vmatprep.subr.msk.bf16.mxu1 %vm323_vm0, %v13840_v48  ;;  %v15464_v54 = vld [vmem:[%s14179_s14 + $0x6c] sm:$0xff]  }
 0x5a8   : > { %v15451_v47 = vld [vmem:[%s17070_s1 + $0x44] ss:$0 sps:$4 sm:$0xff]  }
 0x5a9   : > { %11864 = vmatmul.mubr.msk.bf16.vlgmr.msra.gmra.mxu0 %vm316_vm1, %v15282_v61  ;;  %v13137_v17 = vpop.f32.mrf.mxu1 }
 0x5aa   : > { %4864 = vmatprep.mubr.bf16.mxu0 %v14087_v4  ;;  %v4579_v30 = vrot.slane %v13137_v17, 2  ;;  %13156 = vmatpush3.bf16.msra.mxu0 %v13828_v15  ;;  %v5508_v17 = vsel %vm323_vm0, %v13840_v48, 0 }
 0x5ab   : > { %v4547_v22 = vpop.f32.mrf.mxu1  ;;  %13157 = vmatprep.subr.bf16.mxu0 %v14088_v40  ;;  %11915 = vmatmul.mubr.msk.bf16.gmra.mxu1 %vm316_vm1, %v15428_v41 }
 0x5ac   : > { %v4576_v36 = vrot.slane %v4547_v22, 2  ;;  %13192 = vmatpush3.bf16.msra.mxu1 %v5508_v17  ;;  %v13841_v22 = vld [vmem:[%s17070_s1 + $0x50] ss:$12 sps:$4 sm:$0xff]   ;;  %13195 = vmatprep.mubr.msk.bf16.mxu1 %vm316_vm1, %v15464_v54 }
 0x5ad   : > { %v13138_v61 = vpop.f32.mrf.mxu1  ;;  %13193 = vmatprep.subr.bf16.mxu1 %v13841_v22 }
 0x5ae   : > { %13158 = vmatpush3.bf16.msra.mxu0 %v13829_v34  ;;  %v15467_v61 = vld [vmem:[%s14179_s14 + $0x74] ss:$0 sps:$4 sm:$0x11]  }
 0x5af   : > { %v4550_v62 = vpop.f32.mrf.mxu1  ;;  %13159 = vmatprep.subr.bf16.mxu0 %v14088_v40 }
 0x5b0   : > { %13194 = vmatpush3.bf16.msra.mxu1 %v13841_v22 }
 0x5b1   : > { %11865 = vmatmul.mubr.msk.bf16.gmra.mxu0 %vm316_vm1, %v15285_v1  ;;  %v4577_v1 = vrot.slane %v4550_v62, 2  ;;  %v4675_v16 = vpop.f32.mrf.mxu1  ;;  %11963 = vmatprep.subr.msk.bf16.mxu1 %vm323_vm0, %v15099_v43 }
 0x5b2   : > { %13171 = vmatprep.mubr.msk.bf16.mxu0 %vm14089_vm2, %v14088_v40  ;;  %13160 = vmatpush3.bf16.msra.mxu0 %v13831_v27 }
 0x5b3   : > { %v4578_v19 = vsel %vm447_vm4, %v4576_v36, %v4577_v1  ;;  %v4580_v23 = vsel %vm447_vm4, %v4577_v1, %v4579_v30  ;;  %v4677_v52 = vpop.f32.mrf.mxu1  ;;  %13161 = vmatprep.subr.bf16.mxu0 %v14088_v40  ;;  %13196 = vmatmul.mubr.msk.bf16.vlgmr.msra.gmra.mxu1 %vm316_vm1, %v15467_v61 }
 0x5b4   : > { %v4583_v10 = vadd.f32 %v4578_v19, %v15305_v32  ;;  %v4584_v12 = vadd.f32 %v4580_v23, %v4572_v37  ;;  %v4744_v7 = vrot.slane %v4677_v52, 1  ;;  %5852 = vmatpush1.bf16.msra.mxu1 %v15104_v42  ;;  %5871 = vmatprep.mubr.bf16.mxu1 %v14087_v4 }
 0x5b5   : > { %v4679_v60 = vpop.f32.mrf.mxu1  ;;  %5853 = vmatprep.subr.bf16.mxu1 %v15115_v44  ;;  %v15490_v44 = vld [vmem:[%s14179_s14 + $0x60] sm:$0xff]  }
 0x5b6   : > { %v4739_v55 = vadd.f32 %v4675_v16, %v4583_v10  ;;  %v4740_v59 = vadd.f32 %v4679_v60, %v4584_v12  ;;  %13162 = vmatpush3.bf16.msra.mxu0 %v13832_v24 }
 0x5b7   : > { %v4681_v28 = vpop.f32.mrf.mxu1  ;;  %13163 = vmatprep.subr.bf16.mxu0 %v14088_v40 }
 0x5b8   : > { %v4745_v29 = vrot.slane %v4681_v28, 1  ;;  %5854 = vmatpush1.bf16.msra.mxu1 %v15110_v50 }
 0x5b9   : > { %v4685_v8 = vpop.f32.mrf.mxu1 }
 0x5ba   : > { %v4746_v11 = vsel %vm434_vm3, %v4744_v7, %v4745_v29  ;;  %13164 = vmatpush3.bf16.msra.mxu0 %v13834_v53 }
 0x5bb   : > { %v4686_v3 = vpop.f32.mrf.mxu1  ;;  %v15379_v49 = vadd.f32 %v4746_v11, %v4739_v55  ;;  %13165 = vmatprep.subr.bf16.mxu0 %v14088_v40  ;;  %11964 = vmatmul.mubr.msk.bf16.vlgmr.msra.gmra.mxu1 %vm316_vm1, %v15490_v44 }
 0x5bc   : > { %v4747_v57 = vrot.slane %v4686_v3, 1  ;;  %5881 = vmatprep.mubr.bf16.mxu1 %v14087_v4 }
 0x5bd   : > { %v4688_v33 = vpop.f32.mrf.mxu1 }
 0x5be   : > { %v4748_v6 = vsel %vm434_vm3, %v4745_v29, %v4747_v57  ;;  %13166 = vmatpush3.bf16.msra.mxu0 %v13835_v35 }
 0x5bf   : > { %v4689_v9 = vpop.f32.mrf.mxu1  ;;  %v15381_v32 = vadd.f32 %v4748_v6, %v4740_v59  ;;  %13167 = vmatprep.subr.bf16.mxu0 %v14088_v40 }
 0x5c1   : > { %v15418_v38 = vpop.f32.mrf.mxu1 }
 0x5c2   : > { %13168 = vmatpush3.bf16.msra.mxu0 %v13836_v2  ;;  %v4940_v2 = vrot.slane %v15418_v38, 2 }
 0x5c3   : > { %v15421_v51 = vpop.f32.mrf.mxu1  ;;  %13169 = vmatprep.subr.bf16.mxu0 %v14088_v40 }
 0x5c4   : > { %v4937_v58 = vrot.slane %v15421_v51, 2  ;;  %v15510_v51 = vld [vmem:[%s17071_s2] ss:$0 sm:$0xff] }
 0x5c5   : > { %v13154_v39 = vpop.f32.mrf.mxu1 }
 0x5c6   : > { %13170 = vmatpush3.bf16.msra.mxu0 %v13837_v5 }
 0x5c7   : > { %13593 = vmatprep.subr.msk.bf16.mxu0 %vm323_vm0, %v15451_v47  ;;  %v4909_v30 = vpop.f32.mrf.mxu1 }
 0x5c8   : > { %v4938_v15 = vrot.slane %v4909_v30, 2 }
 0x5c9   : > { %v5185_v36 = vpop.f32.mrf.mxu1 }
 0x5cb   : > { %v5187_v62 = vpop.f32.mrf.mxu1 }
 0x5cc   : > { %v5252_v1 = vrot.slane %v5187_v62, 1  ;;  %v4941_v62 = vsel %vm447_vm4, %v4938_v15, %v4940_v2 }
 0x5cd   : > { %v15479_v43 = vpop.f32.mrf.mxu1 }
 0x5cf   : > { %v15481_v37 = vpop.f32.mrf.mxu1 }
 0x5d0   : > { %v5253_v16 = vrot.slane %v15481_v37, 1 }
 0x5d2   : > { %v5254_v42 = vsel %vm434_vm3, %v5252_v1, %v5253_v16 }
 0x5d3   : > { %v15487_v19 = vadd.f32 %v5254_v42, %v5185_v36 }
 0x659   : > { %v4397_v50 = vpop.f32.mrf.mxu0 }
 0x65a   : > { %v4398_v23 = vadd.f32 %v15128_v20, %v4397_v50 }
 0x65b   : > { %v13129_v10 = vpop.f32.mrf.mxu0 }
 0x65c   : > { %11806 = vst [vmem:[%s14569_s9 + $0x50] sm:$0xff] %v4398_v23 }
 0x65d   : > { %v4400_v52 = vpop.f32.mrf.mxu0 }
 0x65e   : > { %v4401_v12 = vadd.f32 %v15128_v20, %v4400_v52  ;;  %v5327_v52 = vsel %vm323_vm0, %v15451_v47, 0 }
 0x65f   : > { %v13130_v55 = vpop.f32.mrf.mxu0 }
 0x660   : > { %11807 = vst [vmem:[%s14569_s9 + $0x58] sm:$0xff] %v4401_v12  ;;  %v13839_v12 = vld [vmem:[%s17070_s1 + $0x2c] ss:$12 sps:$4 sm:$0xff]  }
 0x661   : > { %v13145_v60 = vpop.f32.mrf.mxu0 }
 0x662   : > { %v4759_v6 = vrot.slane %v13145_v60, 2 }
 0x663   : > { %v4725_v59 = vpop.f32.mrf.mxu0 }
 0x664   : > { %v4756_v7 = vrot.slane %v4725_v59, 2 }
 0x665   : > { %v13146_v28 = vpop.f32.mrf.mxu0 }
 0x667   : > { %v4728_v8 = vpop.f32.mrf.mxu0 }
 0x668   : > { %v4757_v29 = vrot.slane %v4728_v8, 2 }
 0x669   : > { %v4856_v3 = vpop.f32.mrf.mxu0 }
 0x66a   : > { %v4758_v57 = vsel %vm447_vm4, %v4756_v7, %v4757_v29  ;;  %v4760_v13 = vsel %vm447_vm4, %v4757_v29, %v4759_v6 }
 0x66b   : > { %v4858_v33 = vpop.f32.mrf.mxu0  ;;  %v4763_v11 = vadd.f32 %v4758_v57, %v15379_v49  ;;  %v4764_v27 = vadd.f32 %v4760_v13, %v15381_v32  ;;  %v4939_v49 = vsel %vm447_vm4, %v4937_v58, %v4938_v15 }
 0x66c   : > { %v4925_v20 = vrot.slane %v4858_v33, 1 }
 0x66d   : > { %v4860_v9 = vpop.f32.mrf.mxu0  ;;  %v4920_v34 = vadd.f32 %v4856_v3, %v4763_v11 }
 0x66e   : > { %v4921_v48 = vadd.f32 %v4860_v9, %v4764_v27 }
 0x66f   : > { %v4862_v0 = vpop.f32.mrf.mxu0 }
 0x670   : > { %v4926_v18 = vrot.slane %v4862_v0, 1 }
 0x671   : > { %v4866_v24 = vpop.f32.mrf.mxu0 }
 0x672   : > { %v4927_v39 = vsel %vm434_vm3, %v4925_v20, %v4926_v18 }
 0x673   : > { %v4932_v53 = vadd.f32 %v4927_v39, %v4920_v34  ;;  %v4867_v35 = vpop.f32.mrf.mxu0 }
 0x674   : > { %v4928_v5 = vrot.slane %v4867_v35, 1 }
 0x675   : > { %v4944_v17 = vadd.f32 %v4939_v49, %v4932_v53  ;;  %v4869_v22 = vpop.f32.mrf.mxu0  ;;  %v13845_v49 = vld [vmem:[%s14179_s14 + $0x68] ss:$0 sps:$4 sm:$0x11]  }
 0x676   : > { %v4929_v32 = vsel %vm434_vm3, %v4926_v18, %v4928_v5  ;;  %v13846_v5 = vld [vmem:[%s17070_s1 + $0x20] ss:$0 sps:$4 sm:$0xff]   ;;  %11965 = vmatmul.mubr.msk.bf16.gmra.mxu1 %vm316_vm1, %v13845_v49  ;;  %v13848_v22 = vld [vmem:[%s17072_s3 + $0x38] sm:$0xff]  }
 0x677   : > { %v4933_v30 = vadd.f32 %v4929_v32, %v4921_v48  ;;  %v4870_v36 = vpop.f32.mrf.mxu0  ;;  %v4975_v1 = vadd.f32 %v15510_v51, %v4944_v17  ;;  %13595 = vmatprep.subr.msk.bf16.mxu1 %vm323_vm0, %v13846_v5  ;;  %v5837_v48 = vsel %vm323_vm0, %v13846_v5, 0  ;;  %13223 = vmatprep.mubr.msk.bf16.mxu1 %vm316_vm1, %v15490_v44  ;;  %v13847_v17 = vld [vmem:[%s17070_s1 + $0x8] ss:$12 sps:$4 sm:$0xff]   ;;  %v15579_v44 = vld [vmem:[%s14179_s14 + $0x6c] sm:$0xff]  }
 0x678   : > { %13220 = vmatpush3.bf16.msra.mxu1 %v5837_v48  ;;  %v15597_v36 = vld [vmem:[%s14179_s14 + $0x74] ss:$0 sps:$4 sm:$0x11]  }
 0x679   : > { %v4945_v38 = vadd.f32 %v4941_v62, %v4933_v30  ;;  %v4977_v50 = vmax.f32 %v4975_v1, 0.0  ;;  %13221 = vmatprep.subr.bf16.mxu1 %v13847_v17  ;;  %v13854_v62 = vld [vmem:[%s17072_s3 + $0x18] sm:$0xff]   ;;  %v13855_v1 = vld [vmem:[%s17072_s3 + $0x10] sm:$0xff]  }
 0x67b   : > { %v4976_v42 = vadd.f32 %v15510_v51, %v4945_v38  ;;  %v13856_v38 = vld [vmem:[%s17072_s3 + $0x8] sm:$0xff]  }
 0x67c   : > { %13222 = vmatpush3.bf16.msra.mxu1 %v13847_v17 }
 0x67d   : > { %v4978_v23 = vmax.f32 %v4976_v42, 0.0  ;;  %11985 = vmatprep.subr.msk.bf16.mxu1 %vm323_vm0, %v15198_v26  ;;  %v13849_v26 = vld [vmem:[%s17072_s3 + $0x30] sm:$0xff]   ;;  %v13857_v42 = vld [vmem:[%s17072_s3] sm:$0xff]  }
 0x67f   : > { %v4979_v10 = vpack.c.bf16 %v4978_v23, %v4977_v50  ;;  %13224 = vmatmul.mubr.msk.bf16.vlgmr.msra.gmra.mxu1 %vm316_vm1, %v13845_v49  ;;  %v15620_v50 = vld [vmem:[%s17070_s1 + $0x44] ss:$0 sps:$4 sm:$0xff]   ;;  %v13860_v23 = vld [vmem:[%s17070_s1 + $0x68] ss:$0 sps:$4 sm:$0xff]  }
 0x680   : > { %6030 = vmatpush1.bf16.msra.mxu1 %v15207_v46  ;;  %6049 = vmatprep.mubr.bf16.mxu1 %v14087_v4  ;;  %v13851_v46 = vld [vmem:[%s17072_s3 + $0x28] sm:$0xff]  }
 0x681   : > { %13172 = vmatmul.mubr.bf16.vlgmr.msra.gmra.mxu0 %v4979_v10  ;;  %6031 = vmatprep.subr.bf16.mxu1 %v15214_v31  ;;  %v6196_v10 = vsel %vm323_vm0, %v13860_v23, 0 }
 0x682   : > { %13184 = vmatpush3.bf16.msra.mxu0 %v5327_v52  ;;  %13187 = vmatprep.mubr.msk.bf16.mxu0 %vm316_vm1, %v15410_v56  ;;  %v5195_v56 = vpop.f32.mrf.mxu1  ;;  %v13861_v52 = vld [vmem:[%s17070_s1 + $0x50] ss:$12 sps:$4 sm:$0xff]  }
 0x683   : > { %13185 = vmatprep.subr.bf16.mxu0 %v13839_v12  ;;  %v15636_v56 = vld [vmem:[%s14179_s14 + $0x80] ss:$0 sps:$4 sm:$0x11]  }
 0x684   : > { %6032 = vmatpush1.bf16.msra.mxu1 %v15220_v45  ;;  %v13852_v45 = vld [vmem:[%s17072_s3 + $0x20] sm:$0xff]  }
 0x685   : > { %13597 = vmatprep.subr.msk.bf16.mxu1 %vm323_vm0, %v13860_v23 }
 0x686   : > { %13186 = vmatpush3.bf16.msra.mxu0 %v13839_v12  ;;  %v15633_v12 = vld [vmem:[%s14179_s14 + $0x78] sm:$0xff]  }
 0x687   : > { %11935 = vmatprep.subr.msk.bf16.mxu0 %vm323_vm0, %v15339_v14  ;;  %11986 = vmatmul.mubr.msk.bf16.vlgmr.msra.gmra.mxu1 %vm316_vm1, %v15579_v44 }
 0x688   : > { %6059 = vmatprep.mubr.bf16.mxu1 %v14087_v4  ;;  %13236 = vmatpush3.bf16.msra.mxu1 %v6196_v10 }
 0x689   : > { %13188 = vmatmul.mubr.msk.bf16.vlgmr.msra.gmra.mxu0 %vm316_vm1, %v15428_v41  ;;  %v5196_v41 = vpop.f32.mrf.mxu1  ;;  %13237 = vmatprep.subr.bf16.mxu1 %v13861_v52 }
 0x68a   : > { %5523 = vmatpush1.bf16.msra.mxu0 %v15344_v25  ;;  %5542 = vmatprep.mubr.bf16.mxu0 %v14087_v4  ;;  %v5255_v60 = vrot.slane %v5196_v41, 1 }
 0x68b   : > { %5524 = vmatprep.subr.bf16.mxu0 %v15349_v63  ;;  %v5198_v47 = vpop.f32.mrf.mxu1 }
 0x68c   : > { %v5256_v8 = vsel %vm434_vm3, %v5253_v16, %v5255_v60  ;;  %13238 = vmatpush3.bf16.msra.mxu1 %v13861_v52 }
 0x68d   : > { %v5199_v55 = vpop.f32.mrf.mxu1  ;;  %v5260_v57 = vadd.f32 %v5256_v8, %v15479_v43 }
 0x68e   : > { %5525 = vmatpush1.bf16.msra.mxu0 %v15357_v21 }
 0x68f   : > { %13199 = vmatprep.subr.bf16.mxu0 %v14088_v40  ;;  %v13181_v59 = vpop.f32.mrf.mxu1  ;;  %11987 = vmatmul.mubr.msk.bf16.gmra.mxu1 %vm316_vm1, %v15597_v36 }
 0x690   : > { %v5267_v7 = vrot.slane %v13181_v59, 2  ;;  %13239 = vmatprep.mubr.msk.bf16.mxu1 %vm316_vm1, %v15633_v12 }
 0x691   : > { %11936 = vmatmul.mubr.msk.bf16.vlgmr.msra.gmra.mxu0 %vm316_vm1, %v15464_v54  ;;  %v5235_v28 = vpop.f32.mrf.mxu1 }
 0x692   : > { %5552 = vmatprep.mubr.bf16.mxu0 %v14087_v4  ;;  %v5264_v29 = vrot.slane %v5235_v28, 2  ;;  %13200 = vmatpush3.bf16.msra.mxu0 %v13848_v22 }
 0x693   : > { %v13182_v54 = vpop.f32.mrf.mxu1  ;;  %13201 = vmatprep.subr.bf16.mxu0 %v14088_v40 }
 0x695   : > { %v5238_v3 = vpop.f32.mrf.mxu1 }
 0x696   : > { %13202 = vmatpush3.bf16.msra.mxu0 %v13849_v26 }
 0x697   : > { %v5363_v33 = vpop.f32.mrf.mxu1  ;;  %13203 = vmatprep.subr.bf16.mxu0 %v14088_v40  ;;  %13240 = vmatmul.mubr.msk.bf16.vlgmr.msra.gmra.mxu1 %vm316_vm1, %v15636_v56 }
 0x698   : > { %6559 = vmatprep.mubr.bf16.mxu1 %v14087_v4 }
 0x699   : > { %11937 = vmatmul.mubr.msk.bf16.gmra.mxu0 %vm316_vm1, %v15467_v61  ;;  %v5265_v61 = vrot.slane %v5238_v3, 2  ;;  %v5365_v13 = vpop.f32.mrf.mxu1 }
 0x69a   : > { %13215 = vmatprep.mubr.msk.bf16.mxu0 %vm14089_vm2, %v14088_v40  ;;  %v5432_v15 = vrot.slane %v5365_v13, 1  ;;  %13204 = vmatpush3.bf16.msra.mxu0 %v13851_v46 }
 0x69b   : > { %v5266_v6 = vsel %vm447_vm4, %v5264_v29, %v5265_v61  ;;  %v5268_v11 = vsel %vm447_vm4, %v5265_v61, %v5267_v7  ;;  %v5367_v20 = vpop.f32.mrf.mxu1  ;;  %13205 = vmatprep.subr.bf16.mxu0 %v14088_v40  ;;  %v6478_v29 = vld [vmem:[%s17070_s1 + $0x18] sm:$0xff] }
 0x69c   : > { %v5271_v9 = vadd.f32 %v5266_v6, %v15487_v19  ;;  %v5272_v0 = vadd.f32 %v5268_v11, %v5260_v57  ;;  %v15658_v3 = vcombine.high %v6478_v29, %v6478_v29  ;;  %v12032_v57 = vcombine.low %v6478_v29, %v6478_v29  ;;  %v15674_v6 = vld [vmem:[%s17070_s1 + $0x4] ss:$12 sps:$4 sm:$0xff]  }
 0x69d   : > { %v5369_v58 = vpop.f32.mrf.mxu1  ;;  %v15678_v11 = vld [vmem:[%s14179_s14 + $0x6c] sm:$0xff]  }
 0x69e   : > { %v5427_v37 = vadd.f32 %v5363_v33, %v5271_v9  ;;  %v5428_v16 = vadd.f32 %v5367_v20, %v5272_v0  ;;  %v5433_v34 = vrot.slane %v5369_v58, 1  ;;  %13206 = vmatpush3.bf16.msra.mxu0 %v13852_v45  ;;  %12035 = vmatprep.subr.msk.bf16.mxu1 %vm323_vm0, %v15658_v3  ;;  %v15663_v61 = vsel %vm323_vm0, %v12032_v57, 0  ;;  %v15669_v33 = vld [vmem:[%s17070_s1] ss:$12 sps:$4 sm:$0xff]  }
 0x69f   : > { %v5373_v18 = vpop.f32.mrf.mxu1  ;;  %13207 = vmatprep.subr.bf16.mxu0 %v14088_v40  ;;  %6540 = vmatpush1.bf16.msra.mxu1 %v15663_v61  ;;  %v15687_v9 = vld [vmem:[%s17073_s4] ss:$0 sm:$0xff] }
 0x6a0   : > { %v5434_v53 = vsel %vm434_vm3, %v5432_v15, %v5433_v34  ;;  %6541 = vmatprep.subr.bf16.mxu1 %v15674_v6 }
 0x6a1   : > { %v5374_v27 = vpop.f32.mrf.mxu1  ;;  %v15548_v2 = vadd.f32 %v5434_v53, %v5427_v37 }
 0x6a2   : > { %v5435_v43 = vrot.slane %v5374_v27, 1  ;;  %13208 = vmatpush3.bf16.msra.mxu0 %v13854_v62 }
 0x6a3   : > { %v5376_v24 = vpop.f32.mrf.mxu1  ;;  %13209 = vmatprep.subr.bf16.mxu0 %v14088_v40  ;;  %6542 = vmatpush1.bf16.msra.mxu1 %v15669_v33 }
 0x6a4   : > { %v5436_v39 = vsel %vm434_vm3, %v5433_v34, %v5435_v43 }
 0x6a5   : > { %v5377_v35 = vpop.f32.mrf.mxu1  ;;  %v15550_v19 = vadd.f32 %v5436_v39, %v5428_v16 }
 0x6a6   : > { %13210 = vmatpush3.bf16.msra.mxu0 %v13855_v1  ;;  %12036 = vmatmul.mubr.msk.bf16.vlgmr.msra.gmra.mxu1 %vm316_vm1, %v15678_v11 }
 0x6a7   : > { %v15587_v31 = vpop.f32.mrf.mxu1  ;;  %13211 = vmatprep.subr.bf16.mxu0 %v14088_v40  ;;  %6569 = vmatprep.mubr.bf16.mxu1 %v14087_v4 }
 0x6a9   : > { %v15590_v32 = vpop.f32.mrf.mxu1 }
 0x6aa   : > { %13212 = vmatpush3.bf16.msra.mxu0 %v13856_v38  ;;  %v5625_v46 = vrot.slane %v15590_v32, 2 }
 0x6ab   : > { %v13198_v30 = vpop.f32.mrf.mxu1  ;;  %13213 = vmatprep.subr.bf16.mxu0 %v14088_v40 }
 0x6ad   : > { %v15643_v41 = vpop.f32.mrf.mxu1 }
 0x6ae   : > { %13214 = vmatpush3.bf16.msra.mxu0 %v13857_v42  ;;  %v5626_v30 = vrot.slane %v15643_v41, 2 }
 0x6af   : > { %13596 = vmatprep.subr.msk.bf16.mxu0 %vm323_vm0, %v15620_v50  ;;  %v5873_v47 = vpop.f32.mrf.mxu1 }
 0x6b0   : > { %v5627_v52 = vsel %vm447_vm4, %v5625_v46, %v5626_v30 }
 0x6b1   : > { %v5875_v55 = vpop.f32.mrf.mxu1 }
 0x6b2   : > { %v5940_v28 = vrot.slane %v5875_v55, 1 }
 0x6b3   : > { %v15645_v60 = vpop.f32.mrf.mxu1 }
 0x6b5   : > { %v15647_v59 = vpop.f32.mrf.mxu1 }
 0x6b6   : > { %v5941_v8 = vrot.slane %v15647_v59, 1 }
 0x6b8   : > { %v5942_v54 = vsel %vm434_vm3, %v5940_v28, %v5941_v8 }
 0x6b9   : > { %v15653_v7 = vadd.f32 %v5942_v54, %v5873_v47 }
 0x741   : > { %v5085_v13 = vpop.f32.mrf.mxu0 }
 0x742   : > { %v5086_v0 = vadd.f32 %v15687_v9, %v5085_v13 }
 0x743   : > { %v13173_v37 = vpop.f32.mrf.mxu0 }
 0x744   : > { %11878 = vst [vmem:[%s14569_s9 + $0x60] sm:$0xff] %v5086_v0 }
 0x745   : > { %v5088_v20 = vpop.f32.mrf.mxu0 }
 0x746   : > { %v5089_v16 = vadd.f32 %v15687_v9, %v5088_v20 }
 0x747   : > { %v13174_v58 = vpop.f32.mrf.mxu0 }
 0x748   : > { %11879 = vst [vmem:[%s14569_s9 + $0x68] sm:$0xff] %v5089_v16  ;;  %v6015_v16 = vsel %vm323_vm0, %v15620_v50, 0  ;;  %v13859_v58 = vld [vmem:[%s17070_s1 + $0x2c] ss:$12 sps:$4 sm:$0xff]  }
 0x749   : > { %v13189_v18 = vpop.f32.mrf.mxu0 }
 0x74a   : > { %v5447_v49 = vrot.slane %v13189_v18, 2 }
 0x74b   : > { %v5413_v15 = vpop.f32.mrf.mxu0 }
 0x74c   : > { %v5444_v43 = vrot.slane %v5413_v15, 2 }
 0x74d   : > { %v13190_v34 = vpop.f32.mrf.mxu0 }
 0x74f   : > { %v5416_v27 = vpop.f32.mrf.mxu0 }
 0x750   : > { %v5445_v24 = vrot.slane %v5416_v27, 2 }
 0x751   : > { %v5544_v39 = vpop.f32.mrf.mxu0 }
 0x752   : > { %v5446_v53 = vsel %vm447_vm4, %v5444_v43, %v5445_v24  ;;  %v5448_v17 = vsel %vm447_vm4, %v5445_v24, %v5447_v49 }
 0x753   : > { %v5546_v35 = vpop.f32.mrf.mxu0  ;;  %v5451_v5 = vadd.f32 %v5446_v53, %v15548_v2  ;;  %v5452_v1 = vadd.f32 %v5448_v17, %v15550_v19  ;;  %v5628_v2 = vrot.slane %v15587_v31, 2 }
 0x754   : > { %v5613_v26 = vrot.slane %v5546_v35, 1 }
 0x755   : > { %v5548_v48 = vpop.f32.mrf.mxu0  ;;  %v5608_v62 = vadd.f32 %v5544_v39, %v5451_v5  ;;  %v5629_v57 = vsel %vm447_vm4, %v5626_v30, %v5628_v2 }
 0x756   : > { %v5609_v55 = vadd.f32 %v5548_v48, %v5452_v1 }
 0x757   : > { %v5550_v22 = vpop.f32.mrf.mxu0 }
 0x758   : > { %v5614_v45 = vrot.slane %v5550_v22, 1 }
 0x759   : > { %v5554_v38 = vpop.f32.mrf.mxu0 }
 0x75a   : > { %v5615_v42 = vsel %vm434_vm3, %v5613_v26, %v5614_v45 }
 0x75b   : > { %v5620_v23 = vadd.f32 %v5615_v42, %v5608_v62  ;;  %v5555_v10 = vpop.f32.mrf.mxu0 }
 0x75c   : > { %v5616_v47 = vrot.slane %v5555_v10, 1  ;;  %v13871_v10 = vld [vmem:[%s17070_s1 + $0x20] ss:$0 sps:$4 sm:$0xff]  }
 0x75d   : > { %v5632_v28 = vadd.f32 %v5627_v52, %v5620_v23  ;;  %v5557_v54 = vpop.f32.mrf.mxu0  ;;  %v13870_v23 = vld [vmem:[%s14179_s14 + $0x74] ss:$0 sps:$4 sm:$0x11]   ;;  %13598 = vmatprep.subr.msk.bf16.mxu1 %vm323_vm0, %v13871_v10  ;;  %v6525_v2 = vsel %vm323_vm0, %v13871_v10, 0 }
 0x75e   : > { %v5617_v32 = vsel %vm434_vm3, %v5614_v45, %v5616_v47  ;;  %12037 = vmatmul.mubr.msk.bf16.gmra.mxu1 %vm316_vm1, %v13870_v23  ;;  %v13872_v52 = vld [vmem:[%s17070_s1 + $0x8] ss:$12 sps:$4 sm:$0xff]   ;;  %v12047_v47 = vld [vmem:[%s17070_s1 + $0x3c] sm:$0xff] }
 0x75f   : > { %v5621_v29 = vadd.f32 %v5617_v32, %v5609_v55  ;;  %v5558_v41 = vpop.f32.mrf.mxu0  ;;  %v5663_v19 = vadd.f32 %v15510_v51, %v5632_v28  ;;  %13264 = vmatpush3.bf16.msra.mxu1 %v6525_v2  ;;  %13267 = vmatprep.mubr.msk.bf16.mxu1 %vm316_vm1, %v15678_v11  ;;  %v15757_v55 = vcombine.high %v12047_v47, %v12047_v47  ;;  %v13874_v11 = vld [vmem:[%s17072_s3 + $0x38] sm:$0xff]   ;;  %v15773_v32 = vld [vmem:[%s17070_s1 + $0x28] ss:$12 sps:$4 sm:$0xff]  }
 0x760   : > { %13265 = vmatprep.subr.bf16.mxu1 %v13872_v52  ;;  %v12054_v28 = vcombine.low %v12047_v47, %v12047_v47  ;;  %v13879_v41 = vld [vmem:[%s17072_s3 + $0x30] sm:$0xff]  }
 0x761   : > { %v5633_v13 = vadd.f32 %v5629_v57, %v5621_v29  ;;  %v5665_v37 = vmax.f32 %v5663_v19, 0.0  ;;  %v15779_v29 = vld [vmem:[%s17070_s1 + $0x24] ss:$12 sps:$4 sm:$0xff]   ;;  %v15787_v57 = vld [vmem:[%s14179_s14 + $0x78] sm:$0xff]   ;;  %v13881_v19 = vld [vmem:[%s17072_s3 + $0x28] sm:$0xff]  }
 0x762   : > { %v15766_v54 = vsel %vm323_vm0, %v12054_v28, 0 }
 0x763   : > { %v5664_v0 = vadd.f32 %v15510_v51, %v5633_v13  ;;  %13266 = vmatpush3.bf16.msra.mxu1 %v13872_v52 }
 0x764   : > { %12057 = vmatprep.subr.msk.bf16.mxu1 %vm323_vm0, %v15757_v55 }
 0x765   : > { %v5666_v20 = vmax.f32 %v5664_v0, 0.0 }
 0x766   : > { %13268 = vmatmul.mubr.msk.bf16.vlgmr.msra.gmra.mxu1 %vm316_vm1, %v13870_v23 }
 0x767   : > { %v5667_v31 = vpack.c.bf16 %v5666_v20, %v5665_v37  ;;  %6718 = vmatpush1.bf16.msra.mxu1 %v15766_v54  ;;  %6737 = vmatprep.mubr.bf16.mxu1 %v14087_v4  ;;  %v13882_v37 = vld [vmem:[%s17072_s3 + $0x20] sm:$0xff]  }
 0x768   : > { %6719 = vmatprep.subr.bf16.mxu1 %v15773_v32 }
 0x769   : > { %13216 = vmatmul.mubr.bf16.vlgmr.msra.gmra.mxu0 %v5667_v31  ;;  %v15805_v31 = vld [vmem:[%s14179_s14 + $0x80] ss:$0 sps:$4 sm:$0x11]  }
 0x76a   : > { %13228 = vmatpush3.bf16.msra.mxu0 %v6015_v16  ;;  %13231 = vmatprep.mubr.msk.bf16.mxu0 %vm316_vm1, %v15579_v44  ;;  %v5883_v44 = vpop.f32.mrf.mxu1  ;;  %v13884_v16 = vld [vmem:[%s17072_s3 + $0x18] sm:$0xff]  }
 0x76b   : > { %13229 = vmatprep.subr.bf16.mxu0 %v13859_v58  ;;  %6720 = vmatpush1.bf16.msra.mxu1 %v15779_v29  ;;  %v13886_v44 = vld [vmem:[%s17072_s3 + $0x8] sm:$0xff]  }
 0x76e   : > { %13230 = vmatpush3.bf16.msra.mxu0 %v13859_v58  ;;  %12058 = vmatmul.mubr.msk.bf16.vlgmr.msra.gmra.mxu1 %vm316_vm1, %v15787_v57  ;;  %v13885_v58 = vld [vmem:[%s17072_s3 + $0x10] sm:$0xff]  }
 0x76f   : > { %12007 = vmatprep.subr.msk.bf16.mxu0 %vm323_vm0, %v15339_v14  ;;  %v5884_v14 = vpop.f32.mrf.mxu1  ;;  %6747 = vmatprep.mubr.bf16.mxu1 %v14087_v4 }
 0x771   : > { %13232 = vmatmul.mubr.msk.bf16.vlgmr.msra.gmra.mxu0 %vm316_vm1, %v15597_v36 }
 0x772   : > { %6211 = vmatpush1.bf16.msra.mxu0 %v15344_v25  ;;  %6230 = vmatprep.mubr.bf16.mxu0 %v14087_v4  ;;  %v5886_v25 = vpop.f32.mrf.mxu1 }
 0x773   : > { %6212 = vmatprep.subr.bf16.mxu0 %v15349_v63  ;;  %v5943_v63 = vrot.slane %v5884_v14, 1  ;;  %v13887_v14 = vld [vmem:[%s17072_s3] sm:$0xff]  }
 0x774   : > { %v5887_v36 = vpop.f32.mrf.mxu1  ;;  %v15828_v25 = vld [vmem:[%s17070_s1 + $0x44] ss:$0 sps:$4 sm:$0xff]  }
 0x775   : > { %v5944_v18 = vsel %vm434_vm3, %v5941_v8, %v5943_v63  ;;  %v13890_v36 = vld [vmem:[%s17070_s1 + $0x68] ss:$0 sps:$4 sm:$0xff]  }
 0x776   : > { %6213 = vmatpush1.bf16.msra.mxu0 %v15357_v21  ;;  %v13225_v50 = vpop.f32.mrf.mxu1  ;;  %v5948_v43 = vadd.f32 %v5944_v18, %v15645_v60  ;;  %12059 = vmatmul.mubr.msk.bf16.gmra.mxu1 %vm316_vm1, %v15805_v31  ;;  %v6884_v63 = vsel %vm323_vm0, %v13890_v36, 0  ;;  %v15844_v18 = vld [vmem:[%s14179_s14 + $0x8c] ss:$0 sps:$4 sm:$0x11]  }
 0x777   : > { %13243 = vmatprep.subr.bf16.mxu0 %v14088_v40  ;;  %v5955_v15 = vrot.slane %v13225_v50, 2  ;;  %13600 = vmatprep.subr.msk.bf16.mxu1 %vm323_vm0, %v13890_v36  ;;  %v13896_v50 = vld [vmem:[%s17070_s1 + $0x50] ss:$12 sps:$4 sm:$0xff]  }
 0x778   : > { %v5923_v21 = vpop.f32.mrf.mxu1  ;;  %13280 = vmatpush3.bf16.msra.mxu1 %v6884_v63 }
 0x779   : > { %12008 = vmatmul.mubr.msk.bf16.vlgmr.msra.gmra.mxu0 %vm316_vm1, %v15633_v12  ;;  %v5952_v34 = vrot.slane %v5923_v21, 2  ;;  %13281 = vmatprep.subr.bf16.mxu1 %v13896_v50  ;;  %v15841_v21 = vld [vmem:[%s14179_s14 + $0x84] sm:$0xff]  }
 0x77a   : > { %6240 = vmatprep.mubr.bf16.mxu0 %v14087_v4  ;;  %v13226_v12 = vpop.f32.mrf.mxu1  ;;  %13244 = vmatpush3.bf16.msra.mxu0 %v13874_v11 }
 0x77b   : > { %13245 = vmatprep.subr.bf16.mxu0 %v14088_v40  ;;  %13283 = vmatprep.mubr.msk.bf16.mxu1 %vm316_vm1, %v15841_v21 }
 0x77c   : > { %v5926_v27 = vpop.f32.mrf.mxu1  ;;  %13282 = vmatpush3.bf16.msra.mxu1 %v13896_v50 }
 0x77d   : > { %12107 = vmatprep.subr.msk.bf16.mxu1 %vm323_vm0, %v15658_v3 }
 0x77e   : > { %v6051_v24 = vpop.f32.mrf.mxu1  ;;  %13246 = vmatpush3.bf16.msra.mxu0 %v13879_v41 }
 0x77f   : > { %13247 = vmatprep.subr.bf16.mxu0 %v14088_v40  ;;  %13284 = vmatmul.mubr.msk.bf16.vlgmr.msra.gmra.mxu1 %vm316_vm1, %v15844_v18 }
 0x780   : > { %v6053_v49 = vpop.f32.mrf.mxu1  ;;  %7228 = vmatpush1.bf16.msra.mxu1 %v15663_v61  ;;  %7247 = vmatprep.mubr.bf16.mxu1 %v14087_v4 }
 0x781   : > { %12009 = vmatmul.mubr.msk.bf16.gmra.mxu0 %vm316_vm1, %v15636_v56  ;;  %v5953_v56 = vrot.slane %v5926_v27, 2  ;;  %v6120_v26 = vrot.slane %v6053_v49, 1  ;;  %7229 = vmatprep.subr.bf16.mxu1 %v15674_v6 }
 0x782   : > { %13259 = vmatprep.mubr.msk.bf16.mxu0 %vm14089_vm2, %v14088_v40  ;;  %v6055_v48 = vpop.f32.mrf.mxu1  ;;  %13248 = vmatpush3.bf16.msra.mxu0 %v13881_v19 }
 0x783   : > { %v5954_v39 = vsel %vm447_vm4, %v5952_v34, %v5953_v56  ;;  %v5956_v53 = vsel %vm447_vm4, %v5953_v56, %v5955_v15  ;;  %13249 = vmatprep.subr.bf16.mxu0 %v14088_v40 }
 0x784   : > { %v5959_v35 = vadd.f32 %v5954_v39, %v15653_v7  ;;  %v5960_v5 = vadd.f32 %v5956_v53, %v5948_v43  ;;  %v6057_v17 = vpop.f32.mrf.mxu1  ;;  %7230 = vmatpush1.bf16.msra.mxu1 %v15669_v33 }
 0x785   : > { %v6121_v46 = vrot.slane %v6057_v17, 1 }
 0x786   : > { %v6115_v59 = vadd.f32 %v6051_v24, %v5959_v35  ;;  %v6116_v8 = vadd.f32 %v6055_v48, %v5960_v5  ;;  %v6061_v22 = vpop.f32.mrf.mxu1  ;;  %13250 = vmatpush3.bf16.msra.mxu0 %v13882_v37  ;;  %v15867_v35 = vld [vmem:[%s14179_s14 + $0x78] sm:$0xff]  }
 0x787   : > { %v6122_v1 = vsel %vm434_vm3, %v6120_v26, %v6121_v46  ;;  %13251 = vmatprep.subr.bf16.mxu0 %v14088_v40  ;;  %12108 = vmatmul.mubr.msk.bf16.vlgmr.msra.gmra.mxu1 %vm316_vm1, %v15867_v35 }
 0x788   : > { %v6062_v45 = vpop.f32.mrf.mxu1  ;;  %v15738_v42 = vadd.f32 %v6122_v1, %v6115_v59  ;;  %7257 = vmatprep.mubr.bf16.mxu1 %v14087_v4 }
 0x789   : > { %v6123_v60 = vrot.slane %v6062_v45, 1 }
 0x78a   : > { %v6064_v30 = vpop.f32.mrf.mxu1  ;;  %13252 = vmatpush3.bf16.msra.mxu0 %v13884_v16 }
 0x78b   : > { %v6124_v62 = vsel %vm434_vm3, %v6121_v46, %v6123_v60  ;;  %13253 = vmatprep.subr.bf16.mxu0 %v14088_v40 }
 0x78c   : > { %v6065_v38 = vpop.f32.mrf.mxu1  ;;  %v15740_v7 = vadd.f32 %v6124_v62, %v6116_v8 }
 0x78e   : > { %v15795_v13 = vpop.f32.mrf.mxu1  ;;  %13254 = vmatpush3.bf16.msra.mxu0 %v13885_v58 }
 0x78f   : > { %13255 = vmatprep.subr.bf16.mxu0 %v14088_v40  ;;  %v6316_v36 = vrot.slane %v15795_v13, 2 }
 0x790   : > { %v15798_v0 = vpop.f32.mrf.mxu1 }
 0x791   : > { %v6313_v11 = vrot.slane %v15798_v0, 2 }
 0x792   : > { %v13242_v20 = vpop.f32.mrf.mxu1  ;;  %13256 = vmatpush3.bf16.msra.mxu0 %v13886_v44 }
 0x793   : > { %13257 = vmatprep.subr.bf16.mxu0 %v14088_v40 }
 0x794   : > { %v6285_v12 = vpop.f32.mrf.mxu1 }
 0x795   : > { %v6314_v19 = vrot.slane %v6285_v12, 2 }
 0x796   : > { %13258 = vmatpush3.bf16.msra.mxu0 %v13887_v14  ;;  %v6561_v15 = vpop.f32.mrf.mxu1 }
 0x797   : > { %13599 = vmatprep.subr.msk.bf16.mxu0 %vm323_vm0, %v15828_v25 }
 0x798   : > { %v6563_v34 = vpop.f32.mrf.mxu1 }
 0x799   : > { %v6628_v56 = vrot.slane %v6563_v34, 1 }
 0x79a   : > { %v15856_v27 = vpop.f32.mrf.mxu1 }
 0x79c   : > { %v15858_v43 = vpop.f32.mrf.mxu1 }
 0x79d   : > { %v6629_v24 = vrot.slane %v15858_v43, 1 }
 0x79f   : > { %v6630_v39 = vsel %vm434_vm3, %v6628_v56, %v6629_v24 }
 0x7a0   : > { %v15864_v53 = vadd.f32 %v6630_v39, %v6561_v15  ;;  %v6317_v39 = vsel %vm447_vm4, %v6314_v19, %v6316_v36 }
 0x829   : > { %v5773_v49 = vpop.f32.mrf.mxu0 }
 0x82a   : > { %v5774_v5 = vadd.f32 %v15687_v9, %v5773_v49 }
 0x82b   : > { %v13217_v59 = vpop.f32.mrf.mxu0 }
 0x82c   : > { %11950 = vst [vmem:[%s14569_s9 + $0x70] sm:$0xff] %v5774_v5 }
 0x82d   : > { %v5776_v48 = vpop.f32.mrf.mxu0 }
 0x82e   : > { %v5777_v8 = vadd.f32 %v15687_v9, %v5776_v48 }
 0x82f   : > { %v13218_v17 = vpop.f32.mrf.mxu0 }
 0x830   : > { %11951 = vst [vmem:[%s14569_s9 + $0x78] sm:$0xff] %v5777_v8  ;;  %v6703_v8 = vsel %vm323_vm0, %v15828_v25, 0  ;;  %v13889_v17 = vld [vmem:[%s17070_s1 + $0x2c] ss:$12 sps:$4 sm:$0xff]  }
 0x831   : > { %v13233_v22 = vpop.f32.mrf.mxu0 }
 0x832   : > { %v6135_v23 = vrot.slane %v13233_v22, 2  ;;  %v12069_v22 = vld [vmem:[%s17070_s1 + $0x60] sm:$0xff] }
 0x833   : > { %v6101_v26 = vpop.f32.mrf.mxu0 }
 0x834   : > { %v6132_v60 = vrot.slane %v6101_v26, 2  ;;  %v12076_v26 = vcombine.low %v12069_v22, %v12069_v22 }
 0x835   : > { %v13234_v46 = vpop.f32.mrf.mxu0 }
 0x836   : > { %v15903_v25 = vsel %vm323_vm0, %v12076_v26, 0  ;;  %v15908_v46 = vld [vmem:[%s17070_s1 + $0x4c] ss:$12 sps:$4 sm:$0xff]  }
 0x837   : > { %v6104_v45 = vpop.f32.mrf.mxu0  ;;  %v13909_v26 = vld [vmem:[%s17072_s3 + $0x18] sm:$0xff]  }
 0x838   : > { %v6133_v30 = vrot.slane %v6104_v45, 2 }
 0x839   : > { %v6232_v62 = vpop.f32.mrf.mxu0 }
 0x83a   : > { %v6134_v1 = vsel %vm447_vm4, %v6132_v60, %v6133_v30  ;;  %v6136_v52 = vsel %vm447_vm4, %v6133_v30, %v6135_v23 }
 0x83b   : > { %v6234_v38 = vpop.f32.mrf.mxu0  ;;  %v6139_v10 = vadd.f32 %v6134_v1, %v15738_v42  ;;  %v6140_v20 = vadd.f32 %v6136_v52, %v15740_v7  ;;  %v6315_v42 = vsel %vm447_vm4, %v6313_v11, %v6314_v19 }
 0x83c   : > { %v6301_v28 = vrot.slane %v6234_v38, 1 }
 0x83d   : > { %v6236_v2 = vpop.f32.mrf.mxu0  ;;  %v6296_v37 = vadd.f32 %v6232_v62, %v6139_v10 }
 0x83e   : > { %v6297_v50 = vadd.f32 %v6236_v2, %v6140_v20 }
 0x83f   : > { %v6238_v47 = vpop.f32.mrf.mxu0 }
 0x840   : > { %v6302_v41 = vrot.slane %v6238_v47, 1 }
 0x841   : > { %v6242_v16 = vpop.f32.mrf.mxu0 }
 0x842   : > { %v6303_v58 = vsel %vm434_vm3, %v6301_v28, %v6302_v41 }
 0x843   : > { %v6308_v44 = vadd.f32 %v6303_v58, %v6296_v37  ;;  %v6243_v14 = vpop.f32.mrf.mxu0 }
 0x844   : > { %v6304_v63 = vrot.slane %v6243_v14, 1 }
 0x845   : > { %v6320_v15 = vadd.f32 %v6315_v42, %v6308_v44  ;;  %v6245_v34 = vpop.f32.mrf.mxu0 }
 0x846   : > { %v6305_v0 = vsel %vm434_vm3, %v6302_v41, %v6304_v63 }
 0x847   : > { %v6309_v56 = vadd.f32 %v6305_v0, %v6297_v50  ;;  %v6246_v12 = vpop.f32.mrf.mxu0  ;;  %v6351_v7 = vadd.f32 %v15510_v51, %v6320_v15 }
 0x848   : > { %v13901_v12 = vld [vmem:[%s17070_s1 + $0x20] ss:$0 sps:$4 sm:$0xff]  }
 0x849   : > { %v6321_v49 = vadd.f32 %v6317_v39, %v6309_v56  ;;  %v6353_v59 = vmax.f32 %v6351_v7, 0.0  ;;  %v13900_v56 = vld [vmem:[%s14179_s14 + $0x80] ss:$0 sps:$4 sm:$0x11]   ;;  %13601 = vmatprep.subr.msk.bf16.mxu1 %vm323_vm0, %v13901_v12  ;;  %v7213_v39 = vsel %vm323_vm0, %v13901_v12, 0 }
 0x84a   : > { %12109 = vmatmul.mubr.msk.bf16.gmra.mxu1 %vm316_vm1, %v13900_v56  ;;  %v13902_v7 = vld [vmem:[%s17070_s1 + $0x8] ss:$12 sps:$4 sm:$0xff]  }
 0x84b   : > { %v6352_v5 = vadd.f32 %v15510_v51, %v6321_v49  ;;  %v15898_v51 = vcombine.high %v12069_v22, %v12069_v22  ;;  %13308 = vmatpush3.bf16.msra.mxu1 %v7213_v39  ;;  %13311 = vmatprep.mubr.msk.bf16.mxu1 %vm316_vm1, %v15867_v35  ;;  %v13903_v49 = vld [vmem:[%s17072_s3 + $0x38] sm:$0xff]   ;;  %v13904_v35 = vld [vmem:[%s17072_s3 + $0x30] sm:$0xff]   ;;  %v15987_v22 = vld [vmem:[%s14179_s14 + $0x8c] ss:$0 sps:$4 sm:$0x11]  }
 0x84c   : > { %13309 = vmatprep.subr.bf16.mxu1 %v13902_v7 }
 0x84d   : > { %v6354_v48 = vmax.f32 %v6352_v5, 0.0  ;;  %v15969_v5 = vld [vmem:[%s14179_s14 + $0x84] sm:$0xff]  }
 0x84f   : > { %v6355_v13 = vpack.c.bf16 %v6354_v48, %v6353_v59  ;;  %13310 = vmatpush3.bf16.msra.mxu1 %v13902_v7  ;;  %v13906_v59 = vld [vmem:[%s17072_s3 + $0x28] sm:$0xff]  }
 0x850   : > { %12129 = vmatprep.subr.msk.bf16.mxu1 %vm323_vm0, %v15757_v55 }
 0x851   : > { %13260 = vmatmul.mubr.bf16.vlgmr.msra.gmra.mxu0 %v6355_v13 }
 0x852   : > { %13272 = vmatpush3.bf16.msra.mxu0 %v6703_v8  ;;  %13275 = vmatprep.mubr.msk.bf16.mxu0 %vm316_vm1, %v15787_v57  ;;  %v15916_v57 = vld [vmem:[%s17070_s1 + $0x48] ss:$12 sps:$4 sm:$0xff]   ;;  %v13907_v8 = vld [vmem:[%s17072_s3 + $0x20] sm:$0xff]  }
 0x853   : > { %13273 = vmatprep.subr.bf16.mxu0 %v13889_v17  ;;  %13312 = vmatmul.mubr.msk.bf16.vlgmr.msra.gmra.mxu1 %vm316_vm1, %v13900_v56 }
 0x854   : > { %7406 = vmatpush1.bf16.msra.mxu1 %v15766_v54  ;;  %7425 = vmatprep.mubr.bf16.mxu1 %v14087_v4 }
 0x855   : > { %7407 = vmatprep.subr.bf16.mxu1 %v15773_v32 }
 0x856   : > { %13274 = vmatpush3.bf16.msra.mxu0 %v13889_v17 }
 0x857   : > { %12079 = vmatprep.subr.msk.bf16.mxu0 %vm323_vm0, %v15898_v51 }
 0x858   : > { %7408 = vmatpush1.bf16.msra.mxu1 %v15779_v29 }
 0x859   : > { %13276 = vmatmul.mubr.msk.bf16.vlgmr.msra.gmra.mxu0 %vm316_vm1, %v15805_v31  ;;  %v6571_v31 = vpop.f32.mrf.mxu1 }
 0x85a   : > { %6899 = vmatpush1.bf16.msra.mxu0 %v15903_v25  ;;  %6918 = vmatprep.mubr.bf16.mxu0 %v14087_v4  ;;  %v13910_v31 = vld [vmem:[%s17072_s3 + $0x10] sm:$0xff]  }
 0x85b   : > { %6900 = vmatprep.subr.bf16.mxu0 %v15908_v46  ;;  %v6572_v45 = vpop.f32.mrf.mxu1  ;;  %12130 = vmatmul.mubr.msk.bf16.vlgmr.msra.gmra.mxu1 %vm316_vm1, %v15969_v5 }
 0x85c   : > { %v6631_v62 = vrot.slane %v6572_v45, 1  ;;  %7435 = vmatprep.mubr.bf16.mxu1 %v14087_v4  ;;  %v13911_v45 = vld [vmem:[%s17072_s3 + $0x8] sm:$0xff]  }
 0x85d   : > { %v6574_v60 = vpop.f32.mrf.mxu1 }
 0x85e   : > { %6901 = vmatpush1.bf16.msra.mxu0 %v15916_v57  ;;  %v6632_v23 = vsel %vm434_vm3, %v6629_v24, %v6631_v62  ;;  %v13912_v60 = vld [vmem:[%s17072_s3] sm:$0xff]   ;;  %v13915_v62 = vld [vmem:[%s17070_s1 + $0x68] ss:$0 sps:$4 sm:$0xff]  }
 0x85f   : > { %13287 = vmatprep.subr.bf16.mxu0 %v14088_v40  ;;  %v6575_v30 = vpop.f32.mrf.mxu1  ;;  %v6636_v47 = vadd.f32 %v6632_v23, %v15856_v27  ;;  %13603 = vmatprep.subr.msk.bf16.mxu1 %vm323_vm0, %v13915_v62  ;;  %v16023_v23 = vld [vmem:[%s14179_s14 + $0x90] sm:$0xff]  }
 0x860   : > { %v16010_v30 = vld [vmem:[%s17070_s1 + $0x44] ss:$0 sps:$4 sm:$0xff]  }
 0x861   : > { %12080 = vmatmul.mubr.msk.bf16.vlgmr.msra.gmra.mxu0 %vm316_vm1, %v15841_v21  ;;  %v13269_v1 = vpop.f32.mrf.mxu1 }
 0x862   : > { %6928 = vmatprep.mubr.bf16.mxu0 %v14087_v4  ;;  %v6643_v10 = vrot.slane %v13269_v1, 2  ;;  %13288 = vmatpush3.bf16.msra.mxu0 %v13903_v49  ;;  %v7572_v1 = vsel %vm323_vm0, %v13915_v62, 0 }
 0x863   : > { %v6611_v38 = vpop.f32.mrf.mxu1  ;;  %13289 = vmatprep.subr.bf16.mxu0 %v14088_v40  ;;  %12131 = vmatmul.mubr.msk.bf16.gmra.mxu1 %vm316_vm1, %v15987_v22 }
 0x864   : > { %v6640_v2 = vrot.slane %v6611_v38, 2  ;;  %13324 = vmatpush3.bf16.msra.mxu1 %v7572_v1  ;;  %v13916_v38 = vld [vmem:[%s17070_s1 + $0x50] ss:$12 sps:$4 sm:$0xff]   ;;  %13327 = vmatprep.mubr.msk.bf16.mxu1 %vm316_vm1, %v16023_v23 }
 0x865   : > { %v13270_v21 = vpop.f32.mrf.mxu1  ;;  %13325 = vmatprep.subr.bf16.mxu1 %v13916_v38 }
 0x866   : > { %13290 = vmatpush3.bf16.msra.mxu0 %v13904_v35  ;;  %v16026_v21 = vld [vmem:[%s14179_s14 + $0x98] ss:$0 sps:$4 sm:$0x11]  }
 0x867   : > { %v6614_v52 = vpop.f32.mrf.mxu1  ;;  %13291 = vmatprep.subr.bf16.mxu0 %v14088_v40 }
 0x868   : > { %13326 = vmatpush3.bf16.msra.mxu1 %v13916_v38 }
 0x869   : > { %12081 = vmatmul.mubr.msk.bf16.gmra.mxu0 %vm316_vm1, %v15844_v18  ;;  %v6641_v18 = vrot.slane %v6614_v52, 2  ;;  %v6739_v28 = vpop.f32.mrf.mxu1  ;;  %12179 = vmatprep.subr.msk.bf16.mxu1 %vm323_vm0, %v15658_v3 }
 0x86a   : > { %13303 = vmatprep.mubr.msk.bf16.mxu0 %vm14089_vm2, %v14088_v40  ;;  %13292 = vmatpush3.bf16.msra.mxu0 %v13906_v59 }
 0x86b   : > { %v6642_v11 = vsel %vm447_vm4, %v6640_v2, %v6641_v18  ;;  %v6644_v41 = vsel %vm447_vm4, %v6641_v18, %v6643_v10  ;;  %v6741_v37 = vpop.f32.mrf.mxu1  ;;  %13293 = vmatprep.subr.bf16.mxu0 %v14088_v40  ;;  %13328 = vmatmul.mubr.msk.bf16.vlgmr.msra.gmra.mxu1 %vm316_vm1, %v16026_v21 }
 0x86c   : > { %v6647_v19 = vadd.f32 %v6642_v11, %v15864_v53  ;;  %v6648_v20 = vadd.f32 %v6644_v41, %v6636_v47  ;;  %v6808_v14 = vrot.slane %v6741_v37, 1  ;;  %7916 = vmatpush1.bf16.msra.mxu1 %v15663_v61  ;;  %7935 = vmatprep.mubr.bf16.mxu1 %v14087_v4 }
 0x86d   : > { %v6743_v16 = vpop.f32.mrf.mxu1  ;;  %7917 = vmatprep.subr.bf16.mxu1 %v15674_v6  ;;  %v16049_v6 = vld [vmem:[%s14179_s14 + $0x84] sm:$0xff]  }
 0x86e   : > { %v6803_v43 = vadd.f32 %v6739_v28, %v6647_v19  ;;  %v6804_v24 = vadd.f32 %v6743_v16, %v6648_v20  ;;  %13294 = vmatpush3.bf16.msra.mxu0 %v13907_v8 }
 0x86f   : > { %v6745_v58 = vpop.f32.mrf.mxu1  ;;  %13295 = vmatprep.subr.bf16.mxu0 %v14088_v40 }
 0x870   : > { %v6809_v36 = vrot.slane %v6745_v58, 1  ;;  %7918 = vmatpush1.bf16.msra.mxu1 %v15669_v33 }
 0x871   : > { %v6749_v44 = vpop.f32.mrf.mxu1 }
 0x872   : > { %v6810_v15 = vsel %vm434_vm3, %v6808_v14, %v6809_v36  ;;  %13296 = vmatpush3.bf16.msra.mxu0 %v13909_v26 }
 0x873   : > { %v6750_v42 = vpop.f32.mrf.mxu1  ;;  %v15938_v0 = vadd.f32 %v6810_v15, %v6803_v43  ;;  %13297 = vmatprep.subr.bf16.mxu0 %v14088_v40  ;;  %12180 = vmatmul.mubr.msk.bf16.vlgmr.msra.gmra.mxu1 %vm316_vm1, %v16049_v6 }
 0x874   : > { %v6811_v27 = vrot.slane %v6750_v42, 1  ;;  %7945 = vmatprep.mubr.bf16.mxu1 %v14087_v4 }
 0x875   : > { %v6752_v63 = vpop.f32.mrf.mxu1 }
 0x876   : > { %v6812_v50 = vsel %vm434_vm3, %v6809_v36, %v6811_v27  ;;  %13298 = vmatpush3.bf16.msra.mxu0 %v13910_v31 }
 0x877   : > { %v6753_v34 = vpop.f32.mrf.mxu1  ;;  %v15940_v53 = vadd.f32 %v6812_v50, %v6804_v24  ;;  %13299 = vmatprep.subr.bf16.mxu0 %v14088_v40 }
 0x879   : > { %v15977_v48 = vpop.f32.mrf.mxu1 }
 0x87a   : > { %13300 = vmatpush3.bf16.msra.mxu0 %v13911_v45  ;;  %v7004_v45 = vrot.slane %v15977_v48, 2 }
 0x87b   : > { %v15980_v13 = vpop.f32.mrf.mxu1  ;;  %13301 = vmatprep.subr.bf16.mxu0 %v14088_v40 }
 0x87c   : > { %v7001_v39 = vrot.slane %v15980_v13, 2  ;;  %v16069_v13 = vld [vmem:[%s17071_s2] ss:$0 sm:$0xff] }
 0x87d   : > { %v13286_v17 = vpop.f32.mrf.mxu1 }
 0x87e   : > { %13302 = vmatpush3.bf16.msra.mxu0 %v13912_v60 }
 0x87f   : > { %13602 = vmatprep.subr.msk.bf16.mxu0 %vm323_vm0, %v16010_v30  ;;  %v6973_v10 = vpop.f32.mrf.mxu1 }
 0x880   : > { %v7002_v49 = vrot.slane %v6973_v10, 2 }
 0x881   : > { %v7249_v2 = vpop.f32.mrf.mxu1 }
 0x883   : > { %v7251_v52 = vpop.f32.mrf.mxu1 }
 0x884   : > { %v7316_v18 = vrot.slane %v7251_v52, 1  ;;  %v7005_v52 = vsel %vm447_vm4, %v7002_v49, %v7004_v45 }
 0x885   : > { %v16038_v3 = vpop.f32.mrf.mxu1 }
 0x887   : > { %v16040_v47 = vpop.f32.mrf.mxu1 }
 0x888   : > { %v7317_v28 = vrot.slane %v16040_v47, 1 }
 0x88a   : > { %v7318_v61 = vsel %vm434_vm3, %v7316_v18, %v7317_v28 }
 0x88b   : > { %v16046_v11 = vadd.f32 %v7318_v61, %v7249_v2 }
 0x911   : > { %v6461_v33 = vpop.f32.mrf.mxu0 }
 0x912   : > { %v6462_v41 = vadd.f32 %v15687_v9, %v6461_v33 }
 0x913   : > { %v13261_v19 = vpop.f32.mrf.mxu0 }
 0x914   : > { %12022 = vst [vmem:[%s14569_s9 + $0x80] sm:$0xff] %v6462_v41 }
 0x915   : > { %v6464_v37 = vpop.f32.mrf.mxu0 }
 0x916   : > { %v6465_v20 = vadd.f32 %v15687_v9, %v6464_v37  ;;  %v7391_v37 = vsel %vm323_vm0, %v16010_v30, 0 }
 0x917   : > { %v13262_v43 = vpop.f32.mrf.mxu0 }
 0x918   : > { %12023 = vst [vmem:[%s14569_s9 + $0x88] sm:$0xff] %v6465_v20  ;;  %v13914_v20 = vld [vmem:[%s17070_s1 + $0x2c] ss:$12 sps:$4 sm:$0xff]  }
 0x919   : > { %v13277_v16 = vpop.f32.mrf.mxu0 }
 0x91a   : > { %v6823_v50 = vrot.slane %v13277_v16, 2 }
 0x91b   : > { %v6789_v24 = vpop.f32.mrf.mxu0 }
 0x91c   : > { %v6820_v14 = vrot.slane %v6789_v24, 2 }
 0x91d   : > { %v13278_v58 = vpop.f32.mrf.mxu0 }
 0x91f   : > { %v6792_v44 = vpop.f32.mrf.mxu0 }
 0x920   : > { %v6821_v36 = vrot.slane %v6792_v44, 2 }
 0x921   : > { %v6920_v42 = vpop.f32.mrf.mxu0 }
 0x922   : > { %v6822_v27 = vsel %vm447_vm4, %v6820_v14, %v6821_v36  ;;  %v6824_v56 = vsel %vm447_vm4, %v6821_v36, %v6823_v50 }
 0x923   : > { %v6922_v63 = vpop.f32.mrf.mxu0  ;;  %v6827_v15 = vadd.f32 %v6822_v27, %v15938_v0  ;;  %v6828_v59 = vadd.f32 %v6824_v56, %v15940_v53  ;;  %v7003_v0 = vsel %vm447_vm4, %v7001_v39, %v7002_v49 }
 0x924   : > { %v6989_v9 = vrot.slane %v6922_v63, 1 }
 0x925   : > { %v6924_v34 = vpop.f32.mrf.mxu0  ;;  %v6984_v35 = vadd.f32 %v6920_v42, %v6827_v15 }
 0x926   : > { %v6985_v62 = vadd.f32 %v6924_v34, %v6828_v59 }
 0x927   : > { %v6926_v12 = vpop.f32.mrf.mxu0 }
 0x928   : > { %v6990_v7 = vrot.slane %v6926_v12, 1 }
 0x929   : > { %v6930_v8 = vpop.f32.mrf.mxu0 }
 0x92a   : > { %v6991_v17 = vsel %vm434_vm3, %v6989_v9, %v6990_v7 }
 0x92b   : > { %v6996_v26 = vadd.f32 %v6991_v17, %v6984_v35  ;;  %v6931_v31 = vpop.f32.mrf.mxu0 }
 0x92c   : > { %v6992_v60 = vrot.slane %v6931_v31, 1 }
 0x92d   : > { %v7008_v1 = vadd.f32 %v7003_v0, %v6996_v26  ;;  %v6933_v38 = vpop.f32.mrf.mxu0  ;;  %v13920_v0 = vld [vmem:[%s14179_s14 + $0x8c] ss:$0 sps:$4 sm:$0x11]  }
 0x92e   : > { %v6993_v53 = vsel %vm434_vm3, %v6990_v7, %v6992_v60  ;;  %v13921_v60 = vld [vmem:[%s17070_s1 + $0x20] ss:$0 sps:$4 sm:$0xff]   ;;  %12181 = vmatmul.mubr.msk.bf16.gmra.mxu1 %vm316_vm1, %v13920_v0  ;;  %v13923_v38 = vld [vmem:[%s17072_s3 + $0x38] sm:$0xff]  }
 0x92f   : > { %v6997_v10 = vadd.f32 %v6993_v53, %v6985_v62  ;;  %v6934_v2 = vpop.f32.mrf.mxu0  ;;  %v7039_v18 = vadd.f32 %v16069_v13, %v7008_v1  ;;  %13604 = vmatprep.subr.msk.bf16.mxu1 %vm323_vm0, %v13921_v60  ;;  %v7901_v62 = vsel %vm323_vm0, %v13921_v60, 0  ;;  %13355 = vmatprep.mubr.msk.bf16.mxu1 %vm316_vm1, %v16049_v6  ;;  %v13922_v1 = vld [vmem:[%s17070_s1 + $0x8] ss:$12 sps:$4 sm:$0xff]  }
 0x930   : > { %13352 = vmatpush3.bf16.msra.mxu1 %v7901_v62  ;;  %v16138_v6 = vld [vmem:[%s14179_s14 + $0x90] sm:$0xff]   ;;  %v16156_v2 = vld [vmem:[%s14179_s14 + $0x98] ss:$0 sps:$4 sm:$0x11]  }
 0x931   : > { %v7009_v48 = vadd.f32 %v7005_v52, %v6997_v10  ;;  %v7041_v33 = vmax.f32 %v7039_v18, 0.0  ;;  %13353 = vmatprep.subr.bf16.mxu1 %v13922_v1  ;;  %v13929_v52 = vld [vmem:[%s17072_s3 + $0x18] sm:$0xff]   ;;  %v13930_v18 = vld [vmem:[%s17072_s3 + $0x10] sm:$0xff]  }
 0x933   : > { %v7040_v61 = vadd.f32 %v16069_v13, %v7009_v48  ;;  %v13931_v48 = vld [vmem:[%s17072_s3 + $0x8] sm:$0xff]  }
 0x934   : > { %13354 = vmatpush3.bf16.msra.mxu1 %v13922_v1 }
 0x935   : > { %v7042_v41 = vmax.f32 %v7040_v61, 0.0  ;;  %12201 = vmatprep.subr.msk.bf16.mxu1 %vm323_vm0, %v15757_v55  ;;  %v13924_v55 = vld [vmem:[%s17072_s3 + $0x30] sm:$0xff]   ;;  %v13932_v61 = vld [vmem:[%s17072_s3] sm:$0xff]  }
 0x937   : > { %v7043_v19 = vpack.c.bf16 %v7042_v41, %v7041_v33  ;;  %13356 = vmatmul.mubr.msk.bf16.vlgmr.msra.gmra.mxu1 %vm316_vm1, %v13920_v0  ;;  %v16179_v33 = vld [vmem:[%s17070_s1 + $0x44] ss:$0 sps:$4 sm:$0xff]   ;;  %v13935_v41 = vld [vmem:[%s17070_s1 + $0x68] ss:$0 sps:$4 sm:$0xff]  }
 0x938   : > { %8094 = vmatpush1.bf16.msra.mxu1 %v15766_v54  ;;  %8113 = vmatprep.mubr.bf16.mxu1 %v14087_v4  ;;  %v13926_v54 = vld [vmem:[%s17072_s3 + $0x28] sm:$0xff]  }
 0x939   : > { %13304 = vmatmul.mubr.bf16.vlgmr.msra.gmra.mxu0 %v7043_v19  ;;  %8095 = vmatprep.subr.bf16.mxu1 %v15773_v32  ;;  %v8260_v19 = vsel %vm323_vm0, %v13935_v41, 0 }
 0x93a   : > { %13316 = vmatpush3.bf16.msra.mxu0 %v7391_v37  ;;  %13319 = vmatprep.mubr.msk.bf16.mxu0 %vm316_vm1, %v15969_v5  ;;  %v7259_v5 = vpop.f32.mrf.mxu1  ;;  %v13936_v37 = vld [vmem:[%s17070_s1 + $0x50] ss:$12 sps:$4 sm:$0xff]  }
 0x93b   : > { %13317 = vmatprep.subr.bf16.mxu0 %v13914_v20  ;;  %v16195_v5 = vld [vmem:[%s14179_s14 + $0xa4] ss:$0 sps:$4 sm:$0x11]  }
 0x93c   : > { %8096 = vmatpush1.bf16.msra.mxu1 %v15779_v29  ;;  %v13927_v29 = vld [vmem:[%s17072_s3 + $0x20] sm:$0xff]  }
 0x93d   : > { %13606 = vmatprep.subr.msk.bf16.mxu1 %vm323_vm0, %v13935_v41 }
 0x93e   : > { %13318 = vmatpush3.bf16.msra.mxu0 %v13914_v20  ;;  %v16192_v20 = vld [vmem:[%s14179_s14 + $0x9c] sm:$0xff]  }
 0x93f   : > { %12151 = vmatprep.subr.msk.bf16.mxu0 %vm323_vm0, %v15898_v51  ;;  %12202 = vmatmul.mubr.msk.bf16.vlgmr.msra.gmra.mxu1 %vm316_vm1, %v16138_v6 }
 0x940   : > { %8123 = vmatprep.mubr.bf16.mxu1 %v14087_v4  ;;  %13368 = vmatpush3.bf16.msra.mxu1 %v8260_v19 }
 0x941   : > { %13320 = vmatmul.mubr.msk.bf16.vlgmr.msra.gmra.mxu0 %vm316_vm1, %v15987_v22  ;;  %v7260_v22 = vpop.f32.mrf.mxu1  ;;  %13369 = vmatprep.subr.bf16.mxu1 %v13936_v37 }
 0x942   : > { %7587 = vmatpush1.bf16.msra.mxu0 %v15903_v25  ;;  %7606 = vmatprep.mubr.bf16.mxu0 %v14087_v4  ;;  %v7319_v16 = vrot.slane %v7260_v22, 1 }
 0x943   : > { %7588 = vmatprep.subr.bf16.mxu0 %v15908_v46  ;;  %v7262_v30 = vpop.f32.mrf.mxu1 }
 0x944   : > { %v7320_v44 = vsel %vm434_vm3, %v7317_v28, %v7319_v16  ;;  %13370 = vmatpush3.bf16.msra.mxu1 %v13936_v37 }
 0x945   : > { %v7263_v43 = vpop.f32.mrf.mxu1  ;;  %v7324_v27 = vadd.f32 %v7320_v44, %v16038_v3 }
 0x946   : > { %7589 = vmatpush1.bf16.msra.mxu0 %v15916_v57 }
 0x947   : > { %13331 = vmatprep.subr.bf16.mxu0 %v14088_v40  ;;  %v13313_v24 = vpop.f32.mrf.mxu1  ;;  %12203 = vmatmul.mubr.msk.bf16.gmra.mxu1 %vm316_vm1, %v16156_v2 }
 0x948   : > { %v7331_v14 = vrot.slane %v13313_v24, 2  ;;  %13371 = vmatprep.mubr.msk.bf16.mxu1 %vm316_vm1, %v16192_v20 }
 0x949   : > { %12152 = vmatmul.mubr.msk.bf16.vlgmr.msra.gmra.mxu0 %vm316_vm1, %v16023_v23  ;;  %v7299_v58 = vpop.f32.mrf.mxu1 }
 0x94a   : > { %7616 = vmatprep.mubr.bf16.mxu0 %v14087_v4  ;;  %v7328_v36 = vrot.slane %v7299_v58, 2  ;;  %13332 = vmatpush3.bf16.msra.mxu0 %v13923_v38 }
 0x94b   : > { %v13314_v23 = vpop.f32.mrf.mxu1  ;;  %13333 = vmatprep.subr.bf16.mxu0 %v14088_v40 }
 0x94d   : > { %v7302_v42 = vpop.f32.mrf.mxu1 }
 0x94e   : > { %13334 = vmatpush3.bf16.msra.mxu0 %v13924_v55 }
 0x94f   : > { %v7427_v63 = vpop.f32.mrf.mxu1  ;;  %13335 = vmatprep.subr.bf16.mxu0 %v14088_v40  ;;  %13372 = vmatmul.mubr.msk.bf16.vlgmr.msra.gmra.mxu1 %vm316_vm1, %v16195_v5 }
 0x950   : > { %8623 = vmatprep.mubr.bf16.mxu1 %v14087_v4 }
 0x951   : > { %12153 = vmatmul.mubr.msk.bf16.gmra.mxu0 %vm316_vm1, %v16026_v21  ;;  %v7329_v21 = vrot.slane %v7302_v42, 2  ;;  %v7429_v56 = vpop.f32.mrf.mxu1 }
 0x952   : > { %13347 = vmatprep.mubr.msk.bf16.mxu0 %vm14089_vm2, %v14088_v40  ;;  %v7496_v49 = vrot.slane %v7429_v56, 1  ;;  %13336 = vmatpush3.bf16.msra.mxu0 %v13926_v54 }
 0x953   : > { %v7330_v50 = vsel %vm447_vm4, %v7328_v36, %v7329_v21  ;;  %v7332_v15 = vsel %vm447_vm4, %v7329_v21, %v7331_v14  ;;  %v7431_v9 = vpop.f32.mrf.mxu1  ;;  %13337 = vmatprep.subr.bf16.mxu0 %v14088_v40  ;;  %v8542_v36 = vld [vmem:[%s17070_s1 + $0x18] sm:$0xff] }
 0x954   : > { %v7335_v34 = vadd.f32 %v7330_v50, %v16046_v11  ;;  %v7336_v12 = vadd.f32 %v7332_v15, %v7324_v27  ;;  %v16217_v42 = vcombine.high %v8542_v36, %v8542_v36  ;;  %v12248_v27 = vcombine.low %v8542_v36, %v8542_v36  ;;  %v16233_v50 = vld [vmem:[%s17070_s1 + $0x4] ss:$12 sps:$4 sm:$0xff]  }
 0x955   : > { %v7433_v39 = vpop.f32.mrf.mxu1  ;;  %v16237_v15 = vld [vmem:[%s14179_s14 + $0x90] sm:$0xff]  }
 0x956   : > { %v7491_v47 = vadd.f32 %v7427_v63, %v7335_v34  ;;  %v7492_v28 = vadd.f32 %v7431_v9, %v7336_v12  ;;  %v7497_v35 = vrot.slane %v7433_v39, 1  ;;  %13338 = vmatpush3.bf16.msra.mxu0 %v13927_v29  ;;  %12251 = vmatprep.subr.msk.bf16.mxu1 %vm323_vm0, %v16217_v42  ;;  %v16222_v21 = vsel %vm323_vm0, %v12248_v27, 0  ;;  %v16228_v63 = vld [vmem:[%s17070_s1] ss:$12 sps:$4 sm:$0xff]  }
 0x957   : > { %v7437_v7 = vpop.f32.mrf.mxu1  ;;  %13339 = vmatprep.subr.bf16.mxu0 %v14088_v40  ;;  %8604 = vmatpush1.bf16.msra.mxu1 %v16222_v21  ;;  %v16246_v34 = vld [vmem:[%s17073_s4] ss:$0 sm:$0xff] }
 0x958   : > { %v7498_v26 = vsel %vm434_vm3, %v7496_v49, %v7497_v35  ;;  %8605 = vmatprep.subr.bf16.mxu1 %v16233_v50 }
 0x959   : > { %v7438_v59 = vpop.f32.mrf.mxu1  ;;  %v16107_v45 = vadd.f32 %v7498_v26, %v7491_v47 }
 0x95a   : > { %v7499_v3 = vrot.slane %v7438_v59, 1  ;;  %13340 = vmatpush3.bf16.msra.mxu0 %v13929_v52 }
 0x95b   : > { %v7440_v8 = vpop.f32.mrf.mxu1  ;;  %13341 = vmatprep.subr.bf16.mxu0 %v14088_v40  ;;  %8606 = vmatpush1.bf16.msra.mxu1 %v16228_v63 }
 0x95c   : > { %v7500_v17 = vsel %vm434_vm3, %v7497_v35, %v7499_v3 }
 0x95d   : > { %v7441_v31 = vpop.f32.mrf.mxu1  ;;  %v16109_v11 = vadd.f32 %v7500_v17, %v7492_v28 }
 0x95e   : > { %13342 = vmatpush3.bf16.msra.mxu0 %v13930_v18  ;;  %12252 = vmatmul.mubr.msk.bf16.vlgmr.msra.gmra.mxu1 %vm316_vm1, %v16237_v15 }
 0x95f   : > { %v16146_v32 = vpop.f32.mrf.mxu1  ;;  %13343 = vmatprep.subr.bf16.mxu0 %v14088_v40  ;;  %8633 = vmatprep.mubr.bf16.mxu1 %v14087_v4 }
 0x961   : > { %v16149_v53 = vpop.f32.mrf.mxu1 }
 0x962   : > { %13344 = vmatpush3.bf16.msra.mxu0 %v13931_v48  ;;  %v7689_v54 = vrot.slane %v16149_v53, 2 }
 0x963   : > { %v13330_v10 = vpop.f32.mrf.mxu1  ;;  %13345 = vmatprep.subr.bf16.mxu0 %v14088_v40 }
 0x965   : > { %v16202_v22 = vpop.f32.mrf.mxu1 }
 0x966   : > { %13346 = vmatpush3.bf16.msra.mxu0 %v13932_v61  ;;  %v7690_v10 = vrot.slane %v16202_v22, 2 }
 0x967   : > { %13605 = vmatprep.subr.msk.bf16.mxu0 %vm323_vm0, %v16179_v33  ;;  %v7937_v30 = vpop.f32.mrf.mxu1 }
 0x968   : > { %v7691_v37 = vsel %vm447_vm4, %v7689_v54, %v7690_v10 }
 0x969   : > { %v7939_v43 = vpop.f32.mrf.mxu1 }
 0x96a   : > { %v8004_v58 = vrot.slane %v7939_v43, 1 }
 0x96b   : > { %v16204_v16 = vpop.f32.mrf.mxu1 }
 0x96d   : > { %v16206_v24 = vpop.f32.mrf.mxu1 }
 0x96e   : > { %v8005_v44 = vrot.slane %v16206_v24, 1 }
 0x970   : > { %v8006_v23 = vsel %vm434_vm3, %v8004_v58, %v8005_v44 }
 0x971   : > { %v16212_v14 = vadd.f32 %v8006_v23, %v7937_v30 }
 0x9f9   : > { %v7149_v56 = vpop.f32.mrf.mxu0 }
 0x9fa   : > { %v7150_v12 = vadd.f32 %v16246_v34, %v7149_v56 }
 0x9fb   : > { %v13305_v47 = vpop.f32.mrf.mxu0 }
 0x9fc   : > { %12094 = vst [vmem:[%s14569_s9 + $0x90] sm:$0xff] %v7150_v12 }
 0x9fd   : > { %v7152_v9 = vpop.f32.mrf.mxu0 }
 0x9fe   : > { %v7153_v28 = vadd.f32 %v16246_v34, %v7152_v9 }
 0x9ff   : > { %v13306_v39 = vpop.f32.mrf.mxu0 }
 0xa00   : > { %12095 = vst [vmem:[%s14569_s9 + $0x98] sm:$0xff] %v7153_v28  ;;  %v8079_v28 = vsel %vm323_vm0, %v16179_v33, 0  ;;  %v13934_v39 = vld [vmem:[%s17070_s1 + $0x2c] ss:$12 sps:$4 sm:$0xff]  }
 0xa01   : > { %v13321_v7 = vpop.f32.mrf.mxu0 }
 0xa02   : > { %v7511_v0 = vrot.slane %v13321_v7, 2 }
 0xa03   : > { %v7477_v49 = vpop.f32.mrf.mxu0 }
 0xa04   : > { %v7508_v3 = vrot.slane %v7477_v49, 2 }
 0xa05   : > { %v13322_v35 = vpop.f32.mrf.mxu0 }
 0xa07   : > { %v7480_v59 = vpop.f32.mrf.mxu0 }
 0xa08   : > { %v7509_v8 = vrot.slane %v7480_v59, 2 }
 0xa09   : > { %v7608_v17 = vpop.f32.mrf.mxu0 }
 0xa0a   : > { %v7510_v26 = vsel %vm447_vm4, %v7508_v3, %v7509_v8  ;;  %v7512_v1 = vsel %vm447_vm4, %v7509_v8, %v7511_v0 }
 0xa0b   : > { %v7610_v31 = vpop.f32.mrf.mxu0  ;;  %v7515_v60 = vadd.f32 %v7510_v26, %v16107_v45  ;;  %v7516_v18 = vadd.f32 %v7512_v1, %v16109_v11  ;;  %v7692_v45 = vrot.slane %v16146_v32, 2 }
 0xa0c   : > { %v7677_v55 = vrot.slane %v7610_v31, 1 }
 0xa0d   : > { %v7612_v62 = vpop.f32.mrf.mxu0  ;;  %v7672_v52 = vadd.f32 %v7608_v17, %v7515_v60  ;;  %v7693_v27 = vsel %vm447_vm4, %v7690_v10, %v7692_v45 }
 0xa0e   : > { %v7673_v43 = vadd.f32 %v7612_v62, %v7516_v18 }
 0xa0f   : > { %v7614_v38 = vpop.f32.mrf.mxu0 }
 0xa10   : > { %v7678_v29 = vrot.slane %v7614_v38, 1 }
 0xa11   : > { %v7618_v48 = vpop.f32.mrf.mxu0 }
 0xa12   : > { %v7679_v61 = vsel %vm434_vm3, %v7677_v55, %v7678_v29 }
 0xa13   : > { %v7684_v41 = vadd.f32 %v7679_v61, %v7672_v52  ;;  %v7619_v19 = vpop.f32.mrf.mxu0 }
 0xa14   : > { %v7680_v30 = vrot.slane %v7619_v19, 1  ;;  %v13946_v19 = vld [vmem:[%s17070_s1 + $0x20] ss:$0 sps:$4 sm:$0xff]  }
 0xa15   : > { %v7696_v58 = vadd.f32 %v7691_v37, %v7684_v41  ;;  %v7621_v23 = vpop.f32.mrf.mxu0  ;;  %v13945_v41 = vld [vmem:[%s14179_s14 + $0x98] ss:$0 sps:$4 sm:$0x11]   ;;  %13607 = vmatprep.subr.msk.bf16.mxu1 %vm323_vm0, %v13946_v19  ;;  %v8589_v45 = vsel %vm323_vm0, %v13946_v19, 0  ;;  %v13947_v37 = vld [vmem:[%s17070_s1 + $0x8] ss:$12 sps:$4 sm:$0xff]  }
 0xa16   : > { %v7681_v53 = vsel %vm434_vm3, %v7678_v29, %v7680_v30  ;;  %12253 = vmatmul.mubr.msk.bf16.gmra.mxu1 %vm316_vm1, %v13945_v41  ;;  %v12263_v30 = vld [vmem:[%s17070_s1 + $0x3c] sm:$0xff] }
 0xa17   : > { %v7685_v36 = vadd.f32 %v7681_v53, %v7673_v43  ;;  %v7622_v22 = vpop.f32.mrf.mxu0  ;;  %v7727_v11 = vadd.f32 %v16069_v13, %v7696_v58  ;;  %13396 = vmatpush3.bf16.msra.mxu1 %v8589_v45  ;;  %13399 = vmatprep.mubr.msk.bf16.mxu1 %vm316_vm1, %v16237_v15  ;;  %v16316_v43 = vcombine.high %v12263_v30, %v12263_v30  ;;  %v13949_v15 = vld [vmem:[%s17072_s3 + $0x38] sm:$0xff]   ;;  %v16332_v53 = vld [vmem:[%s17070_s1 + $0x28] ss:$12 sps:$4 sm:$0xff]  }
 0xa18   : > { %13397 = vmatprep.subr.bf16.mxu1 %v13947_v37  ;;  %v12270_v58 = vcombine.low %v12263_v30, %v12263_v30  ;;  %v13954_v22 = vld [vmem:[%s17072_s3 + $0x30] sm:$0xff]  }
 0xa19   : > { %v7697_v56 = vadd.f32 %v7693_v27, %v7685_v36  ;;  %v7729_v47 = vmax.f32 %v7727_v11, 0.0  ;;  %v16338_v36 = vld [vmem:[%s17070_s1 + $0x24] ss:$12 sps:$4 sm:$0xff]   ;;  %v16346_v27 = vld [vmem:[%s14179_s14 + $0x9c] sm:$0xff]   ;;  %v13956_v11 = vld [vmem:[%s17072_s3 + $0x28] sm:$0xff]  }
 0xa1a   : > { %v16325_v23 = vsel %vm323_vm0, %v12270_v58, 0 }
 0xa1b   : > { %v7728_v12 = vadd.f32 %v16069_v13, %v7697_v56  ;;  %13398 = vmatpush3.bf16.msra.mxu1 %v13947_v37 }
 0xa1c   : > { %12273 = vmatprep.subr.msk.bf16.mxu1 %vm323_vm0, %v16316_v43 }
 0xa1d   : > { %v7730_v9 = vmax.f32 %v7728_v12, 0.0 }
 0xa1e   : > { %13400 = vmatmul.mubr.msk.bf16.vlgmr.msra.gmra.mxu1 %vm316_vm1, %v13945_v41 }
 0xa1f   : > { %v7731_v32 = vpack.c.bf16 %v7730_v9, %v7729_v47  ;;  %8782 = vmatpush1.bf16.msra.mxu1 %v16325_v23  ;;  %8801 = vmatprep.mubr.bf16.mxu1 %v14087_v4  ;;  %v13957_v47 = vld [vmem:[%s17072_s3 + $0x20] sm:$0xff]  }
 0xa20   : > { %8783 = vmatprep.subr.bf16.mxu1 %v16332_v53 }
 0xa21   : > { %13348 = vmatmul.mubr.bf16.vlgmr.msra.gmra.mxu0 %v7731_v32  ;;  %v16364_v32 = vld [vmem:[%s14179_s14 + $0xa4] ss:$0 sps:$4 sm:$0x11]  }
 0xa22   : > { %13360 = vmatpush3.bf16.msra.mxu0 %v8079_v28  ;;  %13363 = vmatprep.mubr.msk.bf16.mxu0 %vm316_vm1, %v16138_v6  ;;  %v7947_v6 = vpop.f32.mrf.mxu1  ;;  %v13959_v28 = vld [vmem:[%s17072_s3 + $0x18] sm:$0xff]  }
 0xa23   : > { %13361 = vmatprep.subr.bf16.mxu0 %v13934_v39  ;;  %8784 = vmatpush1.bf16.msra.mxu1 %v16338_v36  ;;  %v13961_v6 = vld [vmem:[%s17072_s3 + $0x8] sm:$0xff]  }
 0xa26   : > { %13362 = vmatpush3.bf16.msra.mxu0 %v13934_v39  ;;  %12274 = vmatmul.mubr.msk.bf16.vlgmr.msra.gmra.mxu1 %vm316_vm1, %v16346_v27  ;;  %v13960_v39 = vld [vmem:[%s17072_s3 + $0x10] sm:$0xff]  }
 0xa27   : > { %12223 = vmatprep.subr.msk.bf16.mxu0 %vm323_vm0, %v15898_v51  ;;  %v7948_v51 = vpop.f32.mrf.mxu1  ;;  %8811 = vmatprep.mubr.bf16.mxu1 %v14087_v4 }
 0xa29   : > { %13364 = vmatmul.mubr.msk.bf16.vlgmr.msra.gmra.mxu0 %vm316_vm1, %v16156_v2 }
 0xa2a   : > { %8275 = vmatpush1.bf16.msra.mxu0 %v15903_v25  ;;  %8294 = vmatprep.mubr.bf16.mxu0 %v14087_v4  ;;  %v7950_v25 = vpop.f32.mrf.mxu1 }
 0xa2b   : > { %8276 = vmatprep.subr.bf16.mxu0 %v15908_v46  ;;  %v8007_v46 = vrot.slane %v7948_v51, 1  ;;  %v13962_v51 = vld [vmem:[%s17072_s3] sm:$0xff]  }
 0xa2c   : > { %v7951_v2 = vpop.f32.mrf.mxu1  ;;  %v16387_v25 = vld [vmem:[%s17070_s1 + $0x44] ss:$0 sps:$4 sm:$0xff]  }
 0xa2d   : > { %v8008_v7 = vsel %vm434_vm3, %v8005_v44, %v8007_v46  ;;  %v13965_v2 = vld [vmem:[%s17070_s1 + $0x68] ss:$0 sps:$4 sm:$0xff]  }
 0xa2e   : > { %8277 = vmatpush1.bf16.msra.mxu0 %v15916_v57  ;;  %v13357_v33 = vpop.f32.mrf.mxu1  ;;  %v8012_v3 = vadd.f32 %v8008_v7, %v16204_v16  ;;  %12275 = vmatmul.mubr.msk.bf16.gmra.mxu1 %vm316_vm1, %v16364_v32  ;;  %v8948_v46 = vsel %vm323_vm0, %v13965_v2, 0  ;;  %v16403_v7 = vld [vmem:[%s14179_s14 + $0xb0] ss:$0 sps:$4 sm:$0x11]  }
 0xa2f   : > { %13375 = vmatprep.subr.bf16.mxu0 %v14088_v40  ;;  %v8019_v49 = vrot.slane %v13357_v33, 2  ;;  %13609 = vmatprep.subr.msk.bf16.mxu1 %vm323_vm0, %v13965_v2  ;;  %v13971_v33 = vld [vmem:[%s17070_s1 + $0x50] ss:$12 sps:$4 sm:$0xff]  }
 0xa30   : > { %v7987_v57 = vpop.f32.mrf.mxu1  ;;  %13412 = vmatpush3.bf16.msra.mxu1 %v8948_v46 }
 0xa31   : > { %12224 = vmatmul.mubr.msk.bf16.vlgmr.msra.gmra.mxu0 %vm316_vm1, %v16192_v20  ;;  %v8016_v35 = vrot.slane %v7987_v57, 2  ;;  %13413 = vmatprep.subr.bf16.mxu1 %v13971_v33  ;;  %v16400_v57 = vld [vmem:[%s14179_s14 + $0xa8] sm:$0xff]  }
 0xa32   : > { %8304 = vmatprep.mubr.bf16.mxu0 %v14087_v4  ;;  %v13358_v20 = vpop.f32.mrf.mxu1  ;;  %13376 = vmatpush3.bf16.msra.mxu0 %v13949_v15 }
 0xa33   : > { %13377 = vmatprep.subr.bf16.mxu0 %v14088_v40  ;;  %13415 = vmatprep.mubr.msk.bf16.mxu1 %vm316_vm1, %v16400_v57 }
 0xa34   : > { %v7990_v59 = vpop.f32.mrf.mxu1  ;;  %13414 = vmatpush3.bf16.msra.mxu1 %v13971_v33 }
 0xa35   : > { %12323 = vmatprep.subr.msk.bf16.mxu1 %vm323_vm0, %v16217_v42 }
 0xa36   : > { %v8115_v8 = vpop.f32.mrf.mxu1  ;;  %13378 = vmatpush3.bf16.msra.mxu0 %v13954_v22 }
 0xa37   : > { %13379 = vmatprep.subr.bf16.mxu0 %v14088_v40  ;;  %13416 = vmatmul.mubr.msk.bf16.vlgmr.msra.gmra.mxu1 %vm316_vm1, %v16403_v7 }
 0xa38   : > { %v8117_v0 = vpop.f32.mrf.mxu1  ;;  %9292 = vmatpush1.bf16.msra.mxu1 %v16222_v21  ;;  %9311 = vmatprep.mubr.bf16.mxu1 %v14087_v4 }
 0xa39   : > { %12225 = vmatmul.mubr.msk.bf16.gmra.mxu0 %vm316_vm1, %v16195_v5  ;;  %v8017_v5 = vrot.slane %v7990_v59, 2  ;;  %v8184_v44 = vrot.slane %v8117_v0, 1  ;;  %9293 = vmatprep.subr.bf16.mxu1 %v16233_v50 }
 0xa3a   : > { %13391 = vmatprep.mubr.msk.bf16.mxu0 %vm14089_vm2, %v14088_v40  ;;  %v8119_v62 = vpop.f32.mrf.mxu1  ;;  %13380 = vmatpush3.bf16.msra.mxu0 %v13956_v11 }
 0xa3b   : > { %v8018_v17 = vsel %vm447_vm4, %v8016_v35, %v8017_v5  ;;  %v8020_v26 = vsel %vm447_vm4, %v8017_v5, %v8019_v49  ;;  %13381 = vmatprep.subr.bf16.mxu0 %v14088_v40 }
 0xa3c   : > { %v8023_v31 = vadd.f32 %v8018_v17, %v16212_v14  ;;  %v8024_v60 = vadd.f32 %v8020_v26, %v8012_v3  ;;  %v8121_v38 = vpop.f32.mrf.mxu1  ;;  %9294 = vmatpush1.bf16.msra.mxu1 %v16228_v63 }
 0xa3d   : > { %v8185_v55 = vrot.slane %v8121_v38, 1 }
 0xa3e   : > { %v8179_v24 = vadd.f32 %v8115_v8, %v8023_v31  ;;  %v8180_v1 = vadd.f32 %v8119_v62, %v8024_v60  ;;  %v8125_v54 = vpop.f32.mrf.mxu1  ;;  %13382 = vmatpush3.bf16.msra.mxu0 %v13957_v47  ;;  %v16426_v31 = vld [vmem:[%s14179_s14 + $0x9c] sm:$0xff]  }
 0xa3f   : > { %v8186_v16 = vsel %vm434_vm3, %v8184_v44, %v8185_v55  ;;  %13383 = vmatprep.subr.bf16.mxu0 %v14088_v40  ;;  %12324 = vmatmul.mubr.msk.bf16.vlgmr.msra.gmra.mxu1 %vm316_vm1, %v16426_v31 }
 0xa40   : > { %v8126_v29 = vpop.f32.mrf.mxu1  ;;  %v16297_v61 = vadd.f32 %v8186_v16, %v8179_v24  ;;  %9321 = vmatprep.mubr.bf16.mxu1 %v14087_v4 }
 0xa41   : > { %v8187_v10 = vrot.slane %v8126_v29, 1 }
 0xa42   : > { %v8128_v52 = vpop.f32.mrf.mxu1  ;;  %13384 = vmatpush3.bf16.msra.mxu0 %v13959_v28 }
 0xa43   : > { %v8188_v18 = vsel %vm434_vm3, %v8185_v55, %v8187_v10  ;;  %13385 = vmatprep.subr.bf16.mxu0 %v14088_v40 }
 0xa44   : > { %v8129_v48 = vpop.f32.mrf.mxu1  ;;  %v16299_v14 = vadd.f32 %v8188_v18, %v8180_v1 }
 0xa46   : > { %v16354_v56 = vpop.f32.mrf.mxu1  ;;  %13386 = vmatpush3.bf16.msra.mxu0 %v13960_v39 }
 0xa47   : > { %13387 = vmatprep.subr.bf16.mxu0 %v14088_v40  ;;  %v8380_v2 = vrot.slane %v16354_v56, 2 }
 0xa48   : > { %v16357_v12 = vpop.f32.mrf.mxu1 }
 0xa49   : > { %v8377_v15 = vrot.slane %v16357_v12, 2 }
 0xa4a   : > { %v13374_v9 = vpop.f32.mrf.mxu1  ;;  %13388 = vmatpush3.bf16.msra.mxu0 %v13961_v6 }
 0xa4b   : > { %13389 = vmatprep.subr.bf16.mxu0 %v14088_v40 }
 0xa4c   : > { %v8349_v20 = vpop.f32.mrf.mxu1 }
 0xa4d   : > { %v8378_v11 = vrot.slane %v8349_v20, 2 }
 0xa4e   : > { %13390 = vmatpush3.bf16.msra.mxu0 %v13962_v51  ;;  %v8625_v49 = vpop.f32.mrf.mxu1 }
 0xa4f   : > { %13608 = vmatprep.subr.msk.bf16.mxu0 %vm323_vm0, %v16387_v25 }
 0xa50   : > { %v8627_v35 = vpop.f32.mrf.mxu1 }
 0xa51   : > { %v8692_v5 = vrot.slane %v8627_v35, 1 }
 0xa52   : > { %v16415_v59 = vpop.f32.mrf.mxu1 }
 0xa54   : > { %v16417_v3 = vpop.f32.mrf.mxu1 }
 0xa55   : > { %v8693_v8 = vrot.slane %v16417_v3, 1 }
 0xa57   : > { %v8694_v17 = vsel %vm434_vm3, %v8692_v5, %v8693_v8 }
 0xa58   : > { %v16423_v26 = vadd.f32 %v8694_v17, %v8625_v49  ;;  %v8381_v17 = vsel %vm447_vm4, %v8378_v11, %v8380_v2 }
 0xae1   : > { %v7837_v0 = vpop.f32.mrf.mxu0 }
 0xae2   : > { %v7838_v60 = vadd.f32 %v16246_v34, %v7837_v0 }
 0xae3   : > { %v13349_v24 = vpop.f32.mrf.mxu0 }
 0xae4   : > { %12166 = vst [vmem:[%s14569_s9 + $0xa0] sm:$0xff] %v7838_v60 }
 0xae5   : > { %v7840_v62 = vpop.f32.mrf.mxu0 }
 0xae6   : > { %v7841_v44 = vadd.f32 %v16246_v34, %v7840_v62 }
 0xae7   : > { %v13350_v1 = vpop.f32.mrf.mxu0 }
 0xae8   : > { %12167 = vst [vmem:[%s14569_s9 + $0xa8] sm:$0xff] %v7841_v44  ;;  %v8767_v44 = vsel %vm323_vm0, %v16387_v25, 0  ;;  %v13964_v1 = vld [vmem:[%s17070_s1 + $0x2c] ss:$12 sps:$4 sm:$0xff]  }
 0xae9   : > { %v13365_v38 = vpop.f32.mrf.mxu0 }
 0xaea   : > { %v8199_v41 = vrot.slane %v13365_v38, 2  ;;  %v12285_v38 = vld [vmem:[%s17070_s1 + $0x60] sm:$0xff] }
 0xaeb   : > { %v8165_v55 = vpop.f32.mrf.mxu0 }
 0xaec   : > { %v8196_v29 = vrot.slane %v8165_v55, 2  ;;  %v12292_v55 = vcombine.low %v12285_v38, %v12285_v38 }
 0xaed   : > { %v13366_v54 = vpop.f32.mrf.mxu0 }
 0xaee   : > { %v16462_v25 = vsel %vm323_vm0, %v12292_v55, 0  ;;  %v16467_v54 = vld [vmem:[%s17070_s1 + $0x4c] ss:$12 sps:$4 sm:$0xff]  }
 0xaef   : > { %v8168_v16 = vpop.f32.mrf.mxu0  ;;  %v13984_v55 = vld [vmem:[%s17072_s3 + $0x18] sm:$0xff]  }
 0xaf0   : > { %v8197_v10 = vrot.slane %v8168_v16, 2 }
 0xaf1   : > { %v8296_v52 = vpop.f32.mrf.mxu0 }
 0xaf2   : > { %v8198_v18 = vsel %vm447_vm4, %v8196_v29, %v8197_v10  ;;  %v8200_v37 = vsel %vm447_vm4, %v8197_v10, %v8199_v41 }
 0xaf3   : > { %v8298_v48 = vpop.f32.mrf.mxu0  ;;  %v8203_v19 = vadd.f32 %v8198_v18, %v16297_v61  ;;  %v8204_v9 = vadd.f32 %v8200_v37, %v16299_v14  ;;  %v8379_v61 = vsel %vm447_vm4, %v8377_v15, %v8378_v11 }
 0xaf4   : > { %v8365_v58 = vrot.slane %v8298_v48, 1 }
 0xaf5   : > { %v8300_v45 = vpop.f32.mrf.mxu0  ;;  %v8360_v47 = vadd.f32 %v8296_v52, %v8203_v19 }
 0xaf6   : > { %v8361_v33 = vadd.f32 %v8300_v45, %v8204_v9 }
 0xaf7   : > { %v8302_v30 = vpop.f32.mrf.mxu0 }
 0xaf8   : > { %v8366_v22 = vrot.slane %v8302_v30, 1 }
 0xaf9   : > { %v8306_v28 = vpop.f32.mrf.mxu0 }
 0xafa   : > { %v8367_v39 = vsel %vm434_vm3, %v8365_v58, %v8366_v22 }
 0xafb   : > { %v8372_v6 = vadd.f32 %v8367_v39, %v8360_v47  ;;  %v8307_v51 = vpop.f32.mrf.mxu0 }
 0xafc   : > { %v8368_v46 = vrot.slane %v8307_v51, 1 }
 0xafd   : > { %v8384_v49 = vadd.f32 %v8379_v61, %v8372_v6  ;;  %v8309_v35 = vpop.f32.mrf.mxu0 }
 0xafe   : > { %v8369_v12 = vsel %vm434_vm3, %v8366_v22, %v8368_v46 }
 0xaff   : > { %v8373_v5 = vadd.f32 %v8369_v12, %v8361_v33  ;;  %v8310_v20 = vpop.f32.mrf.mxu0  ;;  %v8415_v14 = vadd.f32 %v16069_v13, %v8384_v49 }
 0xb00   : > { %v13976_v20 = vld [vmem:[%s17070_s1 + $0x20] ss:$0 sps:$4 sm:$0xff]  }
 0xb01   : > { %v8385_v0 = vadd.f32 %v8381_v17, %v8373_v5  ;;  %v8417_v24 = vmax.f32 %v8415_v14, 0.0  ;;  %v13975_v5 = vld [vmem:[%s14179_s14 + $0xa4] ss:$0 sps:$4 sm:$0x11]   ;;  %13610 = vmatprep.subr.msk.bf16.mxu1 %vm323_vm0, %v13976_v20  ;;  %v9277_v17 = vsel %vm323_vm0, %v13976_v20, 0 }
 0xb02   : > { %12325 = vmatmul.mubr.msk.bf16.gmra.mxu1 %vm316_vm1, %v13975_v5  ;;  %v13977_v14 = vld [vmem:[%s17070_s1 + $0x8] ss:$12 sps:$4 sm:$0xff]  }
 0xb03   : > { %v8416_v60 = vadd.f32 %v16069_v13, %v8385_v0  ;;  %v16457_v13 = vcombine.high %v12285_v38, %v12285_v38  ;;  %13440 = vmatpush3.bf16.msra.mxu1 %v9277_v17  ;;  %13443 = vmatprep.mubr.msk.bf16.mxu1 %vm316_vm1, %v16426_v31  ;;  %v13978_v0 = vld [vmem:[%s17072_s3 + $0x38] sm:$0xff]   ;;  %v13979_v31 = vld [vmem:[%s17072_s3 + $0x30] sm:$0xff]  }
 0xb04   : > { %13441 = vmatprep.subr.bf16.mxu1 %v13977_v14  ;;  %v16546_v38 = vld [vmem:[%s14179_s14 + $0xb0] ss:$0 sps:$4 sm:$0x11]  }
 0xb05   : > { %v8418_v62 = vmax.f32 %v8416_v60, 0.0  ;;  %v16528_v60 = vld [vmem:[%s14179_s14 + $0xa8] sm:$0xff]  }
 0xb07   : > { %v8419_v56 = vpack.c.bf16 %v8418_v62, %v8417_v24  ;;  %13442 = vmatpush3.bf16.msra.mxu1 %v13977_v14  ;;  %v13981_v24 = vld [vmem:[%s17072_s3 + $0x28] sm:$0xff]  }
 0xb08   : > { %12345 = vmatprep.subr.msk.bf16.mxu1 %vm323_vm0, %v16316_v43 }
 0xb09   : > { %13392 = vmatmul.mubr.bf16.vlgmr.msra.gmra.mxu0 %v8419_v56 }
 0xb0a   : > { %13404 = vmatpush3.bf16.msra.mxu0 %v8767_v44  ;;  %13407 = vmatprep.mubr.msk.bf16.mxu0 %vm316_vm1, %v16346_v27  ;;  %v16475_v27 = vld [vmem:[%s17070_s1 + $0x48] ss:$12 sps:$4 sm:$0xff]   ;;  %v13982_v44 = vld [vmem:[%s17072_s3 + $0x20] sm:$0xff]  }
 0xb0b   : > { %13405 = vmatprep.subr.bf16.mxu0 %v13964_v1  ;;  %13444 = vmatmul.mubr.msk.bf16.vlgmr.msra.gmra.mxu1 %vm316_vm1, %v13975_v5 }
 0xb0c   : > { %9470 = vmatpush1.bf16.msra.mxu1 %v16325_v23  ;;  %9489 = vmatprep.mubr.bf16.mxu1 %v14087_v4 }
 0xb0d   : > { %9471 = vmatprep.subr.bf16.mxu1 %v16332_v53 }
 0xb0e   : > { %13406 = vmatpush3.bf16.msra.mxu0 %v13964_v1 }
 0xb0f   : > { %12295 = vmatprep.subr.msk.bf16.mxu0 %vm323_vm0, %v16457_v13 }
 0xb10   : > { %9472 = vmatpush1.bf16.msra.mxu1 %v16338_v36 }
 0xb11   : > { %13408 = vmatmul.mubr.msk.bf16.vlgmr.msra.gmra.mxu0 %vm316_vm1, %v16364_v32  ;;  %v8635_v32 = vpop.f32.mrf.mxu1 }
 0xb12   : > { %8963 = vmatpush1.bf16.msra.mxu0 %v16462_v25  ;;  %8982 = vmatprep.mubr.bf16.mxu0 %v14087_v4  ;;  %v13985_v32 = vld [vmem:[%s17072_s3 + $0x10] sm:$0xff]  }
 0xb13   : > { %8964 = vmatprep.subr.bf16.mxu0 %v16467_v54  ;;  %v8636_v16 = vpop.f32.mrf.mxu1  ;;  %12346 = vmatmul.mubr.msk.bf16.vlgmr.msra.gmra.mxu1 %vm316_vm1, %v16528_v60 }
 0xb14   : > { %v8695_v52 = vrot.slane %v8636_v16, 1  ;;  %9499 = vmatprep.mubr.bf16.mxu1 %v14087_v4  ;;  %v13986_v16 = vld [vmem:[%s17072_s3 + $0x8] sm:$0xff]  }
 0xb15   : > { %v8638_v29 = vpop.f32.mrf.mxu1 }
 0xb16   : > { %8965 = vmatpush1.bf16.msra.mxu0 %v16475_v27  ;;  %v8696_v41 = vsel %vm434_vm3, %v8693_v8, %v8695_v52  ;;  %v13987_v29 = vld [vmem:[%s17072_s3] sm:$0xff]   ;;  %v13990_v52 = vld [vmem:[%s17070_s1 + $0x68] ss:$0 sps:$4 sm:$0xff]  }
 0xb17   : > { %13419 = vmatprep.subr.bf16.mxu0 %v14088_v40  ;;  %v8639_v10 = vpop.f32.mrf.mxu1  ;;  %v8700_v30 = vadd.f32 %v8696_v41, %v16415_v59  ;;  %13612 = vmatprep.subr.msk.bf16.mxu1 %vm323_vm0, %v13990_v52  ;;  %v16582_v41 = vld [vmem:[%s14179_s14 + $0xb4] sm:$0xff]  }
 0xb18   : > { %v16569_v10 = vld [vmem:[%s17070_s1 + $0x44] ss:$0 sps:$4 sm:$0xff]  }
 0xb19   : > { %12296 = vmatmul.mubr.msk.bf16.vlgmr.msra.gmra.mxu0 %vm316_vm1, %v16400_v57  ;;  %v13401_v18 = vpop.f32.mrf.mxu1 }
 0xb1a   : > { %8992 = vmatprep.mubr.bf16.mxu0 %v14087_v4  ;;  %v8707_v19 = vrot.slane %v13401_v18, 2  ;;  %13420 = vmatpush3.bf16.msra.mxu0 %v13978_v0  ;;  %v9636_v18 = vsel %vm323_vm0, %v13990_v52, 0 }
 0xb1b   : > { %v8675_v48 = vpop.f32.mrf.mxu1  ;;  %13421 = vmatprep.subr.bf16.mxu0 %v14088_v40  ;;  %12347 = vmatmul.mubr.msk.bf16.gmra.mxu1 %vm316_vm1, %v16546_v38 }
 0xb1c   : > { %v8704_v45 = vrot.slane %v8675_v48, 2  ;;  %13456 = vmatpush3.bf16.msra.mxu1 %v9636_v18  ;;  %v13991_v48 = vld [vmem:[%s17070_s1 + $0x50] ss:$12 sps:$4 sm:$0xff]   ;;  %13459 = vmatprep.mubr.msk.bf16.mxu1 %vm316_vm1, %v16582_v41 }
 0xb1d   : > { %v13402_v57 = vpop.f32.mrf.mxu1  ;;  %13457 = vmatprep.subr.bf16.mxu1 %v13991_v48 }
 0xb1e   : > { %13422 = vmatpush3.bf16.msra.mxu0 %v13979_v31  ;;  %v16585_v57 = vld [vmem:[%s14179_s14 + $0xbc] ss:$0 sps:$4 sm:$0x11]  }
 0xb1f   : > { %v8678_v37 = vpop.f32.mrf.mxu1  ;;  %13423 = vmatprep.subr.bf16.mxu0 %v14088_v40 }
 0xb20   : > { %13458 = vmatpush3.bf16.msra.mxu1 %v13991_v48 }
 0xb21   : > { %12297 = vmatmul.mubr.msk.bf16.gmra.mxu0 %vm316_vm1, %v16403_v7  ;;  %v8705_v7 = vrot.slane %v8678_v37, 2  ;;  %v8803_v58 = vpop.f32.mrf.mxu1  ;;  %12395 = vmatprep.subr.msk.bf16.mxu1 %vm323_vm0, %v16217_v42 }
 0xb22   : > { %13435 = vmatprep.mubr.msk.bf16.mxu0 %vm14089_vm2, %v14088_v40  ;;  %13424 = vmatpush3.bf16.msra.mxu0 %v13981_v24 }
 0xb23   : > { %v8706_v15 = vsel %vm447_vm4, %v8704_v45, %v8705_v7  ;;  %v8708_v22 = vsel %vm447_vm4, %v8705_v7, %v8707_v19  ;;  %v8805_v47 = vpop.f32.mrf.mxu1  ;;  %13425 = vmatprep.subr.bf16.mxu0 %v14088_v40  ;;  %13460 = vmatmul.mubr.msk.bf16.vlgmr.msra.gmra.mxu1 %vm316_vm1, %v16585_v57 }
 0xb24   : > { %v8711_v11 = vadd.f32 %v8706_v15, %v16423_v26  ;;  %v8712_v9 = vadd.f32 %v8708_v22, %v8700_v30  ;;  %v8872_v8 = vrot.slane %v8805_v47, 1  ;;  %9980 = vmatpush1.bf16.msra.mxu1 %v16222_v21  ;;  %9999 = vmatprep.mubr.bf16.mxu1 %v14087_v4 }
 0xb25   : > { %v8807_v28 = vpop.f32.mrf.mxu1  ;;  %9981 = vmatprep.subr.bf16.mxu1 %v16233_v50  ;;  %v16608_v50 = vld [vmem:[%s14179_s14 + $0xa8] sm:$0xff]  }
 0xb26   : > { %v8867_v3 = vadd.f32 %v8803_v58, %v8711_v11  ;;  %v8868_v39 = vadd.f32 %v8807_v28, %v8712_v9  ;;  %13426 = vmatpush3.bf16.msra.mxu0 %v13982_v44 }
 0xb27   : > { %v8809_v6 = vpop.f32.mrf.mxu1  ;;  %13427 = vmatprep.subr.bf16.mxu0 %v14088_v40 }
 0xb28   : > { %v8873_v51 = vrot.slane %v8809_v6, 1  ;;  %9982 = vmatpush1.bf16.msra.mxu1 %v16228_v63 }
 0xb29   : > { %v8813_v2 = vpop.f32.mrf.mxu1 }
 0xb2a   : > { %v8874_v59 = vsel %vm434_vm3, %v8872_v8, %v8873_v51  ;;  %13428 = vmatpush3.bf16.msra.mxu0 %v13984_v55 }
 0xb2b   : > { %v8814_v61 = vpop.f32.mrf.mxu1  ;;  %v16497_v12 = vadd.f32 %v8874_v59, %v8867_v3  ;;  %13429 = vmatprep.subr.bf16.mxu0 %v14088_v40  ;;  %12396 = vmatmul.mubr.msk.bf16.vlgmr.msra.gmra.mxu1 %vm316_vm1, %v16608_v50 }
 0xb2c   : > { %v8875_v46 = vrot.slane %v8814_v61, 1  ;;  %10009 = vmatprep.mubr.bf16.mxu1 %v14087_v4 }
 0xb2d   : > { %v8816_v33 = vpop.f32.mrf.mxu1 }
 0xb2e   : > { %v8876_v49 = vsel %vm434_vm3, %v8873_v51, %v8875_v46  ;;  %13430 = vmatpush3.bf16.msra.mxu0 %v13985_v32 }
 0xb2f   : > { %v8817_v35 = vpop.f32.mrf.mxu1  ;;  %v16499_v26 = vadd.f32 %v8876_v49, %v8868_v39  ;;  %13431 = vmatprep.subr.bf16.mxu0 %v14088_v40 }
 0xb31   : > { %v16536_v62 = vpop.f32.mrf.mxu1 }
 0xb32   : > { %13432 = vmatpush3.bf16.msra.mxu0 %v13986_v16  ;;  %v9068_v16 = vrot.slane %v16536_v62, 2 }
 0xb33   : > { %v16539_v56 = vpop.f32.mrf.mxu1  ;;  %13433 = vmatprep.subr.bf16.mxu0 %v14088_v40 }
 0xb34   : > { %v9065_v17 = vrot.slane %v16539_v56, 2  ;;  %v16628_v56 = vld [vmem:[%s17071_s2] ss:$0 sm:$0xff] }
 0xb35   : > { %v13418_v1 = vpop.f32.mrf.mxu1 }
 0xb36   : > { %13434 = vmatpush3.bf16.msra.mxu0 %v13987_v29 }
 0xb37   : > { %13611 = vmatprep.subr.msk.bf16.mxu0 %vm323_vm0, %v16569_v10  ;;  %v9037_v19 = vpop.f32.mrf.mxu1 }
 0xb38   : > { %v9066_v0 = vrot.slane %v9037_v19, 2 }
 0xb39   : > { %v9313_v45 = vpop.f32.mrf.mxu1 }
 0xb3b   : > { %v9315_v37 = vpop.f32.mrf.mxu1 }
 0xb3c   : > { %v9380_v7 = vrot.slane %v9315_v37, 1  ;;  %v9069_v37 = vsel %vm447_vm4, %v9066_v0, %v9068_v16 }
 0xb3d   : > { %v16597_v42 = vpop.f32.mrf.mxu1 }
 0xb3f   : > { %v16599_v30 = vpop.f32.mrf.mxu1 }
 0xb40   : > { %v9381_v58 = vrot.slane %v16599_v30, 1 }
 0xb42   : > { %v9382_v21 = vsel %vm434_vm3, %v9380_v7, %v9381_v58 }
 0xb43   : > { %v16605_v15 = vadd.f32 %v9382_v21, %v9313_v45 }
 0xbc9   : > { %v8525_v63 = vpop.f32.mrf.mxu0 }
 0xbca   : > { %v8526_v22 = vadd.f32 %v16246_v34, %v8525_v63 }
 0xbcb   : > { %v13393_v11 = vpop.f32.mrf.mxu0 }
 0xbcc   : > { %12238 = vst [vmem:[%s14569_s9 + $0xb0] sm:$0xff] %v8526_v22 }
 0xbcd   : > { %v8528_v47 = vpop.f32.mrf.mxu0 }
 0xbce   : > { %v8529_v9 = vadd.f32 %v16246_v34, %v8528_v47  ;;  %v9455_v47 = vsel %vm323_vm0, %v16569_v10, 0 }
 0xbcf   : > { %v13394_v3 = vpop.f32.mrf.mxu0 }
 0xbd0   : > { %12239 = vst [vmem:[%s14569_s9 + $0xb8] sm:$0xff] %v8529_v9  ;;  %v13989_v9 = vld [vmem:[%s17070_s1 + $0x2c] ss:$12 sps:$4 sm:$0xff]  }
 0xbd1   : > { %v13409_v28 = vpop.f32.mrf.mxu0 }
 0xbd2   : > { %v8887_v33 = vrot.slane %v13409_v28, 2 }
 0xbd3   : > { %v8853_v8 = vpop.f32.mrf.mxu0 }
 0xbd4   : > { %v8884_v51 = vrot.slane %v8853_v8, 2 }
 0xbd5   : > { %v13410_v39 = vpop.f32.mrf.mxu0 }
 0xbd7   : > { %v8856_v6 = vpop.f32.mrf.mxu0 }
 0xbd8   : > { %v8885_v2 = vrot.slane %v8856_v6, 2 }
 0xbd9   : > { %v8984_v59 = vpop.f32.mrf.mxu0 }
 0xbda   : > { %v8886_v61 = vsel %vm447_vm4, %v8884_v51, %v8885_v2  ;;  %v8888_v5 = vsel %vm447_vm4, %v8885_v2, %v8887_v33 }
 0xbdb   : > { %v8986_v46 = vpop.f32.mrf.mxu0  ;;  %v8891_v49 = vadd.f32 %v8886_v61, %v16497_v12  ;;  %v8892_v24 = vadd.f32 %v8888_v5, %v16499_v26  ;;  %v9067_v12 = vsel %vm447_vm4, %v9065_v17, %v9066_v0 }
 0xbdc   : > { %v9053_v34 = vrot.slane %v8986_v46, 1 }
 0xbdd   : > { %v8988_v35 = vpop.f32.mrf.mxu0  ;;  %v9048_v31 = vadd.f32 %v8984_v59, %v8891_v49 }
 0xbde   : > { %v9049_v52 = vadd.f32 %v8988_v35, %v8892_v24 }
 0xbdf   : > { %v8990_v20 = vpop.f32.mrf.mxu0 }
 0xbe0   : > { %v9054_v14 = vrot.slane %v8990_v20, 1 }
 0xbe1   : > { %v8994_v44 = vpop.f32.mrf.mxu0 }
 0xbe2   : > { %v9055_v1 = vsel %vm434_vm3, %v9053_v34, %v9054_v14 }
 0xbe3   : > { %v9060_v55 = vadd.f32 %v9055_v1, %v9048_v31  ;;  %v8995_v32 = vpop.f32.mrf.mxu0 }
 0xbe4   : > { %v9056_v29 = vrot.slane %v8995_v32, 1 }
 0xbe5   : > { %v9072_v18 = vadd.f32 %v9067_v12, %v9060_v55  ;;  %v8997_v48 = vpop.f32.mrf.mxu0  ;;  %v13995_v12 = vld [vmem:[%s14179_s14 + $0xb0] ss:$0 sps:$4 sm:$0x11]  }
 0xbe6   : > { %v9057_v26 = vsel %vm434_vm3, %v9054_v14, %v9056_v29  ;;  %v13996_v29 = vld [vmem:[%s17070_s1 + $0x20] ss:$0 sps:$4 sm:$0xff]   ;;  %12397 = vmatmul.mubr.msk.bf16.gmra.mxu1 %vm316_vm1, %v13995_v12  ;;  %v13998_v48 = vld [vmem:[%s17072_s3 + $0x38] sm:$0xff]  }
 0xbe7   : > { %v9061_v19 = vadd.f32 %v9057_v26, %v9049_v52  ;;  %v8998_v45 = vpop.f32.mrf.mxu0  ;;  %v9103_v7 = vadd.f32 %v16628_v56, %v9072_v18  ;;  %13613 = vmatprep.subr.msk.bf16.mxu1 %vm323_vm0, %v13996_v29  ;;  %v9965_v52 = vsel %vm323_vm0, %v13996_v29, 0  ;;  %13487 = vmatprep.mubr.msk.bf16.mxu1 %vm316_vm1, %v16608_v50  ;;  %v13997_v18 = vld [vmem:[%s17070_s1 + $0x8] ss:$12 sps:$4 sm:$0xff]  }
 0xbe8   : > { %13484 = vmatpush3.bf16.msra.mxu1 %v9965_v52  ;;  %v16697_v50 = vld [vmem:[%s14179_s14 + $0xb4] sm:$0xff]   ;;  %v16715_v45 = vld [vmem:[%s14179_s14 + $0xbc] ss:$0 sps:$4 sm:$0x11]  }
 0xbe9   : > { %v9073_v62 = vadd.f32 %v9069_v37, %v9061_v19  ;;  %v9105_v63 = vmax.f32 %v9103_v7, 0.0  ;;  %13485 = vmatprep.subr.bf16.mxu1 %v13997_v18  ;;  %v14004_v37 = vld [vmem:[%s17072_s3 + $0x18] sm:$0xff]   ;;  %v14005_v7 = vld [vmem:[%s17072_s3 + $0x10] sm:$0xff]  }
 0xbeb   : > { %v9104_v21 = vadd.f32 %v16628_v56, %v9073_v62  ;;  %v14006_v62 = vld [vmem:[%s17072_s3 + $0x8] sm:$0xff]  }
 0xbec   : > { %13486 = vmatpush3.bf16.msra.mxu1 %v13997_v18 }
 0xbed   : > { %v9106_v22 = vmax.f32 %v9104_v21, 0.0  ;;  %12417 = vmatprep.subr.msk.bf16.mxu1 %vm323_vm0, %v16316_v43  ;;  %v13999_v43 = vld [vmem:[%s17072_s3 + $0x30] sm:$0xff]   ;;  %v14007_v21 = vld [vmem:[%s17072_s3] sm:$0xff]  }
 0xbef   : > { %v9107_v11 = vpack.c.bf16 %v9106_v22, %v9105_v63  ;;  %13488 = vmatmul.mubr.msk.bf16.vlgmr.msra.gmra.mxu1 %vm316_vm1, %v13995_v12  ;;  %v16738_v63 = vld [vmem:[%s17070_s1 + $0x44] ss:$0 sps:$4 sm:$0xff]   ;;  %v14010_v22 = vld [vmem:[%s17070_s1 + $0x68] ss:$0 sps:$4 sm:$0xff]  }
 0xbf0   : > { %10158 = vmatpush1.bf16.msra.mxu1 %v16325_v23  ;;  %10177 = vmatprep.mubr.bf16.mxu1 %v14087_v4  ;;  %v14001_v23 = vld [vmem:[%s17072_s3 + $0x28] sm:$0xff]  }
 0xbf1   : > { %13436 = vmatmul.mubr.bf16.vlgmr.msra.gmra.mxu0 %v9107_v11  ;;  %10159 = vmatprep.subr.bf16.mxu1 %v16332_v53  ;;  %v10324_v11 = vsel %vm323_vm0, %v14010_v22, 0 }
 0xbf2   : > { %13448 = vmatpush3.bf16.msra.mxu0 %v9455_v47  ;;  %13451 = vmatprep.mubr.msk.bf16.mxu0 %vm316_vm1, %v16528_v60  ;;  %v9323_v60 = vpop.f32.mrf.mxu1  ;;  %v14011_v47 = vld [vmem:[%s17070_s1 + $0x50] ss:$12 sps:$4 sm:$0xff]  }
 0xbf3   : > { %13449 = vmatprep.subr.bf16.mxu0 %v13989_v9  ;;  %v16754_v60 = vld [vmem:[%s14179_s14 + $0xc8] ss:$0 sps:$4 sm:$0x11]  }
 0xbf4   : > { %10160 = vmatpush1.bf16.msra.mxu1 %v16338_v36  ;;  %v14002_v36 = vld [vmem:[%s17072_s3 + $0x20] sm:$0xff]  }
 0xbf5   : > { %13615 = vmatprep.subr.msk.bf16.mxu1 %vm323_vm0, %v14010_v22 }
 0xbf6   : > { %13450 = vmatpush3.bf16.msra.mxu0 %v13989_v9  ;;  %v16751_v9 = vld [vmem:[%s14179_s14 + $0xc0] sm:$0xff]  }
 0xbf7   : > { %12367 = vmatprep.subr.msk.bf16.mxu0 %vm323_vm0, %v16457_v13  ;;  %12418 = vmatmul.mubr.msk.bf16.vlgmr.msra.gmra.mxu1 %vm316_vm1, %v16697_v50 }
 0xbf8   : > { %10187 = vmatprep.mubr.bf16.mxu1 %v14087_v4  ;;  %13500 = vmatpush3.bf16.msra.mxu1 %v10324_v11 }
 0xbf9   : > { %13452 = vmatmul.mubr.msk.bf16.vlgmr.msra.gmra.mxu0 %vm316_vm1, %v16546_v38  ;;  %v9324_v38 = vpop.f32.mrf.mxu1  ;;  %13501 = vmatprep.subr.bf16.mxu1 %v14011_v47 }
 0xbfa   : > { %9651 = vmatpush1.bf16.msra.mxu0 %v16462_v25  ;;  %9670 = vmatprep.mubr.bf16.mxu0 %v14087_v4  ;;  %v9383_v28 = vrot.slane %v9324_v38, 1 }
 0xbfb   : > { %9652 = vmatprep.subr.bf16.mxu0 %v16467_v54  ;;  %v9326_v10 = vpop.f32.mrf.mxu1 }
 0xbfc   : > { %v9384_v6 = vsel %vm434_vm3, %v9381_v58, %v9383_v28  ;;  %13502 = vmatpush3.bf16.msra.mxu1 %v14011_v47 }
 0xbfd   : > { %v9327_v3 = vpop.f32.mrf.mxu1  ;;  %v9388_v61 = vadd.f32 %v9384_v6, %v16597_v42 }
 0xbfe   : > { %9653 = vmatpush1.bf16.msra.mxu0 %v16475_v27 }
 0xbff   : > { %13463 = vmatprep.subr.bf16.mxu0 %v14088_v40  ;;  %v13445_v8 = vpop.f32.mrf.mxu1  ;;  %12419 = vmatmul.mubr.msk.bf16.gmra.mxu1 %vm316_vm1, %v16715_v45 }
 0xc00   : > { %v9395_v51 = vrot.slane %v13445_v8, 2  ;;  %13503 = vmatprep.mubr.msk.bf16.mxu1 %vm316_vm1, %v16751_v9 }
 0xc01   : > { %12368 = vmatmul.mubr.msk.bf16.vlgmr.msra.gmra.mxu0 %vm316_vm1, %v16582_v41  ;;  %v9363_v39 = vpop.f32.mrf.mxu1 }
 0xc02   : > { %9680 = vmatprep.mubr.bf16.mxu0 %v14087_v4  ;;  %v9392_v2 = vrot.slane %v9363_v39, 2  ;;  %13464 = vmatpush3.bf16.msra.mxu0 %v13998_v48 }
 0xc03   : > { %v13446_v41 = vpop.f32.mrf.mxu1  ;;  %13465 = vmatprep.subr.bf16.mxu0 %v14088_v40 }
 0xc05   : > { %v9366_v59 = vpop.f32.mrf.mxu1 }
 0xc06   : > { %13466 = vmatpush3.bf16.msra.mxu0 %v13999_v43 }
 0xc07   : > { %v9491_v46 = vpop.f32.mrf.mxu1  ;;  %13467 = vmatprep.subr.bf16.mxu0 %v14088_v40  ;;  %13504 = vmatmul.mubr.msk.bf16.vlgmr.msra.gmra.mxu1 %vm316_vm1, %v16754_v60 }
 0xc08   : > { %10687 = vmatprep.mubr.bf16.mxu1 %v14087_v4 }
 0xc09   : > { %12369 = vmatmul.mubr.msk.bf16.gmra.mxu0 %vm316_vm1, %v16585_v57  ;;  %v9393_v57 = vrot.slane %v9366_v59, 2  ;;  %v9493_v5 = vpop.f32.mrf.mxu1 }
 0xc0a   : > { %13479 = vmatprep.mubr.msk.bf16.mxu0 %vm14089_vm2, %v14088_v40  ;;  %v9560_v58 = vrot.slane %v9493_v5, 1  ;;  %13468 = vmatpush3.bf16.msra.mxu0 %v14001_v23 }
 0xc0b   : > { %v9394_v33 = vsel %vm447_vm4, %v9392_v2, %v9393_v57  ;;  %v9396_v49 = vsel %vm447_vm4, %v9393_v57, %v9395_v51  ;;  %v9495_v34 = vpop.f32.mrf.mxu1  ;;  %13469 = vmatprep.subr.bf16.mxu0 %v14088_v40  ;;  %v10606_v2 = vld [vmem:[%s17070_s1 + $0x18] sm:$0xff] }
 0xc0c   : > { %v9399_v35 = vadd.f32 %v9394_v33, %v16605_v15  ;;  %v9400_v20 = vadd.f32 %v9396_v49, %v9388_v61  ;;  %v12465_v59 = vcombine.high %v10606_v2, %v10606_v2  ;;  %v12464_v61 = vcombine.low %v10606_v2, %v10606_v2  ;;  %v14018_v33 = vld [vmem:[%s17070_s1 + $0x4] ss:$12 sps:$4 sm:$0xff]   ;;  %v16785_v49 = vld [vmem:[%s14179_s14 + $0xb4] sm:$0xff]  }
 0xc0d   : > { %v9497_v14 = vpop.f32.mrf.mxu1 }
 0xc0e   : > { %v9555_v30 = vadd.f32 %v9491_v46, %v9399_v35  ;;  %v9556_v17 = vadd.f32 %v9495_v34, %v9400_v20  ;;  %v9561_v0 = vrot.slane %v9497_v14, 1  ;;  %13470 = vmatpush3.bf16.msra.mxu0 %v14002_v36  ;;  %12467 = vmatprep.subr.msk.bf16.mxu1 %vm323_vm0, %v12465_v59  ;;  %v10647_v57 = vsel %vm323_vm0, %v12464_v61, 0  ;;  %v14016_v46 = vld [vmem:[%s17070_s1] ss:$12 sps:$4 sm:$0xff]  }
 0xc0f   : > { %v9501_v31 = vpop.f32.mrf.mxu1  ;;  %13471 = vmatprep.subr.bf16.mxu0 %v14088_v40  ;;  %10668 = vmatpush1.bf16.msra.mxu1 %v10647_v57  ;;  %v16793_v35 = vld [vmem:[%s17073_s4] ss:$0 sm:$0xff] }
 0xc10   : > { %v9562_v42 = vsel %vm434_vm3, %v9560_v58, %v9561_v0  ;;  %10669 = vmatprep.subr.bf16.mxu1 %v14018_v33 }
 0xc11   : > { %v9502_v24 = vpop.f32.mrf.mxu1  ;;  %v16666_v16 = vadd.f32 %v9562_v42, %v9555_v30 }
 0xc12   : > { %v9563_v44 = vrot.slane %v9502_v24, 1  ;;  %13472 = vmatpush3.bf16.msra.mxu0 %v14004_v37 }
 0xc13   : > { %v9504_v1 = vpop.f32.mrf.mxu1  ;;  %13473 = vmatprep.subr.bf16.mxu0 %v14088_v40  ;;  %10670 = vmatpush1.bf16.msra.mxu1 %v14016_v46 }
 0xc14   : > { %v9564_v55 = vsel %vm434_vm3, %v9561_v0, %v9563_v44 }
 0xc15   : > { %v9505_v32 = vpop.f32.mrf.mxu1  ;;  %v16668_v15 = vadd.f32 %v9564_v55, %v9556_v17 }
 0xc16   : > { %13474 = vmatpush3.bf16.msra.mxu0 %v14005_v7  ;;  %12468 = vmatmul.mubr.msk.bf16.vlgmr.msra.gmra.mxu1 %vm316_vm1, %v16785_v49 }
 0xc17   : > { %v16705_v53 = vpop.f32.mrf.mxu1  ;;  %13475 = vmatprep.subr.bf16.mxu0 %v14088_v40  ;;  %10697 = vmatprep.mubr.bf16.mxu1 %v14087_v4 }
 0xc19   : > { %v16708_v26 = vpop.f32.mrf.mxu1 }
 0xc1a   : > { %13476 = vmatpush3.bf16.msra.mxu0 %v14006_v62  ;;  %v9753_v23 = vrot.slane %v16708_v26, 2 }
 0xc1b   : > { %v13462_v19 = vpop.f32.mrf.mxu1  ;;  %13477 = vmatprep.subr.bf16.mxu0 %v14088_v40 }
 0xc1d   : > { %v16761_v38 = vpop.f32.mrf.mxu1 }
 0xc1e   : > { %13478 = vmatpush3.bf16.msra.mxu0 %v14007_v21  ;;  %v9754_v19 = vrot.slane %v16761_v38, 2 }
 0xc1f   : > { %13614 = vmatprep.subr.msk.bf16.mxu0 %vm323_vm0, %v16738_v63  ;;  %v10001_v10 = vpop.f32.mrf.mxu1 }
 0xc20   : > { %v9755_v47 = vsel %vm447_vm4, %v9753_v23, %v9754_v19 }
 0xc21   : > { %v10003_v3 = vpop.f32.mrf.mxu1 }
 0xc22   : > { %v10068_v39 = vrot.slane %v10003_v3, 1 }
 0xc23   : > { %v16763_v28 = vpop.f32.mrf.mxu1 }
 0xc25   : > { %v16765_v8 = vpop.f32.mrf.mxu1 }
 0xc26   : > { %v10069_v6 = vrot.slane %v16765_v8, 1 }
 0xc28   : > { %v10070_v41 = vsel %vm434_vm3, %v10068_v39, %v10069_v6 }
 0xc29   : > { %v16771_v51 = vadd.f32 %v10070_v41, %v10001_v10 }
 0xcb1   : > { %v9213_v5 = vpop.f32.mrf.mxu0 }
 0xcb2   : > { %v9214_v20 = vadd.f32 %v16793_v35, %v9213_v5  ;;  %v10143_v5 = vsel %vm323_vm0, %v16738_v63, 0 }
 0xcb3   : > { %v13437_v30 = vpop.f32.mrf.mxu0 }
 0xcb4   : > { %12310 = vst [vmem:[%s14569_s9 + $0xc0] sm:$0xff] %v9214_v20  ;;  %v14009_v20 = vld [vmem:[%s17070_s1 + $0x2c] ss:$12 sps:$4 sm:$0xff]  }
 0xcb5   : > { %v9216_v34 = vpop.f32.mrf.mxu0 }
 0xcb6   : > { %v9217_v58 = vadd.f32 %v16793_v35, %v9216_v34 }
 0xcb7   : > { %v13438_v17 = vpop.f32.mrf.mxu0 }
 0xcb8   : > { %12311 = vst [vmem:[%s14569_s9 + $0xc8] sm:$0xff] %v9217_v58 }
 0xcb9   : > { %v13453_v14 = vpop.f32.mrf.mxu0 }
 0xcba   : > { %v9575_v12 = vrot.slane %v13453_v14, 2 }
 0xcbb   : > { %v9541_v0 = vpop.f32.mrf.mxu0 }
 0xcbc   : > { %v9572_v24 = vrot.slane %v9541_v0, 2 }
 0xcbd   : > { %v13454_v31 = vpop.f32.mrf.mxu0 }
 0xcbf   : > { %v9544_v42 = vpop.f32.mrf.mxu0 }
 0xcc0   : > { %v9573_v44 = vrot.slane %v9544_v42, 2 }
 0xcc1   : > { %v9672_v1 = vpop.f32.mrf.mxu0 }
 0xcc2   : > { %v9574_v55 = vsel %vm447_vm4, %v9572_v24, %v9573_v44  ;;  %v9576_v18 = vsel %vm447_vm4, %v9573_v44, %v9575_v12 }
 0xcc3   : > { %v9674_v32 = vpop.f32.mrf.mxu0  ;;  %v9579_v29 = vadd.f32 %v9574_v55, %v16666_v16  ;;  %v9580_v7 = vadd.f32 %v9576_v18, %v16668_v15  ;;  %v9756_v16 = vrot.slane %v16705_v53, 2 }
 0xcc4   : > { %v9741_v43 = vrot.slane %v9674_v32, 1 }
 0xcc5   : > { %v9676_v52 = vpop.f32.mrf.mxu0  ;;  %v9736_v37 = vadd.f32 %v9672_v1, %v9579_v29  ;;  %v9757_v59 = vsel %vm447_vm4, %v9754_v19, %v9756_v16 }
 0xcc6   : > { %v9737_v3 = vadd.f32 %v9676_v52, %v9580_v7  ;;  %v14021_v7 = vld [vmem:[%s17070_s1 + $0x20] ss:$0 sps:$4 sm:$0xff]  }
 0xcc7   : > { %v9678_v48 = vpop.f32.mrf.mxu0  ;;  %13616 = vmatprep.subr.msk.bf16.mxu1 %vm323_vm0, %v14021_v7 }
 0xcc8   : > { %v9742_v36 = vrot.slane %v9678_v48, 1 }
 0xcc9   : > { %v9682_v62 = vpop.f32.mrf.mxu0 }
 0xcca   : > { %v9743_v21 = vsel %vm434_vm3, %v9741_v43, %v9742_v36  ;;  %v10653_v62 = vsel %vm323_vm0, %v14021_v7, 0 }
 0xccb   : > { %v9748_v22 = vadd.f32 %v9743_v21, %v9736_v37  ;;  %v9683_v11 = vpop.f32.mrf.mxu0  ;;  %v14020_v37 = vld [vmem:[%s14179_s14 + $0xbc] ss:$0 sps:$4 sm:$0x11]   ;;  %13528 = vmatpush3.bf16.msra.mxu1 %v10653_v62  ;;  %v14022_v21 = vld [vmem:[%s17070_s1 + $0x8] ss:$12 sps:$4 sm:$0xff]  }
 0xccc   : > { %v9744_v10 = vrot.slane %v9683_v11, 1  ;;  %12469 = vmatmul.mubr.msk.bf16.gmra.mxu1 %vm316_vm1, %v14020_v37  ;;  %13529 = vmatprep.subr.bf16.mxu1 %v14022_v21 }
 0xccd   : > { %v9760_v39 = vadd.f32 %v9755_v47, %v9748_v22  ;;  %v9685_v41 = vpop.f32.mrf.mxu0  ;;  %13531 = vmatprep.mubr.msk.bf16.mxu1 %vm316_vm1, %v16785_v49  ;;  %v12479_v22 = vld [vmem:[%s17070_s1 + $0x3c] sm:$0xff] }
 0xcce   : > { %v9745_v26 = vsel %vm434_vm3, %v9742_v36, %v9744_v10  ;;  %v12487_v11 = vcombine.high %v12479_v22, %v12479_v22  ;;  %v12486_v16 = vcombine.low %v12479_v22, %v12479_v22  ;;  %v14024_v49 = vld [vmem:[%s17072_s3 + $0x38] sm:$0xff]   ;;  %v14028_v10 = vld [vmem:[%s17070_s1 + $0x28] ss:$12 sps:$4 sm:$0xff]   ;;  %v16881_v41 = vld [vmem:[%s14179_s14 + $0xc0] sm:$0xff]  }
 0xccf   : > { %v9749_v2 = vadd.f32 %v9745_v26, %v9737_v3  ;;  %v9686_v38 = vpop.f32.mrf.mxu0  ;;  %v9791_v15 = vadd.f32 %v16628_v56, %v9760_v39  ;;  %13530 = vmatpush3.bf16.msra.mxu1 %v14022_v21  ;;  %v14026_v3 = vld [vmem:[%s17070_s1 + $0x24] ss:$12 sps:$4 sm:$0xff]   ;;  %v14031_v26 = vld [vmem:[%s17072_s3 + $0x28] sm:$0xff]  }
 0xcd0   : > { %12489 = vmatprep.subr.msk.bf16.mxu1 %vm323_vm0, %v12487_v11  ;;  %v10825_v47 = vsel %vm323_vm0, %v12486_v16, 0  ;;  %v14029_v39 = vld [vmem:[%s17072_s3 + $0x30] sm:$0xff]  }
 0xcd1   : > { %v9761_v61 = vadd.f32 %v9757_v59, %v9749_v2  ;;  %v9793_v46 = vmax.f32 %v9791_v15, 0.0  ;;  %v14032_v59 = vld [vmem:[%s17072_s3 + $0x20] sm:$0xff]  }
 0xcd3   : > { %v9792_v57 = vadd.f32 %v16628_v56, %v9761_v61  ;;  %v16899_v61 = vld [vmem:[%s14179_s14 + $0xc8] ss:$0 sps:$4 sm:$0x11]  }
 0xcd4   : > { %13532 = vmatmul.mubr.msk.bf16.vlgmr.msra.gmra.mxu1 %vm316_vm1, %v14020_v37 }
 0xcd5   : > { %v9794_v33 = vmax.f32 %v9792_v57, 0.0  ;;  %10846 = vmatpush1.bf16.msra.mxu1 %v10825_v47  ;;  %10865 = vmatprep.mubr.bf16.mxu1 %v14087_v4  ;;  %v14034_v57 = vld [vmem:[%s17072_s3 + $0x18] sm:$0xff]  }
 0xcd6   : > { %10847 = vmatprep.subr.bf16.mxu1 %v14028_v10 }
 0xcd7   : > { %v9795_v53 = vpack.c.bf16 %v9794_v33, %v9793_v46  ;;  %v14035_v46 = vld [vmem:[%s17072_s3 + $0x10] sm:$0xff]   ;;  %v14036_v33 = vld [vmem:[%s17072_s3 + $0x8] sm:$0xff]  }
 0xcd9   : > { %13480 = vmatmul.mubr.bf16.vlgmr.msra.gmra.mxu0 %v9795_v53  ;;  %10848 = vmatpush1.bf16.msra.mxu1 %v14026_v3  ;;  %v14037_v53 = vld [vmem:[%s17072_s3] sm:$0xff]  }
 0xcda   : > { %13492 = vmatpush3.bf16.msra.mxu0 %v10143_v5  ;;  %13495 = vmatprep.mubr.msk.bf16.mxu0 %vm316_vm1, %v16697_v50  ;;  %v10011_v50 = vpop.f32.mrf.mxu1  ;;  %v16922_v5 = vld [vmem:[%s17070_s1 + $0x44] ss:$0 sps:$4 sm:$0xff]  }
 0xcdb   : > { %13493 = vmatprep.subr.bf16.mxu0 %v14009_v20 }
 0xcdc   : > { %12490 = vmatmul.mubr.msk.bf16.vlgmr.msra.gmra.mxu1 %vm316_vm1, %v16881_v41 }
 0xcdd   : > { %10875 = vmatprep.mubr.bf16.mxu1 %v14087_v4 }
 0xcde   : > { %13494 = vmatpush3.bf16.msra.mxu0 %v14009_v20  ;;  %v14040_v20 = vld [vmem:[%s17070_s1 + $0x68] ss:$0 sps:$4 sm:$0xff]  }
 0xcdf   : > { %12439 = vmatprep.subr.msk.bf16.mxu0 %vm323_vm0, %v16457_v13  ;;  %v10012_v13 = vpop.f32.mrf.mxu1  ;;  %13618 = vmatprep.subr.msk.bf16.mxu1 %vm323_vm0, %v14040_v20  ;;  %v11012_v50 = vsel %vm323_vm0, %v14040_v20, 0 }
 0xce0   : > { %13544 = vmatpush3.bf16.msra.mxu1 %v11012_v50 }
 0xce1   : > { %13496 = vmatmul.mubr.msk.bf16.vlgmr.msra.gmra.mxu0 %vm316_vm1, %v16715_v45 }
 0xce2   : > { %10339 = vmatpush1.bf16.msra.mxu0 %v16462_v25  ;;  %10358 = vmatprep.mubr.bf16.mxu0 %v14087_v4  ;;  %v10014_v25 = vpop.f32.mrf.mxu1 }
 0xce3   : > { %10340 = vmatprep.subr.bf16.mxu0 %v16467_v54  ;;  %v10071_v54 = vrot.slane %v10012_v13, 1  ;;  %v14046_v13 = vld [vmem:[%s17070_s1 + $0x50] ss:$12 sps:$4 sm:$0xff]  }
 0xce4   : > { %v10015_v45 = vpop.f32.mrf.mxu1  ;;  %12491 = vmatmul.mubr.msk.bf16.gmra.mxu1 %vm316_vm1, %v16899_v61  ;;  %13545 = vmatprep.subr.bf16.mxu1 %v14046_v13  ;;  %v16935_v25 = vld [vmem:[%s14179_s14 + $0xcc] sm:$0xff]  }
 0xce5   : > { %v10072_v30 = vsel %vm434_vm3, %v10069_v6, %v10071_v54  ;;  %13546 = vmatpush3.bf16.msra.mxu1 %v14046_v13  ;;  %v16938_v45 = vld [vmem:[%s14179_s14 + $0xd4] ss:$0 sps:$4 sm:$0x11]   ;;  %13547 = vmatprep.mubr.msk.bf16.mxu1 %vm316_vm1, %v16935_v25 }
 0xce6   : > { %10341 = vmatpush1.bf16.msra.mxu0 %v16475_v27  ;;  %v13489_v63 = vpop.f32.mrf.mxu1  ;;  %v10076_v14 = vadd.f32 %v10072_v30, %v16763_v28 }
 0xce7   : > { %13507 = vmatprep.subr.bf16.mxu0 %v14088_v40  ;;  %v10083_v34 = vrot.slane %v13489_v63, 2 }
 0xce8   : > { %v10051_v27 = vpop.f32.mrf.mxu1 }
 0xce9   : > { %12440 = vmatmul.mubr.msk.bf16.vlgmr.msra.gmra.mxu0 %vm316_vm1, %v16751_v9  ;;  %v10080_v58 = vrot.slane %v10051_v27, 2 }
 0xcea   : > { %10368 = vmatprep.mubr.bf16.mxu0 %v14087_v4  ;;  %v13490_v9 = vpop.f32.mrf.mxu1  ;;  %13508 = vmatpush3.bf16.msra.mxu0 %v14024_v49 }
 0xceb   : > { %13509 = vmatprep.subr.bf16.mxu0 %v14088_v40 }
 0xcec   : > { %v10054_v17 = vpop.f32.mrf.mxu1  ;;  %13548 = vmatmul.mubr.msk.bf16.vlgmr.msra.gmra.mxu1 %vm316_vm1, %v16938_v45 }
 0xcee   : > { %v10179_v0 = vpop.f32.mrf.mxu1  ;;  %13510 = vmatpush3.bf16.msra.mxu0 %v14029_v39 }
 0xcef   : > { %13511 = vmatprep.subr.bf16.mxu0 %v14088_v40 }
 0xcf0   : > { %v10181_v44 = vpop.f32.mrf.mxu1 }
 0xcf1   : > { %12441 = vmatmul.mubr.msk.bf16.gmra.mxu0 %vm316_vm1, %v16754_v60  ;;  %v10081_v60 = vrot.slane %v10054_v17, 2  ;;  %v10248_v6 = vrot.slane %v10181_v44, 1 }
 0xcf2   : > { %13523 = vmatprep.mubr.msk.bf16.mxu0 %vm14089_vm2, %v14088_v40  ;;  %v10183_v55 = vpop.f32.mrf.mxu1  ;;  %13512 = vmatpush3.bf16.msra.mxu0 %v14031_v26 }
 0xcf3   : > { %v10082_v31 = vsel %vm447_vm4, %v10080_v58, %v10081_v60  ;;  %v10084_v42 = vsel %vm447_vm4, %v10081_v60, %v10083_v34  ;;  %13513 = vmatprep.subr.bf16.mxu0 %v14088_v40 }
 0xcf4   : > { %v10087_v24 = vadd.f32 %v10082_v31, %v16771_v51  ;;  %v10088_v1 = vadd.f32 %v10084_v42, %v10076_v14  ;;  %v10185_v12 = vpop.f32.mrf.mxu1 }
 0xcf5   : > { %v10249_v29 = vrot.slane %v10185_v12, 1 }
 0xcf6   : > { %v10243_v8 = vadd.f32 %v10179_v0, %v10087_v24  ;;  %v10244_v32 = vadd.f32 %v10183_v55, %v10088_v1  ;;  %v10189_v52 = vpop.f32.mrf.mxu1  ;;  %13514 = vmatpush3.bf16.msra.mxu0 %v14032_v59 }
 0xcf7   : > { %v10250_v28 = vsel %vm434_vm3, %v10248_v6, %v10249_v29  ;;  %13515 = vmatprep.subr.bf16.mxu0 %v14088_v40 }
 0xcf8   : > { %v10190_v18 = vpop.f32.mrf.mxu1  ;;  %v16844_v19 = vadd.f32 %v10250_v28, %v10243_v8 }
 0xcf9   : > { %v10251_v48 = vrot.slane %v10190_v18, 1 }
 0xcfa   : > { %v10192_v43 = vpop.f32.mrf.mxu1  ;;  %13516 = vmatpush3.bf16.msra.mxu0 %v14034_v57 }
 0xcfb   : > { %v10252_v23 = vsel %vm434_vm3, %v10249_v29, %v10251_v48  ;;  %13517 = vmatprep.subr.bf16.mxu0 %v14088_v40 }
 0xcfc   : > { %v10193_v36 = vpop.f32.mrf.mxu1  ;;  %v16846_v51 = vadd.f32 %v10252_v23, %v10244_v32 }
 0xcfe   : > { %v16889_v2 = vpop.f32.mrf.mxu1  ;;  %13518 = vmatpush3.bf16.msra.mxu0 %v14035_v46 }
 0xcff   : > { %13519 = vmatprep.subr.bf16.mxu0 %v14088_v40  ;;  %v10444_v3 = vrot.slane %v16889_v2, 2 }
 0xd00   : > { %v16892_v38 = vpop.f32.mrf.mxu1 }
 0xd01   : > { %v10441_v7 = vrot.slane %v16892_v38, 2 }
 0xd02   : > { %v13506_v15 = vpop.f32.mrf.mxu1  ;;  %13520 = vmatpush3.bf16.msra.mxu0 %v14036_v33 }
 0xd03   : > { %13521 = vmatprep.subr.bf16.mxu0 %v14088_v40 }
 0xd04   : > { %v10413_v54 = vpop.f32.mrf.mxu1 }
 0xd05   : > { %v10442_v21 = vrot.slane %v10413_v54, 2  ;;  %v10831_v54 = vsel %vm323_vm0, %v16922_v5, 0 }
 0xd06   : > { %13522 = vmatpush3.bf16.msra.mxu0 %v14037_v53  ;;  %v10689_v63 = vpop.f32.mrf.mxu1 }
 0xd07   : > { %13617 = vmatprep.subr.msk.bf16.mxu0 %vm323_vm0, %v16922_v5  ;;  %v10445_v33 = vsel %vm447_vm4, %v10442_v21, %v10444_v3 }
 0xd08   : > { %v10691_v27 = vpop.f32.mrf.mxu1 }
 0xd09   : > { %v10756_v34 = vrot.slane %v10691_v27, 1  ;;  %v12501_v27 = vld [vmem:[%s17070_s1 + $0x60] sm:$0xff] }
 0xd0a   : > { %v16944_v30 = vpop.f32.mrf.mxu1 }
 0xd0c   : > { %v16946_v9 = vpop.f32.mrf.mxu1 }
 0xd0d   : > { %v10757_v58 = vrot.slane %v16946_v9, 1 }
 0xd0f   : > { %v10758_v17 = vsel %vm434_vm3, %v10756_v34, %v10757_v58  ;;  %v12508_v34 = vcombine.low %v12501_v27, %v12501_v27 }
 0xd10   : > { %v16952_v14 = vadd.f32 %v10758_v17, %v10689_v63  ;;  %v14039_v63 = vld [vmem:[%s17070_s1 + $0x2c] ss:$12 sps:$4 sm:$0xff]  }
 0xd11   : > { %v11006_v5 = vsel %vm323_vm0, %v12508_v34, 0  ;;  %v14045_v17 = vld [vmem:[%s17070_s1 + $0x4c] ss:$12 sps:$4 sm:$0xff]  }
 0xd99   : > { %v9901_v60 = vpop.f32.mrf.mxu0 }
 0xd9a   : > { %v9902_v0 = vadd.f32 %v16793_v35, %v9901_v60  ;;  %v10699_v60 = vpop.f32.mrf.mxu1 }
 0xd9b   : > { %v13481_v31 = vpop.f32.mrf.mxu0 }
 0xd9c   : > { %12382 = vst [vmem:[%s14569_s9 + $0xd0] sm:$0xff] %v9902_v0 }
 0xd9d   : > { %v9904_v42 = vpop.f32.mrf.mxu0 }
 0xd9e   : > { %v9905_v24 = vadd.f32 %v16793_v35, %v9904_v42 }
 0xd9f   : > { %v13482_v44 = vpop.f32.mrf.mxu0 }
 0xda0   : > { %12383 = vst [vmem:[%s14569_s9 + $0xd8] sm:$0xff] %v9905_v24 }
 0xda1   : > { %v13497_v1 = vpop.f32.mrf.mxu0 }
 0xda2   : > { %v10263_v18 = vrot.slane %v13497_v1, 2 }
 0xda3   : > { %v10229_v8 = vpop.f32.mrf.mxu0 }
 0xda4   : > { %v10260_v32 = vrot.slane %v10229_v8, 2 }
 0xda5   : > { %v13498_v55 = vpop.f32.mrf.mxu0 }
 0xda7   : > { %v10232_v6 = vpop.f32.mrf.mxu0 }
 0xda8   : > { %v10261_v12 = vrot.slane %v10232_v6, 2 }
 0xda9   : > { %v10360_v29 = vpop.f32.mrf.mxu0 }
 0xdaa   : > { %v10262_v52 = vsel %vm447_vm4, %v10260_v32, %v10261_v12  ;;  %v10264_v23 = vsel %vm447_vm4, %v10261_v12, %v10263_v18 }
 0xdab   : > { %v10362_v28 = vpop.f32.mrf.mxu0  ;;  %v10267_v48 = vadd.f32 %v10262_v52, %v16844_v19  ;;  %v10268_v11 = vadd.f32 %v10264_v23, %v16846_v51  ;;  %v10443_v19 = vsel %vm447_vm4, %v10441_v7, %v10442_v21 }
 0xdac   : > { %v10429_v37 = vrot.slane %v10362_v28, 1 }
 0xdad   : > { %v10364_v43 = vpop.f32.mrf.mxu0  ;;  %v10424_v22 = vadd.f32 %v10360_v29, %v10267_v48 }
 0xdae   : > { %v10425_v26 = vadd.f32 %v10364_v43, %v10268_v11 }
 0xdaf   : > { %v10366_v36 = vpop.f32.mrf.mxu0 }
 0xdb0   : > { %v10430_v62 = vrot.slane %v10366_v36, 1 }
 0xdb1   : > { %v10370_v16 = vpop.f32.mrf.mxu0 }
 0xdb2   : > { %v10431_v49 = vsel %vm434_vm3, %v10429_v37, %v10430_v62 }
 0xdb3   : > { %v10436_v47 = vadd.f32 %v10431_v49, %v10424_v22  ;;  %v10371_v10 = vpop.f32.mrf.mxu0 }
 0xdb4   : > { %v10432_v39 = vrot.slane %v10371_v10, 1  ;;  %v14051_v10 = vld [vmem:[%s17072_s3 + $0x28] sm:$0xff]  }
 0xdb5   : > { %v10448_v59 = vadd.f32 %v10443_v19, %v10436_v47  ;;  %v10373_v15 = vpop.f32.mrf.mxu0  ;;  %v14050_v47 = vld [vmem:[%s17072_s3 + $0x30] sm:$0xff]  }
 0xdb6   : > { %v10433_v38 = vsel %vm434_vm3, %v10430_v62, %v10432_v39  ;;  %v14052_v39 = vld [vmem:[%s17072_s3 + $0x20] sm:$0xff]   ;;  %v14054_v15 = vld [vmem:[%s17072_s3 + $0x10] sm:$0xff]  }
 0xdb7   : > { %v10437_v57 = vadd.f32 %v10433_v38, %v10425_v26  ;;  %v10374_v46 = vpop.f32.mrf.mxu0  ;;  %v10479_v51 = vadd.f32 %v16628_v56, %v10448_v59  ;;  %v14053_v59 = vld [vmem:[%s17072_s3 + $0x18] sm:$0xff]   ;;  %v14055_v38 = vld [vmem:[%s17072_s3 + $0x8] sm:$0xff]  }
 0xdb9   : > { %v10449_v53 = vadd.f32 %v10445_v33, %v10437_v57  ;;  %v10481_v50 = vmax.f32 %v10479_v51, 0.0  ;;  %v14056_v57 = vld [vmem:[%s17072_s3] sm:$0xff]  }
 0xdbb   : > { %v10480_v20 = vadd.f32 %v16628_v56, %v10449_v53  ;;  %v12509_v56 = vcombine.high %v12501_v27, %v12501_v27 }
 0xdbd   : > { %v10482_v13 = vmax.f32 %v10480_v20, 0.0 }
 0xdbf   : > { %v10483_v2 = vpack.c.bf16 %v10482_v13, %v10481_v50 }
 0xdc1   : > { %13524 = vmatmul.mubr.bf16.vlgmr.msra.gmra.mxu0 %v10483_v2 }
 0xdc2   : > { %13536 = vmatpush3.bf16.msra.mxu0 %v10831_v54  ;;  %13539 = vmatprep.mubr.msk.bf16.mxu0 %vm316_vm1, %v16881_v41  ;;  %v14043_v41 = vld [vmem:[%s17070_s1 + $0x48] ss:$12 sps:$4 sm:$0xff]  }
 0xdc3   : > { %13537 = vmatprep.subr.bf16.mxu0 %v14039_v63 }
 0xdc6   : > { %13538 = vmatpush3.bf16.msra.mxu0 %v14039_v63 }
 0xdc7   : > { %12511 = vmatprep.subr.msk.bf16.mxu0 %vm323_vm0, %v12509_v56 }
 0xdc9   : > { %13540 = vmatmul.mubr.msk.bf16.vlgmr.msra.gmra.mxu0 %vm316_vm1, %v16899_v61  ;;  %v10700_v61 = vpop.f32.mrf.mxu1 }
 0xdca   : > { %11027 = vmatpush1.bf16.msra.mxu0 %v11006_v5  ;;  %11046 = vmatprep.mubr.bf16.mxu0 %v14087_v4  ;;  %v10759_v42 = vrot.slane %v10700_v61, 1 }
 0xdcb   : > { %11028 = vmatprep.subr.bf16.mxu0 %v14045_v17  ;;  %v10702_v0 = vpop.f32.mrf.mxu1 }
 0xdcc   : > { %v10760_v1 = vsel %vm434_vm3, %v10757_v58, %v10759_v42 }
 0xdcd   : > { %v10703_v31 = vpop.f32.mrf.mxu1  ;;  %v10764_v6 = vadd.f32 %v10760_v1, %v16944_v30 }
 0xdce   : > { %11029 = vmatpush1.bf16.msra.mxu0 %v14043_v41 }
 0xdcf   : > { %13551 = vmatprep.subr.bf16.mxu0 %v14088_v40  ;;  %v13533_v24 = vpop.f32.mrf.mxu1 }
 0xdd0   : > { %v10771_v8 = vrot.slane %v13533_v24, 2 }
 0xdd1   : > { %12512 = vmatmul.mubr.msk.bf16.vlgmr.msra.gmra.mxu0 %vm316_vm1, %v16935_v25  ;;  %v10739_v44 = vpop.f32.mrf.mxu1 }
 0xdd2   : > { %11056 = vmatprep.mubr.bf16.mxu0 %v14087_v4  ;;  %v10768_v4 = vrot.slane %v10739_v44, 2 }
 0xdd3   : > { %v13534_v25 = vpop.f32.mrf.mxu1 }
 0xdd5   : > { %v10742_v55 = vpop.f32.mrf.mxu1 }
 0xdd7   : > { %v10867_v32 = vpop.f32.mrf.mxu1 }
 0xdd9   : > { %12513 = vmatmul.mubr.msk.bf16.gmra.mxu0 %vm316_vm1, %v16938_v45  ;;  %v10769_v45 = vrot.slane %v10742_v55, 2  ;;  %v10869_v28 = vpop.f32.mrf.mxu1 }
 0xdda   : > { %13567 = vmatprep.mubr.msk.bf16.mxu0 %vm14089_vm2, %v14088_v40  ;;  %v10936_v43 = vrot.slane %v10869_v28, 1 }
 0xddb   : > { %v10770_v12 = vsel %vm447_vm4, %v10768_v4, %v10769_v45  ;;  %v10772_v29 = vsel %vm447_vm4, %v10769_v45, %v10771_v8  ;;  %v10871_v9 = vpop.f32.mrf.mxu1 }
 0xddc   : > { %v10775_v52 = vadd.f32 %v10770_v12, %v16952_v14  ;;  %v10776_v18 = vadd.f32 %v10772_v29, %v10764_v6  ;;  %v14049_v14 = vld [vmem:[%s17072_s3 + $0x38] sm:$0xff]  }
 0xddd   : > { %v10873_v23 = vpop.f32.mrf.mxu1  ;;  %13552 = vmatpush3.bf16.msra.mxu0 %v14049_v14 }
 0xdde   : > { %v10931_v48 = vadd.f32 %v10867_v32, %v10775_v52  ;;  %v10932_v58 = vadd.f32 %v10871_v9, %v10776_v18  ;;  %v10937_v36 = vrot.slane %v10873_v23, 1  ;;  %13553 = vmatprep.subr.bf16.mxu0 %v14088_v40  ;;  %v12516_v18 = vld [vmem:[%s17071_s2] ss:$0 sm:$0xff] }
 0xddf   : > { %v10877_v37 = vpop.f32.mrf.mxu1 }
 0xde0   : > { %v10938_v7 = vsel %vm434_vm3, %v10936_v43, %v10937_v36 }
 0xde1   : > { %v10878_v30 = vpop.f32.mrf.mxu1  ;;  %v10943_v16 = vadd.f32 %v10938_v7, %v10931_v48  ;;  %13554 = vmatpush3.bf16.msra.mxu0 %v14050_v47 }
 0xde2   : > { %v10939_v62 = vrot.slane %v10878_v30, 1  ;;  %13555 = vmatprep.subr.bf16.mxu0 %v14088_v40 }
 0xde3   : > { %v10880_v21 = vpop.f32.mrf.mxu1 }
 0xde4   : > { %v10940_v22 = vsel %vm434_vm3, %v10937_v36, %v10939_v62  ;;  %v12517_v21 = vld [vmem:[%s17073_s4] ss:$0 sm:$0xff] }
 0xde5   : > { %v10881_v11 = vpop.f32.mrf.mxu1  ;;  %v10944_v49 = vadd.f32 %v10940_v22, %v10932_v58  ;;  %13556 = vmatpush3.bf16.msra.mxu0 %v14051_v10 }
 0xde6   : > { %13557 = vmatprep.subr.bf16.mxu0 %v14088_v40 }
 0xde7   : > { %v17019_v3 = vpop.f32.mrf.mxu1 }
 0xde8   : > { %v11132_v45 = vrot.slane %v17019_v3, 2 }
 0xde9   : > { %v11098_v19 = vpop.f32.mrf.mxu1  ;;  %13558 = vmatpush3.bf16.msra.mxu0 %v14052_v39 }
 0xdea   : > { %13559 = vmatprep.subr.bf16.mxu0 %v14088_v40  ;;  %v11129_v42 = vrot.slane %v11098_v19, 2 }
 0xdeb   : > { %v13550_v26 = vpop.f32.mrf.mxu1 }
 0xded   : > { %13560 = vmatpush3.bf16.msra.mxu0 %v14053_v59  ;;  %v11101_v61 = vpop.f32.mrf.mxu1 }
 0xdee   : > { %13561 = vmatprep.subr.bf16.mxu0 %v14088_v40  ;;  %v11130_v44 = vrot.slane %v11101_v61, 2 }
 0xdf0   : > { %v11131_v32 = vsel %vm447_vm4, %v11129_v42, %v11130_v44  ;;  %v11133_v58 = vsel %vm447_vm4, %v11130_v44, %v11132_v45 }
 0xdf1   : > { %13562 = vmatpush3.bf16.msra.mxu0 %v14054_v15 }
 0xdf2   : > { %13563 = vmatprep.subr.bf16.mxu0 %v14088_v40 }
 0xdf5   : > { %13564 = vmatpush3.bf16.msra.mxu0 %v14055_v38 }
 0xdf6   : > { %13565 = vmatprep.subr.bf16.mxu0 %v14088_v40 }
 0xdf9   : > { %13566 = vmatpush3.bf16.msra.mxu0 %v14056_v57 }
 0xe81   : > { %v10589_v46 = vpop.f32.mrf.mxu0 }
 0xe82   : > { %v10590_v33 = vadd.f32 %v16793_v35, %v10589_v46 }
 0xe83   : > { %v13525_v51 = vpop.f32.mrf.mxu0 }
 0xe84   : > { %12454 = vst [vmem:[%s14569_s9 + $0xe0] sm:$0xff] %v10590_v33 }
 0xe85   : > { %v10592_v53 = vpop.f32.mrf.mxu0 }
 0xe86   : > { %v10593_v20 = vadd.f32 %v16793_v35, %v10592_v53 }
 0xe87   : > { %v13526_v50 = vpop.f32.mrf.mxu0 }
 0xe88   : > { %12455 = vst [vmem:[%s14569_s9 + $0xe8] sm:$0xff] %v10593_v20 }
 0xe89   : > { %v13541_v13 = vpop.f32.mrf.mxu0 }
 0xe8a   : > { %v10951_v17 = vrot.slane %v13541_v13, 2 }
 0xe8b   : > { %v10917_v2 = vpop.f32.mrf.mxu0 }
 0xe8c   : > { %v10948_v40 = vrot.slane %v10917_v2, 2 }
 0xe8d   : > { %v13542_v54 = vpop.f32.mrf.mxu0 }
 0xe8f   : > { %v10920_v63 = vpop.f32.mrf.mxu0 }
 0xe90   : > { %v10949_v27 = vrot.slane %v10920_v63, 2 }
 0xe91   : > { %v11048_v56 = vpop.f32.mrf.mxu0 }
 0xe92   : > { %v10950_v34 = vsel %vm447_vm4, %v10948_v40, %v10949_v27  ;;  %v10952_v0 = vsel %vm447_vm4, %v10949_v27, %v10951_v17 }
 0xe93   : > { %v11050_v5 = vpop.f32.mrf.mxu0  ;;  %v10955_v41 = vadd.f32 %v10950_v34, %v10943_v16  ;;  %v10956_v25 = vadd.f32 %v10952_v0, %v10944_v49 }
 0xe94   : > { %v11117_v35 = vrot.slane %v11050_v5, 1 }
 0xe95   : > { %v11052_v60 = vpop.f32.mrf.mxu0  ;;  %v11112_v1 = vadd.f32 %v11048_v56, %v10955_v41 }
 0xe96   : > { %v11113_v29 = vadd.f32 %v11052_v60, %v10956_v25 }
 0xe97   : > { %v11054_v31 = vpop.f32.mrf.mxu0 }
 0xe98   : > { %v11118_v24 = vrot.slane %v11054_v31, 1 }
 0xe99   : > { %v11058_v8 = vpop.f32.mrf.mxu0 }
 0xe9a   : > { %v11119_v4 = vsel %vm434_vm3, %v11117_v35, %v11118_v24 }
 0xe9b   : > { %v11124_v55 = vadd.f32 %v11119_v4, %v11112_v1  ;;  %v11059_v6 = vpop.f32.mrf.mxu0 }
 0xe9c   : > { %v11120_v12 = vrot.slane %v11059_v6, 1 }
 0xe9d   : > { %v11136_v52 = vadd.f32 %v11131_v32, %v11124_v55  ;;  %v11061_v28 = vpop.f32.mrf.mxu0 }
 0xe9e   : > { %v11121_v48 = vsel %vm434_vm3, %v11118_v24, %v11120_v12 }
 0xe9f   : > { %v11125_v9 = vadd.f32 %v11121_v48, %v11113_v29  ;;  %v11062_v43 = vpop.f32.mrf.mxu0  ;;  %v11167_v23 = vadd.f32 %v12516_v18, %v11136_v52 }
 0xea1   : > { %v11137_v36 = vadd.f32 %v11133_v58, %v11125_v9  ;;  %v11169_v7 = vmax.f32 %v11167_v23, 0.0 }
 0xea3   : > { %v11168_v37 = vadd.f32 %v12516_v18, %v11137_v36 }
 0xea5   : > { %v11170_v30 = vmax.f32 %v11168_v37, 0.0 }
 0xea7   : > { %v11171_v62 = vpack.c.bf16 %v11170_v30, %v11169_v7 }
 0xea9   : > { %13568 = vmatmul.mubr.bf16.vlgmr.msra.gmra.mxu0 %v11171_v62 }
 0xf69   : > { %v11277_v22 = vpop.f32.mrf.mxu0 }
 0xf6a   : > { %v11278_v11 = vadd.f32 %v12517_v21, %v11277_v22 }
 0xf6b   : > { %v13569_v16 = vpop.f32.mrf.mxu0 }
 0xf6c   : > { %12526 = vst [vmem:[%s14569_s9 + $0xf0] sm:$0xff] %v11278_v11 }
 0xf6d   : > { %v11280_v49 = vpop.f32.mrf.mxu0 }
 0xf6e   : > { %v11281_v14 = vadd.f32 %v12517_v21, %v11280_v49 }
 0xf6f   : > { %v13570_v47 = vpop.f32.mrf.mxu0 }
 0xf70   : > { %12527 = vst [vmem:[%s14569_s9 + $0xf8] sm:$0xff] %v11281_v14 }
 0xf71 PF: > { %s15_s20 = sadd.s32 1, %s14085_s20   ;;  %s17075_s18 = smov %s14081_s19 }
 0xf72   : > { %p12_p5 = scmp.ge.s32.totalorder %s15_s20, 4   ;;  %s17076_s19 = smov %s17078_s21 }
 0xf74   :  { %14 = sbr.rel (!%p12_p5) target bundleno = 2 (0x2), region = 344 }

</bundles_post_ra>
